<compile_context>
chip_gen: v6e
topology: v6e:2x2x1
jax: 0.10.0
libtpu: 0.0.40
codegen_flags: <defaults>
</compile_context>

<pallas_src>
import functools
import math

import jax
import jax.numpy as jnp
from jax.experimental import pallas as pl
from jax.experimental.pallas import tpu as pltpu


# --------------------------- generation-aware tiling ------------------------

def _default_vmem_limit():
    """~48 MiB on 64 MiB parts (v7x-class), ~96 MiB on 128 MiB parts (v5e/v6e)."""
    try:
        cap = int(pltpu.get_tpu_info().vmem_capacity_bytes)
    except Exception:
        return 48 * 1024 * 1024
    return 48 * 1024 * 1024 if cap <= 64 * 1024 * 1024 else 96 * 1024 * 1024


_VMEM_LIMIT = _default_vmem_limit()
_SMALL_VMEM = _VMEM_LIMIT <= 48 * 1024 * 1024
# v5e/v6e (128 MiB VMEM) can afford 1024-row tiles on mem-bound kernels.
_M_TILE_CANDIDATES = (512, 256, 128) if _SMALL_VMEM else (1024, 512, 256, 128)


def _pick_tile(dim, candidates=(512, 256, 128)):
    """Largest candidate dividing `dim` (>=256 preferred: feeds v6e/v7x 256^2
    MXU at full depth); falls back to the full dim."""
    for c in candidates:
        if dim % c == 0:
            return c
    return dim


def _pick_m_tile(M, candidates=_M_TILE_CANDIDATES):
    """Row tile: prefer >=2 row tiles so 'parallel' grid axes can be sharded
    across both TensorCores on v7x."""
    for c in candidates:
        if M % c == 0 and M // c >= 2:
            return c
    for c in candidates:
        if M % c == 0:
            return c
    return M


def _pad_cols(w, b, mult=128):
    """Zero-pad the output (N) dim of a weight/bias pair to a lane multiple so
    e.g. a 30522-wide LM head never falls back to a full-vocab tile."""
    n = w.shape[1]
    pad = (-n) % mult
    if pad:
        w = jnp.pad(w, ((0, 0), (0, pad)))
        b = jnp.pad(b, ((0, 0), (0, pad)))
    return w, b, n


# ---------------- fused LayerNorm + matmul (+bias / +relu) ------------------

def _ln_linear_kernel(x_ref, g_ref, bln_ref, w_ref, bias_ref, o_ref, *,
                      eps, activation):
    # LayerNorm fused into the matmul prologue (full feature dim in one K
    # tile) -> saves a full HBM round trip of the activations per LN.
    x = x_ref[...].astype(jnp.float32)
    mu = jnp.mean(x, axis=-1, keepdims=True)
    var = jnp.mean(jnp.square(x - mu), axis=-1, keepdims=True)
    xn = (x - mu) * jax.lax.rsqrt(var + eps)
    xn = xn * g_ref[...].astype(jnp.float32) + bln_ref[...].astype(jnp.float32)
    y = jnp.dot(xn.astype(w_ref.dtype), w_ref[...],
                preferred_element_type=jnp.float32)
    y = y + bias_ref[...].astype(jnp.float32)
    if activation == "relu":
        y = jnp.maximum(y, 0.0)
    o_ref[...] = y.astype(o_ref.dtype)


def ln_linear(x, ln_g, ln_b, w, b, *, activation=None, eps=1e-5,
              out_dtype=jnp.bfloat16):
    """y = act(LayerNorm(x) @ w + b); K (= feature dim) handled in one tile."""
    M, C = x.shape
    assert w.shape[0] == C
    # TODO(synk): for very large C (single K tile no longer fits VMEM), fall
    # back to a standalone layernorm kernel + K-tiled matmul.
    w, b, n_real = _pad_cols(w, b)
    N = w.shape[1]
    tm = _pick_m_tile(M)
    tn = _pick_tile(N)
    grid = (M // tm, N // tn)
    bytes_accessed = (x.size * x.dtype.itemsize + w.size * w.dtype.itemsize
                      + M * N * jnp.dtype(out_dtype).itemsize)
    out = pl.pallas_call(
        functools.partial(_ln_linear_kernel, eps=eps, activation=activation),
        out_shape=jax.ShapeDtypeStruct((M, N), out_dtype),
        grid_spec=pltpu.PrefetchScalarGridSpec(
            num_scalar_prefetch=0, grid=grid,
            in_specs=[pl.BlockSpec((tm, C), lambda i, j: (i, 0)),
                      pl.BlockSpec((1, C), lambda i, j: (0, 0)),
                      pl.BlockSpec((1, C), lambda i, j: (0, 0)),
                      pl.BlockSpec((C, tn), lambda i, j: (0, j)),
                      pl.BlockSpec((1, tn), lambda i, j: (0, j))],
            out_specs=pl.BlockSpec((tm, tn), lambda i, j: (i, j))),
        compiler_params=pltpu.CompilerParams(
            dimension_semantics=("parallel", "parallel"),
            vmem_limit_bytes=_VMEM_LIMIT),
        cost_estimate=pl.CostEstimate(flops=2 * M * N * C, transcendentals=0,
                                      bytes_accessed=int(bytes_accessed)),
    )(x, ln_g, ln_b, w, b)
    return out[:, :n_real] if n_real != N else out


# -------------------- tiled matmul (+bias / +residual) ----------------------

def _linear_kernel_1k(x_ref, w_ref, bias_ref, o_ref, *, activation):
    # Single K step: no accumulator scratch / init branches.
    y = jnp.dot(x_ref[...], w_ref[...], preferred_element_type=jnp.float32)
    y = y + bias_ref[...].astype(jnp.float32)
    if activation == "relu":
        y = jnp.maximum(y, 0.0)
    o_ref[...] = y.astype(o_ref.dtype)


def _linear_res_kernel_1k(x_ref, w_ref, bias_ref, res_ref, o_ref):
    y = jnp.dot(x_ref[...], w_ref[...], preferred_element_type=jnp.float32)
    y = (y + bias_ref[...].astype(jnp.float32)
         + res_ref[...].astype(jnp.float32))
    o_ref[...] = y.astype(o_ref.dtype)


def _linear_kernel(x_ref, w_ref, bias_ref, o_ref, acc_ref, *, activation):
    @pl.when(pl.program_id(2) == 0)
    def _():
        acc_ref[...] = jnp.zeros_like(acc_ref)

    acc_ref[...] += jnp.dot(x_ref[...], w_ref[...],
                            preferred_element_type=jnp.float32)

    @pl.when(pl.program_id(2) == pl.num_programs(2) - 1)
    def _():
        y = acc_ref[...] + bias_ref[...].astype(jnp.float32)
        if activation == "relu":
            y = jnp.maximum(y, 0.0)
        o_ref[...] = y.astype(o_ref.dtype)


def _linear_res_kernel(x_ref, w_ref, bias_ref, res_ref, o_ref, acc_ref):
    @pl.when(pl.program_id(2) == 0)
    def _():
        acc_ref[...] = jnp.zeros_like(acc_ref)

    acc_ref[...] += jnp.dot(x_ref[...], w_ref[...],
                            preferred_element_type=jnp.float32)

    @pl.when(pl.program_id(2) == pl.num_programs(2) - 1)
    def _():
        y = (acc_ref[...] + bias_ref[...].astype(jnp.float32)
             + res_ref[...].astype(jnp.float32))
        o_ref[...] = y.astype(o_ref.dtype)


def linear(x, w, b, *, residual=None, activation=None, out_dtype=jnp.bfloat16):
    """y = act(x @ w + b) [+ residual], tiled over (M, N[, K])."""
    M, K = x.shape
    assert w.shape[0] == K
    w, b, n_real = _pad_cols(w, b)
    N = w.shape[1]
    if residual is not None and N != n_real:
        residual = jnp.pad(residual, ((0, 0), (0, N - n_real)))
    tm, tn, tk = _pick_m_tile(M), _pick_tile(N), _pick_tile(K)
    k_steps = K // tk

    bytes_accessed = (x.size * x.dtype.itemsize + w.size * w.dtype.itemsize
                      + M * N * jnp.dtype(out_dtype).itemsize
                      + (residual.size * residual.dtype.itemsize
                         if residual is not None else 0))
    cost = pl.CostEstimate(flops=2 * M * N * K, transcendentals=0,
                           bytes_accessed=int(bytes_accessed))

    if k_steps == 1:
        in_specs = [pl.BlockSpec((tm, K), lambda i, j: (i, 0)),
                    pl.BlockSpec((K, tn), lambda i, j: (0, j)),
                    pl.BlockSpec((1, tn), lambda i, j: (0, j))]
        operands = [x, w, b]
        if residual is None:
            kernel = functools.partial(_linear_kernel_1k, activation=activation)
        else:
            assert activation is None
            kernel = _linear_res_kernel_1k
            in_specs.append(pl.BlockSpec((tm, tn), lambda i, j: (i, j)))
            operands.append(residual)
        out = pl.pallas_call(
            kernel,
            out_shape=jax.ShapeDtypeStruct((M, N), out_dtype),
            grid_spec=pltpu.PrefetchScalarGridSpec(
                num_scalar_prefetch=0, grid=(M // tm, N // tn),
                in_specs=in_specs,
                out_specs=pl.BlockSpec((tm, tn), lambda i, j: (i, j))),
            compiler_params=pltpu.CompilerParams(
                dimension_semantics=("parallel", "parallel"),
                vmem_limit_bytes=_VMEM_LIMIT),
            cost_estimate=cost,
        )(*operands)
    else:
        in_specs = [pl.BlockSpec((tm, tk), lambda i, j, k: (i, k)),
                    pl.BlockSpec((tk, tn), lambda i, j, k: (k, j)),
                    pl.BlockSpec((1, tn), lambda i, j, k: (0, j))]
        operands = [x, w, b]
        if residual is None:
            kernel = functools.partial(_linear_kernel, activation=activation)
        else:
            assert activation is None
            kernel = _linear_res_kernel
            in_specs.append(pl.BlockSpec((tm, tn), lambda i, j, k: (i, j)))
            operands.append(residual)
        out = pl.pallas_call(
            kernel,
            out_shape=jax.ShapeDtypeStruct((M, N), out_dtype),
            grid_spec=pltpu.PrefetchScalarGridSpec(
                num_scalar_prefetch=0, grid=(M // tm, N // tn, k_steps),
                in_specs=in_specs,
                out_specs=pl.BlockSpec((tm, tn), lambda i, j, k: (i, j)),
                scratch_shapes=[pltpu.VMEM((tm, tn), jnp.float32)]),
            compiler_params=pltpu.CompilerParams(
                dimension_semantics=("parallel", "parallel", "arbitrary"),
                vmem_limit_bytes=_VMEM_LIMIT),
            cost_estimate=cost,
        )(*operands)
    return out[:, :n_real] if n_real != N else out


# --------------------------- flash-style attention --------------------------

def _flash_attn_kernel(q_ref, k_ref, v_ref, o_ref, m_sc, l_sc, acc_sc, *,
                       num_heads, head_dim, scale):
    ki = pl.program_id(2)
    H, D = num_heads, head_dim

    @pl.when(ki == 0)
    def _():
        m_sc[...] = jnp.full_like(m_sc, -jnp.inf)
        l_sc[...] = jnp.zeros_like(l_sc)
        acc_sc[...] = jnp.zeros_like(acc_sc)

    # q/k/v blocks arrive lane-dense as (1, t, H*D); per-head split happens on
    # VMEM-resident tiles.  Fold the 1/sqrt(D) scale into q (4x smaller than
    # the score tensor).
    q = q_ref[0] * jnp.asarray(scale, dtype=q_ref.dtype)   # (tq,  H*D) bf16
    k = k_ref[0]                                           # (tkv, H*D) bf16
    v = v_ref[0]

    m_prev = m_sc[...]          # (tq, H) f32
    l_prev = l_sc[...]          # (tq, H) f32
    acc_prev = acc_sc[...]      # (tq, H*D) f32 (lane-dense)

    acc_parts, m_parts, l_parts = [], [], []
    for h in range(H):          # static unroll over heads
        lo = h * D
        qh = q[:, lo:lo + D]
        kh = k[:, lo:lo + D]
        vh = v[:, lo:lo + D]
        s = jnp.einsum("qd,kd->qk", qh, kh,
                       preferred_element_type=jnp.float32)          # (tq, tkv)
        m_h_prev = m_prev[:, h:h + 1]
        m_h = jnp.maximum(m_h_prev, s.max(axis=-1, keepdims=True))
        alpha = jnp.exp(m_h_prev - m_h)
        p = jnp.exp(s - m_h)
        l_h = alpha * l_prev[:, h:h + 1] + p.sum(axis=-1, keepdims=True)
        pv = jnp.dot(p.astype(v.dtype), vh,
                     preferred_element_type=jnp.float32)             # (tq, D)
        acc_parts.append(alpha * acc_prev[:, lo:lo + D] + pv)
        m_parts.append(m_h)
        l_parts.append(l_h)

    acc_sc[...] = jnp.concatenate(acc_parts, axis=-1)   # dense (tq, H*D) store
    m_sc[...] = jnp.concatenate(m_parts, axis=-1)
    l_sc[...] = jnp.concatenate(l_parts, axis=-1)

    @pl.when(ki == pl.num_programs(2) - 1)
    def _():
        acc = acc_sc[...]
        inv = pl.reciprocal(l_sc[...], approx=False)     # (tq, H) exact
        out_parts = [acc[:, h * D:(h + 1) * D] * inv[:, h:h + 1]
                     for h in range(H)]
        o_ref[0] = jnp.concatenate(out_parts, axis=-1).astype(o_ref.dtype)


def flash_attention(qkv, num_heads, head_dim, *, out_dtype=jnp.bfloat16):
    """qkv: (B, T, 3*H*D) packed [Q|K|V] along the last dim -> (B, T, H*D)."""
    B, T, threeHD = qkv.shape
    HD = num_heads * head_dim
    assert threeHD == 3 * HD
    tq = _pick_tile(T, (256, 128))
    tkv = _pick_tile(T, (512, 256, 128))   # bigger KV tiles: fewer rescale steps
    scale = 1.0 / math.sqrt(head_dim)
    grid = (B, T // tq, T // tkv)
    kernel = functools.partial(_flash_attn_kernel, num_heads=num_heads,
                               head_dim=head_dim, scale=scale)
    # TODO(synk): no padding mask — the reference block (source not provided)
    # is assumed to attend over all T positions (full-length sequences).
    return pl.pallas_call(
        kernel,
        out_shape=jax.ShapeDtypeStruct((B, T, HD), out_dtype),
        grid_spec=pltpu.PrefetchScalarGridSpec(
            num_scalar_prefetch=0, grid=grid,
            in_specs=[
                pl.BlockSpec((1, tq, HD), lambda b, qi, ki: (b, qi, 0)),   # Q cols
                pl.BlockSpec((1, tkv, HD), lambda b, qi, ki: (b, ki, 1)),  # K cols
                pl.BlockSpec((1, tkv, HD), lambda b, qi, ki: (b, ki, 2)),  # V cols
            ],
            out_specs=pl.BlockSpec((1, tq, HD), lambda b, qi, ki: (b, qi, 0)),
            scratch_shapes=[pltpu.VMEM((tq, num_heads), jnp.float32),   # m
                            pltpu.VMEM((tq, num_heads), jnp.float32),   # l
                            pltpu.VMEM((tq, HD), jnp.float32)]),        # acc
        compiler_params=pltpu.CompilerParams(
            dimension_semantics=("parallel", "parallel", "arbitrary"),
            vmem_limit_bytes=_VMEM_LIMIT),
    )(qkv, qkv, qkv)


# ------------------------------ model definition ----------------------------

def init_params(key, cfg):
    C, V = cfg["n_embed"], cfg["vocab_size"]
    H, D = cfg["num_heads"], cfg["head_size"]
    HD = H * D
    keys = iter(jax.random.split(key, 4 + 6 * cfg["n_layer"]))

    def normal(k, shape, dtype=jnp.bfloat16):
        return (0.02 * jax.random.normal(k, shape, dtype=jnp.float32)).astype(dtype)

    params = {
        "tok_emb": normal(next(keys), (V, C), jnp.float32),
        # matches the module: nn.Embedding(vocab_size, n_embed) for positions
        "pos_emb": normal(next(keys), (V, C), jnp.float32),
        "ln_f_g": jnp.ones((1, C), jnp.float32),
        "ln_f_b": jnp.zeros((1, C), jnp.float32),
        "head_w": normal(next(keys), (C, V)),
        "head_b": jnp.zeros((1, V), jnp.float32),
        "blocks": [],
    }
    for _ in range(cfg["n_layer"]):
        layer = (
            jnp.ones((1, C), jnp.float32), jnp.zeros((1, C), jnp.float32),        # ln1
            normal(next(keys), (C, 3 * HD)), jnp.zeros((1, 3 * HD), jnp.float32),  # Wqkv
            normal(next(keys), (HD, C)), jnp.zeros((1, C), jnp.float32),           # Wo
            jnp.ones((1, C), jnp.float32), jnp.zeros((1, C), jnp.float32),         # ln2
            normal(next(keys), (C, 4 * C)), jnp.zeros((1, 4 * C), jnp.float32),    # W1
            normal(next(keys), (4 * C, C)), jnp.zeros((1, C), jnp.float32),        # W2
        )
        params["blocks"].append(layer)
    return params


def encoder_block(x, layer, B, T, num_heads, head_size):
    """x: (B*T, C) bf16 residual stream."""
    M, C = x.shape
    H, D = num_heads, head_size
    HD = H * D
    (g1, b1, wqkv, bqkv, wo, bo, g2, b2, w1, bf1, w2, bf2) = layer

    # ---- multi-head self-attention (pre-norm, bidirectional) ----
    # LN1 fused into the QKV matmul; attention consumes the packed layout
    # directly (reshape (M,3HD)->(B,T,3HD) is free, no transposes).
    qkv = ln_linear(x, g1, b1, wqkv, bqkv)                      # (M, 3HD) bf16
    attn = flash_attention(qkv.reshape(B, T, 3 * HD), H, D)     # (B, T, HD) bf16
    attn = attn.reshape(M, HD)                                  # free reshape
    x = linear(attn, wo, bo, residual=x, out_dtype=jnp.bfloat16)

    # ---- feed-forward (4x expansion, ReLU); LN2 fused into first matmul ----
    hdn = ln_linear(x, g2, b2, w1, bf1, activation="relu")      # (M, 4C) bf16
    x = linear(hdn, w2, bf2, residual=x, out_dtype=jnp.bfloat16)
    return x


def bert_forward(inputs, params, cfg, targets=None):
    """inputs: (B, T) int32 -> (logits (B, T, vocab_size), loss)."""
    B, T = inputs.shape
    C = cfg["n_embed"]
    # Embedding gathers + add are data-dependent glue: plain JAX (XLA fuses).
    tok_emb = jnp.take(params["tok_emb"], inputs, axis=0)       # (B, T, C) f32
    pos_emb = params["pos_emb"][:T]                             # (T, C)
    x = (tok_emb + pos_emb[None, :, :]).reshape(B * T, C).astype(jnp.bfloat16)

    for layer in params["blocks"]:
        x = encoder_block(x, layer, B, T, cfg["num_heads"], cfg["head_size"])

    # final LN fused into the (vocab-tiled, lane-padded) LM head
    logits = ln_linear(x, params["ln_f_g"], params["ln_f_b"],
                       params["head_w"], params["head_b"],
                       out_dtype=jnp.float32)
    logits = logits.reshape(B, T, cfg["vocab_size"])

    loss = None
    if targets is not None:
        lg = logits.reshape(B * T, -1)
        tg = targets.reshape(B * T)
        logz = jax.nn.logsumexp(lg, axis=-1)
        picked = jnp.take_along_axis(lg, tg[:, None], axis=-1)[:, 0]
        loss = jnp.mean(logz - picked)
    return logits, loss


# ------------------------------------ main ----------------------------------

if __name__ == "__main__":
    # Small but lane-dense config: every trailing dim is a multiple of 128.
    cfg = dict(vocab_size=256, n_embed=128, block_size=128,
               num_heads=4, head_size=32, n_layer=2,
               head_dropout=0.0, multi_head_dropout=0.0)
    assert cfg["num_heads"] * cfg["head_size"] == cfg["n_embed"]

    params = init_params(jax.random.PRNGKey(0), cfg)

    B, T = 2, cfg["block_size"]
    inputs = jax.random.randint(jax.random.PRNGKey(1), (B, T), 0,
                                cfg["vocab_size"], dtype=jnp.int32)

    fwd = jax.jit(lambda inp, prm: bert_forward(inp, prm, cfg))
    logits, loss = fwd(inputs, params)
    logits = jax.block_until_ready(logits)

    assert logits.shape == (B, T, cfg["vocab_size"]), logits.shape
    assert logits.dtype == jnp.float32
    assert bool(jnp.all(jnp.isfinite(logits)))
    print("KERNEL_OK")
</pallas_src>

<mosaic_0001>
module attributes {stable_mosaic.version = 11 : i64} {
  func.func @_flash_attn_kernel(%arg0: i32, %arg1: i32, %arg2: i32, %arg3: memref<1x128x128xbf16, #tpu.memory_space<vmem>>, %arg4: memref<1x128x128xbf16, #tpu.memory_space<vmem>>, %arg5: memref<1x128x128xbf16, #tpu.memory_space<vmem>>, %arg6: memref<1x128x128xbf16, #tpu.memory_space<vmem>>, %arg7: memref<128x4xf32, #tpu.memory_space<vmem>>, %arg8: memref<128x4xf32, #tpu.memory_space<vmem>>, %arg9: memref<128x128xf32, #tpu.memory_space<vmem>>) attributes {dimension_semantics = [#tpu.dimension_semantics<parallel>, #tpu.dimension_semantics<parallel>, #tpu.dimension_semantics<arbitrary>], iteration_bounds = array<i64: 2, 1, 1>, scalar_prefetch = 0 : i64, scratch_operands = 3 : i64, tpu.core_type = #tpu.core_type<tc>, window_params = [{transform_indices = @transform_0, window_bounds = array<i64: 1, 128, 128>}, {transform_indices = @transform_1, window_bounds = array<i64: 1, 128, 128>}, {transform_indices = @transform_2, window_bounds = array<i64: 1, 128, 128>}, {transform_indices = @transform_3, window_bounds = array<i64: 1, 128, 128>}]} {
    %c0_i32 = arith.constant 0 : i32
    %0 = arith.cmpi eq, %arg2, %c0_i32 : i32
    %1 = arith.extui %0 : i1 to i32
    %c0_i32_0 = arith.constant 0 : i32
    %2 = arith.cmpi ne, %1, %c0_i32_0 : i32
    scf.if %2 {
      %cst_39 = arith.constant 0xFF800000 : f32
      %119 = vector.broadcast %cst_39 : f32 to vector<128x4xf32>
      %c0_40 = arith.constant 0 : index
      %c0_41 = arith.constant 0 : index
      %120 = vector.load %arg7[%c0_40, %c0_41] : memref<128x4xf32, #tpu.memory_space<vmem>>, vector<128x4xf32>
      tpu.vector_store %arg7[%c0_40, %c0_41], %119 {strides = array<i32>} : memref<128x4xf32, #tpu.memory_space<vmem>>, vector<128x4xf32>,
      %cst_42 = arith.constant 0.000000e+00 : f32
      %121 = vector.broadcast %cst_42 : f32 to vector<128x4xf32>
      %c0_43 = arith.constant 0 : index
      %c0_44 = arith.constant 0 : index
      %122 = vector.load %arg8[%c0_43, %c0_44] : memref<128x4xf32, #tpu.memory_space<vmem>>, vector<128x4xf32>
      tpu.vector_store %arg8[%c0_43, %c0_44], %121 {strides = array<i32>} : memref<128x4xf32, #tpu.memory_space<vmem>>, vector<128x4xf32>,
      %cst_45 = arith.constant 0.000000e+00 : f32
      %123 = vector.broadcast %cst_45 : f32 to vector<128x128xf32>
      %c0_46 = arith.constant 0 : index
      %c0_47 = arith.constant 0 : index
      %124 = vector.load %arg9[%c0_46, %c0_47] : memref<128x128xf32, #tpu.memory_space<vmem>>, vector<128x128xf32>
      tpu.vector_store %arg9[%c0_46, %c0_47], %123 {strides = array<i32>} : memref<128x128xf32, #tpu.memory_space<vmem>>, vector<128x128xf32>,
    } else {
    }
    %c0 = arith.constant 0 : index
    %c0_1 = arith.constant 0 : index
    %c0_2 = arith.constant 0 : index
    %3 = vector.load %arg3[%c0, %c0_1, %c0_2] : memref<1x128x128xbf16, #tpu.memory_space<vmem>>, vector<1x128x128xbf16>
    %4 = vector.shape_cast %3 : vector<1x128x128xbf16> to vector<128x128xbf16>
    %cst = arith.constant 1.767580e-01 : bf16
    %5 = vector.broadcast %cst : bf16 to vector<128x128xbf16>
    %6 = arith.mulf %4, %5 : vector<128x128xbf16>
    %c0_3 = arith.constant 0 : index
    %c0_4 = arith.constant 0 : index
    %c0_5 = arith.constant 0 : index
    %7 = vector.load %arg4[%c0_3, %c0_4, %c0_5] : memref<1x128x128xbf16, #tpu.memory_space<vmem>>, vector<1x128x128xbf16>
    %8 = vector.shape_cast %7 : vector<1x128x128xbf16> to vector<128x128xbf16>
    %c0_6 = arith.constant 0 : index
    %c0_7 = arith.constant 0 : index
    %c0_8 = arith.constant 0 : index
    %9 = vector.load %arg5[%c0_6, %c0_7, %c0_8] : memref<1x128x128xbf16, #tpu.memory_space<vmem>>, vector<1x128x128xbf16>
    %10 = vector.shape_cast %9 : vector<1x128x128xbf16> to vector<128x128xbf16>
    %c0_9 = arith.constant 0 : index
    %c0_10 = arith.constant 0 : index
    %11 = vector.load %arg7[%c0_9, %c0_10] : memref<128x4xf32, #tpu.memory_space<vmem>>, vector<128x4xf32>
    %c0_11 = arith.constant 0 : index
    %c0_12 = arith.constant 0 : index
    %12 = vector.load %arg8[%c0_11, %c0_12] : memref<128x4xf32, #tpu.memory_space<vmem>>, vector<128x4xf32>
    %c0_13 = arith.constant 0 : index
    %c0_14 = arith.constant 0 : index
    %13 = vector.load %arg9[%c0_13, %c0_14] : memref<128x128xf32, #tpu.memory_space<vmem>>, vector<128x128xf32>
    %14 = vector.extract_strided_slice %6 {offsets = [0, 0], sizes = [128, 32], strides = [1, 1]} : vector<128x128xbf16> to vector<128x32xbf16>
    %15 = vector.extract_strided_slice %8 {offsets = [0, 0], sizes = [128, 32], strides = [1, 1]} : vector<128x128xbf16> to vector<128x32xbf16>
    %16 = vector.extract_strided_slice %10 {offsets = [0, 0], sizes = [128, 32], strides = [1, 1]} : vector<128x128xbf16> to vector<128x32xbf16>
    "tpu.trace_start"() <{level = 10 : i32, message = "qd,kd->qk"}> : () -> ()
    %cst_15 = arith.constant dense<0.000000e+00> : vector<128x128xf32>
    %17 = tpu.matmul %14, %15, %cst_15 {dimension_numbers = #tpu.dot_dimension_numbers<[1], [1], [0], [0], [0, 0, 1, 0], [], []>} : vector<128x32xbf16>, vector<128x32xbf16>, vector<128x128xf32> -> vector<128x128xf32>
    "tpu.trace_stop"() : () -> ()
    %18 = vector.extract_strided_slice %11 {offsets = [0, 0], sizes = [128, 1], strides = [1, 1]} : vector<128x4xf32> to vector<128x1xf32>
    %cst_16 = arith.constant dense<0xFF800000> : vector<128xf32>
    %19 = vector.multi_reduction <maximumf>, %17, %cst_16 [1] : vector<128x128xf32> to vector<128xf32>
    %20 = vector.shape_cast %19 : vector<128xf32> to vector<128x1xf32>
    %21 = arith.maximumf %18, %20 : vector<128x1xf32>
    %22 = arith.subf %18, %21 : vector<128x1xf32>
    %23 = math.exp %22 : vector<128x1xf32>
    %24 = vector.broadcast %21 : vector<128x1xf32> to vector<128x128xf32>
    %25 = arith.subf %17, %24 : vector<128x128xf32>
    %26 = math.exp %25 : vector<128x128xf32>
    %27 = vector.extract_strided_slice %12 {offsets = [0, 0], sizes = [128, 1], strides = [1, 1]} : vector<128x4xf32> to vector<128x1xf32>
    %28 = arith.mulf %23, %27 : vector<128x1xf32>
    %cst_17 = arith.constant dense<0.000000e+00> : vector<128xf32>
    %29 = vector.multi_reduction <add>, %26, %cst_17 [1] : vector<128x128xf32> to vector<128xf32>
    %30 = vector.shape_cast %29 : vector<128xf32> to vector<128x1xf32>
    %31 = arith.addf %28, %30 : vector<128x1xf32>
    %32 = arith.truncf %26 : vector<128x128xf32> to vector<128x128xbf16>
    %cst_18 = arith.constant dense<0.000000e+00> : vector<128x32xf32>
    %33 = tpu.matmul %32, %16, %cst_18 {dimension_numbers = #tpu.dot_dimension_numbers<[1], [0], [0], [1], [0, 0, 1, 1], [], []>} : vector<128x128xbf16>, vector<128x32xbf16>, vector<128x32xf32> -> vector<128x32xf32>
    %34 = vector.extract_strided_slice %13 {offsets = [0, 0], sizes = [128, 32], strides = [1, 1]} : vector<128x128xf32> to vector<128x32xf32>
    %35 = vector.broadcast %23 : vector<128x1xf32> to vector<128x32xf32>
    %36 = arith.mulf %35, %34 : vector<128x32xf32>
    %37 = arith.addf %36, %33 : vector<128x32xf32>
    %38 = vector.extract_strided_slice %6 {offsets = [0, 32], sizes = [128, 32], strides = [1, 1]} : vector<128x128xbf16> to vector<128x32xbf16>
    %39 = vector.extract_strided_slice %8 {offsets = [0, 32], sizes = [128, 32], strides = [1, 1]} : vector<128x128xbf16> to vector<128x32xbf16>
    %40 = vector.extract_strided_slice %10 {offsets = [0, 32], sizes = [128, 32], strides = [1, 1]} : vector<128x128xbf16> to vector<128x32xbf16>
    "tpu.trace_start"() <{level = 10 : i32, message = "qd,kd->qk"}> : () -> ()
    %cst_19 = arith.constant dense<0.000000e+00> : vector<128x128xf32>
    %41 = tpu.matmul %38, %39, %cst_19 {dimension_numbers = #tpu.dot_dimension_numbers<[1], [1], [0], [0], [0, 0, 1, 0], [], []>} : vector<128x32xbf16>, vector<128x32xbf16>, vector<128x128xf32> -> vector<128x128xf32>
    "tpu.trace_stop"() : () -> ()
    %42 = vector.extract_strided_slice %11 {offsets = [0, 1], sizes = [128, 1], strides = [1, 1]} : vector<128x4xf32> to vector<128x1xf32>
    %cst_20 = arith.constant dense<0xFF800000> : vector<128xf32>
    %43 = vector.multi_reduction <maximumf>, %41, %cst_20 [1] : vector<128x128xf32> to vector<128xf32>
    %44 = vector.shape_cast %43 : vector<128xf32> to vector<128x1xf32>
    %45 = arith.maximumf %42, %44 : vector<128x1xf32>
    %46 = arith.subf %42, %45 : vector<128x1xf32>
    %47 = math.exp %46 : vector<128x1xf32>
    %48 = vector.broadcast %45 : vector<128x1xf32> to vector<128x128xf32>
    %49 = arith.subf %41, %48 : vector<128x128xf32>
    %50 = math.exp %49 : vector<128x128xf32>
    %51 = vector.extract_strided_slice %12 {offsets = [0, 1], sizes = [128, 1], strides = [1, 1]} : vector<128x4xf32> to vector<128x1xf32>
    %52 = arith.mulf %47, %51 : vector<128x1xf32>
    %cst_21 = arith.constant dense<0.000000e+00> : vector<128xf32>
    %53 = vector.multi_reduction <add>, %50, %cst_21 [1] : vector<128x128xf32> to vector<128xf32>
    %54 = vector.shape_cast %53 : vector<128xf32> to vector<128x1xf32>
    %55 = arith.addf %52, %54 : vector<128x1xf32>
    %56 = arith.truncf %50 : vector<128x128xf32> to vector<128x128xbf16>
    %cst_22 = arith.constant dense<0.000000e+00> : vector<128x32xf32>
    %57 = tpu.matmul %56, %40, %cst_22 {dimension_numbers = #tpu.dot_dimension_numbers<[1], [0], [0], [1], [0, 0, 1, 1], [], []>} : vector<128x128xbf16>, vector<128x32xbf16>, vector<128x32xf32> -> vector<128x32xf32>
    %58 = vector.extract_strided_slice %13 {offsets = [0, 32], sizes = [128, 32], strides = [1, 1]} : vector<128x128xf32> to vector<128x32xf32>
    %59 = vector.broadcast %47 : vector<128x1xf32> to vector<128x32xf32>
    %60 = arith.mulf %59, %58 : vector<128x32xf32>
    %61 = arith.addf %60, %57 : vector<128x32xf32>
    %62 = vector.extract_strided_slice %6 {offsets = [0, 64], sizes = [128, 32], strides = [1, 1]} : vector<128x128xbf16> to vector<128x32xbf16>
    %63 = vector.extract_strided_slice %8 {offsets = [0, 64], sizes = [128, 32], strides = [1, 1]} : vector<128x128xbf16> to vector<128x32xbf16>
    %64 = vector.extract_strided_slice %10 {offsets = [0, 64], sizes = [128, 32], strides = [1, 1]} : vector<128x128xbf16> to vector<128x32xbf16>
    "tpu.trace_start"() <{level = 10 : i32, message = "qd,kd->qk"}> : () -> ()
    %cst_23 = arith.constant dense<0.000000e+00> : vector<128x128xf32>
    %65 = tpu.matmul %62, %63, %cst_23 {dimension_numbers = #tpu.dot_dimension_numbers<[1], [1], [0], [0], [0, 0, 1, 0], [], []>} : vector<128x32xbf16>, vector<128x32xbf16>, vector<128x128xf32> -> vector<128x128xf32>
    "tpu.trace_stop"() : () -> ()
    %66 = vector.extract_strided_slice %11 {offsets = [0, 2], sizes = [128, 1], strides = [1, 1]} : vector<128x4xf32> to vector<128x1xf32>
    %cst_24 = arith.constant dense<0xFF800000> : vector<128xf32>
    %67 = vector.multi_reduction <maximumf>, %65, %cst_24 [1] : vector<128x128xf32> to vector<128xf32>
    %68 = vector.shape_cast %67 : vector<128xf32> to vector<128x1xf32>
    %69 = arith.maximumf %66, %68 : vector<128x1xf32>
    %70 = arith.subf %66, %69 : vector<128x1xf32>
    %71 = math.exp %70 : vector<128x1xf32>
    %72 = vector.broadcast %69 : vector<128x1xf32> to vector<128x128xf32>
    %73 = arith.subf %65, %72 : vector<128x128xf32>
    %74 = math.exp %73 : vector<128x128xf32>
    %75 = vector.extract_strided_slice %12 {offsets = [0, 2], sizes = [128, 1], strides = [1, 1]} : vector<128x4xf32> to vector<128x1xf32>
    %76 = arith.mulf %71, %75 : vector<128x1xf32>
    %cst_25 = arith.constant dense<0.000000e+00> : vector<128xf32>
    %77 = vector.multi_reduction <add>, %74, %cst_25 [1] : vector<128x128xf32> to vector<128xf32>
    %78 = vector.shape_cast %77 : vector<128xf32> to vector<128x1xf32>
    %79 = arith.addf %76, %78 : vector<128x1xf32>
    %80 = arith.truncf %74 : vector<128x128xf32> to vector<128x128xbf16>
    %cst_26 = arith.constant dense<0.000000e+00> : vector<128x32xf32>
    %81 = tpu.matmul %80, %64, %cst_26 {dimension_numbers = #tpu.dot_dimension_numbers<[1], [0], [0], [1], [0, 0, 1, 1], [], []>} : vector<128x128xbf16>, vector<128x32xbf16>, vector<128x32xf32> -> vector<128x32xf32>
    %82 = vector.extract_strided_slice %13 {offsets = [0, 64], sizes = [128, 32], strides = [1, 1]} : vector<128x128xf32> to vector<128x32xf32>
    %83 = vector.broadcast %71 : vector<128x1xf32> to vector<128x32xf32>
    %84 = arith.mulf %83, %82 : vector<128x32xf32>
    %85 = arith.addf %84, %81 : vector<128x32xf32>
    %86 = vector.extract_strided_slice %6 {offsets = [0, 96], sizes = [128, 32], strides = [1, 1]} : vector<128x128xbf16> to vector<128x32xbf16>
    %87 = vector.extract_strided_slice %8 {offsets = [0, 96], sizes = [128, 32], strides = [1, 1]} : vector<128x128xbf16> to vector<128x32xbf16>
    %88 = vector.extract_strided_slice %10 {offsets = [0, 96], sizes = [128, 32], strides = [1, 1]} : vector<128x128xbf16> to vector<128x32xbf16>
    "tpu.trace_start"() <{level = 10 : i32, message = "qd,kd->qk"}> : () -> ()
    %cst_27 = arith.constant dense<0.000000e+00> : vector<128x128xf32>
    %89 = tpu.matmul %86, %87, %cst_27 {dimension_numbers = #tpu.dot_dimension_numbers<[1], [1], [0], [0], [0, 0, 1, 0], [], []>} : vector<128x32xbf16>, vector<128x32xbf16>, vector<128x128xf32> -> vector<128x128xf32>
    "tpu.trace_stop"() : () -> ()
    %90 = vector.extract_strided_slice %11 {offsets = [0, 3], sizes = [128, 1], strides = [1, 1]} : vector<128x4xf32> to vector<128x1xf32>
    %cst_28 = arith.constant dense<0xFF800000> : vector<128xf32>
    %91 = vector.multi_reduction <maximumf>, %89, %cst_28 [1] : vector<128x128xf32> to vector<128xf32>
    %92 = vector.shape_cast %91 : vector<128xf32> to vector<128x1xf32>
    %93 = arith.maximumf %90, %92 : vector<128x1xf32>
    %94 = arith.subf %90, %93 : vector<128x1xf32>
    %95 = math.exp %94 : vector<128x1xf32>
    %96 = vector.broadcast %93 : vector<128x1xf32> to vector<128x128xf32>
    %97 = arith.subf %89, %96 : vector<128x128xf32>
    %98 = math.exp %97 : vector<128x128xf32>
    %99 = vector.extract_strided_slice %12 {offsets = [0, 3], sizes = [128, 1], strides = [1, 1]} : vector<128x4xf32> to vector<128x1xf32>
    %100 = arith.mulf %95, %99 : vector<128x1xf32>
    %cst_29 = arith.constant dense<0.000000e+00> : vector<128xf32>
    %101 = vector.multi_reduction <add>, %98, %cst_29 [1] : vector<128x128xf32> to vector<128xf32>
    %102 = vector.shape_cast %101 : vector<128xf32> to vector<128x1xf32>
    %103 = arith.addf %100, %102 : vector<128x1xf32>
    %104 = arith.truncf %98 : vector<128x128xf32> to vector<128x128xbf16>
    %cst_30 = arith.constant dense<0.000000e+00> : vector<128x32xf32>
    %105 = tpu.matmul %104, %88, %cst_30 {dimension_numbers = #tpu.dot_dimension_numbers<[1], [0], [0], [1], [0, 0, 1, 1], [], []>} : vector<128x128xbf16>, vector<128x32xbf16>, vector<128x32xf32> -> vector<128x32xf32>
    %106 = vector.extract_strided_slice %13 {offsets = [0, 96], sizes = [128, 32], strides = [1, 1]} : vector<128x128xf32> to vector<128x32xf32>
    %107 = vector.broadcast %95 : vector<128x1xf32> to vector<128x32xf32>
    %108 = arith.mulf %107, %106 : vector<128x32xf32>
    %109 = arith.addf %108, %105 : vector<128x32xf32>
    %110 = tpu.concatenate %37, %61, %85, %109 in 1 : vector<128x32xf32>, vector<128x32xf32>, vector<128x32xf32>, vector<128x32xf32> -> vector<128x128xf32>
    %c0_31 = arith.constant 0 : index
    %c0_32 = arith.constant 0 : index
    %111 = vector.load %arg9[%c0_31, %c0_32] : memref<128x128xf32, #tpu.memory_space<vmem>>, vector<128x128xf32>
    tpu.vector_store %arg9[%c0_31, %c0_32], %110 {strides = array<i32>} : memref<128x128xf32, #tpu.memory_space<vmem>>, vector<128x128xf32>,
    %112 = tpu.concatenate %21, %45, %69, %93 in 1 : vector<128x1xf32>, vector<128x1xf32>, vector<128x1xf32>, vector<128x1xf32> -> vector<128x4xf32>
    %c0_33 = arith.constant 0 : index
    %c0_34 = arith.constant 0 : index
    %113 = vector.load %arg7[%c0_33, %c0_34] : memref<128x4xf32, #tpu.memory_space<vmem>>, vector<128x4xf32>
    tpu.vector_store %arg7[%c0_33, %c0_34], %112 {strides = array<i32>} : memref<128x4xf32, #tpu.memory_space<vmem>>, vector<128x4xf32>,
    %114 = tpu.concatenate %31, %55, %79, %103 in 1 : vector<128x1xf32>, vector<128x1xf32>, vector<128x1xf32>, vector<128x1xf32> -> vector<128x4xf32>
    %c0_35 = arith.constant 0 : index
    %c0_36 = arith.constant 0 : index
    %115 = vector.load %arg8[%c0_35, %c0_36] : memref<128x4xf32, #tpu.memory_space<vmem>>, vector<128x4xf32>
    tpu.vector_store %arg8[%c0_35, %c0_36], %114 {strides = array<i32>} : memref<128x4xf32, #tpu.memory_space<vmem>>, vector<128x4xf32>,
    %c0_i32_37 = arith.constant 0 : i32
    %116 = arith.cmpi eq, %arg2, %c0_i32_37 : i32
    %117 = arith.extui %116 : i1 to i32
    %c0_i32_38 = arith.constant 0 : i32
    %118 = arith.cmpi ne, %117, %c0_i32_38 : i32
    scf.if %118 {
      %c0_39 = arith.constant 0 : index
      %c0_40 = arith.constant 0 : index
      %119 = vector.load %arg9[%c0_39, %c0_40] : memref<128x128xf32, #tpu.memory_space<vmem>>, vector<128x128xf32>
      %c0_41 = arith.constant 0 : index
      %c0_42 = arith.constant 0 : index
      %120 = vector.load %arg8[%c0_41, %c0_42] : memref<128x4xf32, #tpu.memory_space<vmem>>, vector<128x4xf32>
      %121 = tpu.reciprocal %120 : vector<128x4xf32> -> vector<128x4xf32>
      %122 = vector.extract_strided_slice %119 {offsets = [0, 0], sizes = [128, 32], strides = [1, 1]} : vector<128x128xf32> to vector<128x32xf32>
      %123 = vector.extract_strided_slice %121 {offsets = [0, 0], sizes = [128, 1], strides = [1, 1]} : vector<128x4xf32> to vector<128x1xf32>
      %124 = vector.broadcast %123 : vector<128x1xf32> to vector<128x32xf32>
      %125 = arith.mulf %122, %124 : vector<128x32xf32>
      %126 = vector.extract_strided_slice %119 {offsets = [0, 32], sizes = [128, 32], strides = [1, 1]} : vector<128x128xf32> to vector<128x32xf32>
      %127 = vector.extract_strided_slice %121 {offsets = [0, 1], sizes = [128, 1], strides = [1, 1]} : vector<128x4xf32> to vector<128x1xf32>
      %128 = vector.broadcast %127 : vector<128x1xf32> to vector<128x32xf32>
      %129 = arith.mulf %126, %128 : vector<128x32xf32>
      %130 = vector.extract_strided_slice %119 {offsets = [0, 64], sizes = [128, 32], strides = [1, 1]} : vector<128x128xf32> to vector<128x32xf32>
      %131 = vector.extract_strided_slice %121 {offsets = [0, 2], sizes = [128, 1], strides = [1, 1]} : vector<128x4xf32> to vector<128x1xf32>
      %132 = vector.broadcast %131 : vector<128x1xf32> to vector<128x32xf32>
      %133 = arith.mulf %130, %132 : vector<128x32xf32>
      %134 = vector.extract_strided_slice %119 {offsets = [0, 96], sizes = [128, 32], strides = [1, 1]} : vector<128x128xf32> to vector<128x32xf32>
      %135 = vector.extract_strided_slice %121 {offsets = [0, 3], sizes = [128, 1], strides = [1, 1]} : vector<128x4xf32> to vector<128x1xf32>
      %136 = vector.broadcast %135 : vector<128x1xf32> to vector<128x32xf32>
      %137 = arith.mulf %134, %136 : vector<128x32xf32>
      %138 = tpu.concatenate %125, %129, %133, %137 in 1 : vector<128x32xf32>, vector<128x32xf32>, vector<128x32xf32>, vector<128x32xf32> -> vector<128x128xf32>
      %139 = arith.truncf %138 : vector<128x128xf32> to vector<128x128xbf16>
      %c0_43 = arith.constant 0 : index
      %c0_44 = arith.constant 0 : index
      %c0_45 = arith.constant 0 : index
      %140 = vector.load %arg6[%c0_43, %c0_44, %c0_45] : memref<1x128x128xbf16, #tpu.memory_space<vmem>>, vector<1x128x128xbf16>
      %141 = vector.shape_cast %140 : vector<1x128x128xbf16> to vector<128x128xbf16>
      %142 = vector.shape_cast %139 : vector<128x128xbf16> to vector<1x128x128xbf16>
      tpu.vector_store %arg6[%c0_43, %c0_44, %c0_45], %142 {strides = array<i32>} : memref<1x128x128xbf16, #tpu.memory_space<vmem>>, vector<1x128x128xbf16>,
    } else {
    }
    return
  }
  func.func @transform_0(%arg0: i32, %arg1: i32, %arg2: i32) -> (i32, i32, i32) {
    %c0_i32 = arith.constant 0 : i32
    %c0_i32_0 = arith.constant 0 : i32
    return %arg0, %arg1, %c0_i32 : i32, i32, i32
  }
  func.func @transform_1(%arg0: i32, %arg1: i32, %arg2: i32) -> (i32, i32, i32) {
    %c1_i32 = arith.constant 1 : i32
    %c0_i32 = arith.constant 0 : i32
    return %arg0, %arg2, %c1_i32 : i32, i32, i32
  }
  func.func @transform_2(%arg0: i32, %arg1: i32, %arg2: i32) -> (i32, i32, i32) {
    %c2_i32 = arith.constant 2 : i32
    %c0_i32 = arith.constant 0 : i32
    return %arg0, %arg2, %c2_i32 : i32, i32, i32
  }
  func.func @transform_3(%arg0: i32, %arg1: i32, %arg2: i32) -> (i32, i32, i32) {
    %c0_i32 = arith.constant 0 : i32
    %c0_i32_0 = arith.constant 0 : i32
    return %arg0, %arg1, %c0_i32 : i32, i32, i32
  }
}

module attributes {stable_mosaic.version = 11 : i64} {
  func.func @_ln_linear_kernel(%arg0: i32, %arg1: i32, %arg2: memref<128x128xbf16, #tpu.memory_space<vmem>>, %arg3: memref<1x128xf32, #tpu.memory_space<vmem>>, %arg4: memref<1x128xf32, #tpu.memory_space<vmem>>, %arg5: memref<128x128xbf16, #tpu.memory_space<vmem>>, %arg6: memref<1x128xf32, #tpu.memory_space<vmem>>, %arg7: memref<128x128xbf16, #tpu.memory_space<vmem>>) attributes {dimension_semantics = [#tpu.dimension_semantics<parallel>, #tpu.dimension_semantics<parallel>], iteration_bounds = array<i64: 2, 3>, scalar_prefetch = 0 : i64, scratch_operands = 0 : i64, tpu.core_type = #tpu.core_type<tc>, window_params = [{transform_indices = @transform_0, window_bounds = array<i64: 128, 128>}, {pipeline_mode = #tpu.pipeline_mode<synchronous>, transform_indices = @transform_1, window_bounds = array<i64: 1, 128>}, {pipeline_mode = #tpu.pipeline_mode<synchronous>, transform_indices = @transform_2, window_bounds = array<i64: 1, 128>}, {transform_indices = @transform_3, window_bounds = array<i64: 128, 128>}, {transform_indices = @transform_4, window_bounds = array<i64: 1, 128>}, {transform_indices = @transform_5, window_bounds = array<i64: 128, 128>}]} {
    %c0 = arith.constant 0 : index
    %c0_0 = arith.constant 0 : index
    %0 = vector.load %arg2[%c0, %c0_0] : memref<128x128xbf16, #tpu.memory_space<vmem>>, vector<128x128xbf16>
    %1 = arith.extf %0 : vector<128x128xbf16> to vector<128x128xf32>
    %cst = arith.constant dense<0.000000e+00> : vector<128xf32>
    %2 = vector.multi_reduction <add>, %1, %cst [1] : vector<128x128xf32> to vector<128xf32>
    %3 = vector.shape_cast %2 : vector<128xf32> to vector<128x1xf32>
    %cst_1 = arith.constant 1.280000e+02 : f32
    %4 = vector.broadcast %cst_1 : f32 to vector<128x1xf32>
    %5 = arith.divf %3, %4 : vector<128x1xf32>
    %6 = vector.broadcast %5 : vector<128x1xf32> to vector<128x128xf32>
    %7 = arith.subf %1, %6 : vector<128x128xf32>
    %8 = arith.mulf %7, %7 : vector<128x128xf32>
    %cst_2 = arith.constant dense<0.000000e+00> : vector<128xf32>
    %9 = vector.multi_reduction <add>, %8, %cst_2 [1] : vector<128x128xf32> to vector<128xf32>
    %10 = vector.shape_cast %9 : vector<128xf32> to vector<128x1xf32>
    %cst_3 = arith.constant 1.280000e+02 : f32
    %11 = vector.broadcast %cst_3 : f32 to vector<128x1xf32>
    %12 = arith.divf %10, %11 : vector<128x1xf32>
    %13 = vector.broadcast %5 : vector<128x1xf32> to vector<128x128xf32>
    %14 = arith.subf %1, %13 : vector<128x128xf32>
    %cst_4 = arith.constant 9.99999974E-6 : f32
    %15 = vector.broadcast %cst_4 : f32 to vector<128x1xf32>
    %16 = arith.addf %12, %15 : vector<128x1xf32>
    %17 = math.rsqrt %16 : vector<128x1xf32>
    %18 = vector.broadcast %17 : vector<128x1xf32> to vector<128x128xf32>
    %19 = arith.mulf %14, %18 : vector<128x128xf32>
    %c0_5 = arith.constant 0 : index
    %c0_6 = arith.constant 0 : index
    %20 = vector.load %arg3[%c0_5, %c0_6] : memref<1x128xf32, #tpu.memory_space<vmem>>, vector<1x128xf32>
    %21 = vector.broadcast %20 : vector<1x128xf32> to vector<128x128xf32>
    %22 = arith.mulf %19, %21 : vector<128x128xf32>
    %c0_7 = arith.constant 0 : index
    %c0_8 = arith.constant 0 : index
    %23 = vector.load %arg4[%c0_7, %c0_8] : memref<1x128xf32, #tpu.memory_space<vmem>>, vector<1x128xf32>
    %24 = vector.broadcast %23 : vector<1x128xf32> to vector<128x128xf32>
    %25 = arith.addf %22, %24 : vector<128x128xf32>
    %26 = arith.truncf %25 : vector<128x128xf32> to vector<128x128xbf16>
    %c0_9 = arith.constant 0 : index
    %c0_10 = arith.constant 0 : index
    %27 = vector.load %arg5[%c0_9, %c0_10] : memref<128x128xbf16, #tpu.memory_space<vmem>>, vector<128x128xbf16>
    %cst_11 = arith.constant dense<0.000000e+00> : vector<128x128xf32>
    %28 = tpu.matmul %26, %27, %cst_11 {dimension_numbers = #tpu.dot_dimension_numbers<[1], [0], [0], [1], [0, 0, 1, 1], [], []>} : vector<128x128xbf16>, vector<128x128xbf16>, vector<128x128xf32> -> vector<128x128xf32>
    %c0_12 = arith.constant 0 : index
    %c0_13 = arith.constant 0 : index
    %29 = vector.load %arg6[%c0_12, %c0_13] : memref<1x128xf32, #tpu.memory_space<vmem>>, vector<1x128xf32>
    %30 = vector.broadcast %29 : vector<1x128xf32> to vector<128x128xf32>
    %31 = arith.addf %28, %30 : vector<128x128xf32>
    %32 = arith.truncf %31 : vector<128x128xf32> to vector<128x128xbf16>
    %c0_14 = arith.constant 0 : index
    %c0_15 = arith.constant 0 : index
    %33 = vector.load %arg7[%c0_14, %c0_15] : memref<128x128xbf16, #tpu.memory_space<vmem>>, vector<128x128xbf16>
    tpu.vector_store %arg7[%c0_14, %c0_15], %32 {strides = array<i32>} : memref<128x128xbf16, #tpu.memory_space<vmem>>, vector<128x128xbf16>,
    return
  }
  func.func @transform_0(%arg0: i32, %arg1: i32) -> (i32, i32) {
    %c0_i32 = arith.constant 0 : i32
    %c0_i32_0 = arith.constant 0 : i32
    return %arg0, %c0_i32 : i32, i32
  }
  func.func @transform_1(%arg0: i32, %arg1: i32) -> (i32, i32) {
    %c0_i32 = arith.constant 0 : i32
    %c0_i32_0 = arith.constant 0 : i32
    %c0_i32_1 = arith.constant 0 : i32
    return %c0_i32, %c0_i32_0 : i32, i32
  }
  func.func @transform_2(%arg0: i32, %arg1: i32) -> (i32, i32) {
    %c0_i32 = arith.constant 0 : i32
    %c0_i32_0 = arith.constant 0 : i32
    %c0_i32_1 = arith.constant 0 : i32
    return %c0_i32, %c0_i32_0 : i32, i32
  }
  func.func @transform_3(%arg0: i32, %arg1: i32) -> (i32, i32) {
    %c0_i32 = arith.constant 0 : i32
    %c0_i32_0 = arith.constant 0 : i32
    return %c0_i32, %arg1 : i32, i32
  }
  func.func @transform_4(%arg0: i32, %arg1: i32) -> (i32, i32) {
    %c0_i32 = arith.constant 0 : i32
    %c0_i32_0 = arith.constant 0 : i32
    return %c0_i32, %arg1 : i32, i32
  }
  func.func @transform_5(%arg0: i32, %arg1: i32) -> (i32, i32) {
    %c0_i32 = arith.constant 0 : i32
    return %arg0, %arg1 : i32, i32
  }
}

module attributes {stable_mosaic.version = 11 : i64} {
  func.func @_linear_res_kernel_1k(%arg0: i32, %arg1: i32, %arg2: memref<128x128xbf16, #tpu.memory_space<vmem>>, %arg3: memref<128x128xbf16, #tpu.memory_space<vmem>>, %arg4: memref<1x128xf32, #tpu.memory_space<vmem>>, %arg5: memref<128x128xbf16, #tpu.memory_space<vmem>>, %arg6: memref<128x128xbf16, #tpu.memory_space<vmem>>) attributes {dimension_semantics = [#tpu.dimension_semantics<parallel>, #tpu.dimension_semantics<parallel>], iteration_bounds = array<i64: 2, 1>, scalar_prefetch = 0 : i64, scratch_operands = 0 : i64, tpu.core_type = #tpu.core_type<tc>, window_params = [{transform_indices = @transform_0, window_bounds = array<i64: 128, 128>}, {transform_indices = @transform_1, window_bounds = array<i64: 128, 128>}, {transform_indices = @transform_2, window_bounds = array<i64: 1, 128>}, {transform_indices = @transform_3, window_bounds = array<i64: 128, 128>}, {transform_indices = @transform_4, window_bounds = array<i64: 128, 128>}]} {
    %c0 = arith.constant 0 : index
    %c0_0 = arith.constant 0 : index
    %0 = vector.load %arg2[%c0, %c0_0] : memref<128x128xbf16, #tpu.memory_space<vmem>>, vector<128x128xbf16>
    %c0_1 = arith.constant 0 : index
    %c0_2 = arith.constant 0 : index
    %1 = vector.load %arg3[%c0_1, %c0_2] : memref<128x128xbf16, #tpu.memory_space<vmem>>, vector<128x128xbf16>
    %cst = arith.constant dense<0.000000e+00> : vector<128x128xf32>
    %2 = tpu.matmul %0, %1, %cst {dimension_numbers = #tpu.dot_dimension_numbers<[1], [0], [0], [1], [0, 0, 1, 1], [], []>} : vector<128x128xbf16>, vector<128x128xbf16>, vector<128x128xf32> -> vector<128x128xf32>
    %c0_3 = arith.constant 0 : index
    %c0_4 = arith.constant 0 : index
    %3 = vector.load %arg4[%c0_3, %c0_4] : memref<1x128xf32, #tpu.memory_space<vmem>>, vector<1x128xf32>
    %4 = vector.broadcast %3 : vector<1x128xf32> to vector<128x128xf32>
    %5 = arith.addf %2, %4 : vector<128x128xf32>
    %c0_5 = arith.constant 0 : index
    %c0_6 = arith.constant 0 : index
    %6 = vector.load %arg5[%c0_5, %c0_6] : memref<128x128xbf16, #tpu.memory_space<vmem>>, vector<128x128xbf16>
    %7 = arith.extf %6 : vector<128x128xbf16> to vector<128x128xf32>
    %8 = arith.addf %5, %7 : vector<128x128xf32>
    %9 = arith.truncf %8 : vector<128x128xf32> to vector<128x128xbf16>
    %c0_7 = arith.constant 0 : index
    %c0_8 = arith.constant 0 : index
    %10 = vector.load %arg6[%c0_7, %c0_8] : memref<128x128xbf16, #tpu.memory_space<vmem>>, vector<128x128xbf16>
    tpu.vector_store %arg6[%c0_7, %c0_8], %9 {strides = array<i32>} : memref<128x128xbf16, #tpu.memory_space<vmem>>, vector<128x128xbf16>,
    return
  }
  func.func @transform_0(%arg0: i32, %arg1: i32) -> (i32, i32) {
    %c0_i32 = arith.constant 0 : i32
    %c0_i32_0 = arith.constant 0 : i32
    return %arg0, %c0_i32 : i32, i32
  }
  func.func @transform_1(%arg0: i32, %arg1: i32) -> (i32, i32) {
    %c0_i32 = arith.constant 0 : i32
    %c0_i32_0 = arith.constant 0 : i32
    return %c0_i32, %arg1 : i32, i32
  }
  func.func @transform_2(%arg0: i32, %arg1: i32) -> (i32, i32) {
    %c0_i32 = arith.constant 0 : i32
    %c0_i32_0 = arith.constant 0 : i32
    return %c0_i32, %arg1 : i32, i32
  }
  func.func @transform_3(%arg0: i32, %arg1: i32) -> (i32, i32) {
    %c0_i32 = arith.constant 0 : i32
    return %arg0, %arg1 : i32, i32
  }
  func.func @transform_4(%arg0: i32, %arg1: i32) -> (i32, i32) {
    %c0_i32 = arith.constant 0 : i32
    return %arg0, %arg1 : i32, i32
  }
}

module attributes {stable_mosaic.version = 11 : i64} {
  func.func @_ln_linear_kernel(%arg0: i32, %arg1: i32, %arg2: memref<128x128xbf16, #tpu.memory_space<vmem>>, %arg3: memref<1x128xf32, #tpu.memory_space<vmem>>, %arg4: memref<1x128xf32, #tpu.memory_space<vmem>>, %arg5: memref<128x512xbf16, #tpu.memory_space<vmem>>, %arg6: memref<1x512xf32, #tpu.memory_space<vmem>>, %arg7: memref<128x512xbf16, #tpu.memory_space<vmem>>) attributes {dimension_semantics = [#tpu.dimension_semantics<parallel>, #tpu.dimension_semantics<parallel>], iteration_bounds = array<i64: 2, 1>, scalar_prefetch = 0 : i64, scratch_operands = 0 : i64, tpu.core_type = #tpu.core_type<tc>, window_params = [{transform_indices = @transform_0, window_bounds = array<i64: 128, 128>}, {pipeline_mode = #tpu.pipeline_mode<synchronous>, transform_indices = @transform_1, window_bounds = array<i64: 1, 128>}, {pipeline_mode = #tpu.pipeline_mode<synchronous>, transform_indices = @transform_2, window_bounds = array<i64: 1, 128>}, {transform_indices = @transform_3, window_bounds = array<i64: 128, 512>}, {transform_indices = @transform_4, window_bounds = array<i64: 1, 512>}, {transform_indices = @transform_5, window_bounds = array<i64: 128, 512>}]} {
    %c0 = arith.constant 0 : index
    %c0_0 = arith.constant 0 : index
    %0 = vector.load %arg2[%c0, %c0_0] : memref<128x128xbf16, #tpu.memory_space<vmem>>, vector<128x128xbf16>
    %1 = arith.extf %0 : vector<128x128xbf16> to vector<128x128xf32>
    %cst = arith.constant dense<0.000000e+00> : vector<128xf32>
    %2 = vector.multi_reduction <add>, %1, %cst [1] : vector<128x128xf32> to vector<128xf32>
    %3 = vector.shape_cast %2 : vector<128xf32> to vector<128x1xf32>
    %cst_1 = arith.constant 1.280000e+02 : f32
    %4 = vector.broadcast %cst_1 : f32 to vector<128x1xf32>
    %5 = arith.divf %3, %4 : vector<128x1xf32>
    %6 = vector.broadcast %5 : vector<128x1xf32> to vector<128x128xf32>
    %7 = arith.subf %1, %6 : vector<128x128xf32>
    %8 = arith.mulf %7, %7 : vector<128x128xf32>
    %cst_2 = arith.constant dense<0.000000e+00> : vector<128xf32>
    %9 = vector.multi_reduction <add>, %8, %cst_2 [1] : vector<128x128xf32> to vector<128xf32>
    %10 = vector.shape_cast %9 : vector<128xf32> to vector<128x1xf32>
    %cst_3 = arith.constant 1.280000e+02 : f32
    %11 = vector.broadcast %cst_3 : f32 to vector<128x1xf32>
    %12 = arith.divf %10, %11 : vector<128x1xf32>
    %13 = vector.broadcast %5 : vector<128x1xf32> to vector<128x128xf32>
    %14 = arith.subf %1, %13 : vector<128x128xf32>
    %cst_4 = arith.constant 9.99999974E-6 : f32
    %15 = vector.broadcast %cst_4 : f32 to vector<128x1xf32>
    %16 = arith.addf %12, %15 : vector<128x1xf32>
    %17 = math.rsqrt %16 : vector<128x1xf32>
    %18 = vector.broadcast %17 : vector<128x1xf32> to vector<128x128xf32>
    %19 = arith.mulf %14, %18 : vector<128x128xf32>
    %c0_5 = arith.constant 0 : index
    %c0_6 = arith.constant 0 : index
    %20 = vector.load %arg3[%c0_5, %c0_6] : memref<1x128xf32, #tpu.memory_space<vmem>>, vector<1x128xf32>
    %21 = vector.broadcast %20 : vector<1x128xf32> to vector<128x128xf32>
    %22 = arith.mulf %19, %21 : vector<128x128xf32>
    %c0_7 = arith.constant 0 : index
    %c0_8 = arith.constant 0 : index
    %23 = vector.load %arg4[%c0_7, %c0_8] : memref<1x128xf32, #tpu.memory_space<vmem>>, vector<1x128xf32>
    %24 = vector.broadcast %23 : vector<1x128xf32> to vector<128x128xf32>
    %25 = arith.addf %22, %24 : vector<128x128xf32>
    %26 = arith.truncf %25 : vector<128x128xf32> to vector<128x128xbf16>
    %c0_9 = arith.constant 0 : index
    %c0_10 = arith.constant 0 : index
    %27 = vector.load %arg5[%c0_9, %c0_10] : memref<128x512xbf16, #tpu.memory_space<vmem>>, vector<128x512xbf16>
    %cst_11 = arith.constant dense<0.000000e+00> : vector<128x512xf32>
    %28 = tpu.matmul %26, %27, %cst_11 {dimension_numbers = #tpu.dot_dimension_numbers<[1], [0], [0], [1], [0, 0, 1, 1], [], []>} : vector<128x128xbf16>, vector<128x512xbf16>, vector<128x512xf32> -> vector<128x512xf32>
    %c0_12 = arith.constant 0 : index
    %c0_13 = arith.constant 0 : index
    %29 = vector.load %arg6[%c0_12, %c0_13] : memref<1x512xf32, #tpu.memory_space<vmem>>, vector<1x512xf32>
    %30 = vector.broadcast %29 : vector<1x512xf32> to vector<128x512xf32>
    %31 = arith.addf %28, %30 : vector<128x512xf32>
    %cst_14 = arith.constant 0.000000e+00 : f32
    %32 = vector.broadcast %cst_14 : f32 to vector<128x512xf32>
    %33 = arith.maximumf %31, %32 : vector<128x512xf32>
    %34 = arith.truncf %33 : vector<128x512xf32> to vector<128x512xbf16>
    %c0_15 = arith.constant 0 : index
    %c0_16 = arith.constant 0 : index
    %35 = vector.load %arg7[%c0_15, %c0_16] : memref<128x512xbf16, #tpu.memory_space<vmem>>, vector<128x512xbf16>
    tpu.vector_store %arg7[%c0_15, %c0_16], %34 {strides = array<i32>} : memref<128x512xbf16, #tpu.memory_space<vmem>>, vector<128x512xbf16>,
    return
  }
  func.func @transform_0(%arg0: i32, %arg1: i32) -> (i32, i32) {
    %c0_i32 = arith.constant 0 : i32
    %c0_i32_0 = arith.constant 0 : i32
    return %arg0, %c0_i32 : i32, i32
  }
  func.func @transform_1(%arg0: i32, %arg1: i32) -> (i32, i32) {
    %c0_i32 = arith.constant 0 : i32
    %c0_i32_0 = arith.constant 0 : i32
    %c0_i32_1 = arith.constant 0 : i32
    return %c0_i32, %c0_i32_0 : i32, i32
  }
  func.func @transform_2(%arg0: i32, %arg1: i32) -> (i32, i32) {
    %c0_i32 = arith.constant 0 : i32
    %c0_i32_0 = arith.constant 0 : i32
    %c0_i32_1 = arith.constant 0 : i32
    return %c0_i32, %c0_i32_0 : i32, i32
  }
  func.func @transform_3(%arg0: i32, %arg1: i32) -> (i32, i32) {
    %c0_i32 = arith.constant 0 : i32
    %c0_i32_0 = arith.constant 0 : i32
    return %c0_i32, %arg1 : i32, i32
  }
  func.func @transform_4(%arg0: i32, %arg1: i32) -> (i32, i32) {
    %c0_i32 = arith.constant 0 : i32
    %c0_i32_0 = arith.constant 0 : i32
    return %c0_i32, %arg1 : i32, i32
  }
  func.func @transform_5(%arg0: i32, %arg1: i32) -> (i32, i32) {
    %c0_i32 = arith.constant 0 : i32
    return %arg0, %arg1 : i32, i32
  }
}

module attributes {stable_mosaic.version = 11 : i64} {
  func.func @_ln_linear_kernel(%arg0: i32, %arg1: i32, %arg2: memref<128x128xbf16, #tpu.memory_space<vmem>>, %arg3: memref<1x128xf32, #tpu.memory_space<vmem>>, %arg4: memref<1x128xf32, #tpu.memory_space<vmem>>, %arg5: memref<128x256xbf16, #tpu.memory_space<vmem>>, %arg6: memref<1x256xf32, #tpu.memory_space<vmem>>, %arg7: memref<128x256xf32, #tpu.memory_space<vmem>>) attributes {dimension_semantics = [#tpu.dimension_semantics<parallel>, #tpu.dimension_semantics<parallel>], iteration_bounds = array<i64: 2, 1>, scalar_prefetch = 0 : i64, scratch_operands = 0 : i64, tpu.core_type = #tpu.core_type<tc>, window_params = [{transform_indices = @transform_0, window_bounds = array<i64: 128, 128>}, {pipeline_mode = #tpu.pipeline_mode<synchronous>, transform_indices = @transform_1, window_bounds = array<i64: 1, 128>}, {pipeline_mode = #tpu.pipeline_mode<synchronous>, transform_indices = @transform_2, window_bounds = array<i64: 1, 128>}, {transform_indices = @transform_3, window_bounds = array<i64: 128, 256>}, {transform_indices = @transform_4, window_bounds = array<i64: 1, 256>}, {transform_indices = @transform_5, window_bounds = array<i64: 128, 256>}]} {
    %c0 = arith.constant 0 : index
    %c0_0 = arith.constant 0 : index
    %0 = vector.load %arg2[%c0, %c0_0] : memref<128x128xbf16, #tpu.memory_space<vmem>>, vector<128x128xbf16>
    %1 = arith.extf %0 : vector<128x128xbf16> to vector<128x128xf32>
    %cst = arith.constant dense<0.000000e+00> : vector<128xf32>
    %2 = vector.multi_reduction <add>, %1, %cst [1] : vector<128x128xf32> to vector<128xf32>
    %3 = vector.shape_cast %2 : vector<128xf32> to vector<128x1xf32>
    %cst_1 = arith.constant 1.280000e+02 : f32
    %4 = vector.broadcast %cst_1 : f32 to vector<128x1xf32>
    %5 = arith.divf %3, %4 : vector<128x1xf32>
    %6 = vector.broadcast %5 : vector<128x1xf32> to vector<128x128xf32>
    %7 = arith.subf %1, %6 : vector<128x128xf32>
    %8 = arith.mulf %7, %7 : vector<128x128xf32>
    %cst_2 = arith.constant dense<0.000000e+00> : vector<128xf32>
    %9 = vector.multi_reduction <add>, %8, %cst_2 [1] : vector<128x128xf32> to vector<128xf32>
    %10 = vector.shape_cast %9 : vector<128xf32> to vector<128x1xf32>
    %cst_3 = arith.constant 1.280000e+02 : f32
    %11 = vector.broadcast %cst_3 : f32 to vector<128x1xf32>
    %12 = arith.divf %10, %11 : vector<128x1xf32>
    %13 = vector.broadcast %5 : vector<128x1xf32> to vector<128x128xf32>
    %14 = arith.subf %1, %13 : vector<128x128xf32>
    %cst_4 = arith.constant 9.99999974E-6 : f32
    %15 = vector.broadcast %cst_4 : f32 to vector<128x1xf32>
    %16 = arith.addf %12, %15 : vector<128x1xf32>
    %17 = math.rsqrt %16 : vector<128x1xf32>
    %18 = vector.broadcast %17 : vector<128x1xf32> to vector<128x128xf32>
    %19 = arith.mulf %14, %18 : vector<128x128xf32>
    %c0_5 = arith.constant 0 : index
    %c0_6 = arith.constant 0 : index
    %20 = vector.load %arg3[%c0_5, %c0_6] : memref<1x128xf32, #tpu.memory_space<vmem>>, vector<1x128xf32>
    %21 = vector.broadcast %20 : vector<1x128xf32> to vector<128x128xf32>
    %22 = arith.mulf %19, %21 : vector<128x128xf32>
    %c0_7 = arith.constant 0 : index
    %c0_8 = arith.constant 0 : index
    %23 = vector.load %arg4[%c0_7, %c0_8] : memref<1x128xf32, #tpu.memory_space<vmem>>, vector<1x128xf32>
    %24 = vector.broadcast %23 : vector<1x128xf32> to vector<128x128xf32>
    %25 = arith.addf %22, %24 : vector<128x128xf32>
    %26 = arith.truncf %25 : vector<128x128xf32> to vector<128x128xbf16>
    %c0_9 = arith.constant 0 : index
    %c0_10 = arith.constant 0 : index
    %27 = vector.load %arg5[%c0_9, %c0_10] : memref<128x256xbf16, #tpu.memory_space<vmem>>, vector<128x256xbf16>
    %cst_11 = arith.constant dense<0.000000e+00> : vector<128x256xf32>
    %28 = tpu.matmul %26, %27, %cst_11 {dimension_numbers = #tpu.dot_dimension_numbers<[1], [0], [0], [1], [0, 0, 1, 1], [], []>} : vector<128x128xbf16>, vector<128x256xbf16>, vector<128x256xf32> -> vector<128x256xf32>
    %c0_12 = arith.constant 0 : index
    %c0_13 = arith.constant 0 : index
    %29 = vector.load %arg6[%c0_12, %c0_13] : memref<1x256xf32, #tpu.memory_space<vmem>>, vector<1x256xf32>
    %30 = vector.broadcast %29 : vector<1x256xf32> to vector<128x256xf32>
    %31 = arith.addf %28, %30 : vector<128x256xf32>
    %c0_14 = arith.constant 0 : index
    %c0_15 = arith.constant 0 : index
    %32 = vector.load %arg7[%c0_14, %c0_15] : memref<128x256xf32, #tpu.memory_space<vmem>>, vector<128x256xf32>
    tpu.vector_store %arg7[%c0_14, %c0_15], %31 {strides = array<i32>} : memref<128x256xf32, #tpu.memory_space<vmem>>, vector<128x256xf32>,
    return
  }
  func.func @transform_0(%arg0: i32, %arg1: i32) -> (i32, i32) {
    %c0_i32 = arith.constant 0 : i32
    %c0_i32_0 = arith.constant 0 : i32
    return %arg0, %c0_i32 : i32, i32
  }
  func.func @transform_1(%arg0: i32, %arg1: i32) -> (i32, i32) {
    %c0_i32 = arith.constant 0 : i32
    %c0_i32_0 = arith.constant 0 : i32
    %c0_i32_1 = arith.constant 0 : i32
    return %c0_i32, %c0_i32_0 : i32, i32
  }
  func.func @transform_2(%arg0: i32, %arg1: i32) -> (i32, i32) {
    %c0_i32 = arith.constant 0 : i32
    %c0_i32_0 = arith.constant 0 : i32
    %c0_i32_1 = arith.constant 0 : i32
    return %c0_i32, %c0_i32_0 : i32, i32
  }
  func.func @transform_3(%arg0: i32, %arg1: i32) -> (i32, i32) {
    %c0_i32 = arith.constant 0 : i32
    %c0_i32_0 = arith.constant 0 : i32
    return %c0_i32, %arg1 : i32, i32
  }
  func.func @transform_4(%arg0: i32, %arg1: i32) -> (i32, i32) {
    %c0_i32 = arith.constant 0 : i32
    %c0_i32_0 = arith.constant 0 : i32
    return %c0_i32, %arg1 : i32, i32
  }
  func.func @transform_5(%arg0: i32, %arg1: i32) -> (i32, i32) {
    %c0_i32 = arith.constant 0 : i32
    return %arg0, %arg1 : i32, i32
  }
}

module attributes {stable_mosaic.version = 11 : i64} {
  func.func @_linear_res_kernel_1k(%arg0: i32, %arg1: i32, %arg2: memref<128x512xbf16, #tpu.memory_space<vmem>>, %arg3: memref<512x128xbf16, #tpu.memory_space<vmem>>, %arg4: memref<1x128xf32, #tpu.memory_space<vmem>>, %arg5: memref<128x128xbf16, #tpu.memory_space<vmem>>, %arg6: memref<128x128xbf16, #tpu.memory_space<vmem>>) attributes {dimension_semantics = [#tpu.dimension_semantics<parallel>, #tpu.dimension_semantics<parallel>], iteration_bounds = array<i64: 2, 1>, scalar_prefetch = 0 : i64, scratch_operands = 0 : i64, tpu.core_type = #tpu.core_type<tc>, window_params = [{transform_indices = @transform_0, window_bounds = array<i64: 128, 512>}, {transform_indices = @transform_1, window_bounds = array<i64: 512, 128>}, {transform_indices = @transform_2, window_bounds = array<i64: 1, 128>}, {transform_indices = @transform_3, window_bounds = array<i64: 128, 128>}, {transform_indices = @transform_4, window_bounds = array<i64: 128, 128>}]} {
    %c0 = arith.constant 0 : index
    %c0_0 = arith.constant 0 : index
    %0 = vector.load %arg2[%c0, %c0_0] : memref<128x512xbf16, #tpu.memory_space<vmem>>, vector<128x512xbf16>
    %c0_1 = arith.constant 0 : index
    %c0_2 = arith.constant 0 : index
    %1 = vector.load %arg3[%c0_1, %c0_2] : memref<512x128xbf16, #tpu.memory_space<vmem>>, vector<512x128xbf16>
    %cst = arith.constant dense<0.000000e+00> : vector<128x128xf32>
    %2 = tpu.matmul %0, %1, %cst {dimension_numbers = #tpu.dot_dimension_numbers<[1], [0], [0], [1], [0, 0, 1, 1], [], []>} : vector<128x512xbf16>, vector<512x128xbf16>, vector<128x128xf32> -> vector<128x128xf32>
    %c0_3 = arith.constant 0 : index
    %c0_4 = arith.constant 0 : index
    %3 = vector.load %arg4[%c0_3, %c0_4] : memref<1x128xf32, #tpu.memory_space<vmem>>, vector<1x128xf32>
    %4 = vector.broadcast %3 : vector<1x128xf32> to vector<128x128xf32>
    %5 = arith.addf %2, %4 : vector<128x128xf32>
    %c0_5 = arith.constant 0 : index
    %c0_6 = arith.constant 0 : index
    %6 = vector.load %arg5[%c0_5, %c0_6] : memref<128x128xbf16, #tpu.memory_space<vmem>>, vector<128x128xbf16>
    %7 = arith.extf %6 : vector<128x128xbf16> to vector<128x128xf32>
    %8 = arith.addf %5, %7 : vector<128x128xf32>
    %9 = arith.truncf %8 : vector<128x128xf32> to vector<128x128xbf16>
    %c0_7 = arith.constant 0 : index
    %c0_8 = arith.constant 0 : index
    %10 = vector.load %arg6[%c0_7, %c0_8] : memref<128x128xbf16, #tpu.memory_space<vmem>>, vector<128x128xbf16>
    tpu.vector_store %arg6[%c0_7, %c0_8], %9 {strides = array<i32>} : memref<128x128xbf16, #tpu.memory_space<vmem>>, vector<128x128xbf16>,
    return
  }
  func.func @transform_0(%arg0: i32, %arg1: i32) -> (i32, i32) {
    %c0_i32 = arith.constant 0 : i32
    %c0_i32_0 = arith.constant 0 : i32
    return %arg0, %c0_i32 : i32, i32
  }
  func.func @transform_1(%arg0: i32, %arg1: i32) -> (i32, i32) {
    %c0_i32 = arith.constant 0 : i32
    %c0_i32_0 = arith.constant 0 : i32
    return %c0_i32, %arg1 : i32, i32
  }
  func.func @transform_2(%arg0: i32, %arg1: i32) -> (i32, i32) {
    %c0_i32 = arith.constant 0 : i32
    %c0_i32_0 = arith.constant 0 : i32
    return %c0_i32, %arg1 : i32, i32
  }
  func.func @transform_3(%arg0: i32, %arg1: i32) -> (i32, i32) {
    %c0_i32 = arith.constant 0 : i32
    return %arg0, %arg1 : i32, i32
  }
  func.func @transform_4(%arg0: i32, %arg1: i32) -> (i32, i32) {
    %c0_i32 = arith.constant 0 : i32
    return %arg0, %arg1 : i32, i32
  }
}

</mosaic_0001>

<bundles_post_ra>
// kernel: _lambda_.11
= control target key start
LH: loop header
LB: loop body
LE: loop exit
PB: predicated region body
PF: predicated region fallthrough
CT: control target
= control target key end

     0   :  { %s1514_s18 = smov 0   ;;  %s1516_s19 = smov 0   ;;  %s1867_s0 = inlined_call_operand.vmem [shape: bf16[256,128], index: 0, kind: input, shape index: {}]   ;;  %s1868_s1 = inlined_call_operand.vmem [shape: f32[1,128], index: 1, kind: input, shape index: {}]   ;;  %s1869_s2 = inlined_call_operand.vmem [shape: f32[1,128], index: 2, kind: input, shape index: {}]   ;;  %s1870_s3 = inlined_call_operand.vmem [shape: bf16[128,384], index: 3, kind: input, shape index: {}]   ;;  %s1871_s4 = inlined_call_operand.vmem [shape: f32[1,384], index: 4, kind: input, shape index: {}]   ;;  %s1872_s5 = inlined_call_operand.vmem [shape: bf16[256,384], index: 5, kind: output, shape index: {}]  }
   0x1   :  { %s1518_s20 = smov 0   ;;  %s1520_s21 = smov 0  }
   0x2   :  { %s1522_s22 = smov 0   ;;  %s1524_s23 = smov 0  }
   0x3   :  { %s1526_s24 = smov 0   ;;  %s1528_s25 = smov 0  }
   0x4   :  { %s1530_s26 = smov 0  }
   0x5 LB: > { %s1089_s27 = sadd.s32 4294967295, %s1482_s26   ;;  %s24_s28 = sadd.s32 1, %s1474_s24  ;;  %s1482_s26 = sphi %s1530_s26, %s15_s26   ;;  %s1478_s25 = sphi %s1528_s25, %s1881_s25   ;;  %s1474_s24 = sphi %s1526_s24, %s1880_s24   ;;  %s1470_s23 = sphi %s1524_s23, %s1879_s23   ;;  %s1466_s22 = sphi %s1522_s22, %s1878_s22   ;;  %s1462_s21 = sphi %s1520_s21, %s1877_s21   ;;  %s1458_s20 = sphi %s1518_s20, %s1876_s20   ;;  %s1454_s19 = sphi %s1516_s19, %s1875_s19   ;;  %s1450_s18 = sphi %s1514_s18, %s1874_s18  }
   0x6   : > { %p25_p0 = scmp.ge.s32.totalorder %s24_s28, 3  ;;  %s27_s29 = sadd.s32 1, %s1478_s25 }
   0x7   : > { %s102_s30 = sadd.s32 1, %s1462_s21  ;;  %p109_p1 = scmp.ne.s32.totalorder %s1462_s21, %s1458_s20 }
   0x8   : > { %s1883_s28 = smov (%p25_p0, %s24_s28), 0  ;;  %s1885_s29 = smov (!%p25_p0, %s27_s29), %s1478_s25 }
   0x9   : > { %s99_s6 = ssub.s32 %s1474_s24, %s1883_s28  ;;  %p110_p2 = scmp.eq.s32.totalorder %s1482_s26, 0 }
   0xa   : > { %p29_p3 = scmp.ge.s32.totalorder %s1885_s29, 2  ;;  %p100_p4 = scmp.eq.s32.totalorder %s99_s6, 0 }
   0xb   : > { %p111_p5 = por %p110_p2, %p109_p1  ;;  %s156_s7 = sadd.s32 1, %s1454_s19 }
   0xc   : > { %s1887_s29 = smov (%p29_p3, %s1885_s29), 0  ;;  %p166_p6 = scmp.ne.s32.totalorder %s1454_s19, %s1450_s18 }
   0xd   : > { %s1575_s8 = scalar_select %p100_p4, %s1462_s21, %s102_s30  }
   0xe   : > { %s151_s9 = ssub.s32 %s1478_s25, %s1887_s29  ;;  %p167_p7 = scmp.eq.s32.totalorder %s1089_s27, 5 }
   0xf   : > { %s153_s10 = sor.u32 %s151_s9, %s99_s6  ;;  %p1092_p10 = scmp.ge.s32.totalorder %s1482_s26, 6 }
  0x10   : > { %p154_p8 = scmp.eq.s32.totalorder %s153_s10, 0  ;;  %p1581_p9 = por %p167_p7, %p166_p6 }
  0x11   : > { %195 = sbr.rel (%p1092_p10) target bundleno = 36 (0x24), region = 24 }
  0x12   : > { %s1586_s12 = scalar_select %p154_p8, %s1454_s19, %s156_s7  }
  0x16   : > { %207 = sbr.rel (!%p111_p5) target bundleno = 36 (0x24), region = 32  ;;  %s209_s13 = sand.u32 (%p111_p5), 1, %s1462_s21  }
  0x17   : > { %s1094_s14 = sshll.u32 (%p111_p5), %s1474_s24, 2  ;;  %s1093_s15 = sshll.u32 (%p111_p5), %s209_s13, 6 }
  0x18   : > { %s1594_s27 = scalar_lea.vmem (%p111_p5), %s1870_s3, %s1094_s14  ;;  %s211_s30 = scalar_lea.vmem (%p111_p5), [#allocation2], %s1093_s15 }
  0x19   : > { %v230_v0 = vld [vmem:[%s1594_s27] sm:$0xf] (%p111_p5)  ;;  %v232_v1 = vld [vmem:[%s1594_s27 + $0xc] sm:$0xf] (%p111_p5)  ;;  %v234_v2 = vld [vmem:[%s1594_s27 + $0x18] sm:$0xf] (%p111_p5) }
  0x1a   : > { %231 = vst [vmem:[%s211_s30] sm:$0xf] (%p111_p5), %v230_v0  ;;  %233 = vst [vmem:[%s211_s30 + $0x4] sm:$0xf] (%p111_p5), %v232_v1  ;;  %v236_v3 = vld [vmem:[%s1594_s27 + $0x24] sm:$0xf] (%p111_p5) }
  0x1b   : > { %v238_v4 = vld [vmem:[%s1594_s27 + $0x30] sm:$0xf]  ;;  %235 = vst [vmem:[%s211_s30 + $0x8] sm:$0xf] %v234_v2  ;;  %237 = vst [vmem:[%s211_s30 + $0xc] sm:$0xf] %v236_v3 }
  0x1c   : > { %239 = vst [vmem:[%s211_s30 + $0x10] sm:$0xf] %v238_v4  ;;  %v240_v5 = vld [vmem:[%s1594_s27 + $0x3c] sm:$0xf]  ;;  %v242_v6 = vld [vmem:[%s1594_s27 + $0x48] sm:$0xf] }
  0x1d   : > { %v244_v7 = vld [vmem:[%s1594_s27 + $0x54] sm:$0xf]  ;;  %241 = vst [vmem:[%s211_s30 + $0x14] sm:$0xf] %v240_v5  ;;  %243 = vst [vmem:[%s211_s30 + $0x18] sm:$0xf] %v242_v6 }
  0x1e   : > { %245 = vst [vmem:[%s211_s30 + $0x1c] sm:$0xf] %v244_v7  ;;  %v246_v8 = vld [vmem:[%s1594_s27 + $0x60] sm:$0xf]  ;;  %v248_v9 = vld [vmem:[%s1594_s27 + $0x6c] sm:$0xf] }
  0x1f   : > { %v250_v10 = vld [vmem:[%s1594_s27 + $0x78] sm:$0xf]  ;;  %247 = vst [vmem:[%s211_s30 + $0x20] sm:$0xf] %v246_v8  ;;  %249 = vst [vmem:[%s211_s30 + $0x24] sm:$0xf] %v248_v9 }
  0x20   : > { %251 = vst [vmem:[%s211_s30 + $0x28] sm:$0xf] %v250_v10  ;;  %v252_v11 = vld [vmem:[%s1594_s27 + $0x84] sm:$0xf]  ;;  %v254_v12 = vld [vmem:[%s1594_s27 + $0x90] sm:$0xf] }
  0x21   : > { %v256_v13 = vld [vmem:[%s1594_s27 + $0x9c] sm:$0xf]  ;;  %253 = vst [vmem:[%s211_s30 + $0x2c] sm:$0xf] %v252_v11  ;;  %255 = vst [vmem:[%s211_s30 + $0x30] sm:$0xf] %v254_v12 }
  0x22   : > { %257 = vst [vmem:[%s211_s30 + $0x34] sm:$0xf] %v256_v13  ;;  %v258_v14 = vld [vmem:[%s1594_s27 + $0xa8] sm:$0xf]  ;;  %v260_v15 = vld [vmem:[%s1594_s27 + $0xb4] sm:$0xf] }
  0x23   : > { %259 = vst [vmem:[%s211_s30 + $0x38] sm:$0xf] %v258_v14  ;;  %261 = vst [vmem:[%s211_s30 + $0x3c] sm:$0xf] %v260_v15 }
  0x24 PF: > { %p1095_p11 = scmp.ge.s32.totalorder %s1482_s26, 1  ;;  %p322_p12 = scmp.lt.s32.totalorder %s1482_s26, 7 }
  0x26   : > { %p323_p13 = pnand %p1095_p11, %p322_p12 }
  0x27   : > { %s1098_s6 = sshll.u32 (!%p323_p13), %s1470_s23, 4  ;;  %s329_s14 = sand.u32 (!%p323_p13), 1, %s1458_s20  }
  0x28   : > { %326 = sbr.rel (%p323_p13) target bundleno = 603 (0x25b), region = 77  ;;  %p364_p0 = scmp.lt.s32.totalorder (!%p323_p13), %s1098_s6, 31 }
  0x29   : > { %s1096_s15 = sshll.u32 (!%p323_p13), %s329_s14, 6  ;;  %p369_p1 = scmp.lt.s32.totalorder (!%p323_p13), %s1466_s22, 2 }
  0x2a   : > { %s1695_s16 = scalar_lea.vmem (!%p323_p13), [#allocation2], %s1096_s15 }
  0x2d   : > { %s1889_s6 = smov (!%p364_p0, %s1098_s6), 31 }
  0x2e   : > { %s1099_s7 = sshll.u32 %s1889_s6, 2 }
  0x2f   : > { %s1618_s13 = scalar_lea.vmem %s1867_s0, %s1099_s7 }
  0x30   : > { %v1150_v16 = vld [vmem:[%s1618_s13] sm:$0xff]   ;;  %v1221_v22 = vld [vmem:[%s1618_s13 + $0x8] sm:$0xff]   ;;  %v1625_v28 = vld [vmem:[%s1618_s13 + $0x10] sm:$0xff]   ;;  %s370_s6 = scalar_select %p369_p1, %s1466_s22, 2 }
  0x31   : > { %v1224_v17 = vld [vmem:[%s1618_s13 + $0x20] sm:$0xff]   ;;  %v1151_v18 = vunpack.c.l.bf16 %v1150_v16  ;;  %v1152_v20 = vunpack.c.h.bf16 %v1150_v16  ;;  %v1155_v23 = vunpack.c.l.bf16 %v1221_v22  ;;  %v1156_v24 = vunpack.c.h.bf16 %v1221_v22  ;;  %v1225_v25 = vld [vmem:[%s1618_s13 + $0x28] sm:$0xff]   ;;  %v1630_v31 = vld [vmem:[%s1618_s13 + $0x30] sm:$0xff]  }
  0x32   : > { %v1167_v19 = vunpack.c.l.bf16 %v1224_v17  ;;  %v1168_v21 = vunpack.c.h.bf16 %v1224_v17  ;;  %v1171_v26 = vunpack.c.l.bf16 %v1225_v25  ;;  %v1172_v27 = vunpack.c.h.bf16 %v1225_v25  ;;  %v1635_v34 = vld [vmem:[%s1618_s13 + $0x18] sm:$0xff]   ;;  %s371_s10 = scalar_lea.vmem %s1871_s4, %s370_s6 }
  0x33   : > { %406 = vadd.xlane.f32.xlu0 %v1151_v18  ;;  %v1159_v29 = vunpack.c.l.bf16 %v1625_v28  ;;  %v1160_v30 = vunpack.c.h.bf16 %v1625_v28  ;;  %v1175_v32 = vunpack.c.l.bf16 %v1630_v31  ;;  %v1176_v33 = vunpack.c.h.bf16 %v1630_v31  ;;  %v1644_v37 = vld [vmem:[%s1618_s13 + $0x38] sm:$0xff]   ;;  %v1373_v28 = vld [vmem:[%s1695_s16 + $0x30] sm:$0xff]   ;;  %s360_s13 = sand.u32 1, %s1450_s18   ;;  %s1299_s18 = smul.u32 (%p1581_p9), 48, %s1470_s23 }
  0x34   : > { %422 = vadd.xlane.f32.xlu1 %v1167_v19  ;;  %v1163_v35 = vunpack.c.l.bf16 %v1635_v34  ;;  %v1164_v36 = vunpack.c.h.bf16 %v1635_v34  ;;  %v1179_v38 = vunpack.c.l.bf16 %v1644_v37  ;;  %v1180_v39 = vunpack.c.h.bf16 %v1644_v37  ;;  %s1097_s14 = sshll.u32 %s360_s13, 6 }
  0x35   : > { %s1807_s15 = scalar_lea.vmem [#allocation3], %s1097_s14  ;;  %s894_s11 = sadd.s32 (%p1581_p9), %s1466_s22, %s1299_s18 }
  0x37   : > { %408 = vadd.xlane.f32.xlu0 %v1152_v20 }
  0x38   : > { %424 = vadd.xlane.f32.xlu1 %v1168_v21 }
  0x3b   : > { %410 = vadd.xlane.f32.xlu0 %v1155_v23 }
  0x3c   : > { %412 = vadd.xlane.f32.xlu1 %v1156_v24 }
  0x3f   : > { %426 = vadd.xlane.f32.xlu0 %v1171_v26 }
  0x40   : > { %428 = vadd.xlane.f32.xlu1 %v1172_v27 }
  0x43   : > { %414 = vadd.xlane.f32.xlu0 %v1159_v29 }
  0x44   : > { %416 = vadd.xlane.f32.xlu1 %v1160_v30 }
  0x47   : > { %430 = vadd.xlane.f32.xlu0 %v1175_v32 }
  0x48   : > { %432 = vadd.xlane.f32.xlu1 %v1176_v33 }
  0x4b   : > { %418 = vadd.xlane.f32.xlu0 %v1163_v35 }
  0x4c   : > { %420 = vadd.xlane.f32.xlu1 %v1164_v36 }
  0x4f   : > { %434 = vadd.xlane.f32.xlu0 %v1179_v38 }
  0x50   : > { %436 = vadd.xlane.f32.xlu1 %v1180_v39 }
  0xbc   : > { %v407_v40 = vpop.xlane.xlu0 %406 }
  0xbd   : > { %v423_v41 = vpop.xlane.xlu1 %422  ;;  %v439_v42 = vmul.f32 0.0078125, %v407_v40 }
  0xbe   : > { %v447_v43 = vmul.f32 0.0078125, %v423_v41 }
  0xbf   : > { %v1656_v44 = vsub.f32 %v1151_v18, %v439_v42  ;;  %v1374_v42 = vld [vmem:[%s1695_s16 + $0x28] sm:$0xff]  }
  0xc0   : > { %v1658_v45 = vsub.f32 %v1167_v19, %v447_v43  ;;  %v409_v46 = vpop.xlane.xlu0 %408  ;;  %v1372_v19 = vld [vmem:[%s1695_s16 + $0x38] sm:$0xff]  }
  0xc1   : > { %v425_v47 = vpop.xlane.xlu1 %424  ;;  %v440_v48 = vmul.f32 0.0078125, %v409_v46  ;;  %v471_v49 = vmul.f32 %v1656_v44, %v1656_v44  ;;  %1251 = vmatprep.subr.bf16.mxu0 %v1372_v19  ;;  %1283 = vmatprep.subr.bf16.mxu1 %v1372_v19 }
  0xc2   : > { %v448_v50 = vmul.f32 0.0078125, %v425_v47  ;;  %v479_v53 = vmul.f32 %v1658_v45, %v1658_v45  ;;  %1252 = vmatpush3.bf16.msra.mxu0 %v1372_v19  ;;  %1291 = vmatpush3.bf16.msra.mxu1 %v1372_v19  ;;  %v1377_v47 = vld [vmem:[%s1695_s16 + $0x10] sm:$0xff]  }
  0xc3   : > { %v1662_v51 = vsub.f32 %v1152_v20, %v440_v48  ;;  %487 = vadd.xlane.f32.xlu0 %v471_v49  ;;  %1253 = vmatprep.subr.bf16.mxu0 %v1373_v28  ;;  %v1378_v48 = vld [vmem:[%s1695_s16 + $0x8] sm:$0xff]   ;;  %v1379_v49 = vld [vmem:[%s1695_s16] sm:$0xff]  }
  0xc4   : > { %v1664_v52 = vsub.f32 %v1168_v21, %v448_v50  ;;  %v411_v54 = vpop.xlane.xlu0 %410  ;;  %1284 = vmatprep.subr.bf16.mxu1 %v1373_v28 }
  0xc5   : > { %v413_v55 = vpop.xlane.xlu1 %412  ;;  %v441_v56 = vmul.f32 0.0078125, %v411_v54  ;;  %v472_v57 = vmul.f32 %v1662_v51, %v1662_v51 }
  0xc6   : > { %v442_v58 = vmul.f32 0.0078125, %v413_v55  ;;  %v480_v61 = vmul.f32 %v1664_v52, %v1664_v52  ;;  %1254 = vmatpush3.bf16.msra.mxu0 %v1373_v28  ;;  %1292 = vmatpush3.bf16.msra.mxu1 %v1373_v28 }
  0xc7   : > { %v1670_v59 = vsub.f32 %v1155_v23, %v441_v56  ;;  %503 = vadd.xlane.f32.xlu0 %v479_v53  ;;  %489 = vadd.xlane.f32.xlu1 %v472_v57 }
  0xc8   : > { %v1672_v60 = vsub.f32 %v1156_v24, %v442_v58  ;;  %v427_v62 = vpop.xlane.xlu0 %426  ;;  %1255 = vmatprep.subr.bf16.mxu0 %v1374_v42  ;;  %1285 = vmatprep.subr.bf16.mxu1 %v1374_v42 }
  0xc9   : > { %v429_v63 = vpop.xlane.xlu1 %428  ;;  %v449_v0 = vmul.f32 0.0078125, %v427_v62  ;;  %v473_v1 = vmul.f32 %v1670_v59, %v1670_v59 }
  0xca   : > { %v450_v2 = vmul.f32 0.0078125, %v429_v63  ;;  %v474_v5 = vmul.f32 %v1672_v60, %v1672_v60  ;;  %1256 = vmatpush3.bf16.msra.mxu0 %v1374_v42  ;;  %1293 = vmatpush3.bf16.msra.mxu1 %v1374_v42 }
  0xcb   : > { %v1678_v3 = vsub.f32 %v1171_v26, %v449_v0  ;;  %505 = vadd.xlane.f32.xlu1 %v480_v61  ;;  %491 = vadd.xlane.f32.xlu0 %v473_v1 }
  0xcc   : > { %v1680_v4 = vsub.f32 %v1172_v27, %v450_v2  ;;  %v415_v6 = vpop.xlane.xlu0 %414 }
  0xcd   : > { %v417_v7 = vpop.xlane.xlu1 %416  ;;  %v443_v8 = vmul.f32 0.0078125, %v415_v6  ;;  %v481_v9 = vmul.f32 %v1678_v3, %v1678_v3 }
  0xce   : > { %v444_v10 = vmul.f32 0.0078125, %v417_v7  ;;  %v482_v13 = vmul.f32 %v1680_v4, %v1680_v4 }
  0xcf   : > { %v1686_v11 = vsub.f32 %v1159_v29, %v443_v8  ;;  %493 = vadd.xlane.f32.xlu1 %v474_v5  ;;  %507 = vadd.xlane.f32.xlu0 %v481_v9 }
  0xd0   : > { %v1688_v12 = vsub.f32 %v1160_v30, %v444_v10  ;;  %v431_v14 = vpop.xlane.xlu0 %430 }
  0xd1   : > { %v433_v15 = vpop.xlane.xlu1 %432  ;;  %v451_v16 = vmul.f32 0.0078125, %v431_v14  ;;  %v475_v17 = vmul.f32 %v1686_v11, %v1686_v11 }
  0xd2   : > { %v452_v18 = vmul.f32 0.0078125, %v433_v15  ;;  %v476_v22 = vmul.f32 %v1688_v12, %v1688_v12 }
  0xd3   : > { %v1700_v20 = vsub.f32 %v1175_v32, %v451_v16  ;;  %509 = vadd.xlane.f32.xlu1 %v482_v13  ;;  %495 = vadd.xlane.f32.xlu0 %v475_v17 }
  0xd4   : > { %v1704_v21 = vsub.f32 %v1176_v33, %v452_v18  ;;  %v419_v23 = vpop.xlane.xlu0 %418 }
  0xd5   : > { %v421_v24 = vpop.xlane.xlu1 %420  ;;  %v445_v25 = vmul.f32 0.0078125, %v419_v23  ;;  %v483_v26 = vmul.f32 %v1700_v20, %v1700_v20 }
  0xd6   : > { %v446_v27 = vmul.f32 0.0078125, %v421_v24  ;;  %v484_v31 = vmul.f32 %v1704_v21, %v1704_v21 }
  0xd7   : > { %v1713_v29 = vsub.f32 %v1163_v35, %v445_v25  ;;  %497 = vadd.xlane.f32.xlu1 %v476_v22  ;;  %511 = vadd.xlane.f32.xlu0 %v483_v26  ;;  %v1747_v25 = vld [vmem:[%s1868_s1] ss:$0 sm:$0xff] }
  0xd8   : > { %v1717_v30 = vsub.f32 %v1164_v36, %v446_v27  ;;  %v435_v32 = vpop.xlane.xlu0 %434 }
  0xd9   : > { %v437_v33 = vpop.xlane.xlu1 %436  ;;  %v453_v40 = vmul.f32 0.0078125, %v435_v32  ;;  %v477_v41 = vmul.f32 %v1713_v29, %v1713_v29 }
  0xda   : > { %v454_v35 = vmul.f32 0.0078125, %v437_v33  ;;  %v478_v43 = vmul.f32 %v1717_v30, %v1717_v30 }
  0xdb   : > { %v1726_v34 = vsub.f32 %v1179_v38, %v453_v40  ;;  %513 = vadd.xlane.f32.xlu1 %v484_v31  ;;  %499 = vadd.xlane.f32.xlu0 %v477_v41  ;;  %v1375_v38 = vld [vmem:[%s1695_s16 + $0x20] sm:$0xff]  }
  0xdc   : > { %v1730_v36 = vsub.f32 %v1180_v39, %v454_v35  ;;  %1257 = vmatprep.subr.bf16.mxu0 %v1375_v38  ;;  %1286 = vmatprep.subr.bf16.mxu1 %v1375_v38  ;;  %v1376_v39 = vld [vmem:[%s1695_s16 + $0x18] sm:$0xff]   ;;  %s1130_s16 = sshll.u32 (%p1581_p9), %s894_s11, 2 }
  0xdd   : > { %v485_v46 = vmul.f32 %v1726_v34, %v1726_v34  ;;  %1258 = vmatpush3.bf16.msra.mxu0 %v1375_v38  ;;  %1294 = vmatpush3.bf16.msra.mxu1 %v1375_v38  ;;  %s896_s27 = scalar_lea.vmem (%p1581_p9), %s1872_s5, %s1130_s16 }
  0xde   : > { %v486_v37 = vmul.f32 %v1730_v36, %v1730_v36  ;;  %1259 = vmatprep.subr.bf16.mxu0 %v1376_v39  ;;  %1287 = vmatprep.subr.bf16.mxu1 %v1376_v39 }
  0xdf   : > { %501 = vadd.xlane.f32.xlu1 %v478_v43  ;;  %515 = vadd.xlane.f32.xlu0 %v485_v46 }
  0xe1   : > { %1260 = vmatpush3.bf16.msra.mxu0 %v1376_v39  ;;  %1295 = vmatpush3.bf16.msra.mxu1 %v1376_v39 }
  0xe2   : > { %1261 = vmatprep.subr.bf16.mxu0 %v1377_v47  ;;  %1288 = vmatprep.subr.bf16.mxu1 %v1377_v47 }
  0xe3   : > { %517 = vadd.xlane.f32.xlu1 %v486_v37 }
  0xe5   : > { %1262 = vmatpush3.bf16.msra.mxu0 %v1377_v47  ;;  %1296 = vmatpush3.bf16.msra.mxu1 %v1377_v47 }
  0xe6   : > { %1263 = vmatprep.subr.bf16.mxu0 %v1378_v48  ;;  %1289 = vmatprep.subr.bf16.mxu1 %v1378_v48 }
  0xe9   : > { %1264 = vmatpush3.bf16.msra.mxu0 %v1378_v48  ;;  %1297 = vmatpush3.bf16.msra.mxu1 %v1378_v48 }
  0xea   : > { %1265 = vmatprep.subr.bf16.mxu0 %v1379_v49  ;;  %1290 = vmatprep.subr.bf16.mxu1 %v1379_v49 }
  0xed   : > { %1266 = vmatpush3.bf16.msra.mxu0 %v1379_v49  ;;  %1298 = vmatpush3.bf16.msra.mxu1 %v1379_v49 }
 0x14c   : > { %v488_v50 = vpop.xlane.xlu0 %487 }
 0x14d   : > { %v519_v53 = vmul.f32 0.0078125, %v488_v50 }
 0x14f   : > { %v535_v54 = vadd.f32 1e-05, %v519_v53 }
 0x150   : > { %v490_v55 = vpop.xlane.xlu1 %489  ;;  %v504_v56 = vpop.xlane.xlu0 %503 }
 0x151   : > { %1380 = vrsqrt.f32 %v535_v54  ;;  %v520_v57 = vmul.f32 0.0078125, %v490_v55  ;;  %v527_v58 = vmul.f32 0.0078125, %v504_v56 }
 0x153   : > { %v536_v61 = vadd.f32 1e-05, %v520_v57  ;;  %v543_v62 = vadd.f32 1e-05, %v527_v58 }
 0x154   : > { %v506_v63 = vpop.xlane.xlu1 %505  ;;  %v492_v0 = vpop.xlane.xlu0 %491 }
 0x155   : > { %1382 = vrsqrt.f32 %v536_v61  ;;  %v528_v1 = vmul.f32 0.0078125, %v506_v63  ;;  %v521_v2 = vmul.f32 0.0078125, %v492_v0 }
 0x156   : > { %1384 = vrsqrt.f32 %v543_v62 }
 0x157   : > { %v544_v5 = vadd.f32 1e-05, %v528_v1  ;;  %v537_v6 = vadd.f32 1e-05, %v521_v2 }
 0x158   : > { %v494_v7 = vpop.xlane.xlu1 %493  ;;  %v508_v8 = vpop.xlane.xlu0 %507 }
 0x159   : > { %1386 = vrsqrt.f32 %v544_v5  ;;  %v522_v9 = vmul.f32 0.0078125, %v494_v7  ;;  %v529_v10 = vmul.f32 0.0078125, %v508_v8 }
 0x15a   : > { %1388 = vrsqrt.f32 %v537_v6 }
 0x15b   : > { %v538_v13 = vadd.f32 1e-05, %v522_v9  ;;  %v545_v14 = vadd.f32 1e-05, %v529_v10 }
 0x15c   : > { %v510_v15 = vpop.xlane.xlu1 %509  ;;  %v496_v16 = vpop.xlane.xlu0 %495 }
 0x15d   : > { %1390 = vrsqrt.f32 %v538_v13  ;;  %v530_v17 = vmul.f32 0.0078125, %v510_v15  ;;  %v523_v18 = vmul.f32 0.0078125, %v496_v16 }
 0x15e   : > { %v1381_v19 = vpop.eup %1380  ;;  %1392 = vrsqrt.f32 %v545_v14 }
 0x15f   : > { %v546_v22 = vadd.f32 1e-05, %v530_v17  ;;  %v539_v23 = vadd.f32 1e-05, %v523_v18  ;;  %v567_v24 = vmul.f32 %v1381_v19, %v1656_v44  ;;  %v1754_v44 = vld [vmem:[%s1869_s2] ss:$0 sm:$0xff] }
 0x160   : > { %v498_v26 = vpop.xlane.xlu1 %497  ;;  %v512_v27 = vpop.xlane.xlu0 %511 }
 0x161   : > { %1394 = vrsqrt.f32 %v546_v22  ;;  %v524_v28 = vmul.f32 0.0078125, %v498_v26  ;;  %v531_v31 = vmul.f32 0.0078125, %v512_v27  ;;  %v590_v33 = vmul.f32 %v1747_v25, %v567_v24 }
 0x162   : > { %v1383_v32 = vpop.eup %1382  ;;  %1396 = vrsqrt.f32 %v539_v23 }
 0x163   : > { %v1385_v40 = vpop.eup %1384  ;;  %v540_v41 = vadd.f32 1e-05, %v524_v28  ;;  %v547_v35 = vadd.f32 1e-05, %v531_v31  ;;  %v568_v42 = vmul.f32 %v1383_v32, %v1662_v51  ;;  %v613_v49 = vadd.f32 %v1754_v44, %v590_v33 }
 0x164   : > { %v514_v43 = vpop.xlane.xlu1 %513  ;;  %v500_v46 = vpop.xlane.xlu0 %499  ;;  %v575_v38 = vmul.f32 %v1385_v40, %v1658_v45 }
 0x165   : > { %1398 = vrsqrt.f32 %v540_v41  ;;  %v532_v37 = vmul.f32 0.0078125, %v514_v43  ;;  %v525_v39 = vmul.f32 0.0078125, %v500_v46  ;;  %v591_v47 = vmul.f32 %v1747_v25, %v568_v42 }
 0x166   : > { %v1387_v48 = vpop.eup %1386  ;;  %1400 = vrsqrt.f32 %v547_v35  ;;  %v598_v45 = vmul.f32 %v1747_v25, %v575_v38 }
 0x167   : > { %v1389_v50 = vpop.eup %1388  ;;  %v548_v51 = vadd.f32 1e-05, %v532_v37  ;;  %v541_v53 = vadd.f32 1e-05, %v525_v39  ;;  %v614_v54 = vadd.f32 %v1754_v44, %v591_v47  ;;  %v576_v55 = vmul.f32 %v1387_v48, %v1664_v52 }
 0x168   : > { %v502_v56 = vpop.xlane.xlu1 %501  ;;  %v516_v57 = vpop.xlane.xlu0 %515  ;;  %v569_v58 = vmul.f32 %v1389_v50, %v1670_v59  ;;  %v621_v9 = vadd.f32 %v1754_v44, %v598_v45 }
 0x169   : > { %1402 = vrsqrt.f32 %v548_v51  ;;  %v526_v61 = vmul.f32 0.0078125, %v502_v56  ;;  %v533_v62 = vmul.f32 0.0078125, %v516_v57  ;;  %v629_v63 = vpack.c.bf16 %v614_v54, %v613_v49 }
 0x16a   : > { %v1391_v0 = vpop.eup %1390  ;;  %1404 = vrsqrt.f32 %v541_v53  ;;  %v599_v1 = vmul.f32 %v1747_v25, %v576_v55  ;;  %v592_v2 = vmul.f32 %v1747_v25, %v569_v58 }
 0x16b   : > { %v1393_v5 = vpop.eup %1392  ;;  %v542_v6 = vadd.f32 1e-05, %v526_v61  ;;  %v549_v7 = vadd.f32 1e-05, %v533_v62  ;;  %1267 = vmatprep.mubr.bf16.mxu0 %v629_v63  ;;  %v570_v52 = vmul.f32 %v1391_v0, %v1672_v60 }
 0x16c   : > { %v518_v8 = vpop.xlane.xlu1 %517  ;;  %v622_v59 = vadd.f32 %v1754_v44, %v599_v1  ;;  %v577_v10 = vmul.f32 %v1393_v5, %v1678_v3  ;;  %v615_v17 = vadd.f32 %v1754_v44, %v592_v2 }
 0x16d   : > { %1406 = vrsqrt.f32 %v542_v6  ;;  %v534_v13 = vmul.f32 0.0078125, %v518_v8  ;;  %v593_v14 = vmul.f32 %v1747_v25, %v570_v52 }
 0x16e   : > { %v1395_v15 = vpop.eup %1394  ;;  %1408 = vrsqrt.f32 %v549_v7  ;;  %v633_v16 = vpack.c.bf16 %v622_v59, %v621_v9  ;;  %v600_v23 = vmul.f32 %v1747_v25, %v577_v10 }
 0x16f   : > { %v1397_v18 = vpop.eup %1396  ;;  %v550_v19 = vadd.f32 1e-05, %v534_v13  ;;  %v616_v60 = vadd.f32 %v1754_v44, %v593_v14  ;;  %v578_v22 = vmul.f32 %v1395_v15, %v1680_v4 }
 0x170   : > { %1275 = vmatprep.mubr.bf16.mxu1 %v633_v16  ;;  %v571_v3 = vmul.f32 %v1397_v18, %v1686_v11  ;;  %v623_v31 = vadd.f32 %v1754_v44, %v600_v23 }
 0x171   : > { %1410 = vrsqrt.f32 %v550_v19  ;;  %v630_v24 = vpack.c.bf16 %v616_v60, %v615_v17  ;;  %v601_v26 = vmul.f32 %v1747_v25, %v578_v22 }
 0x172   : > { %v1399_v27 = vpop.eup %1398  ;;  %v594_v4 = vmul.f32 %v1747_v25, %v571_v3 }
 0x173   : > { %v1401_v28 = vpop.eup %1400  ;;  %1268 = vmatmul.mubr.bf16.vlgmr.msra.gmra.mxu0 %v630_v24  ;;  %v624_v32 = vadd.f32 %v1754_v44, %v601_v26  ;;  %v572_v33 = vmul.f32 %v1399_v27, %v1688_v12 }
 0x174   : > { %v579_v40 = vmul.f32 %v1401_v28, %v1700_v20  ;;  %v617_v43 = vadd.f32 %v1754_v44, %v594_v4 }
 0x175   : > { %v634_v41 = vpack.c.bf16 %v624_v32, %v623_v31  ;;  %v595_v11 = vmul.f32 %v1747_v25, %v572_v33 }
 0x176   : > { %v1403_v35 = vpop.eup %1402  ;;  %v602_v37 = vmul.f32 %v1747_v25, %v579_v40 }
 0x177   : > { %v1405_v42 = vpop.eup %1404  ;;  %1276 = vmatmul.mubr.bf16.vlgmr.msra.gmra.mxu1 %v634_v41  ;;  %v618_v46 = vadd.f32 %v1754_v44, %v595_v11  ;;  %v580_v38 = vmul.f32 %v1403_v35, %v1704_v21 }
 0x178   : > { %v573_v12 = vmul.f32 %v1405_v42, %v1713_v29  ;;  %v625_v49 = vadd.f32 %v1754_v44, %v602_v37 }
 0x179   : > { %v631_v39 = vpack.c.bf16 %v618_v46, %v617_v43  ;;  %v603_v47 = vmul.f32 %v1747_v25, %v580_v38 }
 0x17a   : > { %v1407_v20 = vpop.eup %1406  ;;  %v596_v53 = vmul.f32 %v1747_v25, %v573_v12 }
 0x17b   : > { %v1409_v48 = vpop.eup %1408  ;;  %1271 = vmatprep.mubr.bf16.mxu0 %v631_v39  ;;  %v626_v50 = vadd.f32 %v1754_v44, %v603_v47  ;;  %v574_v51 = vmul.f32 %v1407_v20, %v1717_v30 }
 0x17c   : > { %v581_v21 = vmul.f32 %v1409_v48, %v1726_v34  ;;  %v619_v56 = vadd.f32 %v1754_v44, %v596_v53 }
 0x17d   : > { %v635_v54 = vpack.c.bf16 %v626_v50, %v625_v49  ;;  %v597_v29 = vmul.f32 %v1747_v25, %v574_v51 }
 0x17e   : > { %v1411_v55 = vpop.eup %1410  ;;  %v604_v30 = vmul.f32 %v1747_v25, %v581_v21 }
 0x17f   : > { %1279 = vmatprep.mubr.bf16.mxu1 %v635_v54  ;;  %v620_v57 = vadd.f32 %v1754_v44, %v597_v29  ;;  %v582_v45 = vmul.f32 %v1411_v55, %v1730_v36  ;;  %v1102_v36 = vld [vmem:[%s371_s10] ss:$0 sm:$0xff] }
 0x180   : > { %v627_v34 = vadd.f32 %v1754_v44, %v604_v30 }
 0x181   : > { %v632_v58 = vpack.c.bf16 %v620_v57, %v619_v56  ;;  %v605_v61 = vmul.f32 %v1747_v25, %v582_v45 }
 0x183   : > { %1272 = vmatmul.mubr.bf16.gmra.mxu0 %v632_v58  ;;  %v628_v62 = vadd.f32 %v1754_v44, %v605_v61 }
 0x185   : > { %v636_v63 = vpack.c.bf16 %v628_v62, %v627_v34 }
 0x187   : > { %1280 = vmatmul.mubr.bf16.gmra.mxu1 %v636_v63 }
 0x233   : > { %v1269_v0 = vpop.f32.mrf.mxu0 }
 0x234   : > { %v751_v5 = vadd.f32 %v1269_v0, %v1102_v36 }
 0x235   : > { %v742_v1 = vpop.f32.mrf.mxu0 }
 0x236   : > { %v743_v44 = vadd.f32 %v1102_v36, %v742_v1 }
 0x237   : > { %v1270_v2 = vpop.f32.mrf.mxu0  ;;  %v1277_v25 = vpop.f32.mrf.mxu1 }
 0x238   : > { %v754_v6 = vadd.f32 %v1270_v2, %v1102_v36  ;;  %v783_v10 = vadd.f32 %v1277_v25, %v1102_v36 }
 0x239   : > { %v745_v7 = vpop.f32.mrf.mxu0  ;;  %v774_v52 = vpop.f32.mrf.mxu1 }
 0x23a   : > { %v1189_v8 = vpack.c.bf16 %v754_v6, %v751_v5  ;;  %v746_v9 = vadd.f32 %v1102_v36, %v745_v7  ;;  %v775_v16 = vadd.f32 %v1102_v36, %v774_v52 }
 0x23b   : > { %v1278_v59 = vpop.f32.mrf.mxu1 }
 0x23c   : > { %1228 = vst [vmem:[%s1807_s15 + $0x8] sm:$0xff] %v1189_v8   ;;  %v1184_v13 = vpack.c.bf16 %v746_v9, %v743_v44  ;;  %v786_v14 = vadd.f32 %v1278_v59, %v1102_v36 }
 0x23d   : > { %v777_v15 = vpop.f32.mrf.mxu1 }
 0x23e   : > { %1185 = vst [vmem:[%s1807_s15] sm:$0xff] %v1184_v13   ;;  %v1209_v17 = vpack.c.bf16 %v786_v14, %v783_v10  ;;  %v778_v18 = vadd.f32 %v1102_v36, %v777_v15 }
 0x240   : > { %1232 = vst [vmem:[%s1807_s15 + $0x28] sm:$0xff] %v1209_v17   ;;  %v1204_v19 = vpack.c.bf16 %v778_v18, %v775_v16 }
 0x242   : > { %1231 = vst [vmem:[%s1807_s15 + $0x20] sm:$0xff] %v1204_v19  }
 0x243   : > { %v1273_v60 = vpop.f32.mrf.mxu0  ;;  %v917_v39 = vld [vmem:[%s1807_s15 + $0x8] sm:$0xf] (%p1581_p9)  ;;  %v919_v47 = vld [vmem:[%s1807_s15 + $0xc] sm:$0xf] (%p1581_p9) }
 0x244   : > { %v767_v24 = vadd.f32 %v1273_v60, %v1102_v36  ;;  %918 = vst [vmem:[%s896_s27 + $0x18] sm:$0xf] (%p1581_p9), %v917_v39  ;;  %920 = vst [vmem:[%s896_s27 + $0x24] sm:$0xf] (%p1581_p9), %v919_v47 }
 0x245   : > { %v758_v22 = vpop.f32.mrf.mxu0  ;;  %v913_v37 = vld [vmem:[%s1807_s15] sm:$0xf] (%p1581_p9)  ;;  %v915_v12 = vld [vmem:[%s1807_s15 + $0x4] sm:$0xf] (%p1581_p9) }
 0x246   : > { %v759_v31 = vadd.f32 %v1102_v36, %v758_v22  ;;  %914 = vst [vmem:[%s896_s27] sm:$0xf] (%p1581_p9), %v913_v37  ;;  %916 = vst [vmem:[%s896_s27 + $0xc] sm:$0xf] (%p1581_p9), %v915_v12 }
 0x247   : > { %v1274_v23 = vpop.f32.mrf.mxu0  ;;  %v1281_v3 = vpop.f32.mrf.mxu1  ;;  %v933_v21 = vld [vmem:[%s1807_s15 + $0x28] sm:$0xf] (%p1581_p9)  ;;  %v935_v54 = vld [vmem:[%s1807_s15 + $0x2c] sm:$0xf] (%p1581_p9) }
 0x248   : > { %v770_v26 = vadd.f32 %v1274_v23, %v1102_v36  ;;  %v799_v40 = vadd.f32 %v1281_v3, %v1102_v36  ;;  %934 = vst [vmem:[%s896_s27 + $0x78] sm:$0xf] (%p1581_p9), %v933_v21  ;;  %936 = vst [vmem:[%s896_s27 + $0x84] sm:$0xf] (%p1581_p9), %v935_v54 }
 0x249   : > { %v761_v27 = vpop.f32.mrf.mxu0  ;;  %v790_v28 = vpop.f32.mrf.mxu1  ;;  %v929_v51 = vld [vmem:[%s1807_s15 + $0x20] sm:$0xf] (%p1581_p9)  ;;  %v931_v53 = vld [vmem:[%s1807_s15 + $0x24] sm:$0xf] (%p1581_p9) }
 0x24a   : > { %v1199_v32 = vpack.c.bf16 %v770_v26, %v767_v24  ;;  %v762_v33 = vadd.f32 %v1102_v36, %v761_v27  ;;  %v791_v42 = vadd.f32 %v1102_v36, %v790_v28  ;;  %930 = vst [vmem:[%s896_s27 + $0x60] sm:$0xf] (%p1581_p9), %v929_v51  ;;  %932 = vst [vmem:[%s896_s27 + $0x6c] sm:$0xf] (%p1581_p9), %v931_v53 }
 0x24b   : > { %v1282_v4 = vpop.f32.mrf.mxu1 }
 0x24c   : > { %1230 = vst [vmem:[%s1807_s15 + $0x18] sm:$0xff] %v1199_v32   ;;  %v1194_v41 = vpack.c.bf16 %v762_v33, %v759_v31  ;;  %v802_v11 = vadd.f32 %v1282_v4, %v1102_v36 }
 0x24d   : > { %v793_v35 = vpop.f32.mrf.mxu1 }
 0x24e   : > { %1229 = vst [vmem:[%s1807_s15 + $0x10] sm:$0xff] %v1194_v41   ;;  %v1219_v43 = vpack.c.bf16 %v802_v11, %v799_v40  ;;  %v794_v46 = vadd.f32 %v1102_v36, %v793_v35  ;;  %891 = sbr.rel (!%p1581_p9) target bundleno = 603 (0x25b), region = 85 }
 0x250   : > { %1234 = vst [vmem:[%s1807_s15 + $0x38] sm:$0xff] %v1219_v43   ;;  %v1214_v38 = vpack.c.bf16 %v794_v46, %v791_v42 }
 0x252   : > { %1233 = vst [vmem:[%s1807_s15 + $0x30] sm:$0xff] %v1214_v38  }
 0x253   : > { %v925_v49 = vld [vmem:[%s1807_s15 + $0x18] sm:$0xf]  ;;  %v927_v50 = vld [vmem:[%s1807_s15 + $0x1c] sm:$0xf] }
 0x254   : > { %926 = vst [vmem:[%s896_s27 + $0x48] sm:$0xf] %v925_v49  ;;  %928 = vst [vmem:[%s896_s27 + $0x54] sm:$0xf] %v927_v50 }
 0x255   : > { %v921_v20 = vld [vmem:[%s1807_s15 + $0x10] sm:$0xf]  ;;  %v923_v48 = vld [vmem:[%s1807_s15 + $0x14] sm:$0xf] }
 0x256   : > { %922 = vst [vmem:[%s896_s27 + $0x30] sm:$0xf] %v921_v20  ;;  %924 = vst [vmem:[%s896_s27 + $0x3c] sm:$0xf] %v923_v48 }
 0x257   : > { %v941_v56 = vld [vmem:[%s1807_s15 + $0x38] sm:$0xf]  ;;  %v943_v57 = vld [vmem:[%s1807_s15 + $0x3c] sm:$0xf] }
 0x258   : > { %942 = vst [vmem:[%s896_s27 + $0xa8] sm:$0xf] %v941_v56  ;;  %944 = vst [vmem:[%s896_s27 + $0xb4] sm:$0xf] %v943_v57 }
 0x259   : > { %v937_v29 = vld [vmem:[%s1807_s15 + $0x30] sm:$0xf]  ;;  %v939_v55 = vld [vmem:[%s1807_s15 + $0x34] sm:$0xf] }
 0x25a   : > { %938 = vst [vmem:[%s896_s27 + $0x90] sm:$0xf] %v937_v29  ;;  %940 = vst [vmem:[%s896_s27 + $0x9c] sm:$0xf] %v939_v55 }
 0x25b PF: > { %s15_s26 = sadd.s32 1, %s1482_s26   ;;  %s1874_s18 = smov %s1454_s19 }
 0x25c   : > { %p12_p2 = scmp.ge.s32.totalorder %s15_s26, 8   ;;  %s1875_s19 = smov %s1586_s12 }
 0x25d   : > { %s1876_s20 = smov %s1462_s21  ;;  %s1877_s21 = smov %s1575_s8 }
 0x25e   : > { %s1878_s22 = smov %s1474_s24  ;;  %s1879_s23 = smov %s1478_s25 }
 0x25f   : > { %s1880_s24 = smov %s1883_s28  ;;  %s1881_s25 = smov %s1887_s29 }
 0x260   :  { %14 = sbr.rel (!%p12_p2) target bundleno = 5 (0x5), region = 163 }

// kernel: _lambda_.13
= control target key start
LH: loop header
LB: loop body
LE: loop exit
PB: predicated region body
PF: predicated region fallthrough
CT: control target
= control target key end

     0   :  { %s1066_s15 = smov 0   ;;  %s1068_s16 = smov 0   ;;  %s1182_s0 = inlined_call_operand.vmem [shape: bf16[256,128], index: 0, kind: input, shape index: {}]   ;;  %s1183_s1 = inlined_call_operand.vmem [shape: bf16[128,128], index: 1, kind: input, shape index: {}]   ;;  %s1184_s2 = inlined_call_operand.vmem [shape: f32[1,128], index: 2, kind: input, shape index: {}]   ;;  %s1185_s3 = inlined_call_operand.vmem [shape: bf16[256,128], index: 3, kind: input, shape index: {}]   ;;  %s1186_s4 = inlined_call_operand.vmem [shape: bf16[256,128], index: 4, kind: output, shape index: {}]  }
   0x1   :  { %s1070_s17 = smov 0  }
   0x2 LB: > { %s26_s18 = sadd.s32 1, %s1035_s16  ;;  %p769_p0 = scmp.ge.s32.totalorder %s1039_s17, 1  ;;  %s1039_s17 = sphi %s1070_s17, %s14_s17   ;;  %s1035_s16 = sphi %s1068_s16, %s1188_s16   ;;  %s1031_s15 = sphi %s1066_s15, %s1187_s15  }
   0x3   : > { %p28_p1 = scmp.ge.s32.totalorder %s26_s18, 2  ;;  %p210_p2 = scmp.lt.s32.totalorder %s1039_s17, 3 }
   0x5   : > { %s1190_s18 = smov (%p28_p1, %s26_s18), 0  ;;  %p211_p3 = pnand %p769_p0, %p210_p2 }
   0x6   : > { %s770_s21 = sshll.u32 (!%p211_p3), %s1031_s15, 4 }
   0x7   : > { %214 = sbr.rel (%p211_p3) target bundleno = 259 (0x103), region = 36  ;;  %p255_p4 = scmp.lt.s32.totalorder (!%p211_p3), %s770_s21, 31 }
   0xc   : > { %v1001_v0 = vld [vmem:[%s1183_s1 + $0x38] sm:$0xff]   ;;  %v1002_v1 = vld [vmem:[%s1183_s1 + $0x30] sm:$0xff]   ;;  %s1192_s21 = smov (!%p255_p4, %s770_s21), 31  ;;  %v1003_v2 = vld [vmem:[%s1183_s1 + $0x28] sm:$0xff]  }
   0xd   : > { %929 = vmatprep.subr.bf16.mxu0 %v1001_v0  ;;  %961 = vmatprep.subr.bf16.mxu1 %v1001_v0  ;;  %s1093_s26 = sshll.u32 %s1192_s21, 2  ;;  %v1004_v3 = vld [vmem:[%s1183_s1 + $0x20] sm:$0xff]   ;;  %v1005_v6 = vld [vmem:[%s1183_s1 + $0x18] sm:$0xff]   ;;  %v1006_v7 = vld [vmem:[%s1183_s1 + $0x10] sm:$0xff]  }
   0xe   : > { %930 = vmatpush3.bf16.msra.mxu0 %v1001_v0  ;;  %969 = vmatpush3.bf16.msra.mxu1 %v1001_v0  ;;  %s1099_s29 = scalar_lea.vmem %s1182_s0, %s1093_s26  ;;  %v1007_v8 = vld [vmem:[%s1183_s1 + $0x8] sm:$0xff]   ;;  %v1008_v9 = vld [vmem:[%s1183_s1] sm:$0xff]   ;;  %s1128_s19 = scalar_lea.vmem %s1185_s3, %s1093_s26 }
   0xf   : > { %931 = vmatprep.subr.bf16.mxu0 %v1002_v1  ;;  %962 = vmatprep.subr.bf16.mxu1 %v1002_v1  ;;  %v1009_v4 = vld [vmem:[%s1099_s29] sm:$0xff]   ;;  %v1011_v10 = vld [vmem:[%s1099_s29 + $0x8] sm:$0xff]   ;;  %v1013_v12 = vld [vmem:[%s1099_s29 + $0x10] sm:$0xff]   ;;  %s1153_s24 = scalar_lea.vmem %s1186_s4, %s1093_s26 }
  0x10   : > { %v1010_v5 = vld [vmem:[%s1099_s29 + $0x20] sm:$0xff]   ;;  %945 = vmatprep.mubr.bf16.mxu0 %v1009_v4  ;;  %v1012_v11 = vld [vmem:[%s1099_s29 + $0x28] sm:$0xff]   ;;  %v1014_v13 = vld [vmem:[%s1099_s29 + $0x30] sm:$0xff]  }
  0x11   : > { %953 = vmatprep.mubr.bf16.mxu1 %v1010_v5  ;;  %v1015_v14 = vld [vmem:[%s1099_s29 + $0x18] sm:$0xff]   ;;  %v1133_v16 = vld [vmem:[%s1184_s2] ss:$0 sm:$0xff]  ;;  %v899_v17 = vld [vmem:[%s1128_s19 + $0x8] sm:$0xff]  }
  0x12   : > { %932 = vmatpush3.bf16.msra.mxu0 %v1002_v1  ;;  %970 = vmatpush3.bf16.msra.mxu1 %v1002_v1  ;;  %v1016_v15 = vld [vmem:[%s1099_s29 + $0x38] sm:$0xff]   ;;  %v903_v18 = vld [vmem:[%s1128_s19 + $0x28] sm:$0xff]   ;;  %v828_v21 = vld [vmem:[%s1128_s19] sm:$0xff]   ;;  %v833_v24 = vunpack.c.l.bf16 %v899_v17  ;;  %v834_v29 = vunpack.c.h.bf16 %v899_v17 }
  0x13   : > { %933 = vmatprep.subr.bf16.mxu0 %v1003_v2  ;;  %963 = vmatprep.subr.bf16.mxu1 %v1003_v2  ;;  %v902_v22 = vld [vmem:[%s1128_s19 + $0x20] sm:$0xff]   ;;  %v849_v26 = vunpack.c.l.bf16 %v903_v18  ;;  %v850_v30 = vunpack.c.h.bf16 %v903_v18  ;;  %v829_v32 = vunpack.c.l.bf16 %v828_v21  ;;  %v830_v39 = vunpack.c.h.bf16 %v828_v21  ;;  %v901_v49 = vld [vmem:[%s1128_s19 + $0x18] sm:$0xff]   ;;  %v900_v59 = vld [vmem:[%s1128_s19 + $0x10] sm:$0xff]  }
  0x14   : > { %v845_v34 = vunpack.c.l.bf16 %v902_v22  ;;  %v846_v40 = vunpack.c.h.bf16 %v902_v22  ;;  %v905_v50 = vld [vmem:[%s1128_s19 + $0x38] sm:$0xff]   ;;  %v904_v60 = vld [vmem:[%s1128_s19 + $0x30] sm:$0xff]   ;;  %v841_v62 = vunpack.c.l.bf16 %v901_v49  ;;  %v842_v5 = vunpack.c.h.bf16 %v901_v49 }
  0x15   : > { %v857_v0 = vunpack.c.l.bf16 %v905_v50  ;;  %v854_v17 = vunpack.c.h.bf16 %v904_v60 }
  0x16   : > { %934 = vmatpush3.bf16.msra.mxu0 %v1003_v2  ;;  %971 = vmatpush3.bf16.msra.mxu1 %v1003_v2 }
  0x17   : > { %935 = vmatprep.subr.bf16.mxu0 %v1004_v3  ;;  %964 = vmatprep.subr.bf16.mxu1 %v1004_v3 }
  0x1a   : > { %936 = vmatpush3.bf16.msra.mxu0 %v1004_v3  ;;  %972 = vmatpush3.bf16.msra.mxu1 %v1004_v3 }
  0x1b   : > { %937 = vmatprep.subr.bf16.mxu0 %v1005_v6  ;;  %965 = vmatprep.subr.bf16.mxu1 %v1005_v6 }
  0x1e   : > { %938 = vmatpush3.bf16.msra.mxu0 %v1005_v6  ;;  %973 = vmatpush3.bf16.msra.mxu1 %v1005_v6  ;;  %v858_v6 = vunpack.c.h.bf16 %v905_v50 }
  0x1f   : > { %939 = vmatprep.subr.bf16.mxu0 %v1006_v7  ;;  %966 = vmatprep.subr.bf16.mxu1 %v1006_v7 }
  0x22   : > { %940 = vmatpush3.bf16.msra.mxu0 %v1006_v7  ;;  %974 = vmatpush3.bf16.msra.mxu1 %v1006_v7 }
  0x23   : > { %941 = vmatprep.subr.bf16.mxu0 %v1007_v8  ;;  %967 = vmatprep.subr.bf16.mxu1 %v1007_v8 }
  0x26   : > { %942 = vmatpush3.bf16.msra.mxu0 %v1007_v8  ;;  %975 = vmatpush3.bf16.msra.mxu1 %v1007_v8  ;;  %v837_v8 = vunpack.c.l.bf16 %v900_v59 }
  0x27   : > { %943 = vmatprep.subr.bf16.mxu0 %v1008_v9  ;;  %968 = vmatprep.subr.bf16.mxu1 %v1008_v9 }
  0x2a   : > { %944 = vmatpush3.bf16.msra.mxu0 %v1008_v9  ;;  %976 = vmatpush3.bf16.msra.mxu1 %v1008_v9 }
  0x2d   : > { %946 = vmatmul.mubr.bf16.vlgmr.msra.gmra.mxu0 %v1011_v10  ;;  %954 = vmatmul.mubr.bf16.vlgmr.msra.gmra.mxu1 %v1012_v11  ;;  %v853_v10 = vunpack.c.l.bf16 %v904_v60 }
  0x2e   : > { %949 = vmatprep.mubr.bf16.mxu0 %v1013_v12  ;;  %957 = vmatprep.mubr.bf16.mxu1 %v1014_v13 }
  0x35   : > { %950 = vmatmul.mubr.bf16.gmra.mxu0 %v1015_v14  ;;  %958 = vmatmul.mubr.bf16.gmra.mxu1 %v1016_v15  ;;  %v838_v15 = vunpack.c.h.bf16 %v900_v59 }
  0xed   : > { %v947_v19 = vpop.f32.mrf.mxu0  ;;  %v955_v20 = vpop.f32.mrf.mxu1 }
  0xee   : > { %v464_v23 = vadd.f32 %v947_v19, %v1133_v16  ;;  %v496_v25 = vadd.f32 %v955_v20, %v1133_v16 }
  0xef   : > { %v455_v27 = vpop.f32.mrf.mxu0  ;;  %v487_v28 = vpop.f32.mrf.mxu1 }
  0xf0   : > { %v456_v31 = vadd.f32 %v1133_v16, %v455_v27  ;;  %v488_v33 = vadd.f32 %v1133_v16, %v487_v28  ;;  %v552_v41 = vadd.f32 %v833_v24, %v464_v23  ;;  %v560_v42 = vadd.f32 %v849_v26, %v496_v25 }
  0xf1   : > { %v948_v35 = vpop.f32.mrf.mxu0  ;;  %v956_v36 = vpop.f32.mrf.mxu1 }
  0xf2   : > { %v467_v37 = vadd.f32 %v948_v35, %v1133_v16  ;;  %v499_v38 = vadd.f32 %v956_v36, %v1133_v16  ;;  %v550_v51 = vadd.f32 %v829_v32, %v456_v31  ;;  %v558_v52 = vadd.f32 %v845_v34, %v488_v33 }
  0xf3   : > { %v458_v43 = vpop.f32.mrf.mxu0  ;;  %v490_v44 = vpop.f32.mrf.mxu1 }
  0xf4   : > { %v553_v45 = vadd.f32 %v834_v29, %v467_v37  ;;  %v561_v46 = vadd.f32 %v850_v30, %v499_v38  ;;  %v459_v47 = vadd.f32 %v1133_v16, %v458_v43  ;;  %v491_v48 = vadd.f32 %v1133_v16, %v490_v44 }
  0xf5   : > { %v951_v53 = vpop.f32.mrf.mxu0  ;;  %v959_v54 = vpop.f32.mrf.mxu1 }
  0xf6   : > { %v867_v55 = vpack.c.bf16 %v553_v45, %v552_v41  ;;  %v887_v56 = vpack.c.bf16 %v561_v46, %v560_v42  ;;  %v551_v57 = vadd.f32 %v830_v39, %v459_v47  ;;  %v559_v58 = vadd.f32 %v846_v40, %v491_v48 }
  0xf7   : > { %v480_v61 = vadd.f32 %v951_v53, %v1133_v16  ;;  %v512_v63 = vadd.f32 %v959_v54, %v1133_v16  ;;  %v471_v1 = vpop.f32.mrf.mxu0  ;;  %v503_v2 = vpop.f32.mrf.mxu1 }
  0xf8   : > { %906 = vst [vmem:[%s1153_s24 + $0x8] sm:$0xff] %v867_v55   ;;  %910 = vst [vmem:[%s1153_s24 + $0x28] sm:$0xff] %v887_v56   ;;  %v862_v3 = vpack.c.bf16 %v551_v57, %v550_v51  ;;  %v882_v4 = vpack.c.bf16 %v559_v58, %v558_v52  ;;  %v472_v7 = vadd.f32 %v1133_v16, %v471_v1 }
  0xf9   : > { %v504_v9 = vadd.f32 %v1133_v16, %v503_v2  ;;  %v952_v11 = vpop.f32.mrf.mxu0  ;;  %v960_v12 = vpop.f32.mrf.mxu1  ;;  %v556_v18 = vadd.f32 %v841_v62, %v480_v61  ;;  %v564_v19 = vadd.f32 %v857_v0, %v512_v63 }
  0xfa   : > { %863 = vst [vmem:[%s1153_s24] sm:$0xff] %v862_v3   ;;  %909 = vst [vmem:[%s1153_s24 + $0x20] sm:$0xff] %v882_v4   ;;  %v483_v13 = vadd.f32 %v952_v11, %v1133_v16  ;;  %v515_v14 = vadd.f32 %v960_v12, %v1133_v16  ;;  %v554_v26 = vadd.f32 %v837_v8, %v472_v7 }
  0xfb   : > { %v474_v20 = vpop.f32.mrf.mxu0  ;;  %v506_v21 = vpop.f32.mrf.mxu1  ;;  %v562_v27 = vadd.f32 %v853_v10, %v504_v9 }
  0xfc   : > { %v557_v22 = vadd.f32 %v842_v5, %v483_v13  ;;  %v565_v23 = vadd.f32 %v858_v6, %v515_v14  ;;  %v475_v24 = vadd.f32 %v1133_v16, %v474_v20  ;;  %v507_v25 = vadd.f32 %v1133_v16, %v506_v21 }
  0xfe   : > { %v877_v28 = vpack.c.bf16 %v557_v22, %v556_v18  ;;  %v897_v29 = vpack.c.bf16 %v565_v23, %v564_v19  ;;  %v555_v30 = vadd.f32 %v838_v15, %v475_v24  ;;  %v563_v31 = vadd.f32 %v854_v17, %v507_v25 }
 0x100   : > { %908 = vst [vmem:[%s1153_s24 + $0x18] sm:$0xff] %v877_v28   ;;  %912 = vst [vmem:[%s1153_s24 + $0x38] sm:$0xff] %v897_v29   ;;  %v872_v32 = vpack.c.bf16 %v555_v30, %v554_v26  ;;  %v892_v33 = vpack.c.bf16 %v563_v31, %v562_v27 }
 0x102   : > { %907 = vst [vmem:[%s1153_s24 + $0x10] sm:$0xff] %v872_v32   ;;  %911 = vst [vmem:[%s1153_s24 + $0x30] sm:$0xff] %v892_v33  }
 0x103 PF: > { %s14_s17 = sadd.s32 1, %s1039_s17   ;;  %s1187_s15 = smov %s1035_s16 }
 0x104   : > { %p11_p5 = scmp.ge.s32.totalorder %s14_s17, 4   ;;  %s1188_s16 = smov %s1190_s18 }
 0x106   :  { %13 = sbr.rel (!%p11_p5) target bundleno = 2 (0x2), region = 75 }

// kernel: _lambda_.14
= control target key start
LH: loop header
LB: loop body
LE: loop exit
PB: predicated region body
PF: predicated region fallthrough
CT: control target
= control target key end

     0   :  { %s1709_s18 = smov 0   ;;  %s1711_s19 = smov 0   ;;  %s2159_s0 = inlined_call_operand.vmem [shape: bf16[256,128], index: 0, kind: input, shape index: {}]   ;;  %s2160_s1 = inlined_call_operand.vmem [shape: f32[1,128], index: 1, kind: input, shape index: {}]   ;;  %s2161_s2 = inlined_call_operand.vmem [shape: f32[1,128], index: 2, kind: input, shape index: {}]   ;;  %s2162_s3 = inlined_call_operand.vmem [shape: bf16[128,512], index: 3, kind: input, shape index: {}]   ;;  %s2163_s4 = inlined_call_operand.vmem [shape: f32[1,512], index: 4, kind: input, shape index: {}]   ;;  %s2164_s5 = inlined_call_operand.vmem [shape: bf16[256,512], index: 5, kind: output, shape index: {}]  }
   0x1   :  { %s1713_s20 = smov 0  }
   0x2 LB: > { %s27_s21 = sadd.s32 1, %s1672_s19  ;;  %p1403_p0 = scmp.ge.s32.totalorder %s1676_s20, 1  ;;  %s1676_s20 = sphi %s1713_s20, %s15_s20   ;;  %s1672_s19 = sphi %s1711_s19, %s2166_s19   ;;  %s1668_s18 = sphi %s1709_s18, %s2165_s18  }
   0x3   : > { %p29_p1 = scmp.ge.s32.totalorder %s27_s21, 2  ;;  %p223_p2 = scmp.lt.s32.totalorder %s1676_s20, 3 }
   0x5   : > { %s2168_s21 = smov (%p29_p1, %s27_s21), 0  ;;  %p224_p3 = pnand %p1403_p0, %p223_p2 }
   0x6   : > { %s1404_s22 = sshll.u32 (!%p224_p3), %s1668_s18, 4 }
   0x7   : > { %227 = sbr.rel (%p224_p3) target bundleno = 592 (0x250), region = 40  ;;  %p266_p4 = scmp.lt.s32.totalorder (!%p224_p3), %s1404_s22, 31 }
   0xc   : > { %s2170_s22 = smov (!%p266_p4, %s1404_s22), 31  ;;  %v1574_v24 = vld [vmem:[%s2162_s3 + $0xe4] ss:$16 sps:$4 sm:$0xff]   ;;  %v1576_v25 = vld [vmem:[%s2162_s3 + $0xec] ss:$16 sps:$4 sm:$0xff]  }
   0xd   : > { %s1405_s23 = sshll.u32 %s2170_s22, 2  ;;  %v1578_v26 = vld [vmem:[%s2162_s3 + $0xe0] ss:$16 sps:$4 sm:$0xff]   ;;  %v1579_v27 = vld [vmem:[%s2162_s3 + $0xe8] ss:$16 sps:$4 sm:$0xff]   ;;  %772 = vmatprep.subr.bf16.mxu0 %v1574_v24  ;;  %885 = vmatprep.subr.bf16.mxu1 %v1576_v25  ;;  %s1477_s9 = sshll.u32 %s2170_s22, 4 }
   0xe   : > { %s1733_s26 = scalar_lea.vmem %s2159_s0, %s1405_s23  ;;  %773 = vmatpush1.bf16.msra.mxu0 %v1578_v26  ;;  %886 = vmatpush1.bf16.msra.mxu1 %v1579_v27  ;;  %v1580_v63 = vld [vmem:[%s2162_s3 + $0xc4] ss:$16 sps:$4 sm:$0xff]   ;;  %v1590_v25 = vld [vmem:[%s2162_s3 + $0xa0] ss:$16 sps:$4 sm:$0xff]   ;;  %v1591_v26 = vld [vmem:[%s2162_s3 + $0xa8] ss:$16 sps:$4 sm:$0xff]   ;;  %s2056_s12 = scalar_lea.vmem %s2164_s5, %s1477_s9 }
   0xf   : > { %v1511_v0 = vld [vmem:[%s1733_s26] sm:$0xff]   ;;  %v1542_v1 = vld [vmem:[%s1733_s26 + $0x8] sm:$0xff]   ;;  %v1738_v4 = vld [vmem:[%s1733_s26 + $0x10] sm:$0xff]   ;;  %774 = vmatprep.subr.bf16.mxu0 %v1580_v63 }
  0x10   : > { %v1512_v2 = vunpack.c.l.bf16 %v1511_v0  ;;  %v1516_v3 = vunpack.c.l.bf16 %v1542_v1  ;;  %v1513_v5 = vunpack.c.h.bf16 %v1511_v0  ;;  %v1517_v6 = vunpack.c.h.bf16 %v1542_v1  ;;  %v1743_v9 = vld [vmem:[%s1733_s26 + $0x18] sm:$0xff]   ;;  %v1748_v12 = vld [vmem:[%s1733_s26 + $0x20] sm:$0xff]   ;;  %v1755_v15 = vld [vmem:[%s1733_s26 + $0x28] sm:$0xff]  }
  0x11   : > { %v1520_v7 = vunpack.c.l.bf16 %v1738_v4  ;;  %v1521_v8 = vunpack.c.h.bf16 %v1738_v4  ;;  %v1524_v10 = vunpack.c.l.bf16 %v1743_v9  ;;  %v1525_v11 = vunpack.c.h.bf16 %v1743_v9  ;;  %v1764_v18 = vld [vmem:[%s1733_s26 + $0x30] sm:$0xff]   ;;  %v1773_v21 = vld [vmem:[%s1733_s26 + $0x38] sm:$0xff]  }
  0x12   : > { %327 = vadd.xlane.f32.xlu0 %v1512_v2  ;;  %331 = vadd.xlane.f32.xlu1 %v1516_v3  ;;  %v1528_v13 = vunpack.c.l.bf16 %v1748_v12  ;;  %v1529_v14 = vunpack.c.h.bf16 %v1748_v12  ;;  %v1532_v16 = vunpack.c.l.bf16 %v1755_v15  ;;  %v1533_v17 = vunpack.c.h.bf16 %v1755_v15  ;;  %v1582_v0 = vld [vmem:[%s2162_s3 + $0xcc] ss:$16 sps:$4 sm:$0xff]   ;;  %v1584_v1 = vld [vmem:[%s2162_s3 + $0xc0] ss:$16 sps:$4 sm:$0xff]   ;;  %v1621_v63 = vld [vmem:[%s2162_s3 + $0x8] ss:$16 sps:$4 sm:$0xff]  }
  0x13   : > { %v1536_v19 = vunpack.c.l.bf16 %v1764_v18  ;;  %v1537_v20 = vunpack.c.h.bf16 %v1764_v18  ;;  %v1540_v22 = vunpack.c.l.bf16 %v1773_v21  ;;  %v1541_v23 = vunpack.c.h.bf16 %v1773_v21  ;;  %887 = vmatprep.subr.bf16.mxu1 %v1582_v0  ;;  %775 = vmatpush1.bf16.msra.mxu0 %v1584_v1  ;;  %v1588_v12 = vld [vmem:[%s2162_s3 + $0xac] ss:$16 sps:$4 sm:$0xff]   ;;  %v1604_v21 = vld [vmem:[%s2162_s3 + $0x44] ss:$16 sps:$4 sm:$0xff]  }
  0x14   : > { %v1678_v0 = vmov 0  }
  0x15   : > { %804 = vmatprep.mubr.bf16.mxu0 %v1678_v0  ;;  %917 = vmatprep.mubr.bf16.mxu1 %v1678_v0 }
  0x16   : > { %329 = vadd.xlane.f32.xlu0 %v1513_v5  ;;  %333 = vadd.xlane.f32.xlu1 %v1517_v6 }
  0x1a   : > { %335 = vadd.xlane.f32.xlu0 %v1520_v7  ;;  %337 = vadd.xlane.f32.xlu1 %v1521_v8 }
  0x1e   : > { %339 = vadd.xlane.f32.xlu0 %v1524_v10  ;;  %341 = vadd.xlane.f32.xlu1 %v1525_v11 }
  0x22   : > { %343 = vadd.xlane.f32.xlu0 %v1528_v13  ;;  %345 = vadd.xlane.f32.xlu1 %v1529_v14 }
  0x26   : > { %347 = vadd.xlane.f32.xlu0 %v1532_v16  ;;  %349 = vadd.xlane.f32.xlu1 %v1533_v17 }
  0x2a   : > { %351 = vadd.xlane.f32.xlu0 %v1536_v19  ;;  %353 = vadd.xlane.f32.xlu1 %v1537_v20 }
  0x2e   : > { %355 = vadd.xlane.f32.xlu0 %v1540_v22  ;;  %357 = vadd.xlane.f32.xlu1 %v1541_v23 }
  0x9b   : > { %v328_v28 = vpop.xlane.xlu0 %327  ;;  %v332_v29 = vpop.xlane.xlu1 %331 }
  0x9c   : > { %v360_v30 = vmul.f32 0.0078125, %v328_v28  ;;  %v362_v31 = vmul.f32 0.0078125, %v332_v29  ;;  %v1592_v29 = vld [vmem:[%s2162_s3 + $0x84] ss:$16 sps:$4 sm:$0xff]  }
  0x9e   : > { %v1797_v32 = vsub.f32 %v1512_v2, %v360_v30  ;;  %v1799_v33 = vsub.f32 %v1516_v3, %v362_v31  ;;  %v1585_v2 = vld [vmem:[%s2162_s3 + $0xc8] ss:$16 sps:$4 sm:$0xff]   ;;  %v1594_v30 = vld [vmem:[%s2162_s3 + $0x8c] ss:$16 sps:$4 sm:$0xff]  }
  0x9f   : > { %v330_v34 = vpop.xlane.xlu0 %329  ;;  %v334_v35 = vpop.xlane.xlu1 %333  ;;  %888 = vmatpush1.bf16.msra.mxu1 %v1585_v2 }
  0xa0   : > { %v361_v36 = vmul.f32 0.0078125, %v330_v34  ;;  %v392_v37 = vmul.f32 %v1797_v32, %v1797_v32  ;;  %v363_v38 = vmul.f32 0.0078125, %v334_v35  ;;  %v394_v41 = vmul.f32 %v1799_v33, %v1799_v33  ;;  %889 = vmatprep.subr.bf16.mxu1 %v1588_v12 }
  0xa2   : > { %v1803_v39 = vsub.f32 %v1513_v5, %v361_v36  ;;  %408 = vadd.xlane.f32.xlu0 %v392_v37  ;;  %v1805_v40 = vsub.f32 %v1517_v6, %v363_v38  ;;  %v1596_v36 = vld [vmem:[%s2162_s3 + $0x80] ss:$16 sps:$4 sm:$0xff]   ;;  %v1597_v37 = vld [vmem:[%s2162_s3 + $0x88] ss:$16 sps:$4 sm:$0xff]  }
  0xa3   : > { %v336_v42 = vpop.xlane.xlu0 %335  ;;  %v338_v43 = vpop.xlane.xlu1 %337  ;;  %890 = vmatpush1.bf16.msra.mxu1 %v1591_v26 }
  0xa4   : > { %v364_v44 = vmul.f32 0.0078125, %v336_v42  ;;  %v393_v45 = vmul.f32 %v1803_v39, %v1803_v39  ;;  %v365_v46 = vmul.f32 0.0078125, %v338_v43  ;;  %v395_v49 = vmul.f32 %v1805_v40, %v1805_v40  ;;  %891 = vmatprep.subr.bf16.mxu1 %v1594_v30  ;;  %v1598_v42 = vld [vmem:[%s2162_s3 + $0x64] ss:$16 sps:$4 sm:$0xff]   ;;  %v1600_v43 = vld [vmem:[%s2162_s3 + $0x6c] ss:$16 sps:$4 sm:$0xff]  }
  0xa6   : > { %v1811_v47 = vsub.f32 %v1520_v7, %v364_v44  ;;  %412 = vadd.xlane.f32.xlu0 %v394_v41  ;;  %410 = vadd.xlane.f32.xlu1 %v393_v45  ;;  %v1813_v48 = vsub.f32 %v1521_v8, %v365_v46 }
  0xa7   : > { %v340_v50 = vpop.xlane.xlu0 %339  ;;  %v342_v51 = vpop.xlane.xlu1 %341  ;;  %892 = vmatpush1.bf16.msra.mxu1 %v1597_v37 }
  0xa8   : > { %v366_v52 = vmul.f32 0.0078125, %v340_v50  ;;  %v396_v53 = vmul.f32 %v1811_v47, %v1811_v47  ;;  %v367_v54 = vmul.f32 0.0078125, %v342_v51  ;;  %v397_v57 = vmul.f32 %v1813_v48, %v1813_v48  ;;  %v1603_v50 = vld [vmem:[%s2162_s3 + $0x68] ss:$16 sps:$4 sm:$0xff]   ;;  %893 = vmatprep.subr.bf16.mxu1 %v1600_v43 }
  0xaa   : > { %v1819_v55 = vsub.f32 %v1524_v10, %v366_v52  ;;  %414 = vadd.xlane.f32.xlu1 %v395_v49  ;;  %416 = vadd.xlane.f32.xlu0 %v396_v53  ;;  %v1823_v56 = vsub.f32 %v1525_v11, %v367_v54  ;;  %v1586_v11 = vld [vmem:[%s2162_s3 + $0xa4] ss:$16 sps:$4 sm:$0xff]   ;;  %v1602_v49 = vld [vmem:[%s2162_s3 + $0x60] ss:$16 sps:$4 sm:$0xff]   ;;  %v1609_v53 = vld [vmem:[%s2162_s3 + $0x48] ss:$16 sps:$4 sm:$0xff]  }
  0xab   : > { %v344_v58 = vpop.xlane.xlu0 %343  ;;  %v346_v59 = vpop.xlane.xlu1 %345  ;;  %776 = vmatprep.subr.bf16.mxu0 %v1586_v11  ;;  %894 = vmatpush1.bf16.msra.mxu1 %v1603_v50  ;;  %v1608_v52 = vld [vmem:[%s2162_s3 + $0x40] ss:$16 sps:$4 sm:$0xff]   ;;  %v1610_v54 = vld [vmem:[%s2162_s3 + $0x24] ss:$16 sps:$4 sm:$0xff]  }
  0xac   : > { %v368_v60 = vmul.f32 0.0078125, %v344_v58  ;;  %v398_v61 = vmul.f32 %v1819_v55, %v1819_v55  ;;  %v369_v62 = vmul.f32 0.0078125, %v346_v59  ;;  %v399_v5 = vmul.f32 %v1823_v56, %v1823_v56  ;;  %777 = vmatpush1.bf16.msra.mxu0 %v1590_v25  ;;  %v1614_v58 = vld [vmem:[%s2162_s3 + $0x20] ss:$16 sps:$4 sm:$0xff]   ;;  %v1615_v59 = vld [vmem:[%s2162_s3 + $0x28] ss:$16 sps:$4 sm:$0xff]  }
  0xad   : > { %778 = vmatprep.subr.bf16.mxu0 %v1592_v29 }
  0xae   : > { %v1843_v3 = vsub.f32 %v1528_v13, %v368_v60  ;;  %418 = vadd.xlane.f32.xlu1 %v397_v57  ;;  %420 = vadd.xlane.f32.xlu0 %v398_v61  ;;  %v1847_v4 = vsub.f32 %v1529_v14, %v369_v62  ;;  %v1612_v57 = vld [vmem:[%s2162_s3 + $0x2c] ss:$16 sps:$4 sm:$0xff]   ;;  %v1616_v60 = vld [vmem:[%s2162_s3 + $0x4] ss:$16 sps:$4 sm:$0xff]   ;;  %v1620_v62 = vld [vmem:[%s2162_s3] ss:$16 sps:$4 sm:$0xff]  }
  0xaf   : > { %v348_v6 = vpop.xlane.xlu0 %347  ;;  %v350_v7 = vpop.xlane.xlu1 %349  ;;  %v1618_v61 = vld [vmem:[%s2162_s3 + $0xc] ss:$16 sps:$4 sm:$0xff]  }
  0xb0   : > { %v370_v8 = vmul.f32 0.0078125, %v348_v6  ;;  %v400_v9 = vmul.f32 %v1843_v3, %v1843_v3  ;;  %v371_v10 = vmul.f32 0.0078125, %v350_v7  ;;  %v401_v24 = vmul.f32 %v1847_v4, %v1847_v4  ;;  %779 = vmatpush1.bf16.msra.mxu0 %v1596_v36 }
  0xb1   : > { %780 = vmatprep.subr.bf16.mxu0 %v1598_v42 }
  0xb2   : > { %v1861_v13 = vsub.f32 %v1532_v16, %v370_v8  ;;  %422 = vadd.xlane.f32.xlu1 %v399_v5  ;;  %424 = vadd.xlane.f32.xlu0 %v400_v9  ;;  %v1865_v14 = vsub.f32 %v1533_v17, %v371_v10 }
  0xb3   : > { %v352_v27 = vpop.xlane.xlu0 %351  ;;  %v354_v16 = vpop.xlane.xlu1 %353 }
  0xb4   : > { %v372_v28 = vmul.f32 0.0078125, %v352_v27  ;;  %v402_v15 = vmul.f32 %v1861_v13, %v1861_v13  ;;  %v373_v17 = vmul.f32 0.0078125, %v354_v16  ;;  %v403_v35 = vmul.f32 %v1865_v14, %v1865_v14  ;;  %781 = vmatpush1.bf16.msra.mxu0 %v1602_v49 }
  0xb5   : > { %782 = vmatprep.subr.bf16.mxu0 %v1604_v21 }
  0xb6   : > { %v1885_v31 = vsub.f32 %v1536_v19, %v372_v28  ;;  %426 = vadd.xlane.f32.xlu1 %v401_v24  ;;  %428 = vadd.xlane.f32.xlu0 %v402_v15  ;;  %v1889_v34 = vsub.f32 %v1537_v20, %v373_v17 }
  0xb7   : > { %v356_v38 = vpop.xlane.xlu0 %355  ;;  %v358_v19 = vpop.xlane.xlu1 %357 }
  0xb8   : > { %v374_v41 = vmul.f32 0.0078125, %v356_v38  ;;  %v404_v18 = vmul.f32 %v1885_v31, %v1885_v31  ;;  %v375_v20 = vmul.f32 0.0078125, %v358_v19  ;;  %v405_v46 = vmul.f32 %v1889_v34, %v1889_v34  ;;  %783 = vmatpush1.bf16.msra.mxu0 %v1608_v52  ;;  %v1969_v19 = vld [vmem:[%s2160_s1] ss:$0 sm:$0xff] }
  0xb9   : > { %784 = vmatprep.subr.bf16.mxu0 %v1610_v54 }
  0xba   : > { %v1909_v44 = vsub.f32 %v1540_v22, %v374_v41  ;;  %430 = vadd.xlane.f32.xlu1 %v403_v35  ;;  %432 = vadd.xlane.f32.xlu0 %v404_v18  ;;  %v1913_v45 = vsub.f32 %v1541_v23, %v375_v20  ;;  %v1606_v23 = vld [vmem:[%s2162_s3 + $0x4c] ss:$16 sps:$4 sm:$0xff]  }
  0xbb   : > { %895 = vmatprep.subr.bf16.mxu1 %v1606_v23 }
  0xbc   : > { %v406_v22 = vmul.f32 %v1909_v44, %v1909_v44  ;;  %v407_v51 = vmul.f32 %v1913_v45, %v1913_v45  ;;  %896 = vmatpush1.bf16.msra.mxu1 %v1609_v53  ;;  %785 = vmatpush1.bf16.msra.mxu0 %v1614_v58 }
  0xbd   : > { %897 = vmatprep.subr.bf16.mxu1 %v1612_v57  ;;  %786 = vmatprep.subr.bf16.mxu0 %v1616_v60 }
  0xbe   : > { %434 = vadd.xlane.f32.xlu1 %v405_v46  ;;  %436 = vadd.xlane.f32.xlu0 %v406_v22  ;;  %v1976_v22 = vld [vmem:[%s2161_s2] ss:$0 sm:$0xff] }
  0xc0   : > { %898 = vmatpush1.bf16.msra.mxu1 %v1615_v59  ;;  %787 = vmatpush1.bf16.msra.mxu0 %v1620_v62 }
  0xc1   : > { %899 = vmatprep.subr.bf16.mxu1 %v1618_v61 }
  0xc2   : > { %438 = vadd.xlane.f32.xlu1 %v407_v51 }
  0xc4   : > { %900 = vmatpush1.bf16.msra.mxu1 %v1621_v63 }
 0x12b   : > { %v409_v1 = vpop.xlane.xlu0 %408 }
 0x12c   : > { %v440_v2 = vmul.f32 0.0078125, %v409_v1 }
 0x12e   : > { %v456_v5 = vadd.f32 1e-05, %v440_v2 }
 0x12f   : > { %v411_v6 = vpop.xlane.xlu1 %410  ;;  %v413_v7 = vpop.xlane.xlu0 %412 }
 0x130   : > { %1622 = vrsqrt.f32 %v456_v5  ;;  %v441_v8 = vmul.f32 0.0078125, %v411_v6  ;;  %v442_v9 = vmul.f32 0.0078125, %v413_v7 }
 0x132   : > { %v457_v10 = vadd.f32 1e-05, %v441_v8  ;;  %v458_v11 = vadd.f32 1e-05, %v442_v9 }
 0x133   : > { %v415_v12 = vpop.xlane.xlu1 %414  ;;  %v417_v24 = vpop.xlane.xlu0 %416 }
 0x134   : > { %1624 = vrsqrt.f32 %v457_v10  ;;  %v443_v25 = vmul.f32 0.0078125, %v415_v12  ;;  %v444_v27 = vmul.f32 0.0078125, %v417_v24 }
 0x135   : > { %1626 = vrsqrt.f32 %v458_v11 }
 0x136   : > { %v459_v26 = vadd.f32 1e-05, %v443_v25  ;;  %v460_v15 = vadd.f32 1e-05, %v444_v27 }
 0x137   : > { %v419_v16 = vpop.xlane.xlu1 %418  ;;  %v421_v29 = vpop.xlane.xlu0 %420 }
 0x138   : > { %1628 = vrsqrt.f32 %v459_v26  ;;  %v445_v28 = vmul.f32 0.0078125, %v419_v16  ;;  %v446_v37 = vmul.f32 0.0078125, %v421_v29 }
 0x13a   : > { %v461_v17 = vadd.f32 1e-05, %v445_v28  ;;  %v462_v20 = vadd.f32 1e-05, %v446_v37 }
 0x13b   : > { %v423_v30 = vpop.xlane.xlu1 %422  ;;  %v425_v43 = vpop.xlane.xlu0 %424 }
 0x13c   : > { %1630 = vrsqrt.f32 %v461_v17  ;;  %v447_v35 = vmul.f32 0.0078125, %v423_v30  ;;  %v448_v51 = vmul.f32 0.0078125, %v425_v43 }
 0x13d   : > { %v1623_v36 = vpop.eup %1622  ;;  %1632 = vrsqrt.f32 %v460_v15 }
 0x13e   : > { %v488_v38 = vmul.f32 %v1623_v36, %v1797_v32  ;;  %v463_v41 = vadd.f32 1e-05, %v447_v35  ;;  %v464_v62 = vadd.f32 1e-05, %v448_v51 }
 0x13f   : > { %v427_v42 = vpop.xlane.xlu1 %426  ;;  %v429_v2 = vpop.xlane.xlu0 %428 }
 0x140   : > { %v511_v49 = vmul.f32 %v1969_v19, %v488_v38  ;;  %1634 = vrsqrt.f32 %v463_v41  ;;  %v449_v32 = vmul.f32 0.0078125, %v427_v42  ;;  %v450_v6 = vmul.f32 0.0078125, %v429_v2 }
 0x141   : > { %v1625_v18 = vpop.eup %1624  ;;  %1636 = vrsqrt.f32 %v462_v20 }
 0x142   : > { %v489_v46 = vmul.f32 %v1625_v18, %v1803_v39  ;;  %v1627_v50 = vpop.eup %1626  ;;  %v534_v52 = vadd.f32 %v1976_v22, %v511_v49  ;;  %v465_v57 = vadd.f32 1e-05, %v449_v32  ;;  %v466_v26 = vadd.f32 1e-05, %v450_v6 }
 0x143   : > { %v490_v39 = vmul.f32 %v1627_v50, %v1799_v33  ;;  %v431_v60 = vpop.xlane.xlu1 %430  ;;  %v433_v16 = vpop.xlane.xlu0 %432 }
 0x144   : > { %v512_v21 = vmul.f32 %v1969_v19, %v489_v46  ;;  %1638 = vrsqrt.f32 %v465_v57  ;;  %v451_v33 = vmul.f32 0.0078125, %v431_v60  ;;  %v452_v15 = vmul.f32 0.0078125, %v433_v16 }
 0x145   : > { %v1629_v23 = vpop.eup %1628  ;;  %v513_v63 = vmul.f32 %v1969_v19, %v490_v39  ;;  %1640 = vrsqrt.f32 %v464_v62 }
 0x146   : > { %v535_v53 = vadd.f32 %v1976_v22, %v512_v21  ;;  %v491_v54 = vmul.f32 %v1629_v23, %v1805_v40  ;;  %v467_v9 = vadd.f32 1e-05, %v451_v33  ;;  %v468_v41 = vadd.f32 1e-05, %v452_v15 }
 0x147   : > { %v536_v7 = vadd.f32 %v1976_v22, %v513_v63  ;;  %v435_v24 = vpop.xlane.xlu1 %434  ;;  %v437_v42 = vpop.xlane.xlu0 %436 }
 0x148   : > { %v550_v58 = vpack.c.bf16 %v535_v53, %v534_v52  ;;  %v514_v61 = vmul.f32 %v1969_v19, %v491_v54  ;;  %1642 = vrsqrt.f32 %v467_v9  ;;  %v454_v46 = vmul.f32 0.0078125, %v437_v42 }
 0x149   : > { %v1631_v59 = vpop.eup %1630  ;;  %1644 = vrsqrt.f32 %v466_v26 }
 0x14a   : > { %805 = vmatmul.mubr.bf16.vlgmr.msra.gmra.mxu0 %v550_v58  ;;  %918 = vmatmul.mubr.bf16.vlgmr.msra.gmra.mxu1 %v550_v58  ;;  %v1633_v1 = vpop.eup %1632  ;;  %v537_v40 = vadd.f32 %v1976_v22, %v514_v61  ;;  %v493_v5 = vmul.f32 %v1631_v59, %v1813_v48  ;;  %v453_v48 = vmul.f32 0.0078125, %v435_v24  ;;  %v470_v52 = vadd.f32 1e-05, %v454_v46 }
 0x14b   : > { %814 = vmatprep.mubr.bf16.mxu0 %v1678_v0  ;;  %927 = vmatprep.mubr.bf16.mxu1 %v1678_v0  ;;  %v492_v8 = vmul.f32 %v1633_v1, %v1811_v47  ;;  %v439_v38 = vpop.xlane.xlu1 %438 }
 0x14c   : > { %v551_v10 = vpack.c.bf16 %v537_v40, %v536_v7  ;;  %v516_v11 = vmul.f32 %v1969_v19, %v493_v5  ;;  %v469_v30 = vadd.f32 1e-05, %v453_v48 }
 0x14d   : > { %v1635_v12 = vpop.eup %1634  ;;  %v515_v27 = vmul.f32 %v1969_v19, %v492_v8 }
 0x14e   : > { %v1637_v25 = vpop.eup %1636  ;;  %v539_v47 = vadd.f32 %v1976_v22, %v516_v11  ;;  %v495_v28 = vmul.f32 %v1635_v12, %v1823_v56  ;;  %1646 = vrsqrt.f32 %v469_v30  ;;  %v455_v56 = vmul.f32 0.0078125, %v439_v38 }
 0x14f   : > { %v538_v17 = vadd.f32 %v1976_v22, %v515_v27  ;;  %v494_v29 = vmul.f32 %v1637_v25, %v1819_v55  ;;  %1648 = vrsqrt.f32 %v468_v41  ;;  %v592_v25 = vlaneseq }
 0x150   : > { %v518_v36 = vmul.f32 %v1969_v19, %v495_v28  ;;  %v471_v32 = vadd.f32 1e-05, %v455_v56 }
 0x151   : > { %v552_v35 = vpack.c.bf16 %v539_v47, %v538_v17  ;;  %v1639_v37 = vpop.eup %1638  ;;  %v517_v18 = vmul.f32 %v1969_v19, %v494_v29 }
 0x152   : > { %815 = vmatmul.mubr.bf16.gmra.mxu0 %v551_v10  ;;  %928 = vmatmul.mubr.bf16.gmra.mxu1 %v551_v10  ;;  %v1641_v20 = vpop.eup %1640  ;;  %v541_v55 = vadd.f32 %v1976_v22, %v518_v36  ;;  %v497_v43 = vmul.f32 %v1639_v37, %v1847_v4  ;;  %1650 = vrsqrt.f32 %v471_v32 }
 0x153   : > { %824 = vmatprep.mubr.bf16.mxu0 %v1678_v0  ;;  %937 = vmatprep.mubr.bf16.mxu1 %v1678_v0  ;;  %v540_v49 = vadd.f32 %v1976_v22, %v517_v18  ;;  %v496_v50 = vmul.f32 %v1641_v20, %v1843_v3  ;;  %1652 = vrsqrt.f32 %v470_v52 }
 0x154   : > { %v520_v23 = vmul.f32 %v1969_v19, %v497_v43 }
 0x155   : > { %v553_v21 = vpack.c.bf16 %v541_v55, %v540_v49  ;;  %v1643_v51 = vpop.eup %1642  ;;  %v519_v53 = vmul.f32 %v1969_v19, %v496_v50 }
 0x156   : > { %v1645_v39 = vpop.eup %1644  ;;  %v543_v4 = vadd.f32 %v1976_v22, %v520_v23  ;;  %v499_v3 = vmul.f32 %v1643_v51, %v1865_v14 }
 0x157   : > { %v542_v54 = vadd.f32 %v1976_v22, %v519_v53  ;;  %v498_v57 = vmul.f32 %v1645_v39, %v1861_v13 }
 0x158   : > { %v522_v59 = vmul.f32 %v1969_v19, %v499_v3 }
 0x159   : > { %v554_v58 = vpack.c.bf16 %v543_v4, %v542_v54  ;;  %v521_v61 = vmul.f32 %v1969_v19, %v498_v57 }
 0x15a   : > { %825 = vmatmul.mubr.bf16.gmra.mxu0 %v552_v35  ;;  %938 = vmatmul.mubr.bf16.gmra.mxu1 %v552_v35  ;;  %v545_v14 = vadd.f32 %v1976_v22, %v522_v59 }
 0x15b   : > { %834 = vmatprep.mubr.bf16.mxu0 %v1678_v0  ;;  %947 = vmatprep.mubr.bf16.mxu1 %v1678_v0  ;;  %v1647_v60 = vpop.eup %1646  ;;  %v544_v1 = vadd.f32 %v1976_v22, %v521_v61 }
 0x15c   : > { %v1649_v62 = vpop.eup %1648  ;;  %v501_v63 = vmul.f32 %v1647_v60, %v1889_v34 }
 0x15d   : > { %v500_v13 = vmul.f32 %v1649_v62, %v1885_v31  ;;  %v555_v2 = vpack.c.bf16 %v545_v14, %v544_v1 }
 0x15e   : > { %v524_v33 = vmul.f32 %v1969_v19, %v501_v63 }
 0x15f   : > { %v1651_v40 = vpop.eup %1650  ;;  %v523_v5 = vmul.f32 %v1969_v19, %v500_v13 }
 0x160   : > { %v1653_v6 = vpop.eup %1652  ;;  %v547_v7 = vadd.f32 %v1976_v22, %v524_v33  ;;  %v503_v34 = vmul.f32 %v1651_v40, %v1913_v45 }
 0x161   : > { %v546_v8 = vadd.f32 %v1976_v22, %v523_v5  ;;  %v502_v31 = vmul.f32 %v1653_v6, %v1909_v44  ;;  %v593_v44 = vshrl.u32 %v592_v25, 7 }
 0x162   : > { %835 = vmatmul.mubr.bf16.gmra.mxu0 %v553_v21  ;;  %948 = vmatmul.mubr.bf16.gmra.mxu1 %v553_v21  ;;  %v526_v10 = vmul.f32 %v1969_v19, %v503_v34 }
 0x163   : > { %844 = vmatprep.mubr.bf16.mxu0 %v1678_v0  ;;  %957 = vmatprep.mubr.bf16.mxu1 %v1678_v0  ;;  %v556_v9 = vpack.c.bf16 %v547_v7, %v546_v8  ;;  %v525_v11 = vmul.f32 %v1969_v19, %v502_v31  ;;  %v594_v26 = vsub.s32 0, %v593_v44  ;;  %v602_v27 = vsub.s32 2, %v593_v44  ;;  %v590_v19 = vld [vmem:[%s2163_s4] sm:$0xf] }
 0x164   : > { %v549_v12 = vadd.f32 %v1976_v22, %v526_v10  ;;  %v598_v16 = vsub.s32 1, %v593_v44  ;;  %v606_v48 = vsub.s32 3, %v593_v44 }
 0x165   : > { %v548_v24 = vadd.f32 %v1976_v22, %v525_v11  ;;  %v2040_v47 = vrot.slane %v590_v19, %v594_v26 }
 0x166   : > { %v2044_v28 = vrot.slane %v590_v19, %v598_v16  ;;  %v2046_v22 = vrot.slane %v590_v19, %v606_v48 }
 0x167   : > { %v557_v45 = vpack.c.bf16 %v549_v12, %v548_v24 }
 0x16a   : > { %845 = vmatmul.mubr.bf16.gmra.mxu0 %v554_v58  ;;  %958 = vmatmul.mubr.bf16.gmra.mxu1 %v554_v58 }
 0x16b   : > { %854 = vmatprep.mubr.bf16.mxu0 %v1678_v0  ;;  %967 = vmatprep.mubr.bf16.mxu1 %v1678_v0 }
 0x172   : > { %855 = vmatmul.mubr.bf16.gmra.mxu0 %v555_v2  ;;  %968 = vmatmul.mubr.bf16.gmra.mxu1 %v555_v2 }
 0x173   : > { %864 = vmatprep.mubr.bf16.mxu0 %v1678_v0  ;;  %977 = vmatprep.mubr.bf16.mxu1 %v1678_v0 }
 0x17a   : > { %865 = vmatmul.mubr.bf16.gmra.mxu0 %v556_v9  ;;  %978 = vmatmul.mubr.bf16.gmra.mxu1 %v556_v9 }
 0x17b   : > { %874 = vmatprep.mubr.bf16.mxu0 %v1678_v0  ;;  %987 = vmatprep.mubr.bf16.mxu1 %v1678_v0  ;;  %v2042_v0 = vrot.slane %v590_v19, %v602_v27 }
 0x182   : > { %875 = vmatmul.mubr.bf16.gmra.mxu0 %v557_v45  ;;  %988 = vmatmul.mubr.bf16.gmra.mxu1 %v557_v45 }
 0x20a   : > { %v806_v15 = vpop.f32.mrf.mxu0  ;;  %v919_v17 = vpop.f32.mrf.mxu1 }
 0x20b   : > { %v807_v29 = vadd.f32 %v806_v15, %v2040_v47  ;;  %v920_v30 = vadd.f32 %v919_v17, %v2042_v0 }
 0x20c   : > { %v808_v35 = vpop.f32.mrf.mxu0  ;;  %v921_v36 = vpop.f32.mrf.mxu1 }
 0x20d   : > { %v809_v37 = vadd.f32 %v808_v35, %v2044_v28  ;;  %v922_v38 = vadd.f32 %v921_v36, %v2046_v22  ;;  %v998_v20 = vmax.f32 %v807_v29, 0.0  ;;  %v1000_v42 = vmax.f32 %v920_v30, 0.0 }
 0x20e   : > { %v810_v41 = vpop.f32.mrf.mxu0  ;;  %v923_v18 = vpop.f32.mrf.mxu1 }
 0x20f   : > { %v999_v56 = vmax.f32 %v809_v37, 0.0  ;;  %v1001_v55 = vmax.f32 %v922_v38, 0.0  ;;  %v811_v43 = vadd.f32 %v810_v41, %v2040_v47  ;;  %v924_v46 = vadd.f32 %v923_v18, %v2042_v0 }
 0x210   : > { %v812_v49 = vpop.f32.mrf.mxu0  ;;  %v925_v50 = vpop.f32.mrf.mxu1 }
 0x211   : > { %v1478_v32 = vpack.c.bf16 %v999_v56, %v998_v20  ;;  %v1479_v21 = vpack.c.bf16 %v1001_v55, %v1000_v42  ;;  %v813_v23 = vadd.f32 %v812_v49, %v2044_v28  ;;  %v926_v51 = vadd.f32 %v925_v50, %v2046_v22 }
 0x212   : > { %v816_v52 = vpop.f32.mrf.mxu0  ;;  %v929_v53 = vpop.f32.mrf.mxu1  ;;  %v1002_v3 = vmax.f32 %v811_v43, 0.0  ;;  %v1004_v54 = vmax.f32 %v924_v46, 0.0 }
 0x213   : > { %1254 = vst [vmem:[%s2056_s12] sm:$0xff] %v1478_v32  ;;  %1255 = vst [vmem:[%s2056_s12 + $0x8] sm:$0xff] %v1479_v21  ;;  %v817_v39 = vadd.f32 %v816_v52, %v2040_v47  ;;  %v930_v4 = vadd.f32 %v929_v53, %v2042_v0  ;;  %v1003_v57 = vmax.f32 %v813_v23, 0.0  ;;  %v1005_v58 = vmax.f32 %v926_v51, 0.0 }
 0x214   : > { %v818_v59 = vpop.f32.mrf.mxu0  ;;  %v931_v60 = vpop.f32.mrf.mxu1 }
 0x215   : > { %v819_v61 = vadd.f32 %v818_v59, %v2044_v28  ;;  %v932_v62 = vadd.f32 %v931_v60, %v2046_v22  ;;  %v1480_v14 = vpack.c.bf16 %v1003_v57, %v1002_v3  ;;  %v1481_v63 = vpack.c.bf16 %v1005_v58, %v1004_v54 }
 0x216   : > { %v820_v1 = vpop.f32.mrf.mxu0  ;;  %v933_v13 = vpop.f32.mrf.mxu1  ;;  %v1006_v2 = vmax.f32 %v817_v39, 0.0  ;;  %v1008_v33 = vmax.f32 %v930_v4, 0.0 }
 0x217   : > { %v1007_v40 = vmax.f32 %v819_v61, 0.0  ;;  %v1009_v5 = vmax.f32 %v932_v62, 0.0  ;;  %1256 = vst [vmem:[%s2056_s12 + $0x10] sm:$0xff] %v1480_v14  ;;  %1257 = vst [vmem:[%s2056_s12 + $0x18] sm:$0xff] %v1481_v63  ;;  %v821_v6 = vadd.f32 %v820_v1, %v2040_v47  ;;  %v934_v7 = vadd.f32 %v933_v13, %v2042_v0 }
 0x218   : > { %v822_v34 = vpop.f32.mrf.mxu0  ;;  %v935_v8 = vpop.f32.mrf.mxu1 }
 0x219   : > { %v1482_v31 = vpack.c.bf16 %v1007_v40, %v1006_v2  ;;  %v1483_v9 = vpack.c.bf16 %v1009_v5, %v1008_v33  ;;  %v823_v10 = vadd.f32 %v822_v34, %v2044_v28  ;;  %v936_v11 = vadd.f32 %v935_v8, %v2046_v22 }
 0x21a   : > { %v826_v12 = vpop.f32.mrf.mxu0  ;;  %v939_v24 = vpop.f32.mrf.mxu1  ;;  %v1010_v44 = vmax.f32 %v821_v6, 0.0  ;;  %v1012_v26 = vmax.f32 %v934_v7, 0.0 }
 0x21b   : > { %1258 = vst [vmem:[%s2056_s12 + $0x20] sm:$0xff] %v1482_v31  ;;  %1259 = vst [vmem:[%s2056_s12 + $0x28] sm:$0xff] %v1483_v9  ;;  %v827_v45 = vadd.f32 %v826_v12, %v2040_v47  ;;  %v940_v25 = vadd.f32 %v939_v24, %v2042_v0  ;;  %v1011_v27 = vmax.f32 %v823_v10, 0.0  ;;  %v1013_v19 = vmax.f32 %v936_v11, 0.0 }
 0x21c   : > { %v828_v16 = vpop.f32.mrf.mxu0  ;;  %v941_v48 = vpop.f32.mrf.mxu1 }
 0x21d   : > { %v829_v15 = vadd.f32 %v828_v16, %v2044_v28  ;;  %v942_v17 = vadd.f32 %v941_v48, %v2046_v22  ;;  %v1484_v29 = vpack.c.bf16 %v1011_v27, %v1010_v44  ;;  %v1485_v30 = vpack.c.bf16 %v1013_v19, %v1012_v26 }
 0x21e   : > { %v830_v35 = vpop.f32.mrf.mxu0  ;;  %v943_v36 = vpop.f32.mrf.mxu1  ;;  %v1014_v37 = vmax.f32 %v827_v45, 0.0  ;;  %v1016_v38 = vmax.f32 %v940_v25, 0.0 }
 0x21f   : > { %v1015_v41 = vmax.f32 %v829_v15, 0.0  ;;  %v1017_v18 = vmax.f32 %v942_v17, 0.0  ;;  %1260 = vst [vmem:[%s2056_s12 + $0x30] sm:$0xff] %v1484_v29  ;;  %1261 = vst [vmem:[%s2056_s12 + $0x38] sm:$0xff] %v1485_v30  ;;  %v831_v20 = vadd.f32 %v830_v35, %v2040_v47  ;;  %v944_v42 = vadd.f32 %v943_v36, %v2042_v0 }
 0x220   : > { %v832_v56 = vpop.f32.mrf.mxu0  ;;  %v945_v55 = vpop.f32.mrf.mxu1 }
 0x221   : > { %v1486_v43 = vpack.c.bf16 %v1015_v41, %v1014_v37  ;;  %v1487_v46 = vpack.c.bf16 %v1017_v18, %v1016_v38  ;;  %v833_v49 = vadd.f32 %v832_v56, %v2044_v28  ;;  %v946_v50 = vadd.f32 %v945_v55, %v2046_v22 }
 0x222   : > { %v836_v32 = vpop.f32.mrf.mxu0  ;;  %v949_v21 = vpop.f32.mrf.mxu1  ;;  %v1018_v52 = vmax.f32 %v831_v20, 0.0  ;;  %v1020_v53 = vmax.f32 %v944_v42, 0.0 }
 0x223   : > { %1262 = vst [vmem:[%s2056_s12 + $0x40] sm:$0xff] %v1486_v43  ;;  %1263 = vst [vmem:[%s2056_s12 + $0x48] sm:$0xff] %v1487_v46  ;;  %v837_v23 = vadd.f32 %v836_v32, %v2040_v47  ;;  %v950_v51 = vadd.f32 %v949_v21, %v2042_v0  ;;  %v1019_v39 = vmax.f32 %v833_v49, 0.0  ;;  %v1021_v4 = vmax.f32 %v946_v50, 0.0 }
 0x224   : > { %v838_v3 = vpop.f32.mrf.mxu0  ;;  %v951_v54 = vpop.f32.mrf.mxu1 }
 0x225   : > { %v839_v57 = vadd.f32 %v838_v3, %v2044_v28  ;;  %v952_v58 = vadd.f32 %v951_v54, %v2046_v22  ;;  %v1488_v59 = vpack.c.bf16 %v1019_v39, %v1018_v52  ;;  %v1489_v60 = vpack.c.bf16 %v1021_v4, %v1020_v53 }
 0x226   : > { %v840_v61 = vpop.f32.mrf.mxu0  ;;  %v953_v62 = vpop.f32.mrf.mxu1  ;;  %v1022_v14 = vmax.f32 %v837_v23, 0.0  ;;  %v1024_v63 = vmax.f32 %v950_v51, 0.0 }
 0x227   : > { %v1023_v1 = vmax.f32 %v839_v57, 0.0  ;;  %v1025_v13 = vmax.f32 %v952_v58, 0.0  ;;  %1264 = vst [vmem:[%s2056_s12 + $0x50] sm:$0xff] %v1488_v59  ;;  %1265 = vst [vmem:[%s2056_s12 + $0x58] sm:$0xff] %v1489_v60  ;;  %v841_v2 = vadd.f32 %v840_v61, %v2040_v47  ;;  %v954_v33 = vadd.f32 %v953_v62, %v2042_v0 }
 0x228   : > { %v842_v40 = vpop.f32.mrf.mxu0  ;;  %v955_v5 = vpop.f32.mrf.mxu1 }
 0x229   : > { %v1490_v6 = vpack.c.bf16 %v1023_v1, %v1022_v14  ;;  %v1491_v7 = vpack.c.bf16 %v1025_v13, %v1024_v63  ;;  %v843_v34 = vadd.f32 %v842_v40, %v2044_v28  ;;  %v956_v8 = vadd.f32 %v955_v5, %v2046_v22 }
 0x22a   : > { %v846_v31 = vpop.f32.mrf.mxu0  ;;  %v959_v9 = vpop.f32.mrf.mxu1  ;;  %v1026_v12 = vmax.f32 %v841_v2, 0.0  ;;  %v1028_v24 = vmax.f32 %v954_v33, 0.0 }
 0x22b   : > { %1266 = vst [vmem:[%s2056_s12 + $0x60] sm:$0xff] %v1490_v6  ;;  %1267 = vst [vmem:[%s2056_s12 + $0x68] sm:$0xff] %v1491_v7  ;;  %v847_v10 = vadd.f32 %v846_v31, %v2040_v47  ;;  %v960_v11 = vadd.f32 %v959_v9, %v2042_v0  ;;  %v1027_v45 = vmax.f32 %v843_v34, 0.0  ;;  %v1029_v25 = vmax.f32 %v956_v8, 0.0 }
 0x22c   : > { %v848_v44 = vpop.f32.mrf.mxu0  ;;  %v961_v26 = vpop.f32.mrf.mxu1 }
 0x22d   : > { %v849_v27 = vadd.f32 %v848_v44, %v2044_v28  ;;  %v962_v19 = vadd.f32 %v961_v26, %v2046_v22  ;;  %v1492_v16 = vpack.c.bf16 %v1027_v45, %v1026_v12  ;;  %v1493_v48 = vpack.c.bf16 %v1029_v25, %v1028_v24 }
 0x22e   : > { %v850_v15 = vpop.f32.mrf.mxu0  ;;  %v963_v17 = vpop.f32.mrf.mxu1  ;;  %v1030_v29 = vmax.f32 %v847_v10, 0.0  ;;  %v1032_v30 = vmax.f32 %v960_v11, 0.0 }
 0x22f   : > { %v1031_v35 = vmax.f32 %v849_v27, 0.0  ;;  %v1033_v36 = vmax.f32 %v962_v19, 0.0  ;;  %1268 = vst [vmem:[%s2056_s12 + $0x70] sm:$0xff] %v1492_v16  ;;  %1269 = vst [vmem:[%s2056_s12 + $0x78] sm:$0xff] %v1493_v48  ;;  %v851_v37 = vadd.f32 %v850_v15, %v2040_v47  ;;  %v964_v38 = vadd.f32 %v963_v17, %v2042_v0 }
 0x230   : > { %v852_v41 = vpop.f32.mrf.mxu0  ;;  %v965_v18 = vpop.f32.mrf.mxu1 }
 0x231   : > { %v1494_v20 = vpack.c.bf16 %v1031_v35, %v1030_v29  ;;  %v1495_v42 = vpack.c.bf16 %v1033_v36, %v1032_v30  ;;  %v853_v56 = vadd.f32 %v852_v41, %v2044_v28  ;;  %v966_v55 = vadd.f32 %v965_v18, %v2046_v22 }
 0x232   : > { %v856_v43 = vpop.f32.mrf.mxu0  ;;  %v969_v46 = vpop.f32.mrf.mxu1  ;;  %v1034_v32 = vmax.f32 %v851_v37, 0.0  ;;  %v1036_v21 = vmax.f32 %v964_v38, 0.0 }
 0x233   : > { %1270 = vst [vmem:[%s2056_s12 + $0x80] sm:$0xff] %v1494_v20  ;;  %1271 = vst [vmem:[%s2056_s12 + $0x88] sm:$0xff] %v1495_v42  ;;  %v857_v49 = vadd.f32 %v856_v43, %v2040_v47  ;;  %v970_v50 = vadd.f32 %v969_v46, %v2042_v0  ;;  %v1035_v23 = vmax.f32 %v853_v56, 0.0  ;;  %v1037_v51 = vmax.f32 %v966_v55, 0.0 }
 0x234   : > { %v858_v52 = vpop.f32.mrf.mxu0  ;;  %v971_v53 = vpop.f32.mrf.mxu1 }
 0x235   : > { %v859_v39 = vadd.f32 %v858_v52, %v2044_v28  ;;  %v972_v4 = vadd.f32 %v971_v53, %v2046_v22  ;;  %v1496_v3 = vpack.c.bf16 %v1035_v23, %v1034_v32  ;;  %v1497_v54 = vpack.c.bf16 %v1037_v51, %v1036_v21 }
 0x236   : > { %v860_v57 = vpop.f32.mrf.mxu0  ;;  %v973_v58 = vpop.f32.mrf.mxu1  ;;  %v1038_v59 = vmax.f32 %v857_v49, 0.0  ;;  %v1040_v60 = vmax.f32 %v970_v50, 0.0 }
 0x237   : > { %v1039_v61 = vmax.f32 %v859_v39, 0.0  ;;  %v1041_v62 = vmax.f32 %v972_v4, 0.0  ;;  %1272 = vst [vmem:[%s2056_s12 + $0x90] sm:$0xff] %v1496_v3  ;;  %1273 = vst [vmem:[%s2056_s12 + $0x98] sm:$0xff] %v1497_v54  ;;  %v861_v14 = vadd.f32 %v860_v57, %v2040_v47  ;;  %v974_v63 = vadd.f32 %v973_v58, %v2042_v0 }
 0x238   : > { %v862_v1 = vpop.f32.mrf.mxu0  ;;  %v975_v13 = vpop.f32.mrf.mxu1 }
 0x239   : > { %v1498_v2 = vpack.c.bf16 %v1039_v61, %v1038_v59  ;;  %v1499_v33 = vpack.c.bf16 %v1041_v62, %v1040_v60  ;;  %v863_v40 = vadd.f32 %v862_v1, %v2044_v28  ;;  %v976_v5 = vadd.f32 %v975_v13, %v2046_v22 }
 0x23a   : > { %v866_v6 = vpop.f32.mrf.mxu0  ;;  %v979_v7 = vpop.f32.mrf.mxu1  ;;  %v1042_v31 = vmax.f32 %v861_v14, 0.0  ;;  %v1044_v9 = vmax.f32 %v974_v63, 0.0 }
 0x23b   : > { %1274 = vst [vmem:[%s2056_s12 + $0xa0] sm:$0xff] %v1498_v2  ;;  %1275 = vst [vmem:[%s2056_s12 + $0xa8] sm:$0xff] %v1499_v33  ;;  %v867_v34 = vadd.f32 %v866_v6, %v2040_v47  ;;  %v980_v8 = vadd.f32 %v979_v7, %v2042_v0  ;;  %v1043_v10 = vmax.f32 %v863_v40, 0.0  ;;  %v1045_v11 = vmax.f32 %v976_v5, 0.0 }
 0x23c   : > { %v868_v12 = vpop.f32.mrf.mxu0  ;;  %v981_v24 = vpop.f32.mrf.mxu1 }
 0x23d   : > { %v869_v45 = vadd.f32 %v868_v12, %v2044_v28  ;;  %v982_v25 = vadd.f32 %v981_v24, %v2046_v22  ;;  %v1500_v44 = vpack.c.bf16 %v1043_v10, %v1042_v31  ;;  %v1501_v26 = vpack.c.bf16 %v1045_v11, %v1044_v9 }
 0x23e   : > { %v870_v27 = vpop.f32.mrf.mxu0  ;;  %v983_v19 = vpop.f32.mrf.mxu1  ;;  %v1046_v16 = vmax.f32 %v867_v34, 0.0  ;;  %v1048_v48 = vmax.f32 %v980_v8, 0.0 }
 0x23f   : > { %v1047_v15 = vmax.f32 %v869_v45, 0.0  ;;  %v1049_v17 = vmax.f32 %v982_v25, 0.0  ;;  %1276 = vst [vmem:[%s2056_s12 + $0xb0] sm:$0xff] %v1500_v44  ;;  %1277 = vst [vmem:[%s2056_s12 + $0xb8] sm:$0xff] %v1501_v26  ;;  %v871_v29 = vadd.f32 %v870_v27, %v2040_v47  ;;  %v984_v30 = vadd.f32 %v983_v19, %v2042_v0 }
 0x240   : > { %v872_v35 = vpop.f32.mrf.mxu0  ;;  %v985_v36 = vpop.f32.mrf.mxu1 }
 0x241   : > { %v1502_v37 = vpack.c.bf16 %v1047_v15, %v1046_v16  ;;  %v1503_v38 = vpack.c.bf16 %v1049_v17, %v1048_v48  ;;  %v873_v41 = vadd.f32 %v872_v35, %v2044_v28  ;;  %v986_v18 = vadd.f32 %v985_v36, %v2046_v22 }
 0x242   : > { %v876_v20 = vpop.f32.mrf.mxu0  ;;  %v989_v42 = vpop.f32.mrf.mxu1  ;;  %v1050_v43 = vmax.f32 %v871_v29, 0.0  ;;  %v1052_v46 = vmax.f32 %v984_v30, 0.0 }
 0x243   : > { %1278 = vst [vmem:[%s2056_s12 + $0xc0] sm:$0xff] %v1502_v37  ;;  %1279 = vst [vmem:[%s2056_s12 + $0xc8] sm:$0xff] %v1503_v38  ;;  %v877_v56 = vadd.f32 %v876_v20, %v2040_v47  ;;  %v990_v55 = vadd.f32 %v989_v42, %v2042_v0  ;;  %v1051_v49 = vmax.f32 %v873_v41, 0.0  ;;  %v1053_v50 = vmax.f32 %v986_v18, 0.0 }
 0x244   : > { %v878_v32 = vpop.f32.mrf.mxu0  ;;  %v991_v21 = vpop.f32.mrf.mxu1 }
 0x245   : > { %v879_v23 = vadd.f32 %v878_v32, %v2044_v28  ;;  %v992_v51 = vadd.f32 %v991_v21, %v2046_v22  ;;  %v1504_v52 = vpack.c.bf16 %v1051_v49, %v1050_v43  ;;  %v1505_v53 = vpack.c.bf16 %v1053_v50, %v1052_v46 }
 0x246   : > { %v880_v39 = vpop.f32.mrf.mxu0  ;;  %v993_v4 = vpop.f32.mrf.mxu1  ;;  %v1054_v3 = vmax.f32 %v877_v56, 0.0  ;;  %v1056_v54 = vmax.f32 %v990_v55, 0.0 }
 0x247   : > { %v1055_v57 = vmax.f32 %v879_v23, 0.0  ;;  %v1057_v58 = vmax.f32 %v992_v51, 0.0  ;;  %1280 = vst [vmem:[%s2056_s12 + $0xd0] sm:$0xff] %v1504_v52  ;;  %1281 = vst [vmem:[%s2056_s12 + $0xd8] sm:$0xff] %v1505_v53  ;;  %v881_v59 = vadd.f32 %v880_v39, %v2040_v47  ;;  %v994_v60 = vadd.f32 %v993_v4, %v2042_v0 }
 0x248   : > { %v882_v61 = vpop.f32.mrf.mxu0  ;;  %v995_v62 = vpop.f32.mrf.mxu1 }
 0x249   : > { %v1506_v14 = vpack.c.bf16 %v1055_v57, %v1054_v3  ;;  %v1507_v63 = vpack.c.bf16 %v1057_v58, %v1056_v54  ;;  %v883_v1 = vadd.f32 %v882_v61, %v2044_v28  ;;  %v996_v13 = vadd.f32 %v995_v62, %v2046_v22 }
 0x24a   : > { %v1058_v2 = vmax.f32 %v881_v59, 0.0  ;;  %v1060_v33 = vmax.f32 %v994_v60, 0.0 }
 0x24b   : > { %1282 = vst [vmem:[%s2056_s12 + $0xe0] sm:$0xff] %v1506_v14  ;;  %1283 = vst [vmem:[%s2056_s12 + $0xe8] sm:$0xff] %v1507_v63  ;;  %v1059_v40 = vmax.f32 %v883_v1, 0.0  ;;  %v1061_v5 = vmax.f32 %v996_v13, 0.0 }
 0x24d   : > { %v1508_v6 = vpack.c.bf16 %v1059_v40, %v1058_v2  ;;  %v1509_v47 = vpack.c.bf16 %v1061_v5, %v1060_v33 }
 0x24f   : > { %1284 = vst [vmem:[%s2056_s12 + $0xf0] sm:$0xff] %v1508_v6  ;;  %1285 = vst [vmem:[%s2056_s12 + $0xf8] sm:$0xff] %v1509_v47 }
 0x250 PF: > { %s15_s20 = sadd.s32 1, %s1676_s20   ;;  %s2165_s18 = smov %s1672_s19 }
 0x251   : > { %p12_p5 = scmp.ge.s32.totalorder %s15_s20, 4   ;;  %s2166_s19 = smov %s2168_s21 }
 0x253   :  { %14 = sbr.rel (!%p12_p5) target bundleno = 2 (0x2), region = 76 }

// kernel: _lambda_.21
= control target key start
LH: loop header
LB: loop body
LE: loop exit
PB: predicated region body
PF: predicated region fallthrough
CT: control target
= control target key end

     0   :  { %10 = vsyncpa [#allocation3], 0  ;;  %s1664_s0 = inlined_call_operand.vmem [shape: bf16[256,128], index: 0, kind: input, shape index: {}]   ;;  %s1665_s1 = inlined_call_operand.vmem [shape: f32[1,128], index: 1, kind: input, shape index: {}]   ;;  %s1666_s2 = inlined_call_operand.vmem [shape: f32[1,128], index: 2, kind: input, shape index: {}]   ;;  %s1667_s3 = inlined_call_operand.vmem [shape: bf16[128,256], index: 3, kind: input, shape index: {}]   ;;  %s1668_s4 = inlined_call_operand.vmem [shape: f32[1,256], index: 4, kind: input, shape index: {}]   ;;  %s1669_s5 = inlined_call_operand.hbm [shape: f32[256,256], index: 5, kind: output, shape index: {}]  }
   0x1   :  { %12 = vsyncpa [#allocation3 + $0x1], 0  ;;  %s1233_s18 = smov 0   ;;  %s1235_s19 = smov 0  }
   0x2   :  { %s1237_s20 = smov 0   ;;  %s1239_s21 = smov 0  }
   0x3   :  { %s1241_s22 = smov 0   ;;  %s1243_s23 = smov 0  }
   0x4 LB: > { %s916_s24 = sadd.s32 4294967295, %s1197_s23   ;;  %s917_s25 = sadd.s32 4294967294, %s1197_s23   ;;  %s1197_s23 = sphi %s1243_s23, %s18_s23   ;;  %s1193_s22 = sphi %s1241_s22, %s1676_s22   ;;  %s1189_s21 = sphi %s1239_s21, %s1675_s21   ;;  %s1185_s20 = sphi %s1237_s20, %s1674_s20   ;;  %s1181_s19 = sphi %s1235_s19, %s1673_s19   ;;  %s1177_s18 = sphi %s1233_s18, %s1672_s18  }
   0x5   : > { %s30_s26 = sadd.s32 1, %s1193_s22  ;;  %s159_s27 = sadd.s32 1, %s1185_s20 }
   0x6   : > { %p32_p0 = scmp.ge.s32.totalorder %s30_s26, 2  ;;  %p169_p1 = scmp.ne.s32.totalorder %s1185_s20, %s1181_s19 }
   0x7   : > { %p170_p2 = scmp.eq.s32.totalorder %s916_s24, 1  ;;  %p175_p3 = scmp.ne.s32.totalorder %s1181_s19, %s1177_s18 }
   0x8   : > { %s1678_s26 = smov (%p32_p0, %s30_s26), 0  ;;  %p176_p5 = scmp.eq.s32.totalorder %s917_s25, 1 }
   0x9   : > { %p1273_p4 = por %p170_p2, %p169_p1  ;;  %s154_s29 = ssub.s32 %s1193_s22, %s1678_s26 }
   0xa   : > { %p922_p6 = scmp.ge.s32.totalorder %s1197_s23, 1  ;;  %p157_p7 = scmp.eq.s32.totalorder %s154_s29, 0 }
   0xb   : > { %p1280_p8 = por %p176_p5, %p175_p3  ;;  %p226_p9 = scmp.lt.s32.totalorder %s1197_s23, 3 }
   0xc   : > { %s1286_s6 = scalar_select %p157_p7, %s1185_s20, %s159_s27  }
   0xd   : > { %p227_p10 = pnand %p922_p6, %p226_p9 }
   0xe   : > { %s924_s7 = sshll.u32 (!%p227_p10), %s1189_s21, 4  ;;  %s260_s24 = sand.u32 (!%p227_p10), 1, %s1181_s19  }
   0xf   : > { %230 = sbr.rel (%p227_p10) target bundleno = 582 (0x246), region = 40  ;;  %p264_p11 = scmp.lt.s32.totalorder (!%p227_p10), %s924_s7, 31 }
  0x10   : > { %s923_s29 = sshll.u32 (!%p227_p10), %s260_s24, 8  ;;  %s1200_s14 = smov (!%p227_p10), [#allocation2]  }
  0x11   : > { %s1125_s15 = sshll.u32 (!%p227_p10), %s1200_s14, 4  ;;  %s1126_s15 = int_to_ptr.vmem [resolvable:$false] %s1125_s15 }
  0x12   : > { %s1127_s16 = scalar_lea.vmem (!%p227_p10), %s1126_s15, 8192 }
  0x14   : > { %s1680_s7 = smov (!%p264_p11, %s924_s7), 31  ;;  %v1065_v24 = vld [vmem:[%s1667_s3 + $0x74] ss:$8 sps:$4 sm:$0xff]   ;;  %v1067_v25 = vld [vmem:[%s1667_s3 + $0x70] ss:$8 sps:$4 sm:$0xff]  }
  0x15   : > { %s925_s8 = sshll.u32 %s1680_s7, 2  ;;  %654 = vmatprep.subr.bf16.mxu0 %v1065_v24  ;;  %991 = vmatprep.subr.bf16.mxu1 %v1065_v24  ;;  %v1068_v61 = vld [vmem:[%s1667_s3 + $0x64] ss:$8 sps:$4 sm:$0xff]   ;;  %v1070_v62 = vld [vmem:[%s1667_s3 + $0x60] ss:$8 sps:$4 sm:$0xff]   ;;  %s1543_s7 = scalar_lea.vmem [#allocation2], %s923_s29 }
  0x16   : > { %s1292_s11 = scalar_lea.vmem %s1664_s0, %s925_s8  ;;  %655 = vmatpush1.bf16.msra.mxu0 %v1067_v25  ;;  %999 = vmatpush1.bf16.msra.mxu1 %v1067_v25  ;;  %s951_s8 = sshll.u32 %s1189_s21, 12 }
  0x17   : > { %v953_v0 = vld [vmem:[%s1292_s11] sm:$0xff]   ;;  %v984_v6 = vld [vmem:[%s1292_s11 + $0x8] sm:$0xff]   ;;  %v1303_v12 = vld [vmem:[%s1292_s11 + $0x10] sm:$0xff]   ;;  %656 = vmatprep.subr.bf16.mxu0 %v1068_v61  ;;  %992 = vmatprep.subr.bf16.mxu1 %v1068_v61  ;;  %s816_s9 = sshll.u32 %s1543_s7, 4  ;;  %s1610_s12 = scalar_lea.hbm %s1669_s5, %s951_s8  ;;  %s1612_s9 = int_to_ptr.vmem [resolvable:$true] %s816_s9 }
  0x18   : > { %v987_v1 = vld [vmem:[%s1292_s11 + $0x20] sm:$0xff]   ;;  %v954_v2 = vunpack.c.l.bf16 %v953_v0  ;;  %v955_v4 = vunpack.c.h.bf16 %v953_v0  ;;  %v958_v7 = vunpack.c.l.bf16 %v984_v6  ;;  %v959_v8 = vunpack.c.h.bf16 %v984_v6  ;;  %v1298_v9 = vld [vmem:[%s1292_s11 + $0x28] sm:$0xff]   ;;  %v1308_v15 = vld [vmem:[%s1292_s11 + $0x30] sm:$0xff]   ;;  %s1619_s21 = scalar_lea.sflag [#allocation3], %s260_s24  ;;  %s1121_s13 = scalar_lea.vmem %s1612_s9, 4096 }
  0x19   : > { %v970_v3 = vunpack.c.l.bf16 %v987_v1  ;;  %v971_v5 = vunpack.c.h.bf16 %v987_v1  ;;  %v974_v10 = vunpack.c.l.bf16 %v1298_v9  ;;  %v975_v11 = vunpack.c.h.bf16 %v1298_v9  ;;  %v1317_v18 = vld [vmem:[%s1292_s11 + $0x18] sm:$0xff]   ;;  %p1122_p12 = scmp.ne.s32.totalorder %s1612_s9, %s1121_s13  ;;  %p1128_p1 = scmp.lt.s32.totalorder %s1612_s9, %s1126_s15 }
  0x1a   : > { %315 = vadd.xlane.f32.xlu0 %v954_v2  ;;  %v962_v13 = vunpack.c.l.bf16 %v1303_v12  ;;  %v963_v14 = vunpack.c.h.bf16 %v1303_v12  ;;  %v978_v16 = vunpack.c.l.bf16 %v1308_v15  ;;  %v979_v17 = vunpack.c.h.bf16 %v1308_v15  ;;  %v1326_v21 = vld [vmem:[%s1292_s11 + $0x38] sm:$0xff]   ;;  %657 = vmatpush1.bf16.msra.mxu0 %v1070_v62  ;;  %v1074_v15 = vld [vmem:[%s1667_s3 + $0x44] ss:$8 sps:$4 sm:$0xff]   ;;  %p1129_p2 = scmp.lt.s32.totalorder %s1127_s16, %s1121_s13 }
  0x1b   : > { %331 = vadd.xlane.f32.xlu1 %v970_v3  ;;  %v966_v19 = vunpack.c.l.bf16 %v1317_v18  ;;  %v967_v20 = vunpack.c.h.bf16 %v1317_v18  ;;  %v982_v22 = vunpack.c.l.bf16 %v1326_v21  ;;  %v983_v23 = vunpack.c.h.bf16 %v1326_v21  ;;  %1000 = vmatpush1.bf16.msra.mxu1 %v1070_v62  ;;  %v1077_v18 = vld [vmem:[%s1667_s3 + $0x34] ss:$8 sps:$4 sm:$0xff]   ;;  %v1080_v21 = vld [vmem:[%s1667_s3 + $0x24] ss:$8 sps:$4 sm:$0xff]   ;;  %p1123_p13 = pnand %p1122_p12, %p1273_p4 }
  0x1c   : > { %p1130_p3 = por %p1129_p2, %p1128_p1 }
  0x1d   : > { %p1124_p0 = pneg %p1123_p13 }
  0x1e   : > { %317 = vadd.xlane.f32.xlu0 %v955_v4 }
  0x1f   : > { %333 = vadd.xlane.f32.xlu1 %v971_v5  ;;  %p1131_p5 = pnand %p1130_p3, %p1124_p0 }
  0x22   : > { %319 = vadd.xlane.f32.xlu0 %v958_v7 }
  0x23   : > { %321 = vadd.xlane.f32.xlu1 %v959_v8 }
  0x26   : > { %335 = vadd.xlane.f32.xlu0 %v974_v10 }
  0x27   : > { %337 = vadd.xlane.f32.xlu1 %v975_v11 }
  0x2a   : > { %323 = vadd.xlane.f32.xlu0 %v962_v13 }
  0x2b   : > { %325 = vadd.xlane.f32.xlu1 %v963_v14 }
  0x2e   : > { %339 = vadd.xlane.f32.xlu0 %v978_v16 }
  0x2f   : > { %341 = vadd.xlane.f32.xlu1 %v979_v17 }
  0x32   : > { %327 = vadd.xlane.f32.xlu0 %v966_v19 }
  0x33   : > { %329 = vadd.xlane.f32.xlu1 %v967_v20 }
  0x36   : > { %343 = vadd.xlane.f32.xlu0 %v982_v22 }
  0x37   : > { %345 = vadd.xlane.f32.xlu1 %v983_v23 }
  0xa3   : > { %v316_v26 = vpop.xlane.xlu0 %315 }
  0xa4   : > { %v332_v27 = vpop.xlane.xlu1 %331  ;;  %v348_v28 = vmul.f32 0.0078125, %v316_v26 }
  0xa5   : > { %v356_v29 = vmul.f32 0.0078125, %v332_v27  ;;  %v1076_v27 = vld [vmem:[%s1667_s3 + $0x40] ss:$8 sps:$4 sm:$0xff]  }
  0xa6   : > { %v1344_v30 = vsub.f32 %v954_v2, %v348_v28 }
  0xa7   : > { %v1346_v31 = vsub.f32 %v970_v3, %v356_v29  ;;  %v318_v32 = vpop.xlane.xlu0 %317 }
  0xa8   : > { %v334_v33 = vpop.xlane.xlu1 %333  ;;  %v349_v34 = vmul.f32 0.0078125, %v318_v32  ;;  %v380_v35 = vmul.f32 %v1344_v30, %v1344_v30 }
  0xa9   : > { %v357_v36 = vmul.f32 0.0078125, %v334_v33  ;;  %v388_v39 = vmul.f32 %v1346_v31, %v1346_v31 }
  0xaa   : > { %v1350_v37 = vsub.f32 %v955_v4, %v349_v34  ;;  %396 = vadd.xlane.f32.xlu0 %v380_v35 }
  0xab   : > { %v1352_v38 = vsub.f32 %v971_v5, %v357_v36  ;;  %v320_v40 = vpop.xlane.xlu0 %319  ;;  %v1079_v36 = vld [vmem:[%s1667_s3 + $0x30] ss:$8 sps:$4 sm:$0xff]  }
  0xac   : > { %v322_v41 = vpop.xlane.xlu1 %321  ;;  %v350_v42 = vmul.f32 0.0078125, %v320_v40  ;;  %v381_v43 = vmul.f32 %v1350_v37, %v1350_v37  ;;  %v1083_v40 = vld [vmem:[%s1667_s3 + $0x14] ss:$8 sps:$4 sm:$0xff]  }
  0xad   : > { %v351_v44 = vmul.f32 0.0078125, %v322_v41  ;;  %v389_v47 = vmul.f32 %v1352_v38, %v1352_v38  ;;  %v1085_v41 = vld [vmem:[%s1667_s3 + $0x10] ss:$8 sps:$4 sm:$0xff]  }
  0xae   : > { %v1358_v45 = vsub.f32 %v958_v7, %v350_v42  ;;  %412 = vadd.xlane.f32.xlu0 %v388_v39  ;;  %398 = vadd.xlane.f32.xlu1 %v381_v43  ;;  %v1071_v7 = vld [vmem:[%s1667_s3 + $0x54] ss:$8 sps:$4 sm:$0xff]   ;;  %v1086_v42 = vld [vmem:[%s1667_s3 + $0x4] ss:$8 sps:$4 sm:$0xff]   ;;  %v1088_v43 = vld [vmem:[%s1667_s3] ss:$8 sps:$4 sm:$0xff]  }
  0xaf   : > { %v1360_v46 = vsub.f32 %v959_v8, %v351_v44  ;;  %v336_v48 = vpop.xlane.xlu0 %335  ;;  %658 = vmatprep.subr.bf16.mxu0 %v1071_v7  ;;  %993 = vmatprep.subr.bf16.mxu1 %v1071_v7  ;;  %v1199_v44 = vmov 0  }
  0xb0   : > { %v338_v49 = vpop.xlane.xlu1 %337  ;;  %v358_v50 = vmul.f32 0.0078125, %v336_v48  ;;  %v382_v51 = vmul.f32 %v1358_v45, %v1358_v45  ;;  %686 = vmatprep.mubr.bf16.mxu0 %v1199_v44  ;;  %726 = vmatprep.mubr.bf16.mxu1 %v1199_v44 }
  0xb1   : > { %v359_v52 = vmul.f32 0.0078125, %v338_v49  ;;  %v383_v55 = vmul.f32 %v1360_v46, %v1360_v46 }
  0xb2   : > { %v1366_v53 = vsub.f32 %v974_v10, %v358_v50  ;;  %414 = vadd.xlane.f32.xlu1 %v389_v47  ;;  %400 = vadd.xlane.f32.xlu0 %v382_v51 }
  0xb3   : > { %v1368_v54 = vsub.f32 %v975_v11, %v359_v52  ;;  %v324_v56 = vpop.xlane.xlu0 %323  ;;  %v1073_v11 = vld [vmem:[%s1667_s3 + $0x50] ss:$8 sps:$4 sm:$0xff]  }
  0xb4   : > { %v326_v57 = vpop.xlane.xlu1 %325  ;;  %v352_v58 = vmul.f32 0.0078125, %v324_v56  ;;  %v390_v59 = vmul.f32 %v1366_v53, %v1366_v53  ;;  %659 = vmatpush1.bf16.msra.mxu0 %v1073_v11  ;;  %1001 = vmatpush1.bf16.msra.mxu1 %v1073_v11 }
  0xb5   : > { %v353_v60 = vmul.f32 0.0078125, %v326_v57  ;;  %v391_v1 = vmul.f32 %v1368_v54, %v1368_v54  ;;  %660 = vmatprep.subr.bf16.mxu0 %v1074_v15  ;;  %994 = vmatprep.subr.bf16.mxu1 %v1074_v15 }
  0xb6   : > { %v1382_v63 = vsub.f32 %v962_v13, %v352_v58  ;;  %402 = vadd.xlane.f32.xlu1 %v383_v55  ;;  %416 = vadd.xlane.f32.xlu0 %v390_v59 }
  0xb7   : > { %v1386_v0 = vsub.f32 %v963_v14, %v353_v60  ;;  %v340_v2 = vpop.xlane.xlu0 %339 }
  0xb8   : > { %v342_v3 = vpop.xlane.xlu1 %341  ;;  %v360_v4 = vmul.f32 0.0078125, %v340_v2  ;;  %v384_v5 = vmul.f32 %v1382_v63, %v1382_v63  ;;  %661 = vmatpush1.bf16.msra.mxu0 %v1076_v27  ;;  %1002 = vmatpush1.bf16.msra.mxu1 %v1076_v27 }
  0xb9   : > { %v361_v6 = vmul.f32 0.0078125, %v342_v3  ;;  %v385_v10 = vmul.f32 %v1386_v0, %v1386_v0  ;;  %662 = vmatprep.subr.bf16.mxu0 %v1077_v18  ;;  %995 = vmatprep.subr.bf16.mxu1 %v1077_v18 }
  0xba   : > { %v1397_v8 = vsub.f32 %v978_v16, %v360_v4  ;;  %418 = vadd.xlane.f32.xlu1 %v391_v1  ;;  %404 = vadd.xlane.f32.xlu0 %v384_v5 }
  0xbb   : > { %v1401_v9 = vsub.f32 %v979_v17, %v361_v6  ;;  %v328_v12 = vpop.xlane.xlu0 %327 }
  0xbc   : > { %v330_v13 = vpop.xlane.xlu1 %329  ;;  %v354_v14 = vmul.f32 0.0078125, %v328_v12  ;;  %v392_v16 = vmul.f32 %v1397_v8, %v1397_v8  ;;  %663 = vmatpush1.bf16.msra.mxu0 %v1079_v36  ;;  %1003 = vmatpush1.bf16.msra.mxu1 %v1079_v36 }
  0xbd   : > { %v355_v24 = vmul.f32 0.0078125, %v330_v13  ;;  %v393_v26 = vmul.f32 %v1401_v9, %v1401_v9  ;;  %664 = vmatprep.subr.bf16.mxu0 %v1080_v21  ;;  %996 = vmatprep.subr.bf16.mxu1 %v1080_v21 }
  0xbe   : > { %v1415_v17 = vsub.f32 %v966_v19, %v354_v14  ;;  %406 = vadd.xlane.f32.xlu1 %v385_v10  ;;  %420 = vadd.xlane.f32.xlu0 %v392_v16 }
  0xbf   : > { %v1419_v25 = vsub.f32 %v967_v20, %v355_v24  ;;  %v344_v28 = vpop.xlane.xlu0 %343 }
  0xc0   : > { %v346_v29 = vpop.xlane.xlu1 %345  ;;  %v362_v32 = vmul.f32 0.0078125, %v344_v28  ;;  %v386_v19 = vmul.f32 %v1415_v17, %v1415_v17 }
  0xc1   : > { %v363_v33 = vmul.f32 0.0078125, %v346_v29  ;;  %v387_v35 = vmul.f32 %v1419_v25, %v1419_v25 }
  0xc2   : > { %v1433_v20 = vsub.f32 %v982_v22, %v362_v32  ;;  %422 = vadd.xlane.f32.xlu1 %v393_v26  ;;  %408 = vadd.xlane.f32.xlu0 %v386_v19  ;;  %v1472_v26 = vld [vmem:[%s1665_s1] ss:$0 sm:$0xff] }
  0xc3   : > { %v1437_v34 = vsub.f32 %v983_v23, %v363_v33  ;;  %v1082_v23 = vld [vmem:[%s1667_s3 + $0x20] ss:$8 sps:$4 sm:$0xff]  }
  0xc4   : > { %v394_v39 = vmul.f32 %v1433_v20, %v1433_v20  ;;  %665 = vmatpush1.bf16.msra.mxu0 %v1082_v23  ;;  %1004 = vmatpush1.bf16.msra.mxu1 %v1082_v23 }
  0xc5   : > { %v395_v22 = vmul.f32 %v1437_v34, %v1437_v34  ;;  %666 = vmatprep.subr.bf16.mxu0 %v1083_v40  ;;  %997 = vmatprep.subr.bf16.mxu1 %v1083_v40 }
  0xc6   : > { %410 = vadd.xlane.f32.xlu1 %v387_v35  ;;  %424 = vadd.xlane.f32.xlu0 %v394_v39 }
  0xc8   : > { %667 = vmatpush1.bf16.msra.mxu0 %v1085_v41  ;;  %1005 = vmatpush1.bf16.msra.mxu1 %v1085_v41 }
  0xc9   : > { %668 = vmatprep.subr.bf16.mxu0 %v1086_v42  ;;  %998 = vmatprep.subr.bf16.mxu1 %v1086_v42 }
  0xca   : > { %426 = vadd.xlane.f32.xlu1 %v395_v22 }
  0xcc   : > { %669 = vmatpush1.bf16.msra.mxu0 %v1088_v43  ;;  %1006 = vmatpush1.bf16.msra.mxu1 %v1088_v43 }
 0x133   : > { %v397_v47 = vpop.xlane.xlu0 %396 }
 0x134   : > { %v428_v48 = vmul.f32 0.0078125, %v397_v47 }
 0x136   : > { %v444_v49 = vadd.f32 1e-05, %v428_v48 }
 0x137   : > { %v399_v50 = vpop.xlane.xlu1 %398  ;;  %v413_v51 = vpop.xlane.xlu0 %412 }
 0x138   : > { %1089 = vrsqrt.f32 %v444_v49  ;;  %v429_v52 = vmul.f32 0.0078125, %v399_v50  ;;  %v436_v55 = vmul.f32 0.0078125, %v413_v51 }
 0x13a   : > { %v445_v56 = vadd.f32 1e-05, %v429_v52  ;;  %v452_v57 = vadd.f32 1e-05, %v436_v55 }
 0x13b   : > { %v415_v58 = vpop.xlane.xlu1 %414  ;;  %v401_v59 = vpop.xlane.xlu0 %400 }
 0x13c   : > { %1091 = vrsqrt.f32 %v445_v56  ;;  %v437_v60 = vmul.f32 0.0078125, %v415_v58  ;;  %v430_v61 = vmul.f32 0.0078125, %v401_v59 }
 0x13d   : > { %1093 = vrsqrt.f32 %v452_v57 }
 0x13e   : > { %v453_v62 = vadd.f32 1e-05, %v437_v60  ;;  %v446_v1 = vadd.f32 1e-05, %v430_v61 }
 0x13f   : > { %v403_v2 = vpop.xlane.xlu1 %402  ;;  %v417_v3 = vpop.xlane.xlu0 %416 }
 0x140   : > { %1095 = vrsqrt.f32 %v453_v62  ;;  %v431_v4 = vmul.f32 0.0078125, %v403_v2  ;;  %v438_v5 = vmul.f32 0.0078125, %v417_v3 }
 0x141   : > { %1097 = vrsqrt.f32 %v446_v1 }
 0x142   : > { %v447_v6 = vadd.f32 1e-05, %v431_v4  ;;  %v454_v7 = vadd.f32 1e-05, %v438_v5 }
 0x143   : > { %v419_v10 = vpop.xlane.xlu1 %418  ;;  %v405_v11 = vpop.xlane.xlu0 %404 }
 0x144   : > { %1099 = vrsqrt.f32 %v447_v6  ;;  %v439_v12 = vmul.f32 0.0078125, %v419_v10  ;;  %v432_v13 = vmul.f32 0.0078125, %v405_v11 }
 0x145   : > { %v1090_v14 = vpop.eup %1089  ;;  %1101 = vrsqrt.f32 %v454_v7 }
 0x146   : > { %v455_v16 = vadd.f32 1e-05, %v439_v12  ;;  %v448_v24 = vadd.f32 1e-05, %v432_v13  ;;  %v476_v15 = vmul.f32 %v1090_v14, %v1344_v30  ;;  %v1479_v30 = vld [vmem:[%s1666_s2] ss:$0 sm:$0xff] }
 0x147   : > { %v407_v27 = vpop.xlane.xlu1 %406  ;;  %v421_v28 = vpop.xlane.xlu0 %420 }
 0x148   : > { %1103 = vrsqrt.f32 %v455_v16  ;;  %v433_v29 = vmul.f32 0.0078125, %v407_v27  ;;  %v440_v32 = vmul.f32 0.0078125, %v421_v28  ;;  %v499_v33 = vmul.f32 %v1472_v26, %v476_v15 }
 0x149   : > { %v1092_v19 = vpop.eup %1091  ;;  %1105 = vrsqrt.f32 %v448_v24 }
 0x14a   : > { %v1094_v18 = vpop.eup %1093  ;;  %v449_v35 = vadd.f32 1e-05, %v433_v29  ;;  %v456_v36 = vadd.f32 1e-05, %v440_v32  ;;  %v477_v39 = vmul.f32 %v1092_v19, %v1350_v37  ;;  %v522_v47 = vadd.f32 %v1479_v30, %v499_v33 }
 0x14b   : > { %v423_v21 = vpop.xlane.xlu1 %422  ;;  %v409_v22 = vpop.xlane.xlu0 %408  ;;  %v484_v23 = vmul.f32 %v1094_v18, %v1346_v31 }
 0x14c   : > { %1107 = vrsqrt.f32 %v449_v35  ;;  %v441_v40 = vmul.f32 0.0078125, %v423_v21  ;;  %v434_v41 = vmul.f32 0.0078125, %v409_v22  ;;  %v500_v42 = vmul.f32 %v1472_v26, %v477_v39 }
 0x14d   : > { %v1096_v43 = vpop.eup %1095  ;;  %1109 = vrsqrt.f32 %v456_v36  ;;  %v507_v31 = vmul.f32 %v1472_v26, %v484_v23 }
 0x14e   : > { %v1098_v48 = vpop.eup %1097  ;;  %v457_v37 = vadd.f32 1e-05, %v441_v40  ;;  %v450_v49 = vadd.f32 1e-05, %v434_v41  ;;  %v523_v50 = vadd.f32 %v1479_v30, %v500_v42  ;;  %v485_v51 = vmul.f32 %v1096_v43, %v1352_v38 }
 0x14f   : > { %v411_v52 = vpop.xlane.xlu1 %410  ;;  %v425_v55 = vpop.xlane.xlu0 %424  ;;  %v478_v56 = vmul.f32 %v1098_v48, %v1358_v45  ;;  %v530_v5 = vadd.f32 %v1479_v30, %v507_v31 }
 0x150   : > { %1111 = vrsqrt.f32 %v457_v37  ;;  %v435_v57 = vmul.f32 0.0078125, %v411_v52  ;;  %v442_v58 = vmul.f32 0.0078125, %v425_v55  ;;  %v538_v59 = vpack.c.bf16 %v523_v50, %v522_v47 }
 0x151   : > { %v1100_v60 = vpop.eup %1099  ;;  %1113 = vrsqrt.f32 %v450_v49  ;;  %v508_v61 = vmul.f32 %v1472_v26, %v485_v51  ;;  %v501_v62 = vmul.f32 %v1472_v26, %v478_v56 }
 0x152   : > { %v1102_v1 = vpop.eup %1101  ;;  %v451_v2 = vadd.f32 1e-05, %v435_v57  ;;  %v458_v3 = vadd.f32 1e-05, %v442_v58  ;;  %687 = vmatmul.mubr.bf16.vlgmr.msra.gmra.mxu0 %v538_v59  ;;  %v479_v38 = vmul.f32 %v1100_v60, %v1360_v46 }
 0x153   : > { %v427_v4 = vpop.xlane.xlu1 %426  ;;  %v531_v45 = vadd.f32 %v1479_v30, %v508_v61  ;;  %696 = vmatprep.mubr.bf16.mxu0 %v1199_v44  ;;  %v486_v6 = vmul.f32 %v1102_v1, %v1366_v53  ;;  %v524_v13 = vadd.f32 %v1479_v30, %v501_v62  ;;  %v564_v61 = vlaneseq }
 0x154   : > { %1115 = vrsqrt.f32 %v451_v2  ;;  %v443_v7 = vmul.f32 0.0078125, %v427_v4  ;;  %v502_v10 = vmul.f32 %v1472_v26, %v479_v38 }
 0x155   : > { %v1104_v11 = vpop.eup %1103  ;;  %1117 = vrsqrt.f32 %v458_v3  ;;  %v542_v12 = vpack.c.bf16 %v531_v45, %v530_v5  ;;  %v509_v15 = vmul.f32 %v1472_v26, %v486_v6  ;;  %v565_v62 = vshrl.u32 %v564_v61, 7 }
 0x156   : > { %v1106_v14 = vpop.eup %1105  ;;  %v459_v46 = vadd.f32 1e-05, %v443_v7  ;;  %v525_v16 = vadd.f32 %v1479_v30, %v502_v10  ;;  %v487_v24 = vmul.f32 %v1104_v11, %v1368_v54 }
 0x157   : > { %727 = vmatmul.mubr.bf16.vlgmr.msra.gmra.mxu1 %v542_v12  ;;  %v480_v53 = vmul.f32 %v1106_v14, %v1382_v63  ;;  %v532_v19 = vadd.f32 %v1479_v30, %v509_v15  ;;  %v566_v1 = vsub.s32 0, %v565_v62  ;;  %v570_v2 = vsub.s32 1, %v565_v62 }
 0x158   : > { %1119 = vrsqrt.f32 %v459_v46  ;;  %v539_v27 = vpack.c.bf16 %v525_v16, %v524_v13  ;;  %736 = vmatprep.mubr.bf16.mxu1 %v1199_v44  ;;  %v510_v28 = vmul.f32 %v1472_v26, %v487_v24 }
 0x159   : > { %v1108_v29 = vpop.eup %1107  ;;  %v503_v18 = vmul.f32 %v1472_v26, %v480_v53 }
 0x15a   : > { %v1110_v32 = vpop.eup %1109  ;;  %697 = vmatmul.mubr.bf16.gmra.mxu0 %v539_v27  ;;  %v533_v33 = vadd.f32 %v1479_v30, %v510_v28  ;;  %v481_v54 = vmul.f32 %v1108_v29, %v1386_v0 }
 0x15b   : > { %706 = vmatprep.mubr.bf16.mxu0 %v1199_v44  ;;  %v488_v63 = vmul.f32 %v1110_v32, %v1397_v8  ;;  %v526_v22 = vadd.f32 %v1479_v30, %v503_v18 }
 0x15c   : > { %v543_v35 = vpack.c.bf16 %v533_v33, %v532_v19  ;;  %v504_v36 = vmul.f32 %v1472_v26, %v481_v54 }
 0x15d   : > { %v1112_v39 = vpop.eup %1111  ;;  %v511_v41 = vmul.f32 %v1472_v26, %v488_v63 }
 0x15e   : > { %v1114_v21 = vpop.eup %1113  ;;  %v527_v23 = vadd.f32 %v1479_v30, %v504_v36  ;;  %v489_v40 = vmul.f32 %v1112_v39, %v1401_v9 }
 0x15f   : > { %737 = vmatmul.mubr.bf16.gmra.mxu1 %v543_v35  ;;  %v482_v0 = vmul.f32 %v1114_v21, %v1415_v17  ;;  %v534_v48 = vadd.f32 %v1479_v30, %v511_v41 }
 0x160   : > { %v540_v42 = vpack.c.bf16 %v527_v23, %v526_v22  ;;  %746 = vmatprep.mubr.bf16.mxu1 %v1199_v44  ;;  %v512_v8 = vmul.f32 %v1472_v26, %v489_v40 }
 0x161   : > { %v1116_v43 = vpop.eup %1115  ;;  %v505_v9 = vmul.f32 %v1472_v26, %v482_v0 }
 0x162   : > { %v1118_v47 = vpop.eup %1117  ;;  %707 = vmatmul.mubr.bf16.gmra.mxu0 %v540_v42  ;;  %v535_v37 = vadd.f32 %v1479_v30, %v512_v8  ;;  %v483_v49 = vmul.f32 %v1116_v43, %v1419_v25 }
 0x163   : > { %716 = vmatprep.mubr.bf16.mxu0 %v1199_v44  ;;  %v490_v17 = vmul.f32 %v1118_v47, %v1433_v20  ;;  %v528_v55 = vadd.f32 %v1479_v30, %v505_v9 }
 0x164   : > { %v544_v50 = vpack.c.bf16 %v535_v37, %v534_v48  ;;  %v506_v51 = vmul.f32 %v1472_v26, %v483_v49 }
 0x165   : > { %v1120_v52 = vpop.eup %1119  ;;  %v513_v57 = vmul.f32 %v1472_v26, %v490_v17 }
 0x166   : > { %v529_v31 = vadd.f32 %v1479_v30, %v506_v51  ;;  %v491_v56 = vmul.f32 %v1120_v52, %v1437_v34  ;;  %v562_v34 = vld [vmem:[%s1668_s4] sm:$0x3] }
 0x167   : > { %747 = vmatmul.mubr.bf16.gmra.mxu1 %v544_v50  ;;  %v536_v58 = vadd.f32 %v1479_v30, %v513_v57 }
 0x168   : > { %v541_v25 = vpack.c.bf16 %v529_v31, %v528_v55  ;;  %756 = vmatprep.mubr.bf16.mxu1 %v1199_v44  ;;  %v514_v20 = vmul.f32 %v1472_v26, %v491_v56  ;;  %v1538_v44 = vrot.slane %v562_v34, %v566_v1  ;;  %v1540_v26 = vrot.slane %v562_v34, %v570_v2 }
 0x16a   : > { %717 = vmatmul.mubr.bf16.gmra.mxu0 %v541_v25  ;;  %v537_v59 = vadd.f32 %v1479_v30, %v514_v20 }
 0x16c   : > { %v545_v60 = vpack.c.bf16 %v537_v59, %v536_v58 }
 0x16f   : > { %757 = vmatmul.mubr.bf16.gmra.mxu1 %v545_v60 }
 0x212   : > { %v688_v3 = vpop.f32.mrf.mxu0 }
 0x213   : > { %v689_v30 = vadd.f32 %v688_v3, %v1538_v44 }
 0x214   : > { %v690_v38 = vpop.f32.mrf.mxu0 }
 0x215   : > { %767 = vst [vmem:[%s1543_s7] sm:$0xff] %v689_v30  ;;  %v691_v4 = vadd.f32 %v690_v38, %v1540_v26 }
 0x216   : > { %v692_v5 = vpop.f32.mrf.mxu0 }
 0x217   : > { %768 = vst [vmem:[%s1543_s7 + $0x8] sm:$0xff] %v691_v4  ;;  %v693_v45 = vadd.f32 %v692_v5, %v1538_v44  ;;  %v728_v6 = vpop.f32.mrf.mxu1 }
 0x218   : > { %v729_v7 = vadd.f32 %v728_v6, %v1538_v44  ;;  %v694_v10 = vpop.f32.mrf.mxu0 }
 0x219   : > { %769 = vst [vmem:[%s1543_s7 + $0x10] sm:$0xff] %v693_v45  ;;  %v695_v11 = vadd.f32 %v694_v10, %v1540_v26  ;;  %v730_v12 = vpop.f32.mrf.mxu1 }
 0x21a   : > { %783 = vst [vmem:[%s1543_s7 + $0x80] sm:$0xff] %v729_v7  ;;  %v731_v13 = vadd.f32 %v730_v12, %v1540_v26  ;;  %v698_v14 = vpop.f32.mrf.mxu0 }
 0x21b   : > { %770 = vst [vmem:[%s1543_s7 + $0x18] sm:$0xff] %v695_v11  ;;  %v699_v46 = vadd.f32 %v698_v14, %v1538_v44  ;;  %v732_v16 = vpop.f32.mrf.mxu1 }
 0x21c   : > { %784 = vst [vmem:[%s1543_s7 + $0x88] sm:$0xff] %v731_v13  ;;  %v733_v24 = vadd.f32 %v732_v16, %v1538_v44  ;;  %v700_v15 = vpop.f32.mrf.mxu0 }
 0x21d   : > { %771 = vst [vmem:[%s1543_s7 + $0x20] sm:$0xff] %v699_v46  ;;  %v701_v53 = vadd.f32 %v700_v15, %v1540_v26  ;;  %v734_v27 = vpop.f32.mrf.mxu1 }
 0x21e   : > { %785 = vst [vmem:[%s1543_s7 + $0x90] sm:$0xff] %v733_v24  ;;  %v735_v28 = vadd.f32 %v734_v27, %v1540_v26  ;;  %v702_v29 = vpop.f32.mrf.mxu0 }
 0x21f   : > { %772 = vst [vmem:[%s1543_s7 + $0x28] sm:$0xff] %v701_v53  ;;  %v703_v32 = vadd.f32 %v702_v29, %v1538_v44  ;;  %v738_v19 = vpop.f32.mrf.mxu1 }
 0x220   : > { %786 = vst [vmem:[%s1543_s7 + $0x98] sm:$0xff] %v735_v28  ;;  %v739_v33 = vadd.f32 %v738_v19, %v1538_v44  ;;  %v704_v54 = vpop.f32.mrf.mxu0 }
 0x221   : > { %773 = vst [vmem:[%s1543_s7 + $0x30] sm:$0xff] %v703_v32  ;;  %v705_v18 = vadd.f32 %v704_v54, %v1540_v26  ;;  %v740_v63 = vpop.f32.mrf.mxu1 }
 0x222   : > { %787 = vst [vmem:[%s1543_s7 + $0xa0] sm:$0xff] %v739_v33  ;;  %v741_v35 = vadd.f32 %v740_v63, %v1540_v26  ;;  %v708_v36 = vpop.f32.mrf.mxu0 }
 0x223   : > { %774 = vst [vmem:[%s1543_s7 + $0x38] sm:$0xff] %v705_v18  ;;  %v709_v39 = vadd.f32 %v708_v36, %v1538_v44  ;;  %v742_v21 = vpop.f32.mrf.mxu1 }
 0x224   : > { %788 = vst [vmem:[%s1543_s7 + $0xa8] sm:$0xff] %v741_v35  ;;  %v743_v22 = vadd.f32 %v742_v21, %v1538_v44  ;;  %v710_v23 = vpop.f32.mrf.mxu0 }
 0x225   : > { %775 = vst [vmem:[%s1543_s7 + $0x40] sm:$0xff] %v709_v39  ;;  %v711_v40 = vadd.f32 %v710_v23, %v1540_v26  ;;  %v744_v41 = vpop.f32.mrf.mxu1 }
 0x226   : > { %789 = vst [vmem:[%s1543_s7 + $0xb0] sm:$0xff] %v743_v22  ;;  %v745_v0 = vadd.f32 %v744_v41, %v1540_v26  ;;  %v712_v42 = vpop.f32.mrf.mxu0 }
 0x227   : > { %776 = vst [vmem:[%s1543_s7 + $0x48] sm:$0xff] %v711_v40  ;;  %v713_v8 = vadd.f32 %v712_v42, %v1538_v44  ;;  %v748_v43 = vpop.f32.mrf.mxu1 }
 0x228   : > { %790 = vst [vmem:[%s1543_s7 + $0xb8] sm:$0xff] %v745_v0  ;;  %v749_v47 = vadd.f32 %v748_v43, %v1538_v44  ;;  %v714_v48 = vpop.f32.mrf.mxu0 }
 0x229   : > { %777 = vst [vmem:[%s1543_s7 + $0x50] sm:$0xff] %v713_v8  ;;  %v715_v37 = vadd.f32 %v714_v48, %v1540_v26  ;;  %v750_v49 = vpop.f32.mrf.mxu1 }
 0x22a   : > { %791 = vst [vmem:[%s1543_s7 + $0xc0] sm:$0xff] %v749_v47  ;;  %v751_v9 = vadd.f32 %v750_v49, %v1540_v26  ;;  %v718_v17 = vpop.f32.mrf.mxu0 }
 0x22b   : > { %778 = vst [vmem:[%s1543_s7 + $0x58] sm:$0xff] %v715_v37  ;;  %v719_v50 = vadd.f32 %v718_v17, %v1538_v44  ;;  %v752_v51 = vpop.f32.mrf.mxu1 }
 0x22c   : > { %792 = vst [vmem:[%s1543_s7 + $0xc8] sm:$0xff] %v751_v9  ;;  %v753_v52 = vadd.f32 %v752_v51, %v1538_v44  ;;  %v720_v55 = vpop.f32.mrf.mxu0 }
 0x22d   : > { %779 = vst [vmem:[%s1543_s7 + $0x60] sm:$0xff] %v719_v50  ;;  %v721_v31 = vadd.f32 %v720_v55, %v1540_v26  ;;  %v754_v56 = vpop.f32.mrf.mxu1 }
 0x22e   : > { %793 = vst [vmem:[%s1543_s7 + $0xd0] sm:$0xff] %v753_v52  ;;  %v755_v57 = vadd.f32 %v754_v56, %v1540_v26  ;;  %v722_v25 = vpop.f32.mrf.mxu0 }
 0x22f   : > { %780 = vst [vmem:[%s1543_s7 + $0x68] sm:$0xff] %v721_v31  ;;  %v723_v20 = vadd.f32 %v722_v25, %v1538_v44  ;;  %v758_v58 = vpop.f32.mrf.mxu1 }
 0x230   : > { %794 = vst [vmem:[%s1543_s7 + $0xd8] sm:$0xff] %v755_v57  ;;  %v759_v59 = vadd.f32 %v758_v58, %v1538_v44  ;;  %v724_v60 = vpop.f32.mrf.mxu0 }
 0x231   : > { %781 = vst [vmem:[%s1543_s7 + $0x70] sm:$0xff] %v723_v20  ;;  %v725_v61 = vadd.f32 %v724_v60, %v1540_v26  ;;  %v760_v62 = vpop.f32.mrf.mxu1 }
 0x232   : > { %795 = vst [vmem:[%s1543_s7 + $0xe0] sm:$0xff] %v759_v59  ;;  %v761_v1 = vadd.f32 %v760_v62, %v1540_v26 }
 0x233   : > { %782 = vst [vmem:[%s1543_s7 + $0x78] sm:$0xff] %v725_v61  ;;  %v762_v34 = vpop.f32.mrf.mxu1 }
 0x234   : > { %796 = vst [vmem:[%s1543_s7 + $0xe8] sm:$0xff] %v761_v1  ;;  %v763_v2 = vadd.f32 %v762_v34, %v1538_v44 }
 0x235   : > { %v764_v3 = vpop.f32.mrf.mxu1 }
 0x236   : > { %797 = vst [vmem:[%s1543_s7 + $0xf0] sm:$0xff] %v763_v2  ;;  %v765_v30 = vadd.f32 %v764_v3, %v1540_v26 }
 0x238   : > { %798 = vst [vmem:[%s1543_s7 + $0xf8] sm:$0xff] %v765_v30 }
 0x239   : > { %1134 = shalt.err (!%p1131_p5)
}
 0x23a   : > { %s1135_s17 = scalar_lea.hbm %s1610_s12, 4096  ;;  %s1139_s27 = scalar_lea.hbm %s1669_s5, 8192 }
 0x23b   : > { %p1136_p6 = scmp.ne.s32.totalorder %s1610_s12, %s1135_s17  ;;  %p1140_p10 = scmp.lt.s32.totalorder %s1610_s12, %s1669_s5 }
 0x23c   : > { %p1141_p11 = scmp.lt.s32.totalorder %s1139_s27, %s1135_s17 }
 0x23d   : > { %p1137_p7 = pnand %p1136_p6, %p1273_p4 }
 0x23e   : > { %p1142_p12 = por %p1141_p11, %p1140_p10 }
 0x23f   : > { %p1138_p9 = pneg %p1137_p7 }
 0x241   : > { %p1143_p13 = pnand %p1142_p12, %p1138_p9 }
 0x243   : > { %1146 = shalt.err (!%p1143_p13)
}
 0x244   : > { %s1201_s8 = smov 256   ;;  %s1202_s10 = smov 16  }
 0x245   : > { %1007 = dma.vmem_to_hbm [thread:$0]  (%p1273_p4), %s1612_s9, 4096, %s1610_s12, %s1619_s21, %s1201_s8, %s1201_s8, %s1202_s10  }
 0x246 PF: > { %p1013_p0 = scmp.ge.s32.totalorder %s1197_s23, 2  ;;  %s831_s11 = sand.u32 1, %s1177_s18  }
 0x247   : > { %s832_s13 = scalar_lea.sflag [#allocation3], %s831_s11 }
 0x248   : > { %p1010_p1 = pnand %p1013_p0, %p1280_p8 }
 0x24a   : > { %p1011_p2 = pneg %p1010_p1 }
 0x24c   : > { %1172 = dma.done.wait (%p1011_p2), %s832_s13, 4096  }
 0x24d   : > { %1174 = vsyncadd (%p1011_p2), %s832_s13, 4294963200  ;;  %s18_s23 = sadd.s32 1, %s1197_s23   ;;  %s1672_s18 = smov %s1181_s19 }
 0x24e   : > { %p15_p3 = scmp.ge.s32.totalorder %s18_s23, 4   ;;  %s1673_s19 = smov %s1185_s20 }
 0x24f   : > { %s1674_s20 = smov %s1286_s6  ;;  %s1675_s21 = smov %s1193_s22 }
 0x250   : > { %s1676_s22 = smov %s1678_s26  ;;  %17 = sbr.rel (!%p15_p3) target bundleno = 4 (0x4), region = 81 }
 0x255   :  { %837 = vsyncpa [#allocation3], 1 }
 0x256   :  { %839 = vsyncpa [#allocation3 + $0x1], 1 }

// kernel: _lambda_.12
= control target key start
LH: loop header
LB: loop body
LE: loop exit
PB: predicated region body
PF: predicated region fallthrough
CT: control target
= control target key end

     0   :  { %s5822_s12 = smov 0   ;;  %s5824_s13 = smov 0   ;;  %s8562_s0 = inlined_call_operand.vmem [shape: bf16[2,128,384], index: 0, kind: input, shape index: {}, may-alias: {0,1,2}]   ;;  %s8563_s1 = inlined_call_operand.vmem [shape: bf16[2,128,384], index: 1, kind: input, shape index: {}, may-alias: {0,1,2}]   ;;  %s8564_s2 = inlined_call_operand.vmem [shape: bf16[2,128,384], index: 2, kind: input, shape index: {}, may-alias: {0,1,2}]   ;;  %s8565_s3 = inlined_call_operand.vmem [shape: bf16[2,128,128], index: 3, kind: output, shape index: {}]  }
   0x1   :  { %s5826_s14 = smov 0   ;;  %s5828_s15 = smov 0  }
   0x2   :  { %s5830_s16 = smov 0  }
   0x3 LB: > { %s32_s17 = sadd.s32 1, %s5787_s15  ;;  %p48_p1 = scmp.ne.s32.totalorder %s5779_s13, %s5775_s12  ;;  %s5791_s16 = sphi %s5830_s16, %s13_s16   ;;  %s5787_s15 = sphi %s5828_s15, %s9237_s15   ;;  %s5783_s14 = sphi %s5826_s14, %s9236_s14   ;;  %s5779_s13 = sphi %s5824_s13, %s9235_s13   ;;  %s5775_s12 = sphi %s5822_s12, %s9234_s12  }
   0x4   : > { %p34_p0 = scmp.ge.s32.totalorder %s32_s17, 2  ;;  %p49_p2 = scmp.eq.s32.totalorder %s5791_s16, 0 }
   0x5   : > { %s41_s20 = sadd.s32 1, %s5779_s13  ;;  %p4682_p5 = scmp.ge.s32.totalorder %s5791_s16, 2 }
   0x6   : > { %s9239_s17 = smov (%p34_p0, %s32_s17), 0  ;;  %p5853_p3 = por %p49_p2, %p48_p1 }
   0x7   : > { %s36_s19 = ssub.s32 %s5787_s15, %s9239_s17  ;;  %158 = sbr.rel (%p4682_p5) target bundleno = 57 (0x39), region = 16 }
   0x8   : > { %p39_p4 = scmp.eq.s32.totalorder %s36_s19, 0 }
   0xa   : > { %s5861_s21 = scalar_select %p39_p4, %s5779_s13, %s41_s20  }
   0xc   : > { %161 = sbr.rel (!%p5853_p3) target bundleno = 27 (0x1b), region = 20  ;;  %s163_s22 = sand.u32 (%p5853_p3), 1, %s5779_s13  }
   0xd   : > { %s5281_s23 = smul.u32 (%p5853_p3), 192, %s5787_s15  ;;  %s4683_s24 = sshll.u32 (%p5853_p3), %s163_s22, 6 }
   0xe   : > { %s165_s28 = scalar_lea.vmem (%p5853_p3), [#allocation5], %s4683_s24 }
   0xf   : > { %s5871_s27 = scalar_lea.vmem (%p5853_p3), %s8562_s0, %s5281_s23 }
  0x10   : > { %v188_v0 = vld [vmem:[%s5871_s27] sm:$0xf] (%p5853_p3)  ;;  %v190_v1 = vld [vmem:[%s5871_s27 + $0xc] sm:$0xf] (%p5853_p3)  ;;  %v192_v2 = vld [vmem:[%s5871_s27 + $0x18] sm:$0xf] (%p5853_p3) }
  0x11   : > { %189 = vst [vmem:[%s165_s28] sm:$0xf] %v188_v0  ;;  %191 = vst [vmem:[%s165_s28 + $0x4] sm:$0xf] %v190_v1  ;;  %v194_v3 = vld [vmem:[%s5871_s27 + $0x24] sm:$0xf] }
  0x12   : > { %193 = vst [vmem:[%s165_s28 + $0x8] sm:$0xf] %v192_v2  ;;  %v196_v4 = vld [vmem:[%s5871_s27 + $0x30] sm:$0xf]  ;;  %v198_v5 = vld [vmem:[%s5871_s27 + $0x3c] sm:$0xf] }
  0x13   : > { %195 = vst [vmem:[%s165_s28 + $0xc] sm:$0xf] %v194_v3  ;;  %197 = vst [vmem:[%s165_s28 + $0x10] sm:$0xf] %v196_v4  ;;  %v200_v6 = vld [vmem:[%s5871_s27 + $0x48] sm:$0xf] }
  0x14   : > { %199 = vst [vmem:[%s165_s28 + $0x14] sm:$0xf] %v198_v5  ;;  %v202_v7 = vld [vmem:[%s5871_s27 + $0x54] sm:$0xf]  ;;  %v204_v8 = vld [vmem:[%s5871_s27 + $0x60] sm:$0xf] }
  0x15   : > { %201 = vst [vmem:[%s165_s28 + $0x18] sm:$0xf] %v200_v6  ;;  %203 = vst [vmem:[%s165_s28 + $0x1c] sm:$0xf] %v202_v7  ;;  %v206_v9 = vld [vmem:[%s5871_s27 + $0x6c] sm:$0xf] }
  0x16   : > { %205 = vst [vmem:[%s165_s28 + $0x20] sm:$0xf] %v204_v8  ;;  %v208_v10 = vld [vmem:[%s5871_s27 + $0x78] sm:$0xf]  ;;  %v210_v11 = vld [vmem:[%s5871_s27 + $0x84] sm:$0xf] }
  0x17   : > { %207 = vst [vmem:[%s165_s28 + $0x24] sm:$0xf] %v206_v9  ;;  %209 = vst [vmem:[%s165_s28 + $0x28] sm:$0xf] %v208_v10  ;;  %v212_v12 = vld [vmem:[%s5871_s27 + $0x90] sm:$0xf] }
  0x18   : > { %211 = vst [vmem:[%s165_s28 + $0x2c] sm:$0xf] %v210_v11  ;;  %v214_v13 = vld [vmem:[%s5871_s27 + $0x9c] sm:$0xf]  ;;  %v216_v14 = vld [vmem:[%s5871_s27 + $0xa8] sm:$0xf] }
  0x19   : > { %213 = vst [vmem:[%s165_s28 + $0x30] sm:$0xf] %v212_v12  ;;  %215 = vst [vmem:[%s165_s28 + $0x34] sm:$0xf] %v214_v13  ;;  %v218_v15 = vld [vmem:[%s5871_s27 + $0xb4] sm:$0xf] }
  0x1a   : > { %217 = vst [vmem:[%s165_s28 + $0x38] sm:$0xf] %v216_v14  ;;  %219 = vst [vmem:[%s165_s28 + $0x3c] sm:$0xf] %v218_v15 }
  0x1b PF: > { %275 = sbr.rel (!%p5853_p3) target bundleno = 42 (0x2a), region = 61  ;;  %s277_s29 = sand.u32 (%p5853_p3), 1, %s5779_s13  }
  0x1c   : > { %s4686_s30 = smul.u32 (%p5853_p3), 192, %s5787_s15  ;;  %s4685_s4 = sshll.u32 (%p5853_p3), %s277_s29, 6 }
  0x1d   : > { %s279_s8 = scalar_lea.vmem (%p5853_p3), [#allocation6], %s4685_s4 }
  0x1e   : > { %s5896_s7 = scalar_lea.vmem (%p5853_p3), %s8563_s1, %s4686_s30 }
  0x1f   : > { %v4687_v16 = vld [vmem:[%s5896_s7 + $0x4] sm:$0xf] (%p5853_p3)  ;;  %v4688_v17 = vld [vmem:[%s5896_s7 + $0x10] sm:$0xf] (%p5853_p3)  ;;  %v4689_v18 = vld [vmem:[%s5896_s7 + $0x1c] sm:$0xf] (%p5853_p3) }
  0x20   : > { %304 = vst [vmem:[%s279_s8] sm:$0xf] %v4687_v16  ;;  %306 = vst [vmem:[%s279_s8 + $0x4] sm:$0xf] %v4688_v17  ;;  %v4690_v19 = vld [vmem:[%s5896_s7 + $0x28] sm:$0xf] }
  0x21   : > { %308 = vst [vmem:[%s279_s8 + $0x8] sm:$0xf] %v4689_v18  ;;  %v4691_v20 = vld [vmem:[%s5896_s7 + $0x34] sm:$0xf]  ;;  %v4692_v21 = vld [vmem:[%s5896_s7 + $0x40] sm:$0xf] }
  0x22   : > { %310 = vst [vmem:[%s279_s8 + $0xc] sm:$0xf] %v4690_v19  ;;  %312 = vst [vmem:[%s279_s8 + $0x10] sm:$0xf] %v4691_v20  ;;  %v4693_v22 = vld [vmem:[%s5896_s7 + $0x4c] sm:$0xf] }
  0x23   : > { %314 = vst [vmem:[%s279_s8 + $0x14] sm:$0xf] %v4692_v21  ;;  %v4694_v23 = vld [vmem:[%s5896_s7 + $0x58] sm:$0xf]  ;;  %v4695_v24 = vld [vmem:[%s5896_s7 + $0x64] sm:$0xf] }
  0x24   : > { %316 = vst [vmem:[%s279_s8 + $0x18] sm:$0xf] %v4693_v22  ;;  %318 = vst [vmem:[%s279_s8 + $0x1c] sm:$0xf] %v4694_v23  ;;  %v4696_v25 = vld [vmem:[%s5896_s7 + $0x70] sm:$0xf] }
  0x25   : > { %320 = vst [vmem:[%s279_s8 + $0x20] sm:$0xf] %v4695_v24  ;;  %v4697_v26 = vld [vmem:[%s5896_s7 + $0x7c] sm:$0xf]  ;;  %v4698_v27 = vld [vmem:[%s5896_s7 + $0x88] sm:$0xf] }
  0x26   : > { %322 = vst [vmem:[%s279_s8 + $0x24] sm:$0xf] %v4696_v25  ;;  %324 = vst [vmem:[%s279_s8 + $0x28] sm:$0xf] %v4697_v26  ;;  %v4699_v28 = vld [vmem:[%s5896_s7 + $0x94] sm:$0xf] }
  0x27   : > { %326 = vst [vmem:[%s279_s8 + $0x2c] sm:$0xf] %v4698_v27  ;;  %v4700_v29 = vld [vmem:[%s5896_s7 + $0xa0] sm:$0xf]  ;;  %v4701_v30 = vld [vmem:[%s5896_s7 + $0xac] sm:$0xf] }
  0x28   : > { %328 = vst [vmem:[%s279_s8 + $0x30] sm:$0xf] %v4699_v28  ;;  %330 = vst [vmem:[%s279_s8 + $0x34] sm:$0xf] %v4700_v29  ;;  %v4702_v31 = vld [vmem:[%s5896_s7 + $0xb8] sm:$0xf] }
  0x29   : > { %332 = vst [vmem:[%s279_s8 + $0x38] sm:$0xf] %v4701_v30  ;;  %334 = vst [vmem:[%s279_s8 + $0x3c] sm:$0xf] %v4702_v31 }
  0x2a PF: > { %390 = sbr.rel (!%p5853_p3) target bundleno = 57 (0x39), region = 102  ;;  %s392_s9 = sand.u32 (%p5853_p3), 1, %s5779_s13  }
  0x2b   : > { %s4704_s10 = smul.u32 (%p5853_p3), 192, %s5787_s15  ;;  %s4703_s11 = sshll.u32 (%p5853_p3), %s392_s9, 6 }
  0x2c   : > { %s394_s18 = scalar_lea.vmem (%p5853_p3), [#allocation7], %s4703_s11 }
  0x2d   : > { %s5921_s22 = scalar_lea.vmem (%p5853_p3), %s8564_s2, %s4704_s10 }
  0x2e   : > { %v4705_v32 = vld [vmem:[%s5921_s22 + $0x8] sm:$0xf] (%p5853_p3)  ;;  %v4706_v33 = vld [vmem:[%s5921_s22 + $0x14] sm:$0xf] (%p5853_p3)  ;;  %v4707_v34 = vld [vmem:[%s5921_s22 + $0x20] sm:$0xf] (%p5853_p3) }
  0x2f   : > { %419 = vst [vmem:[%s394_s18] sm:$0xf] %v4705_v32  ;;  %421 = vst [vmem:[%s394_s18 + $0x4] sm:$0xf] %v4706_v33  ;;  %v4708_v35 = vld [vmem:[%s5921_s22 + $0x2c] sm:$0xf] }
  0x30   : > { %423 = vst [vmem:[%s394_s18 + $0x8] sm:$0xf] %v4707_v34  ;;  %v4709_v36 = vld [vmem:[%s5921_s22 + $0x38] sm:$0xf]  ;;  %v4710_v37 = vld [vmem:[%s5921_s22 + $0x44] sm:$0xf] }
  0x31   : > { %425 = vst [vmem:[%s394_s18 + $0xc] sm:$0xf] %v4708_v35  ;;  %427 = vst [vmem:[%s394_s18 + $0x10] sm:$0xf] %v4709_v36  ;;  %v4711_v38 = vld [vmem:[%s5921_s22 + $0x50] sm:$0xf] }
  0x32   : > { %429 = vst [vmem:[%s394_s18 + $0x14] sm:$0xf] %v4710_v37  ;;  %v4712_v39 = vld [vmem:[%s5921_s22 + $0x5c] sm:$0xf]  ;;  %v4713_v40 = vld [vmem:[%s5921_s22 + $0x68] sm:$0xf] }
  0x33   : > { %431 = vst [vmem:[%s394_s18 + $0x18] sm:$0xf] %v4711_v38  ;;  %433 = vst [vmem:[%s394_s18 + $0x1c] sm:$0xf] %v4712_v39  ;;  %v4714_v41 = vld [vmem:[%s5921_s22 + $0x74] sm:$0xf] }
  0x34   : > { %435 = vst [vmem:[%s394_s18 + $0x20] sm:$0xf] %v4713_v40  ;;  %v4715_v42 = vld [vmem:[%s5921_s22 + $0x80] sm:$0xf]  ;;  %v4716_v43 = vld [vmem:[%s5921_s22 + $0x8c] sm:$0xf] }
  0x35   : > { %437 = vst [vmem:[%s394_s18 + $0x24] sm:$0xf] %v4714_v41  ;;  %439 = vst [vmem:[%s394_s18 + $0x28] sm:$0xf] %v4715_v42  ;;  %v4717_v44 = vld [vmem:[%s5921_s22 + $0x98] sm:$0xf] }
  0x36   : > { %441 = vst [vmem:[%s394_s18 + $0x2c] sm:$0xf] %v4716_v43  ;;  %v4718_v45 = vld [vmem:[%s5921_s22 + $0xa4] sm:$0xf]  ;;  %v4719_v46 = vld [vmem:[%s5921_s22 + $0xb0] sm:$0xf] }
  0x37   : > { %443 = vst [vmem:[%s394_s18 + $0x30] sm:$0xf] %v4717_v44  ;;  %445 = vst [vmem:[%s394_s18 + $0x34] sm:$0xf] %v4718_v45  ;;  %v4720_v47 = vld [vmem:[%s5921_s22 + $0xbc] sm:$0xf] }
  0x38   : > { %447 = vst [vmem:[%s394_s18 + $0x38] sm:$0xf] %v4719_v46  ;;  %449 = vst [vmem:[%s394_s18 + $0x3c] sm:$0xf] %v4720_v47 }
  0x39 PF: > { %p4721_p6 = scmp.ge.s32.totalorder %s5791_s16, 1  ;;  %p504_p7 = scmp.lt.s32.totalorder %s5791_s16, 3 }
  0x3b   : > { %p505_p8 = pnand %p4721_p6, %p504_p7 }
  0x3d   : > { %508 = sbr.rel (%p505_p8) target bundleno = 2845 (0xb1d), region = 143 }
  0x42   : > { %s511_s23 = sand.u32 1, %s5775_s12   ;;  %vm820_vm0 = vcmask 261120   ;;  %vm579_vm1 = vcmask 31744   ;;  %v5793_v40 = vmov -inf   ;;  %s5796_s27 = smov 96   ;;  %vm3895_vm2 = vcmask 7168  }
  0x43   : > { %s5942_s24 = sshll.u32 %s511_s23, 6  ;;  %582 = vst.msk [vmem:[#allocation2 + $0x10] sm:$0xff] %vm579_vm1, %v5793_v40  ;;  %580 = vst.msk [vmem:[#allocation2] sm:$0xff] %vm579_vm1, %v5793_v40  ;;  %s5798_s28 = smov 64   ;;  %vm3912_vm3 = vcmask 15360   ;;  %vm3929_vm4 = vcmask 23552  }
  0x44   : > { %s5945_s25 = scalar_lea.vmem [#allocation6], %s5942_s24  ;;  %s5965_s12 = scalar_lea.vmem [#allocation5], %s5942_s24  ;;  %581 = vst.msk [vmem:[#allocation2 + $0x8] sm:$0xff] %vm579_vm1, %v5793_v40  ;;  %583 = vst.msk [vmem:[#allocation2 + $0x18] sm:$0xff] %vm579_vm1, %v5793_v40  ;;  %vm3845_vm5 = vcmask 523264   ;;  %vm3862_vm6 = vcmask 785408  }
  0x45   : > { %v5948_v48 = vld [vmem:[%s5945_s25 + $0x38] sm:$0xff]   ;;  %v5951_v49 = vld [vmem:[%s5945_s25 + $0x30] sm:$0xff]   ;;  %v5962_v52 = vld [vmem:[%s5945_s25 + $0x28] sm:$0xff]   ;;  %584 = vst.msk [vmem:[#allocation2 + $0x20] sm:$0xff] %vm579_vm1, %v5793_v40  ;;  %s6137_s26 = scalar_lea.vmem [#allocation7], %s5942_s24  ;;  %s5799_s29 = smov 32  }
  0x46   : > { %5249 = vmatprep.subr.msk.bf16.mxu0 %vm820_vm0, %v5948_v48  ;;  %v867_v50 = vsel %vm820_vm0, %v5948_v48, 0  ;;  %v864_v51 = vsel %vm820_vm0, %v5951_v49, 0  ;;  %v628_v53 = vld [vmem:[%s5965_s12] sm:$0xf]  ;;  %v629_v54 = vld [vmem:[%s5965_s12 + $0x4] sm:$0xf] }
  0x47   : > { %4994 = vmatpush3.bf16.xpose.msra.mxu0 %v867_v50  ;;  %v644_v55 = vmul.bf16 1043676725, %v628_v53  ;;  %v645_v56 = vmul.bf16 1043676725, %v629_v54  ;;  %v861_v58 = vsel %vm820_vm0, %v5962_v52, 0  ;;  %v5978_v59 = vld [vmem:[%s5945_s25 + $0x20] sm:$0xff]  }
  0x48   : > { %5250 = vmatprep.subr.msk.bf16.mxu0 %vm820_vm0, %v5951_v49  ;;  %v858_v60 = vsel %vm820_vm0, %v5978_v59, 0  ;;  %v5985_v61 = vld [vmem:[%s5945_s25 + $0x18] sm:$0xff]   ;;  %v5992_v63 = vld [vmem:[%s5945_s25 + $0x10] sm:$0xff]   ;;  %v5999_v1 = vld [vmem:[%s5945_s25 + $0x8] sm:$0xff]   ;;  %585 = vst.msk [vmem:[#allocation2 + $0x28] sm:$0xff] %vm579_vm1, %v5793_v40  ;;  %v8566_v50 = vmov 0  }
  0x49   : > { %v5969_v57 = vcombine.low %v644_v55, %v645_v56  ;;  %v855_v62 = vsel %vm820_vm0, %v5985_v61, 0  ;;  %v852_v0 = vsel %vm820_vm0, %v5992_v63, 0  ;;  %v849_v2 = vsel %vm820_vm0, %v5999_v1, 0  ;;  %v6006_v3 = vld [vmem:[%s5945_s25] sm:$0xff]   ;;  %v630_v4 = vld [vmem:[%s5965_s12 + $0x8] sm:$0xf]  ;;  %5332 = vset.pattern.permute.xlu1 %v8566_v50  ;;  %5331 = vset.pattern.permute.xlu0 %v8566_v50 }
  0x4a   : > { %v631_v5 = vld [vmem:[%s5965_s12 + $0xc] sm:$0xf]  ;;  %v846_v6 = vsel %vm820_vm0, %v6006_v3, 0  ;;  %v632_v7 = vld [vmem:[%s5965_s12 + $0x10] sm:$0xf]  ;;  %586 = vst.msk [vmem:[#allocation2 + $0x30] sm:$0xff] %vm579_vm1, %v5793_v40 }
  0x4b   : > { %8660 = vst [vmem:[#allocation8_spill] sm:$0xff] %v5969_v57  ;;  %5009 = vmatprep.mubr.msk.bf16.mxu0 %vm820_vm0, %v5969_v57  ;;  %v633_v8 = vld [vmem:[%s5965_s12 + $0x14] sm:$0xf]  ;;  %v646_v9 = vmul.bf16 1043676725, %v630_v4  ;;  %587 = vst.msk [vmem:[#allocation2 + $0x38] sm:$0xff] %vm579_vm1, %v5793_v40 }
  0x4c   : > { %v647_v10 = vmul.bf16 1043676725, %v631_v5  ;;  %v648_v11 = vmul.bf16 1043676725, %v632_v7  ;;  %v649_v12 = vmul.bf16 1043676725, %v633_v8 }
  0x4d   : > { %v634_v15 = vld [vmem:[%s5965_s12 + $0x18] sm:$0xf]  ;;  %v635_v16 = vld [vmem:[%s5965_s12 + $0x1c] sm:$0xf]  ;;  %v636_v17 = vld [vmem:[%s5965_s12 + $0x20] sm:$0xf] }
  0x4e   : > { %v6016_v13 = vcombine.low %v646_v9, %v647_v10  ;;  %v6018_v14 = vcombine.low %v648_v11, %v649_v12  ;;  %v637_v18 = vld [vmem:[%s5965_s12 + $0x24] sm:$0xf]  ;;  %v650_v19 = vmul.bf16 1043676725, %v634_v15  ;;  %v651_v20 = vmul.bf16 1043676725, %v635_v16 }
  0x4f   : > { %4996 = vmatpush3.bf16.xpose.msra.mxu0 %v864_v51  ;;  %v652_v21 = vmul.bf16 1043676725, %v636_v17  ;;  %v653_v22 = vmul.bf16 1043676725, %v637_v18  ;;  %v638_v25 = vld [vmem:[%s5965_s12 + $0x28] sm:$0xf] }
  0x50   : > { %5251 = vmatprep.subr.msk.bf16.mxu0 %vm820_vm0, %v5962_v52  ;;  %8661 = vst [vmem:[#allocation9_spill] sm:$0xff] %v6016_v13  ;;  %8662 = vst [vmem:[#allocation10_spill] sm:$0xff] %v6018_v14  ;;  %v6028_v23 = vcombine.low %v650_v19, %v651_v20  ;;  %v639_v26 = vld [vmem:[%s5965_s12 + $0x2c] sm:$0xf]  ;;  %v640_v27 = vld [vmem:[%s5965_s12 + $0x30] sm:$0xf] }
  0x51   : > { %v6030_v24 = vcombine.low %v652_v21, %v653_v22  ;;  %v641_v28 = vld [vmem:[%s5965_s12 + $0x34] sm:$0xf]  ;;  %v654_v29 = vmul.bf16 1043676725, %v638_v25  ;;  %v655_v30 = vmul.bf16 1043676725, %v639_v26 }
  0x52   : > { %v656_v31 = vmul.bf16 1043676725, %v640_v27  ;;  %v657_v32 = vmul.bf16 1043676725, %v641_v28  ;;  %v642_v35 = vld [vmem:[%s5965_s12 + $0x38] sm:$0xf] }
  0x53   : > { %8663 = vst [vmem:[#allocation11_spill] sm:$0xff] %v6030_v24  ;;  %v6040_v33 = vcombine.low %v654_v29, %v655_v30  ;;  %v643_v36 = vld [vmem:[%s5965_s12 + $0x3c] sm:$0xf]  ;;  %v658_v37 = vmul.bf16 1043676725, %v642_v35  ;;  %588 = vst.msk [vmem:[#allocation2 + $0x40] sm:$0xff] %vm579_vm1, %v5793_v40 }
  0x54   : > { %v6042_v34 = vcombine.low %v656_v31, %v657_v32  ;;  %v659_v38 = vmul.bf16 1043676725, %v643_v36  ;;  %589 = vst.msk [vmem:[#allocation2 + $0x48] sm:$0xff] %vm579_vm1, %v5793_v40  ;;  %590 = vst.msk [vmem:[#allocation2 + $0x50] sm:$0xff] %vm579_vm1, %v5793_v40  ;;  %v6140_v4 = vld [vmem:[%s6137_s26 + $0x38] sm:$0xff]   ;;  %v6144_v5 = vld [vmem:[%s6137_s26 + $0x30] sm:$0xff]  }
  0x55   : > { %8664 = vst [vmem:[#allocation12_spill] sm:$0xff] %v6040_v33  ;;  %591 = vst.msk [vmem:[#allocation2 + $0x58] sm:$0xff] %vm579_vm1, %v5793_v40  ;;  %5025 = vmatprep.subr.bf16.mxu1 %v6140_v4  ;;  %v6153_v7 = vld [vmem:[%s6137_s26 + $0x20] sm:$0xff]   ;;  %v6160_v8 = vld [vmem:[%s6137_s26 + $0x18] sm:$0xff]   ;;  %p564_p9 = scmp.lt.s32.totalorder %s5783_s14, 1 }
  0x56   : > { %8665 = vst [vmem:[#allocation13_spill] sm:$0xff] %v6042_v34  ;;  %v6050_v39 = vcombine.low %v658_v37, %v659_v38  ;;  %592 = vst.msk [vmem:[#allocation2 + $0x60] sm:$0xff] %vm579_vm1, %v5793_v40  ;;  %5026 = vmatpush3.bf16.msra.mxu1 %v6140_v4  ;;  %v6162_v9 = vld [vmem:[#allocation2 + $0x10] sm:$0xff]  ;;  %v6165_v11 = vld [vmem:[#allocation2] sm:$0xff] }
  0x57   : > { %4998 = vmatpush3.bf16.xpose.msra.mxu0 %v861_v58  ;;  %593 = vst.msk [vmem:[#allocation2 + $0x68] sm:$0xff] %vm579_vm1, %v5793_v40  ;;  %594 = vst.msk [vmem:[#allocation2 + $0x70] sm:$0xff] %vm579_vm1, %v5793_v40  ;;  %5027 = vmatprep.subr.bf16.mxu1 %v6144_v5  ;;  %v6172_v15 = vld [vmem:[%s6137_s26 + $0x10] sm:$0xff]   ;;  %v6179_v18 = vld [vmem:[#allocation2 + $0x8] sm:$0xff]  ;;  %s9241_s14 = smov (!%p564_p9, %s5783_s14), 1 }
  0x58   : > { %5252 = vmatprep.subr.msk.bf16.mxu0 %vm820_vm0, %v5978_v59  ;;  %8666 = vst [vmem:[#allocation14_spill] sm:$0xff] %v6050_v39  ;;  %595 = vst.msk [vmem:[#allocation2 + $0x78] sm:$0xff] %vm579_vm1, %v5793_v40  ;;  %v6184_v19 = vld [vmem:[%s6137_s26 + $0x8] sm:$0xff]   ;;  %v6190_v22 = vld [vmem:[#allocation2 + $0x18] sm:$0xff]  ;;  %s4801_s30 = sshll.u32 %s9241_s14, 6 }
  0x59   : > { %v6195_v26 = vld [vmem:[%s6137_s26] sm:$0xff]   ;;  %v6197_v28 = vld [vmem:[#allocation2 + $0x38] sm:$0xff]  ;;  %s8426_s5 = scalar_lea.vmem %s8565_s3, %s4801_s30 }
  0x5a   : > { %5028 = vmatpush3.bf16.msra.mxu1 %v6144_v5 }
  0x5b   : > { %v6209_v36 = vld [vmem:[#allocation2 + $0x50] sm:$0xff] }
  0x5f   : > { %5000 = vmatpush3.bf16.xpose.msra.mxu0 %v858_v60  ;;  %v5795_v60 = vmov 0.0   ;;  %v6244_v50 = vld [vmem:[#allocation2 + $0x78] sm:$0xff] }
  0x60   : > { %5253 = vmatprep.subr.msk.bf16.mxu0 %vm820_vm0, %v5985_v61  ;;  %598 = vst.msk [vmem:[#allocation3 + $0x10] sm:$0xff] %vm579_vm1, %v5795_v60  ;;  %596 = vst.msk [vmem:[#allocation3] sm:$0xff] %vm579_vm1, %v5795_v60 }
  0x61   : > { %597 = vst.msk [vmem:[#allocation3 + $0x8] sm:$0xff] %vm579_vm1, %v5795_v60  ;;  %599 = vst.msk [vmem:[#allocation3 + $0x18] sm:$0xff] %vm579_vm1, %v5795_v60 }
  0x62   : > { %600 = vst.msk [vmem:[#allocation3 + $0x20] sm:$0xff] %vm579_vm1, %v5795_v60  ;;  %601 = vst.msk [vmem:[#allocation3 + $0x28] sm:$0xff] %vm579_vm1, %v5795_v60 }
  0x63   : > { %602 = vst.msk [vmem:[#allocation3 + $0x30] sm:$0xff] %vm579_vm1, %v5795_v60  ;;  %603 = vst.msk [vmem:[#allocation3 + $0x38] sm:$0xff] %vm579_vm1, %v5795_v60 }
  0x64   : > { %604 = vst.msk [vmem:[#allocation3 + $0x40] sm:$0xff] %vm579_vm1, %v5795_v60  ;;  %605 = vst.msk [vmem:[#allocation3 + $0x48] sm:$0xff] %vm579_vm1, %v5795_v60 }
  0x65   : > { %606 = vst.msk [vmem:[#allocation3 + $0x50] sm:$0xff] %vm579_vm1, %v5795_v60  ;;  %607 = vst.msk [vmem:[#allocation3 + $0x58] sm:$0xff] %vm579_vm1, %v5795_v60 }
  0x66   : > { %608 = vst.msk [vmem:[#allocation3 + $0x60] sm:$0xff] %vm579_vm1, %v5795_v60  ;;  %609 = vst.msk [vmem:[#allocation3 + $0x68] sm:$0xff] %vm579_vm1, %v5795_v60 }
  0x67   : > { %5002 = vmatpush3.bf16.xpose.msra.mxu0 %v855_v62  ;;  %610 = vst.msk [vmem:[#allocation3 + $0x70] sm:$0xff] %vm579_vm1, %v5795_v60  ;;  %611 = vst.msk [vmem:[#allocation3 + $0x78] sm:$0xff] %vm579_vm1, %v5795_v60  ;;  %v6216_v60 = vld [vmem:[#allocation2 + $0x40] sm:$0xff] }
  0x68   : > { %5254 = vmatprep.subr.msk.bf16.mxu0 %vm820_vm0, %v5992_v63 }
  0x6f   : > { %5004 = vmatpush3.bf16.xpose.msra.mxu0 %v852_v0 }
  0x70   : > { %5255 = vmatprep.subr.msk.bf16.mxu0 %vm820_vm0, %v5999_v1 }
  0x77   : > { %5006 = vmatpush3.bf16.xpose.msra.mxu0 %v849_v2 }
  0x78   : > { %5256 = vmatprep.subr.msk.bf16.mxu0 %vm820_vm0, %v6006_v3 }
  0x7f   : > { %5008 = vmatpush3.bf16.xpose.msra.mxu0 %v846_v6  ;;  %v6150_v6 = vld [vmem:[%s6137_s26 + $0x28] sm:$0xff]  }
  0x80   : > { %5029 = vmatprep.subr.bf16.mxu1 %v6150_v6 }
  0x81   : > { %5030 = vmatpush3.bf16.msra.mxu1 %v6150_v6 }
  0x82   : > { %5031 = vmatprep.subr.bf16.mxu1 %v6153_v7 }
  0x85   : > { %5032 = vmatpush3.bf16.msra.mxu1 %v6153_v7 }
  0x86   : > { %5010 = vmatmul.mubr.msk.bf16.vlgmr.msra.gmra.mxu0 %vm820_vm0, %v6016_v13  ;;  %5033 = vmatprep.subr.bf16.mxu1 %v6160_v8 }
  0x87   : > { %5013 = vmatprep.mubr.msk.bf16.mxu0 %vm820_vm0, %v6018_v14 }
  0x89   : > { %5034 = vmatpush3.bf16.msra.mxu1 %v6160_v8 }
  0x8a   : > { %5035 = vmatprep.subr.bf16.mxu1 %v6172_v15 }
  0x8d   : > { %5036 = vmatpush3.bf16.msra.mxu1 %v6172_v15 }
  0x8e   : > { %5014 = vmatmul.mubr.msk.bf16.gmra.mxu0 %vm820_vm0, %v6028_v23  ;;  %5037 = vmatprep.subr.bf16.mxu1 %v6184_v19 }
  0x8f   : > { %5017 = vmatprep.mubr.msk.bf16.mxu0 %vm820_vm0, %v6030_v24 }
  0x91   : > { %5038 = vmatpush3.bf16.msra.mxu1 %v6184_v19 }
  0x92   : > { %5039 = vmatprep.subr.bf16.mxu1 %v6195_v26 }
  0x95   : > { %5040 = vmatpush3.bf16.msra.mxu1 %v6195_v26 }
  0x96   : > { %5018 = vmatmul.mubr.msk.bf16.gmra.mxu0 %vm820_vm0, %v6040_v33 }
  0x97   : > { %5021 = vmatprep.mubr.msk.bf16.mxu0 %vm820_vm0, %v6042_v34 }
  0x9e   : > { %5022 = vmatmul.mubr.msk.bf16.gmra.mxu0 %vm820_vm0, %v6050_v39 }
 0x146   : > { %v6070_v41 = vpop.f32.mrf.mxu0 }
 0x147   : > { %970 = vmax.xlane.f32.xlu1 %v6070_v41 }
 0x148   : > { %v6073_v42 = vpop.f32.mrf.mxu0 }
 0x149   : > { %966 = vmax.xlane.f32.xlu0 %v6073_v42 }
 0x14a   : > { %v6076_v43 = vpop.f32.mrf.mxu0 }
 0x14b   : > { %972 = vmax.xlane.f32.xlu1 %v6076_v43 }
 0x14c   : > { %v6079_v44 = vpop.f32.mrf.mxu0 }
 0x14d   : > { %968 = vmax.xlane.f32.xlu0 %v6079_v44 }
 0x14e   : > { %v6082_v45 = vpop.f32.mrf.mxu0 }
 0x150   : > { %v6084_v46 = vpop.f32.mrf.mxu0 }
 0x151   : > { %978 = vmax.xlane.f32.xlu0 %v6082_v45 }
 0x152   : > { %v6087_v47 = vpop.f32.mrf.mxu0 }
 0x153   : > { %980 = vmax.xlane.f32.xlu1 %v6087_v47 }
 0x154   : > { %v6092_v51 = vpop.f32.mrf.mxu0 }
 0x155   : > { %974 = vmax.xlane.f32.xlu0 %v6084_v46 }
 0x156   : > { %v6095_v53 = vpop.f32.mrf.mxu0 }
 0x157   : > { %976 = vmax.xlane.f32.xlu1 %v6092_v51 }
 0x158   : > { %v6098_v54 = vpop.f32.mrf.mxu0 }
 0x159   : > { %986 = vmax.xlane.f32.xlu0 %v6095_v53 }
 0x15a   : > { %v6101_v55 = vpop.f32.mrf.mxu0 }
 0x15b   : > { %988 = vmax.xlane.f32.xlu1 %v6101_v55 }
 0x15c   : > { %v6104_v56 = vpop.f32.mrf.mxu0 }
 0x15d   : > { %982 = vmax.xlane.f32.xlu0 %v6098_v54 }
 0x15e   : > { %v6107_v58 = vpop.f32.mrf.mxu0 }
 0x15f   : > { %984 = vmax.xlane.f32.xlu1 %v6104_v56 }
 0x160   : > { %v6126_v62 = vpop.f32.mrf.mxu0 }
 0x161   : > { %994 = vmax.xlane.f32.xlu0 %v6107_v58 }
 0x162   : > { %v6129_v0 = vpop.f32.mrf.mxu0 }
 0x163   : > { %996 = vmax.xlane.f32.xlu1 %v6129_v0 }
 0x164   : > { %v6132_v2 = vpop.f32.mrf.mxu0 }
 0x165   : > { %990 = vmax.xlane.f32.xlu0 %v6126_v62 }
 0x167   : > { %992 = vmax.xlane.f32.xlu1 %v6132_v2 }
 0x1d0   : > { %v971_v10 = vpop.xlane.xlu1 %970 }
 0x1d1   : > { %v6169_v12 = vmax.f32 %v6162_v9, %v971_v10  ;;  %v6221_v10 = vld [vmem:[#allocation2 + $0x30] sm:$0xff] }
 0x1d2   : > { %v967_v16 = vpop.xlane.xlu0 %966 }
 0x1d3   : > { %8667 = vst [vmem:[#allocation15_spill] sm:$0xff] %v6169_v12  ;;  %v6175_v17 = vmax.f32 %v6165_v11, %v967_v16  ;;  %1074 = vperm.xlu1 %5332, %v6169_v12  }
 0x1d4   : > { %v973_v25 = vpop.xlane.xlu1 %972 }
 0x1d5   : > { %8668 = vst [vmem:[#allocation16_spill] sm:$0xff] %v6175_v17  ;;  %1064 = vperm.xlu0 %5331, %v6175_v17   ;;  %v6200_v29 = vmax.f32 %v6190_v22, %v973_v25 }
 0x1d6   : > { %v969_v20 = vpop.xlane.xlu0 %968 }
 0x1d7   : > { %v6187_v21 = vmax.f32 %v6179_v18, %v969_v20  ;;  %8670 = vst [vmem:[#allocation18_spill] sm:$0xff] %v6200_v29 }
 0x1d9   : > { %8669 = vst [vmem:[#allocation17_spill] sm:$0xff] %v6187_v21  ;;  %1069 = vperm.xlu1 %5332, %v6187_v21  }
 0x1da   : > { %v979_v27 = vpop.xlane.xlu0 %978 }
 0x1dc   : > { %v981_v30 = vpop.xlane.xlu1 %980 }
 0x1dd   : > { %v6205_v31 = vmax.f32 %v6197_v28, %v981_v30  ;;  %1079 = vperm.xlu1 %5332, %v6200_v29   ;;  %v6232_v30 = vld [vmem:[#allocation2 + $0x20] sm:$0xff] }
 0x1de   : > { %v975_v32 = vpop.xlane.xlu0 %974 }
 0x1df   : > { %8671 = vst [vmem:[#allocation19_spill] sm:$0xff] %v6205_v31  ;;  %1099 = vperm.xlu0 %5331, %v6205_v31  }
 0x1e0   : > { %v977_v35 = vpop.xlane.xlu1 %976 }
 0x1e1   : > { %1549 = vrot.lane.b32.xlu1 %v5948_v48, %s5796_s27  ;;  %v6227_v48 = vmax.f32 %v6221_v10, %v979_v27  ;;  %v6242_v27 = vld [vmem:[#allocation2 + $0x68] sm:$0xff] }
 0x1e2   : > { %v987_v37 = vpop.xlane.xlu0 %986 }
 0x1e3   : > { %v6214_v38 = vmax.f32 %v6209_v36, %v987_v37  ;;  %8674 = vst [vmem:[#allocation22_spill] sm:$0xff] %v6227_v48 }
 0x1e4   : > { %v989_v40 = vpop.xlane.xlu1 %988 }
 0x1e5   : > { %8672 = vst [vmem:[#allocation20_spill] sm:$0xff] %v6214_v38  ;;  %1114 = vperm.xlu0 %5331, %v6214_v38   ;;  %1547 = vrot.lane.b32.xlu1 %v5951_v49, %s5796_s27  ;;  %v6235_v49 = vmax.f32 %v6232_v30, %v975_v32  ;;  %v6253_v32 = vld [vmem:[#allocation2 + $0x58] sm:$0xff] }
 0x1e6   : > { %v983_v16 = vpop.xlane.xlu0 %982 }
 0x1e7   : > { %v6224_v20 = vmax.f32 %v6216_v60, %v983_v16  ;;  %8675 = vst [vmem:[#allocation23_spill] sm:$0xff] %v6235_v49  ;;  %v6240_v16 = vld [vmem:[#allocation2 + $0x28] sm:$0xff] }
 0x1e8   : > { %v985_v25 = vpop.xlane.xlu1 %984 }
 0x1e9   : > { %8673 = vst [vmem:[#allocation21_spill] sm:$0xff] %v6224_v20  ;;  %1104 = vperm.xlu0 %5331, %v6224_v20   ;;  %1545 = vrot.lane.b32.xlu1 %v5962_v52, %s5796_s27  ;;  %v6247_v52 = vmax.f32 %v6240_v16, %v977_v35 }
 0x1ea   : > { %v995_v35 = vpop.xlane.xlu0 %994 }
 0x1ec   : > { %v997_v37 = vpop.xlane.xlu1 %996 }
 0x1ed   : > { %1094 = vperm.xlu1 %5332, %v6227_v48   ;;  %1543 = vrot.lane.b32.xlu0 %v5978_v59, %s5796_s27  ;;  %v6256_v31 = vmax.f32 %v6244_v50, %v997_v37  ;;  %v6260_v59 = vmax.f32 %v6253_v32, %v989_v40  ;;  %v6263_v48 = vld [vmem:[#allocation2 + $0x48] sm:$0xff]  ;;  %v1014_v40 = vsub.f32 %v6165_v11, %v6175_v17 }
 0x1ef   : > { %8677 = vst [vmem:[#allocation25_spill] sm:$0xff] %v6256_v31  ;;  %8678 = vst [vmem:[#allocation26_spill] sm:$0xff] %v6260_v59 }
 0x1f0   : > { %v993_v38 = vpop.xlane.xlu1 %992 }
 0x1f1   : > { %v6250_v20 = vmax.f32 %v6242_v27, %v993_v38  ;;  %1084 = vperm.xlu1 %5332, %v6235_v49   ;;  %v6267_v38 = vmax.f32 %v6263_v48, %v985_v25  ;;  %v6270_v49 = vld [vmem:[#allocation2 + $0x70] sm:$0xff]  ;;  %v1030_v25 = vmul.f32 1.442695, %v1014_v40 }
 0x1f2   : > { %v6278_v37 = vmax.f32 %v6270_v49, %v995_v35 }
 0x1f3   : > { %8676 = vst [vmem:[#allocation24_spill] sm:$0xff] %v6250_v20  ;;  %1129 = vperm.xlu0 %5331, %v6250_v20   ;;  %8679 = vst [vmem:[#allocation27_spill] sm:$0xff] %v6267_v38  ;;  %v991_v20 = vpop.xlane.xlu0 %990  ;;  %5420 = vpow2.f32 %v1030_v25 }
 0x1f5   : > { %1089 = vperm.xlu1 %5332, %v6247_v52  }
 0x1f7   : > { %1139 = vperm.xlu0 %5331, %v6256_v31   ;;  %v6280_v31 = vld [vmem:[#allocation2 + $0x60] sm:$0xff] }
 0x1f9   : > { %1119 = vperm.xlu1 %5332, %v6260_v59   ;;  %v6286_v59 = vmax.f32 %v6280_v31, %v991_v20 }
 0x1fb   : > { %1539 = vrot.lane.b32.xlu0 %v5992_v63, %s5796_s27 }
 0x1fd   : > { %1109 = vperm.xlu1 %5332, %v6267_v38  }
 0x1ff   : > { %1535 = vrot.lane.b32.xlu0 %v6006_v3, %s5796_s27 }
 0x200   : > { %v6303_v63 = vpop.eup %5420 }
 0x201   : > { %1134 = vperm.xlu1 %5332, %v6278_v37   ;;  %8680 = vst [vmem:[#allocation28_spill] sm:$0xff] %v6303_v63 }
 0x203   : > { %1521 = vrot.lane.b32.xlu0 %v6016_v13, %s5796_s27 }
 0x205   : > { %1124 = vperm.xlu1 %5332, %v6286_v59  }
 0x207   : > { %1525 = vrot.lane.b32.xlu0 %v6028_v23, %s5796_s27 }
 0x209   : > { %1541 = vrot.lane.b32.xlu1 %v5985_v61, %s5796_s27 }
 0x20b   : > { %1529 = vrot.lane.b32.xlu0 %v6040_v33, %s5796_s27 }
 0x20d   : > { %1537 = vrot.lane.b32.xlu1 %v5999_v1, %s5796_s27 }
 0x20f   : > { %1533 = vrot.lane.b32.xlu0 %v6050_v39, %s5796_s27 }
 0x211   : > { %1519 = vrot.lane.b32.xlu1 %v5969_v57, %s5796_s27 }
 0x213   : > { %1409 = vperm.xlu0 %5331, %v6303_v63  }
 0x215   : > { %1523 = vrot.lane.b32.xlu1 %v6018_v14, %s5796_s27 }
 0x219   : > { %1527 = vrot.lane.b32.xlu1 %v6030_v24, %s5796_s27 }
 0x21d   : > { %1531 = vrot.lane.b32.xlu1 %v6042_v34, %s5796_s27 }
 0x221   : > { %2006 = vrot.lane.b32.xlu1 %v6140_v4, %s5796_s27 }
 0x225   : > { %2004 = vrot.lane.b32.xlu1 %v6144_v5, %s5796_s27 }
 0x24e   : > { %v1075_v61 = vpop.permute.xlu1 %1074 }
 0x24f   : > { %v1144_v1 = vsub.f32 %v6070_v41, %v1075_v61 }
 0x250   : > { %v1065_v3 = vpop.permute.xlu0 %1064 }
 0x251   : > { %v1162_v20 = vmul.f32 1.442695, %v1144_v1  ;;  %v1142_v35 = vsub.f32 %v6073_v42, %v1065_v3 }
 0x253   : > { %5422 = vpow2.f32 %v1162_v20  ;;  %v1158_v40 = vmul.f32 1.442695, %v1142_v35 }
 0x254   : > { %v1070_v25 = vpop.permute.xlu1 %1069 }
 0x255   : > { %5424 = vpow2.f32 %v1158_v40  ;;  %v1143_v63 = vsub.f32 %v6079_v44, %v1070_v25 }
 0x257   : > { %v1160_v17 = vmul.f32 1.442695, %v1143_v63 }
 0x258   : > { %v1080_v39 = vpop.permute.xlu1 %1079 }
 0x259   : > { %5426 = vpow2.f32 %v1160_v17  ;;  %v1145_v4 = vsub.f32 %v6076_v43, %v1080_v39 }
 0x25a   : > { %v1100_v34 = vpop.permute.xlu0 %1099 }
 0x25b   : > { %v1164_v5 = vmul.f32 1.442695, %v1145_v4  ;;  %v1149_v24 = vsub.f32 %v6087_v47, %v1100_v34 }
 0x25c   : > { %v1550_v41 = vpop.permute.xlu1 %1549 }
 0x25d   : > { %5428 = vpow2.f32 %v1164_v5  ;;  %v1172_v61 = vmul.f32 1.442695, %v1149_v24  ;;  %5257 = vmatprep.subr.msk.bf16.mxu1 %vm820_vm0, %v1550_v41 }
 0x25f   : > { %5430 = vpow2.f32 %v1172_v61  ;;  %v1597_v61 = vsel %vm820_vm0, %v1550_v41, 0 }
 0x260   : > { %v5423_v42 = vpop.eup %5422  ;;  %v1548_v1 = vpop.permute.xlu1 %1547 }
 0x261   : > { %v1115_v3 = vpop.permute.xlu0 %1114  ;;  %1210 = vadd.xlane.f32.xlu0 %v5423_v42 }
 0x262   : > { %v5425_v44 = vpop.eup %5424  ;;  %v1152_v25 = vsub.f32 %v6095_v53, %v1115_v3 }
 0x263   : > { %1206 = vadd.xlane.f32.xlu1 %v5425_v44 }
 0x264   : > { %v1546_v63 = vpop.permute.xlu1 %1545 }
 0x265   : > { %v1105_v20 = vpop.permute.xlu0 %1104 }
 0x266   : > { %v5427_v17 = vpop.eup %5426 }
 0x267   : > { %1208 = vadd.xlane.f32.xlu0 %v5427_v17  ;;  %v1254_v39 = vpack.c.bf16 %v5427_v17, %v5425_v44 }
 0x268   : > { %v1095_v43 = vpop.permute.xlu1 %1094 }
 0x269   : > { %v1148_v34 = vsub.f32 %v6082_v45, %v1095_v43  ;;  %5041 = vmatprep.mubr.bf16.mxu1 %v1254_v39  ;;  %v6323_v35 = vpop.permute.xlu0 %1543  ;;  %v1178_v45 = vmul.f32 1.442695, %v1152_v25  ;;  %v1150_v39 = vsub.f32 %v6098_v54, %v1105_v20 }
 0x26a   : > { %v5429_v47 = vpop.eup %5428 }
 0x26b   : > { %v1170_v24 = vmul.f32 1.442695, %v1148_v34  ;;  %1212 = vadd.xlane.f32.xlu1 %v5429_v47  ;;  %v1255_v40 = vpack.c.bf16 %v5429_v47, %v5423_v42  ;;  %v1594_v47 = vsel %vm820_vm0, %v1548_v1, 0 }
 0x26c   : > { %v1085_v4 = vpop.permute.xlu1 %1084  ;;  %v5431_v44 = vpop.eup %5430 }
 0x26d   : > { %5432 = vpow2.f32 %v1170_v24  ;;  %v1146_v5 = vsub.f32 %v6084_v46, %v1085_v4  ;;  %5042 = vmatmul.mubr.bf16.vlgmr.msra.gmra.mxu1 %v1255_v40  ;;  %v1174_v46 = vmul.f32 1.442695, %v1150_v39 }
 0x26e   : > { %5058 = vmatpush3.bf16.xpose.msra.mxu1 %v1597_v61  ;;  %v1130_v42 = vpop.permute.xlu0 %1129  ;;  %v1591_v61 = vsel %vm820_vm0, %v1546_v63, 0 }
 0x26f   : > { %v1166_v17 = vmul.f32 1.442695, %v1146_v5  ;;  %5258 = vmatprep.subr.msk.bf16.mxu1 %vm820_vm0, %v1548_v1  ;;  %1220 = vadd.xlane.f32.xlu1 %v5431_v44  ;;  %v1155_v5 = vsub.f32 %v6132_v2, %v1130_v42 }
 0x270   : > { %v1090_v43 = vpop.permute.xlu1 %1089 }
 0x271   : > { %5434 = vpow2.f32 %v1166_v17  ;;  %v1147_v53 = vsub.f32 %v6092_v51, %v1090_v43 }
 0x272   : > { %5436 = vpow2.f32 %v1178_v45  ;;  %v1140_v24 = vpop.permute.xlu0 %1139 }
 0x273   : > { %v1168_v3 = vmul.f32 1.442695, %v1147_v53  ;;  %v1157_v25 = vsub.f32 %v6129_v0, %v1140_v24 }
 0x274   : > { %v1120_v34 = vpop.permute.xlu1 %1119 }
 0x275   : > { %5438 = vpow2.f32 %v1168_v3  ;;  %v1153_v41 = vsub.f32 %v6101_v55, %v1120_v34  ;;  %v1188_v45 = vmul.f32 1.442695, %v1157_v25 }
 0x276   : > { %5060 = vmatpush3.bf16.xpose.msra.mxu1 %v1594_v47  ;;  %5440 = vpow2.f32 %v1174_v46  ;;  %v1588_v46 = vsel %vm820_vm0, %v6323_v35, 0 }
 0x277   : > { %v1180_v40 = vmul.f32 1.442695, %v1153_v41  ;;  %5259 = vmatprep.subr.msk.bf16.mxu1 %vm820_vm0, %v1546_v63 }
 0x278   : > { %v1110_v54 = vpop.permute.xlu1 %1109 }
 0x279   : > { %5442 = vpow2.f32 %v1180_v40  ;;  %v1151_v20 = vsub.f32 %v6104_v56, %v1110_v54  ;;  %v1184_v56 = vmul.f32 1.442695, %v1155_v5 }
 0x27a   : > { %v5433_v51 = vpop.eup %5432 }
 0x27b   : > { %v1176_v4 = vmul.f32 1.442695, %v1151_v20  ;;  %1218 = vadd.xlane.f32.xlu0 %v5433_v51  ;;  %v1257_v34 = vpack.c.bf16 %v5431_v44, %v5433_v51  ;;  %v1540_v44 = vpop.permute.xlu0 %1539 }
 0x27c   : > { %v1135_v55 = vpop.permute.xlu1 %1134 }
 0x27d   : > { %5444 = vpow2.f32 %v1176_v4  ;;  %v1156_v1 = vsub.f32 %v6107_v58, %v1135_v55 }
 0x27e   : > { %v5435_v17 = vpop.eup %5434  ;;  %5062 = vmatpush3.bf16.xpose.msra.mxu1 %v1591_v61 }
 0x27f   : > { %v1186_v39 = vmul.f32 1.442695, %v1156_v1  ;;  %5260 = vmatprep.subr.msk.bf16.mxu1 %vm820_vm0, %v6323_v35  ;;  %1214 = vadd.xlane.f32.xlu0 %v5435_v17  ;;  %v5437_v43 = vpop.eup %5436  ;;  %v1582_v1 = vsel %vm820_vm0, %v1540_v44, 0 }
 0x280   : > { %v1125_v0 = vpop.permute.xlu1 %1124 }
 0x281   : > { %5446 = vpow2.f32 %v1186_v39  ;;  %v1154_v2 = vsub.f32 %v6126_v62, %v1125_v0  ;;  %v1536_v0 = vpop.permute.xlu0 %1535 }
 0x282   : > { %v5439_v42 = vpop.eup %5438  ;;  %5448 = vpow2.f32 %v1188_v45 }
 0x283   : > { %v1182_v53 = vmul.f32 1.442695, %v1154_v2  ;;  %1226 = vadd.xlane.f32.xlu0 %v5437_v43  ;;  %1216 = vadd.xlane.f32.xlu1 %v5439_v42  ;;  %v1256_v58 = vpack.c.bf16 %v5439_v42, %v5435_v17  ;;  %5450 = vpow2.f32 %v1184_v56  ;;  %v5441_v3 = vpop.eup %5440  ;;  %v1576_v2 = vsel %vm820_vm0, %v1536_v0, 0 }
 0x284   : > { %v1542_v63 = vpop.permute.xlu1 %1541 }
 0x285   : > { %5452 = vpow2.f32 %v1182_v53  ;;  %5045 = vmatprep.mubr.bf16.mxu1 %v1256_v58  ;;  %v1585_v40 = vsel %vm820_vm0, %v1542_v63, 0  ;;  %v1522_v42 = vpop.permute.xlu0 %1521 }
 0x286   : > { %v5443_v41 = vpop.eup %5442  ;;  %5064 = vmatpush3.bf16.xpose.msra.mxu1 %v1588_v46 }
 0x287   : > { %5046 = vmatmul.mubr.bf16.gmra.mxu1 %v1257_v34  ;;  %1222 = vadd.xlane.f32.xlu0 %v5441_v3  ;;  %v1259_v20 = vpack.c.bf16 %v5443_v41, %v5437_v43 }
 0x288   : > { %1228 = vadd.xlane.f32.xlu1 %v5443_v41  ;;  %5261 = vmatprep.subr.msk.bf16.mxu1 %vm820_vm0, %v1542_v63  ;;  %v1538_v62 = vpop.permute.xlu1 %1537 }
 0x289   : > { %v1579_v39 = vsel %vm820_vm0, %v1538_v62, 0  ;;  %v1526_v53 = vpop.permute.xlu0 %1525 }
 0x28a   : > { %v5445_v47 = vpop.eup %5444 }
 0x28b   : > { %v1258_v24 = vpack.c.bf16 %v5445_v47, %v5441_v3 }
 0x28c   : > { %1224 = vadd.xlane.f32.xlu1 %v5445_v47  ;;  %v1520_v54 = vpop.permute.xlu1 %1519 }
 0x28d   : > { %5049 = vmatprep.mubr.bf16.mxu1 %v1258_v24  ;;  %v1530_v58 = vpop.permute.xlu0 %1529 }
 0x28e   : > { %v5447_v25 = vpop.eup %5446  ;;  %5066 = vmatpush3.bf16.xpose.msra.mxu1 %v1585_v40 }
 0x28f   : > { %v5449_v35 = vpop.eup %5448  ;;  %5050 = vmatmul.mubr.bf16.gmra.mxu1 %v1259_v20  ;;  %1234 = vadd.xlane.f32.xlu0 %v5447_v25 }
 0x290   : > { %1236 = vadd.xlane.f32.xlu1 %v5449_v35  ;;  %5262 = vmatprep.subr.msk.bf16.mxu1 %vm820_vm0, %v1540_v44  ;;  %v1524_v51 = vpop.permute.xlu1 %1523  ;;  %v5451_v4 = vpop.eup %5450  ;;  %v1261_v17 = vpack.c.bf16 %v5449_v35, %v5447_v25 }
 0x291   : > { %v1534_v63 = vpop.permute.xlu0 %1533 }
 0x292   : > { %v5453_v5 = vpop.eup %5452 }
 0x293   : > { %1230 = vadd.xlane.f32.xlu0 %v5453_v5  ;;  %v1260_v55 = vpack.c.bf16 %v5451_v4, %v5453_v5 }
 0x294   : > { %1232 = vadd.xlane.f32.xlu1 %v5451_v4  ;;  %v1528_v61 = vpop.permute.xlu1 %1527 }
 0x295   : > { %5053 = vmatprep.mubr.bf16.mxu1 %v1260_v55 }
 0x296   : > { %5068 = vmatpush3.bf16.xpose.msra.mxu1 %v1582_v1 }
 0x297   : > { %5054 = vmatmul.mubr.bf16.gmra.mxu1 %v1261_v17  ;;  %5263 = vmatprep.subr.msk.bf16.mxu1 %vm820_vm0, %v1538_v62 }
 0x298   : > { %5073 = vmatprep.mubr.msk.bf16.mxu1 %vm820_vm0, %v1520_v54  ;;  %v1532_v45 = vpop.permute.xlu1 %1531 }
 0x29c   : > { %v2007_v56 = vpop.permute.xlu1 %2006 }
 0x29d   : > { %5089 = vmatprep.subr.bf16.mxu0 %v2007_v56 }
 0x29e   : > { %5070 = vmatpush3.bf16.xpose.msra.mxu1 %v1579_v39  ;;  %5090 = vmatpush3.bf16.msra.mxu0 %v2007_v56 }
 0x29f   : > { %5264 = vmatprep.subr.msk.bf16.mxu1 %vm820_vm0, %v1536_v0  ;;  %v8592_v0 = vmov 1  }
 0x2a0   : > { %v2005_v43 = vpop.permute.xlu1 %2004  ;;  %5333 = vset.pattern.permute.xlu1 %v8592_v0  ;;  %5334 = vset.pattern.permute.xlu0 %v8592_v0 }
 0x2a1   : > { %5091 = vmatprep.subr.bf16.mxu0 %v2005_v43 }
 0x2a2   : > { %5092 = vmatpush3.bf16.msra.mxu0 %v2005_v43 }
 0x2a6   : > { %5072 = vmatpush3.bf16.xpose.msra.mxu1 %v1576_v2 }
 0x2ad   : > { %5074 = vmatmul.mubr.msk.bf16.vlgmr.msra.gmra.mxu1 %vm820_vm0, %v1522_v42 }
 0x2ae   : > { %5077 = vmatprep.mubr.msk.bf16.mxu1 %vm820_vm0, %v1524_v51 }
 0x2b5   : > { %5078 = vmatmul.mubr.msk.bf16.gmra.mxu1 %vm820_vm0, %v1526_v53 }
 0x2b6   : > { %5081 = vmatprep.mubr.msk.bf16.mxu1 %vm820_vm0, %v1528_v61 }
 0x2bd   : > { %5082 = vmatmul.mubr.msk.bf16.gmra.mxu1 %vm820_vm0, %v1530_v58 }
 0x2be   : > { %5085 = vmatprep.mubr.msk.bf16.mxu1 %vm820_vm0, %v1532_v45 }
 0x2c5   : > { %5086 = vmatmul.mubr.msk.bf16.gmra.mxu1 %vm820_vm0, %v1534_v63 }
 0x32d   : > { %v6360_v3 = vpop.f32.mrf.mxu1 }
 0x32e   : > { %8681 = vst [vmem:[#allocation29_spill] sm:$0xff] %v6360_v3 }
 0x32f   : > { %v6362_v46 = vpop.f32.mrf.mxu1 }
 0x330   : > { %8682 = vst [vmem:[#allocation30_spill] sm:$0xff] %v6362_v46 }
 0x331   : > { %v6364_v34 = vpop.f32.mrf.mxu1 }
 0x332   : > { %8683 = vst [vmem:[#allocation31_spill] sm:$0xff] %v6364_v34 }
 0x333   : > { %v6366_v41 = vpop.f32.mrf.mxu1 }
 0x334   : > { %8684 = vst [vmem:[#allocation32_spill] sm:$0xff] %v6366_v41 }
 0x347   : > { %v6368_v62 = vpop.f32.mrf.mxu1 }
 0x348   : > { %8685 = vst [vmem:[#allocation33_spill] sm:$0xff] %v6368_v62 }
 0x349   : > { %v6370_v47 = vpop.f32.mrf.mxu1 }
 0x34a   : > { %8686 = vst [vmem:[#allocation34_spill] sm:$0xff] %v6370_v47 }
 0x34b   : > { %v6372_v24 = vpop.f32.mrf.mxu1 }
 0x34c   : > { %8687 = vst [vmem:[#allocation35_spill] sm:$0xff] %v6372_v24  ;;  %v6454_v24 = vpop.permute.xlu0 %1409 }
 0x34d   : > { %v6374_v40 = vpop.f32.mrf.mxu1  ;;  %8708 = vst [vmem:[#allocation56_spill] sm:$0xff] %v6454_v24 }
 0x34e   : > { %8688 = vst [vmem:[#allocation36_spill] sm:$0xff] %v6374_v40 }
 0x34f   : > { %v6376_v54 = vpop.f32.mrf.mxu1 }
 0x350   : > { %8689 = vst [vmem:[#allocation37_spill] sm:$0xff] %v6376_v54  ;;  %v6458_v40 = vpop.xlane.xlu0 %1210 }
 0x351   : > { %v6378_v20 = vpop.f32.mrf.mxu1  ;;  %8710 = vst [vmem:[#allocation58_spill] sm:$0xff] %v6458_v40 }
 0x352   : > { %8690 = vst [vmem:[#allocation38_spill] sm:$0xff] %v6378_v20 }
 0x353   : > { %v6380_v25 = vpop.f32.mrf.mxu1 }
 0x354   : > { %8691 = vst [vmem:[#allocation39_spill] sm:$0xff] %v6380_v25  ;;  %v6462_v34 = vpop.xlane.xlu0 %1208 }
 0x355   : > { %v6382_v35 = vpop.f32.mrf.mxu1  ;;  %8712 = vst [vmem:[#allocation60_spill] sm:$0xff] %v6462_v34  ;;  %v5711_v34 = vld [vmem:[%s5945_s25 + $0x28] sm:$0xff]  }
 0x356   : > { %8692 = vst [vmem:[#allocation40_spill] sm:$0xff] %v6382_v35 }
 0x357   : > { %v6384_v44 = vpop.f32.mrf.mxu1 }
 0x358   : > { %8693 = vst [vmem:[#allocation41_spill] sm:$0xff] %v6384_v44  ;;  %v6442_v44 = vpop.xlane.xlu1 %1206  ;;  %v6467_v46 = vpop.xlane.xlu0 %1218 }
 0x359   : > { %v6386_v51 = vpop.f32.mrf.mxu1  ;;  %8702 = vst [vmem:[#allocation50_spill] sm:$0xff] %v6442_v44  ;;  %8713 = vst [vmem:[#allocation61_spill] sm:$0xff] %v6467_v46 }
 0x35a   : > { %8694 = vst [vmem:[#allocation42_spill] sm:$0xff] %v6386_v51 }
 0x35b   : > { %v6388_v4 = vpop.f32.mrf.mxu1 }
 0x35c   : > { %8695 = vst [vmem:[#allocation43_spill] sm:$0xff] %v6388_v4  ;;  %v6444_v25 = vpop.xlane.xlu1 %1212  ;;  %v6474_v24 = vpop.xlane.xlu0 %1214 }
 0x35d   : > { %v6390_v5 = vpop.f32.mrf.mxu1  ;;  %8703 = vst [vmem:[#allocation51_spill] sm:$0xff] %v6444_v25  ;;  %8714 = vst [vmem:[#allocation62_spill] sm:$0xff] %v6474_v24  ;;  %v5708_v24 = vld [vmem:[%s5945_s25 + $0x30] sm:$0xff]  }
 0x35e   : > { %8696 = vst [vmem:[#allocation44_spill] sm:$0xff] %v6390_v5 }
 0x360   : > { %v6446_v51 = vpop.xlane.xlu1 %1220 }
 0x361   : > { %8704 = vst [vmem:[#allocation52_spill] sm:$0xff] %v6446_v51  ;;  %v6483_v51 = vpop.xlane.xlu0 %1226 }
 0x362   : > { %8715 = vst [vmem:[#allocation63_spill] sm:$0xff] %v6483_v51 }
 0x364   : > { %v6448_v35 = vpop.xlane.xlu1 %1216 }
 0x365   : > { %8705 = vst [vmem:[#allocation53_spill] sm:$0xff] %v6448_v35 }
 0x368   : > { %v6450_v54 = vpop.xlane.xlu1 %1228 }
 0x369   : > { %8706 = vst [vmem:[#allocation54_spill] sm:$0xff] %v6450_v54 }
 0x36c   : > { %v6452_v20 = vpop.xlane.xlu1 %1224 }
 0x36d   : > { %v6392_v55 = vpop.f32.mrf.mxu1  ;;  %8707 = vst [vmem:[#allocation55_spill] sm:$0xff] %v6452_v20 }
 0x36e   : > { %1700 = vmax.xlane.f32.xlu1 %v6392_v55 }
 0x36f   : > { %v6395_v1 = vpop.f32.mrf.mxu1 }
 0x370   : > { %v6456_v62 = vpop.xlane.xlu1 %1236 }
 0x371   : > { %v6397_v61 = vpop.f32.mrf.mxu1  ;;  %8709 = vst [vmem:[#allocation57_spill] sm:$0xff] %v6456_v62 }
 0x372   : > { %1696 = vmax.xlane.f32.xlu1 %v6395_v1 }
 0x373   : > { %v6400_v17 = vpop.f32.mrf.mxu1 }
 0x374   : > { %v6460_v47 = vpop.xlane.xlu1 %1232 }
 0x375   : > { %v6402_v45 = vpop.f32.mrf.mxu1  ;;  %8711 = vst [vmem:[#allocation59_spill] sm:$0xff] %v6460_v47 }
 0x376   : > { %1702 = vmax.xlane.f32.xlu1 %v6397_v61 }
 0x377   : > { %v6405_v39 = vpop.f32.mrf.mxu1 }
 0x379   : > { %v6407_v56 = vpop.f32.mrf.mxu1 }
 0x37a   : > { %1698 = vmax.xlane.f32.xlu1 %v6400_v17 }
 0x37b   : > { %v6412_v43 = vpop.f32.mrf.mxu1 }
 0x37c   : > { %1706 = vmax.xlane.f32.xlu0 %v6412_v43 }
 0x37d   : > { %v6415_v2 = vpop.f32.mrf.mxu1 }
 0x37e   : > { %1708 = vmax.xlane.f32.xlu1 %v6402_v45 }
 0x37f   : > { %v6418_v42 = vpop.f32.mrf.mxu1 }
 0x381   : > { %v6420_v53 = vpop.f32.mrf.mxu1 }
 0x382   : > { %1704 = vmax.xlane.f32.xlu1 %v6405_v39 }
 0x383   : > { %v6423_v58 = vpop.f32.mrf.mxu1 }
 0x384   : > { %8697 = vst [vmem:[#allocation45_spill] sm:$0xff] %v6423_v58 }
 0x385   : > { %v6425_v63 = vpop.f32.mrf.mxu1 }
 0x386   : > { %8698 = vst [vmem:[#allocation46_spill] sm:$0xff] %v6425_v63  ;;  %1710 = vmax.xlane.f32.xlu1 %v6407_v56  ;;  %1724 = vmax.xlane.f32.xlu0 %v6425_v63 }
 0x387   : > { %v6433_v0 = vpop.f32.mrf.mxu1 }
 0x388   : > { %8699 = vst [vmem:[#allocation47_spill] sm:$0xff] %v6433_v0 }
 0x389   : > { %v6436_v4 = vpop.f32.mrf.mxu1 }
 0x38a   : > { %1716 = vmax.xlane.f32.xlu1 %v6415_v2  ;;  %8700 = vst [vmem:[#allocation48_spill] sm:$0xff] %v6436_v4 }
 0x38b   : > { %v6439_v5 = vpop.f32.mrf.mxu1 }
 0x38c   : > { %8701 = vst [vmem:[#allocation49_spill] sm:$0xff] %v6439_v5 }
 0x38e   : > { %1712 = vmax.xlane.f32.xlu1 %v6418_v42 }
 0x392   : > { %1718 = vmax.xlane.f32.xlu1 %v6420_v53 }
 0x396   : > { %1714 = vmax.xlane.f32.xlu1 %v6423_v58 }
 0x39a   : > { %1720 = vmax.xlane.f32.xlu1 %v6433_v0  ;;  %v8723_v0 = vld [vmem:[#allocation23_spill] sm:$0xff] }
 0x39b   : > { %v1018_v63 = vsub.f32 %v6232_v30, %v8723_v0  ;;  %v8726_v0 = vld [vmem:[#allocation22_spill] sm:$0xff] }
 0x39e   : > { %1726 = vmax.xlane.f32.xlu1 %v6436_v4  ;;  %v5713_v4 = vld [vmem:[%s5945_s25 + $0x10] sm:$0xff]  }
 0x3a2   : > { %1722 = vmax.xlane.f32.xlu1 %v6439_v5 }
 0x3f7   : > { %v1701_v3 = vpop.xlane.xlu1 %1700 }
 0x3f8   : > { %v6465_v41 = vmax.f32 %v6162_v9, %v1701_v3 }
 0x3fa   : > { %1804 = vperm.xlu1 %5333, %v6465_v41  }
 0x3fb   : > { %v1697_v54 = vpop.xlane.xlu1 %1696 }
 0x3fc   : > { %v6471_v20 = vmax.f32 %v6165_v11, %v1697_v54 }
 0x3fe   : > { %1794 = vperm.xlu0 %5334, %v6471_v20  }
 0x3ff   : > { %v1703_v62 = vpop.xlane.xlu1 %1702 }
 0x400   : > { %v6477_v47 = vmax.f32 %v6190_v22, %v1703_v62  ;;  %v6492_v62 = vpop.xlane.xlu0 %1222 }
 0x401   : > { %8716 = vst [vmem:[#allocation64_spill] sm:$0xff] %v6492_v62  ;;  %v5709_v62 = vld [vmem:[%s5945_s25 + $0x20] sm:$0xff]  }
 0x402   : > { %1809 = vperm.xlu0 %5334, %v6477_v47  }
 0x403   : > { %v1699_v3 = vpop.xlane.xlu1 %1698 }
 0x404   : > { %v6481_v35 = vmax.f32 %v6179_v18, %v1699_v3 }
 0x406   : > { %2000 = vrot.lane.b32.xlu0 %v6153_v7, %s5796_s27  ;;  %1799 = vperm.xlu1 %5333, %v6481_v35   ;;  %v6498_v7 = vpop.xlane.xlu0 %1234 }
 0x407   : > { %v1709_v54 = vpop.xlane.xlu1 %1708  ;;  %8717 = vst [vmem:[#allocation65_spill] sm:$0xff] %v6498_v7 }
 0x408   : > { %v6520_v25 = vmax.f32 %v6221_v10, %v1709_v54 }
 0x40a   : > { %1996 = vrot.lane.b32.xlu0 %v6172_v15, %s5796_s27  ;;  %2002 = vrot.lane.b32.xlu1 %v6150_v6, %s5796_s27  ;;  %v6504_v15 = vpop.xlane.xlu0 %1230 }
 0x40b   : > { %v1705_v3 = vpop.xlane.xlu1 %1704  ;;  %8718 = vst [vmem:[#allocation66_spill] sm:$0xff] %v6504_v15 }
 0x40e   : > { %1992 = vrot.lane.b32.xlu0 %v6195_v26, %s5796_s27  ;;  %1998 = vrot.lane.b32.xlu1 %v6160_v8, %s5796_s27  ;;  %v5710_v26 = vld [vmem:[%s5945_s25 + $0x38] sm:$0xff]   ;;  %v1707_v46 = vpop.xlane.xlu0 %1706 }
 0x40f   : > { %v1711_v51 = vpop.xlane.xlu1 %1710 }
 0x410   : > { %v6511_v7 = vmax.f32 %v6197_v28, %v1711_v51 }
 0x412   : > { %2317 = vrot.lane.b32.xlu0 %v5708_v24, %s5798_s28  ;;  %1994 = vrot.lane.b32.xlu1 %v6184_v19, %s5796_s27  ;;  %v6517_v24 = vmax.f32 %v6240_v16, %v1707_v46  ;;  %v1725_v15 = vpop.xlane.xlu0 %1724 }
 0x413   : > { %v1717_v6 = vpop.xlane.xlu1 %1716 }
 0x416   : > { %2313 = vrot.lane.b32.xlu0 %v5709_v62, %s5798_s28  ;;  %2319 = vrot.lane.b32.xlu1 %v5710_v26, %s5798_s28  ;;  %v1015_v62 = vsub.f32 %v6179_v18, %v6187_v21  ;;  %v6527_v26 = vmax.f32 %v6232_v30, %v1705_v3 }
 0x417   : > { %v1713_v8 = vpop.xlane.xlu1 %1712 }
 0x418   : > { %v1032_v44 = vmul.f32 1.442695, %v1015_v62  ;;  %v6535_v54 = vmax.f32 %v6216_v60, %v1713_v8 }
 0x41a   : > { %2315 = vrot.lane.b32.xlu1 %v5711_v34, %s5798_s28  ;;  %1829 = vperm.xlu0 %5334, %v6511_v7   ;;  %v6530_v34 = vmax.f32 %v6209_v36, %v1717_v6  ;;  %5454 = vpow2.f32 %v1032_v44  ;;  %v1016_v44 = vsub.f32 %v6162_v9, %v6169_v12 }
 0x41b   : > { %v1719_v19 = vpop.xlane.xlu1 %1718 }
 0x41c   : > { %v6538_v40 = vmax.f32 %v6253_v32, %v1719_v19  ;;  %v6553_v19 = vmax.f32 %v6270_v49, %v1725_v15 }
 0x41e   : > { %1824 = vperm.xlu1 %5333, %v6520_v25   ;;  %1819 = vperm.xlu0 %5334, %v6517_v24   ;;  %8719 = vst [vmem:[#allocation67_spill] sm:$0xff] %v6538_v40 }
 0x41f   : > { %v1715_v51 = vpop.xlane.xlu1 %1714 }
 0x420   : > { %v6543_v6 = vmax.f32 %v6263_v48, %v1715_v51  ;;  %v1017_v51 = vsub.f32 %v6190_v22, %v6200_v29  ;;  %v1038_v29 = vmul.f32 1.442695, %v1018_v63  ;;  %v5715_v63 = vld [vmem:[%s5945_s25] sm:$0xff]  }
 0x422   : > { %1814 = vperm.xlu1 %5333, %v6527_v26   ;;  %1844 = vperm.xlu0 %5334, %v6530_v34   ;;  %8720 = vst [vmem:[#allocation68_spill] sm:$0xff] %v6543_v6  ;;  %v1036_v15 = vmul.f32 1.442695, %v1017_v51  ;;  %v5712_v51 = vld [vmem:[%s5945_s25 + $0x18] sm:$0xff]  }
 0x423   : > { %v1721_v46 = vpop.xlane.xlu1 %1720 }
 0x424   : > { %v6565_v12 = vmax.f32 %v6280_v31, %v1721_v46  ;;  %v1020_v46 = vsub.f32 %v6221_v10, %v8726_v0 }
 0x426   : > { %1834 = vperm.xlu0 %5334, %v6535_v54   ;;  %1849 = vperm.xlu1 %5333, %v6538_v40   ;;  %v1042_v58 = vmul.f32 1.442695, %v1020_v46 }
 0x427   : > { %v1727_v3 = vpop.xlane.xlu1 %1726  ;;  %v6567_v5 = vpop.eup %5454 }
 0x428   : > { %v6546_v62 = vmax.f32 %v6244_v50, %v1727_v3  ;;  %v1034_v3 = vmul.f32 1.442695, %v1016_v44  ;;  %8724 = vst [vmem:[#allocation71_spill] sm:$0xff] %v6567_v5  ;;  %v1019_v44 = vsub.f32 %v6240_v16, %v6247_v52 }
 0x42a   : > { %8721 = vst [vmem:[#allocation69_spill] sm:$0xff] %v6546_v62  ;;  %1839 = vperm.xlu1 %5333, %v6543_v6   ;;  %1869 = vperm.xlu0 %5334, %v6546_v62   ;;  %5456 = vpow2.f32 %v1034_v3  ;;  %v5714_v3 = vld [vmem:[%s5945_s25 + $0x8] sm:$0xff]  }
 0x42b   : > { %v1723_v8 = vpop.xlane.xlu1 %1722  ;;  %5458 = vpow2.f32 %v1036_v15 }
 0x42c   : > { %v6556_v21 = vmax.f32 %v6242_v27, %v1723_v8  ;;  %v8725_v8 = vmov 0   ;;  %5460 = vpow2.f32 %v1038_v29 }
 0x42e   : > { %8722 = vst [vmem:[#allocation70_spill] sm:$0xff] %v6556_v21  ;;  %1864 = vperm.xlu1 %5333, %v6553_v19   ;;  %1859 = vperm.xlu0 %5334, %v6556_v21  }
 0x432   : > { %1854 = vperm.xlu1 %5333, %v6565_v12   ;;  %5335 = vset.pattern.permute.xlu0 %v8725_v8 }
 0x433   : > { %1414 = vperm.xlu0 %5335, %v6567_v5   ;;  %v1040_v5 = vmul.f32 1.442695, %v1019_v44  ;;  %v8729_v44 = vld [vmem:[#allocation21_spill] sm:$0xff] }
 0x434   : > { %v1022_v46 = vsub.f32 %v6216_v60, %v8729_v44 }
 0x435   : > { %5462 = vpow2.f32 %v1040_v5 }
 0x436   : > { %2311 = vrot.lane.b32.xlu1 %v5712_v51, %s5798_s28  ;;  %5464 = vpow2.f32 %v1042_v58 }
 0x437   : > { %2309 = vrot.lane.b32.xlu0 %v5713_v4, %s5798_s28  ;;  %5336 = vset.pattern.permute.xlu1 %v8725_v8  ;;  %v8727_v4 = vld [vmem:[#allocation19_spill] sm:$0xff]  ;;  %v6591_v29 = vpop.eup %5456  ;;  %v1046_v8 = vmul.f32 1.442695, %v1022_v46  ;;  %v8735_v46 = vld [vmem:[#allocation26_spill] sm:$0xff] }
 0x438   : > { %v1021_v15 = vsub.f32 %v6197_v28, %v8727_v4  ;;  %8728 = vst [vmem:[#allocation22_spill] sm:$0xff] %v6591_v29  ;;  %v6595_v51 = vpop.eup %5458 }
 0x439   : > { %8730 = vst [vmem:[#allocation19_spill] sm:$0xff] %v6595_v51  ;;  %v6599_v58 = vpop.eup %5460 }
 0x43a   : > { %2307 = vrot.lane.b32.xlu1 %v5714_v3, %s5798_s28  ;;  %v1044_v5 = vmul.f32 1.442695, %v1021_v15  ;;  %8731 = vst [vmem:[#allocation21_spill] sm:$0xff] %v6599_v58  ;;  %v8732_v3 = vld [vmem:[#allocation20_spill] sm:$0xff]  ;;  %v1026_v15 = vsub.f32 %v6280_v31, %v6286_v59 }
 0x43b   : > { %2305 = vrot.lane.b32.xlu0 %v5715_v63, %s5798_s28  ;;  %v1024_v63 = vsub.f32 %v6209_v36, %v8732_v3 }
 0x43c   : > { %5466 = vpow2.f32 %v1044_v5 }
 0x43d   : > { %5468 = vpow2.f32 %v1046_v8 }
 0x43e   : > { %2289 = vrot.lane.b32.xlu1 %v5969_v57, %s5798_s28 }
 0x43f   : > { %2291 = vrot.lane.b32.xlu0 %v6016_v13, %s5798_s28  ;;  %v1023_v13 = vsub.f32 %v6263_v48, %v6267_v38  ;;  %v1028_v38 = vsub.f32 %v6270_v49, %v6278_v37 }
 0x441   : > { %v1048_v5 = vmul.f32 1.442695, %v1023_v13  ;;  %v1745_v13 = vsub.f32 %v6179_v18, %v6481_v35  ;;  %v1754_v18 = vsub.f32 %v6209_v36, %v6530_v34 }
 0x442   : > { %1419 = vperm.xlu1 %5336, %v6591_v29   ;;  %v6608_v57 = vpop.eup %5462  ;;  %v1050_v29 = vmul.f32 1.442695, %v1024_v63  ;;  %v8736_v63 = vld [vmem:[#allocation24_spill] sm:$0xff] }
 0x443   : > { %1424 = vperm.xlu0 %5335, %v6595_v51   ;;  %8733 = vst [vmem:[#allocation20_spill] sm:$0xff] %v6608_v57  ;;  %v6612_v51 = vpop.eup %5464 }
 0x444   : > { %8734 = vst [vmem:[#allocation72_spill] sm:$0xff] %v6612_v51  ;;  %5470 = vpow2.f32 %v1050_v29  ;;  %v8737_v29 = vld [vmem:[#allocation11_spill] sm:$0xff] }
 0x445   : > { %5472 = vpow2.f32 %v1048_v5 }
 0x446   : > { %1429 = vperm.xlu1 %5336, %v6599_v58   ;;  %v1025_v58 = vsub.f32 %v6253_v32, %v8735_v46  ;;  %v8739_v46 = vld [vmem:[#allocation25_spill] sm:$0xff] }
 0x447   : > { %2293 = vrot.lane.b32.xlu0 %v6018_v14, %s5798_s28  ;;  %v1054_v14 = vmul.f32 1.442695, %v1026_v15  ;;  %v8738_v15 = vld [vmem:[#allocation13_spill] sm:$0xff] }
 0x448   : > { %v1052_v8 = vmul.f32 1.442695, %v1025_v58 }
 0x449   : > { %5474 = vpow2.f32 %v1054_v14  ;;  %v6634_v5 = vpop.eup %5466  ;;  %v1762_v14 = vmul.f32 1.442695, %v1745_v13  ;;  %v8743_v13 = vld [vmem:[#allocation14_spill] sm:$0xff] }
 0x44a   : > { %1434 = vperm.xlu1 %5336, %v6608_v57   ;;  %v1027_v57 = vsub.f32 %v6242_v27, %v8736_v63  ;;  %5476 = vpow2.f32 %v1052_v8  ;;  %8740 = vst [vmem:[#allocation11_spill] sm:$0xff] %v6634_v5  ;;  %v6636_v63 = vpop.eup %5468  ;;  %v1744_v8 = vsub.f32 %v6165_v11, %v6471_v20 }
 0x44b   : > { %1439 = vperm.xlu0 %5335, %v6612_v51   ;;  %v1058_v51 = vmul.f32 1.442695, %v1028_v38  ;;  %8741 = vst [vmem:[#allocation13_spill] sm:$0xff] %v6636_v63 }
 0x44c   : > { %v1056_v58 = vmul.f32 1.442695, %v1027_v57  ;;  %v1758_v57 = vsub.f32 %v6270_v49, %v6553_v19  ;;  %v1756_v49 = vsub.f32 %v6280_v31, %v6565_v12 }
 0x44d   : > { %5478 = vpow2.f32 %v1058_v51  ;;  %v1780_v51 = vmul.f32 1.442695, %v1754_v18 }
 0x44e   : > { %2295 = vrot.lane.b32.xlu1 %v6028_v23, %s5798_s28  ;;  %5480 = vpow2.f32 %v1056_v58  ;;  %v1760_v58 = vmul.f32 1.442695, %v1744_v8  ;;  %v1784_v8 = vmul.f32 1.442695, %v1756_v49 }
 0x44f   : > { %2299 = vrot.lane.b32.xlu0 %v6040_v33, %s5798_s28  ;;  %v1029_v33 = vsub.f32 %v6244_v50, %v8739_v46  ;;  %5482 = vpow2.f32 %v1762_v14 }
 0x451   : > { %v1060_v38 = vmul.f32 1.442695, %v1029_v33  ;;  %v6644_v46 = vpop.eup %5470  ;;  %v1746_v33 = vsub.f32 %v6162_v9, %v6465_v41 }
 0x452   : > { %2297 = vrot.lane.b32.xlu1 %v8737_v29, %s5798_s28  ;;  %8742 = vst [vmem:[#allocation73_spill] sm:$0xff] %v6644_v46  ;;  %v6651_v36 = vpop.eup %5472 }
 0x453   : > { %2301 = vrot.lane.b32.xlu0 %v8738_v15, %s5798_s28  ;;  %5484 = vpow2.f32 %v1060_v38  ;;  %8744 = vst [vmem:[#allocation14_spill] sm:$0xff] %v6651_v36  ;;  %v1764_v18 = vmul.f32 1.442695, %v1746_v33  ;;  %v1747_v38 = vsub.f32 %v6190_v22, %v6477_v47  ;;  %v8750_v22 = vmov 1  }
 0x454   : > { %5486 = vpow2.f32 %v1780_v51  ;;  %v1748_v51 = vsub.f32 %v6232_v30, %v6527_v26 }
 0x455   : > { %5488 = vpow2.f32 %v1760_v58  ;;  %v1750_v58 = vsub.f32 %v6221_v10, %v6520_v25  ;;  %v1749_v10 = vsub.f32 %v6240_v16, %v6517_v24 }
 0x456   : > { %1444 = vperm.xlu1 %5336, %v6634_v5   ;;  %v6655_v11 = vpop.eup %5474  ;;  %v1768_v49 = vmul.f32 1.442695, %v1748_v51 }
 0x457   : > { %1449 = vperm.xlu0 %5335, %v6636_v63   ;;  %8745 = vst [vmem:[#allocation74_spill] sm:$0xff] %v6655_v11  ;;  %v1788_v63 = vmul.f32 1.442695, %v1758_v57  ;;  %v6661_v14 = vpop.eup %5476  ;;  %v1766_v57 = vmul.f32 1.442695, %v1747_v38  ;;  %v1751_v38 = vsub.f32 %v6197_v28, %v6511_v7 }
 0x458   : > { %8746 = vst [vmem:[#allocation75_spill] sm:$0xff] %v6661_v14  ;;  %v1772_v30 = vmul.f32 1.442695, %v1750_v58  ;;  %v1770_v28 = vmul.f32 1.442695, %v1749_v10  ;;  %v1753_v10 = vsub.f32 %v6263_v48, %v6543_v6 }
 0x459   : > { %5490 = vpow2.f32 %v1788_v63  ;;  %v1774_v51 = vmul.f32 1.442695, %v1751_v38 }
 0x45a   : > { %2303 = vrot.lane.b32.xlu1 %v8743_v13, %s5798_s28  ;;  %v6665_v9 = vpop.eup %5478  ;;  %5492 = vpow2.f32 %v1764_v18 }
 0x45b   : > { %1459 = vperm.xlu0 %5335, %v6644_v46   ;;  %8747 = vst [vmem:[#allocation76_spill] sm:$0xff] %v6665_v9  ;;  %v6669_v31 = vpop.eup %5480  ;;  %5494 = vpow2.f32 %v1784_v8  ;;  %v1759_v46 = vsub.f32 %v6244_v50, %v6546_v62  ;;  %v8843_v62 = vld [vmem:[#allocation17_spill] sm:$0xff] }
 0x45c   : > { %8748 = vst [vmem:[#allocation77_spill] sm:$0xff] %v6669_v31  ;;  %v6674_v33 = vpop.eup %5482  ;;  %5496 = vpow2.f32 %v1766_v57  ;;  %v3897_v6 = vsel %vm3895_vm2, %v8843_v62, %v6481_v35  ;;  %v7098_v35 = vld [vmem:[%s6137_s26] sm:$0xff]   ;;  %v5730_v62 = vld [vmem:[%s5945_s25 + $0x38] sm:$0xff]  }
 0x45d   : > { %8749 = vst [vmem:[#allocation78_spill] sm:$0xff] %v6674_v33  ;;  %5498 = vpow2.f32 %v1768_v49 }
 0x45e   : > { %1454 = vperm.xlu1 %5336, %v6651_v36   ;;  %5500 = vpow2.f32 %v1772_v30  ;;  %v1755_v30 = vsub.f32 %v6253_v32, %v6538_v40  ;;  %v7088_v40 = vld [vmem:[%s6137_s26 + $0x18] sm:$0xff]  }
 0x45f   : > { %1469 = vperm.xlu0 %5335, %v6655_v11   ;;  %5502 = vpow2.f32 %v1774_v51 }
 0x460   : > { %v6678_v63 = vpop.eup %5484  ;;  %5504 = vpow2.f32 %v1770_v28  ;;  %v1782_v51 = vmul.f32 1.442695, %v1755_v30 }
 0x461   : > { %8751 = vst [vmem:[#allocation79_spill] sm:$0xff] %v6678_v63  ;;  %v6683_v18 = vpop.eup %5486 }
 0x462   : > { %1464 = vperm.xlu1 %5336, %v6661_v14   ;;  %8752 = vst [vmem:[#allocation80_spill] sm:$0xff] %v6683_v18  ;;  %v6688_v8 = vpop.eup %5488  ;;  %v1778_v14 = vmul.f32 1.442695, %v1753_v10 }
 0x463   : > { %1479 = vperm.xlu0 %5335, %v6665_v9   ;;  %8753 = vst [vmem:[#allocation81_spill] sm:$0xff] %v6688_v8 }
 0x466   : > { %1474 = vperm.xlu1 %5336, %v6669_v31   ;;  %v6691_v57 = vpop.eup %5490  ;;  %v1752_v31 = vsub.f32 %v6216_v60, %v6535_v54 }
 0x467   : > { %5338 = vset.pattern.permute.xlu0 %v8750_v22  ;;  %8754 = vst [vmem:[#allocation82_spill] sm:$0xff] %v6691_v57  ;;  %v6697_v58 = vpop.eup %5492 }
 0x468   : > { %2120 = vperm.xlu0 %5338, %v6674_v33   ;;  %8755 = vst [vmem:[#allocation83_spill] sm:$0xff] %v6697_v58  ;;  %v6699_v49 = vpop.eup %5494  ;;  %v1776_v16 = vmul.f32 1.442695, %v1752_v31 }
 0x469   : > { %8756 = vst [vmem:[#allocation84_spill] sm:$0xff] %v6699_v49 }
 0x46a   : > { %1484 = vperm.xlu1 %5336, %v6678_v63   ;;  %v6705_v63 = vpop.eup %5496  ;;  %5506 = vpow2.f32 %v1776_v16  ;;  %v1790_v16 = vmul.f32 1.442695, %v1759_v46 }
 0x46b   : > { %8757 = vst [vmem:[#allocation85_spill] sm:$0xff] %v6705_v63  ;;  %5508 = vpow2.f32 %v1782_v51 }
 0x46c   : > { %2165 = vperm.xlu0 %5338, %v6683_v18   ;;  %5510 = vpow2.f32 %v1778_v14 }
 0x46e   : > { %5337 = vset.pattern.permute.xlu1 %v8750_v22  ;;  %v7067_v22 = vld [vmem:[#allocation2 + $0x28] sm:$0xff] }
 0x46f   : > { %2115 = vperm.xlu1 %5337, %v6688_v8  }
 0x470   : > { %2185 = vperm.xlu0 %5338, %v6691_v57   ;;  %v6710_v57 = vpop.eup %5498 }
 0x471   : > { %8758 = vst [vmem:[#allocation86_spill] sm:$0xff] %v6710_v57  ;;  %v6717_v31 = vpop.eup %5500 }
 0x472   : > { %8759 = vst [vmem:[#allocation87_spill] sm:$0xff] %v6717_v31 }
 0x473   : > { %2125 = vperm.xlu1 %5337, %v6697_v58  }
 0x474   : > { %2175 = vperm.xlu0 %5338, %v6699_v49  }
 0x475   : > { %v1805_v38 = vpop.permute.xlu1 %1804 }
 0x476   : > { %v1874_v60 = vsub.f32 %v6392_v55, %v1805_v38 }
 0x477   : > { %2130 = vperm.xlu1 %5337, %v6705_v63  }
 0x478   : > { %v1892_v32 = vmul.f32 1.442695, %v1874_v60 }
 0x479   : > { %v1795_v36 = vpop.permute.xlu0 %1794 }
 0x47a   : > { %v1872_v9 = vsub.f32 %v6395_v1, %v1795_v36  ;;  %v1757_v1 = vsub.f32 %v6242_v27, %v6556_v21  ;;  %5512 = vpow2.f32 %v1892_v32 }
 0x47b   : > { %2135 = vperm.xlu1 %5337, %v6710_v57   ;;  %v6722_v57 = vpop.eup %5502 }
 0x47c   : > { %v1888_v48 = vmul.f32 1.442695, %v1872_v9  ;;  %8760 = vst [vmem:[#allocation88_spill] sm:$0xff] %v6722_v57  ;;  %v6729_v38 = vpop.eup %5504 }
 0x47d   : > { %v1810_v28 = vpop.permute.xlu0 %1809  ;;  %8761 = vst [vmem:[#allocation89_spill] sm:$0xff] %v6729_v38  ;;  %v6732_v10 = vpop.eup %5506 }
 0x47e   : > { %5514 = vpow2.f32 %v1888_v48  ;;  %v1875_v30 = vsub.f32 %v6397_v61, %v1810_v28  ;;  %8762 = vst [vmem:[#allocation90_spill] sm:$0xff] %v6732_v10  ;;  %v6737_v60 = vpop.eup %5508 }
 0x47f   : > { %2145 = vperm.xlu1 %5337, %v6717_v31   ;;  %8763 = vst [vmem:[#allocation91_spill] sm:$0xff] %v6737_v60  ;;  %v6740_v51 = vpop.eup %5510 }
 0x480   : > { %8764 = vst [vmem:[#allocation92_spill] sm:$0xff] %v6740_v51 }
 0x481   : > { %v2001_v18 = vpop.permute.xlu0 %2000  ;;  %v1800_v5 = vpop.permute.xlu1 %1799 }
 0x482   : > { %v1873_v55 = vsub.f32 %v6400_v17, %v1800_v5  ;;  %v1786_v17 = vmul.f32 1.442695, %v1757_v1  ;;  %v1894_v5 = vmul.f32 1.442695, %v1875_v30 }
 0x483   : > { %2150 = vperm.xlu1 %5337, %v6722_v57  }
 0x484   : > { %v1890_v36 = vmul.f32 1.442695, %v1873_v55 }
 0x485   : > { %v1997_v50 = vpop.permute.xlu0 %1996  ;;  %v2003_v9 = vpop.permute.xlu1 %2002 }
 0x486   : > { %5516 = vpow2.f32 %v1890_v36  ;;  %5093 = vmatprep.subr.bf16.mxu0 %v2003_v9 }
 0x487   : > { %2140 = vperm.xlu1 %5337, %v6729_v38   ;;  %5094 = vmatpush3.bf16.msra.mxu0 %v2003_v9  ;;  %5518 = vpow2.f32 %v1790_v16  ;;  %v5513_v28 = vpop.eup %5512 }
 0x488   : > { %5095 = vmatprep.subr.bf16.mxu0 %v2001_v18  ;;  %5520 = vpow2.f32 %v1786_v17 }
 0x489   : > { %v1993_v27 = vpop.permute.xlu0 %1992  ;;  %v1999_v14 = vpop.permute.xlu1 %1998  ;;  %5522 = vpow2.f32 %v1894_v5 }
 0x48b   : > { %2155 = vperm.xlu1 %5337, %v6732_v10   ;;  %5096 = vmatpush3.bf16.msra.mxu0 %v2001_v18  ;;  %v5515_v55 = vpop.eup %5514 }
 0x48c   : > { %5097 = vmatprep.subr.bf16.mxu0 %v1999_v14 }
 0x48d   : > { %v6735_v61 = vpop.permute.xlu0 %2317  ;;  %v1995_v46 = vpop.permute.xlu1 %1994 }
 0x48f   : > { %2170 = vperm.xlu1 %5337, %v6737_v60   ;;  %5098 = vmatpush3.bf16.msra.mxu0 %v1999_v14 }
 0x490   : > { %5099 = vmatprep.subr.bf16.mxu0 %v1997_v50 }
 0x491   : > { %v6742_v32 = vpop.permute.xlu0 %2313  ;;  %v2320_v48 = vpop.permute.xlu1 %2319 }
 0x493   : > { %v6744_v18 = vpop.eup %5516  ;;  %2160 = vperm.xlu1 %5337, %v6740_v51   ;;  %1940 = vadd.xlane.f32.xlu0 %v5513_v28 }
 0x494   : > { %5100 = vmatpush3.bf16.msra.mxu0 %v1997_v50  ;;  %v1984_v1 = vpack.c.bf16 %v6744_v18, %v5515_v55  ;;  %v6750_v30 = vpop.eup %5518 }
 0x495   : > { %5101 = vmatprep.subr.bf16.mxu0 %v1995_v46  ;;  %v1830_v36 = vpop.permute.xlu0 %1829  ;;  %v6748_v16 = vpop.permute.xlu1 %2315  ;;  %8765 = vst [vmem:[#allocation93_spill] sm:$0xff] %v6750_v30 }
 0x496   : > { %v1879_v9 = vsub.f32 %v6407_v56, %v1830_v36  ;;  %5105 = vmatprep.mubr.bf16.mxu0 %v1984_v1  ;;  %v6754_v5 = vpop.eup %5520 }
 0x497   : > { %2190 = vperm.xlu1 %5337, %v6750_v30   ;;  %1936 = vadd.xlane.f32.xlu0 %v5515_v55  ;;  %8766 = vst [vmem:[#allocation94_spill] sm:$0xff] %v6754_v5  ;;  %v5523_v51 = vpop.eup %5522 }
 0x498   : > { %v1902_v17 = vmul.f32 1.442695, %v1879_v9  ;;  %5102 = vmatpush3.bf16.msra.mxu0 %v1995_v46  ;;  %v1985_v1 = vpack.c.bf16 %v5523_v51, %v5513_v28 }
 0x499   : > { %5103 = vmatprep.subr.bf16.mxu0 %v1993_v27  ;;  %v1820_v50 = vpop.permute.xlu0 %1819  ;;  %v1825_v14 = vpop.permute.xlu1 %1824 }
 0x49a   : > { %5524 = vpow2.f32 %v1902_v17  ;;  %v1877_v60 = vsub.f32 %v6412_v43, %v1820_v50  ;;  %v1878_v10 = vsub.f32 %v6402_v45, %v1825_v14  ;;  %v2367_v17 = vsel %vm820_vm0, %v2320_v48, 0 }
 0x49b   : > { %2180 = vperm.xlu1 %5337, %v6754_v5   ;;  %1942 = vadd.xlane.f32.xlu0 %v5523_v51 }
 0x49c   : > { %v1898_v56 = vmul.f32 1.442695, %v1877_v60  ;;  %5104 = vmatpush3.bf16.msra.mxu0 %v1993_v27  ;;  %v1900_v36 = vmul.f32 1.442695, %v1878_v10 }
 0x49d   : > { %5265 = vmatprep.subr.msk.bf16.mxu0 %vm820_vm0, %v2320_v48  ;;  %v1845_v55 = vpop.permute.xlu0 %1844  ;;  %v1815_v46 = vpop.permute.xlu1 %1814  ;;  %v8767_v48 = vld [vmem:[#allocation45_spill] sm:$0xff] }
 0x49e   : > { %5526 = vpow2.f32 %v1898_v56  ;;  %v1876_v9 = vsub.f32 %v6405_v39, %v1815_v46  ;;  %v1882_v10 = vsub.f32 %v6415_v2, %v1845_v55  ;;  %v8769_v55 = vld [vmem:[#allocation49_spill] sm:$0xff] }
 0x49f   : > { %5106 = vmatmul.mubr.bf16.vlgmr.msra.gmra.mxu0 %v1985_v1  ;;  %5528 = vpow2.f32 %v1900_v36  ;;  %v8768_v1 = vld [vmem:[#allocation48_spill] sm:$0xff]  ;;  %v2364_v36 = vsel %vm820_vm0, %v6735_v61, 0 }
 0x4a0   : > { %v1896_v43 = vmul.f32 1.442695, %v1876_v9  ;;  %5122 = vmatpush3.bf16.xpose.msra.mxu0 %v2367_v17  ;;  %v1908_v17 = vmul.f32 1.442695, %v1882_v10 }
 0x4a1   : > { %5266 = vmatprep.subr.msk.bf16.mxu0 %vm820_vm0, %v6735_v61  ;;  %v1835_v45 = vpop.permute.xlu0 %1834  ;;  %v1850_v60 = vpop.permute.xlu1 %1849 }
 0x4a2   : > { %v1880_v27 = vsub.f32 %v6418_v42, %v1835_v45  ;;  %v1883_v50 = vsub.f32 %v6420_v53, %v1850_v60  ;;  %5530 = vpow2.f32 %v1896_v43  ;;  %v8770_v45 = vld [vmem:[#allocation46_spill] sm:$0xff] }
 0x4a4   : > { %v1910_v51 = vmul.f32 1.442695, %v1883_v50  ;;  %v1904_v14 = vmul.f32 1.442695, %v1880_v27 }
 0x4a5   : > { %v1870_v39 = vpop.permute.xlu0 %1869  ;;  %v1840_v28 = vpop.permute.xlu1 %1839 }
 0x4a6   : > { %v1881_v56 = vsub.f32 %v8767_v48, %v1840_v28  ;;  %5532 = vpow2.f32 %v1910_v51  ;;  %v1887_v9 = vsub.f32 %v8768_v1, %v1870_v39  ;;  %v8771_v39 = vld [vmem:[#allocation47_spill] sm:$0xff] }
 0x4a7   : > { %v5525_v46 = vpop.eup %5524  ;;  %5534 = vpow2.f32 %v1904_v14 }
 0x4a8   : > { %v1906_v42 = vmul.f32 1.442695, %v1881_v56  ;;  %5124 = vmatpush3.bf16.xpose.msra.mxu0 %v2364_v36  ;;  %1950 = vadd.xlane.f32.xlu0 %v5525_v46  ;;  %v1918_v50 = vmul.f32 1.442695, %v1887_v9  ;;  %v2361_v56 = vsel %vm820_vm0, %v6748_v16, 0 }
 0x4a9   : > { %5267 = vmatprep.subr.msk.bf16.mxu0 %vm820_vm0, %v6748_v16  ;;  %v1860_v2 = vpop.permute.xlu0 %1859  ;;  %v1865_v53 = vpop.permute.xlu1 %1864 }
 0x4aa   : > { %v1885_v43 = vsub.f32 %v8769_v55, %v1860_v2  ;;  %v1886_v60 = vsub.f32 %v8770_v45, %v1865_v53  ;;  %5536 = vpow2.f32 %v1906_v42  ;;  %v2358_v2 = vsel %vm820_vm0, %v6742_v32, 0 }
 0x4ab   : > { %v5527_v27 = vpop.eup %5526  ;;  %5538 = vpow2.f32 %v1908_v17 }
 0x4ac   : > { %v1914_v51 = vmul.f32 1.442695, %v1885_v43  ;;  %1946 = vadd.xlane.f32.xlu0 %v5527_v27  ;;  %v1916_v61 = vmul.f32 1.442695, %v1886_v60  ;;  %v5529_v48 = vpop.eup %5528  ;;  %5540 = vpow2.f32 %v1918_v50 }
 0x4ad   : > { %v1855_v10 = vpop.permute.xlu1 %1854  ;;  %v1987_v36 = vpack.c.bf16 %v5525_v46, %v5529_v48 }
 0x4ae   : > { %v1884_v28 = vsub.f32 %v8771_v39, %v1855_v10  ;;  %5542 = vpow2.f32 %v1914_v51  ;;  %v6783_v45 = vpop.permute.xlu0 %1414 }
 0x4af   : > { %v5531_v14 = vpop.eup %5530  ;;  %5544 = vpow2.f32 %v1916_v61  ;;  %8772 = vst [vmem:[#allocation45_spill] sm:$0xff] %v6783_v45 }
 0x4b0   : > { %v1912_v1 = vmul.f32 1.442695, %v1884_v28  ;;  %5126 = vmatpush3.bf16.xpose.msra.mxu0 %v2361_v56  ;;  %v1986_v9 = vpack.c.bf16 %v5527_v27, %v5531_v14 }
 0x4b1   : > { %5268 = vmatprep.subr.msk.bf16.mxu0 %vm820_vm0, %v6742_v32  ;;  %v2312_v53 = vpop.permute.xlu1 %2311 }
 0x4b2   : > { %5546 = vpow2.f32 %v1912_v1  ;;  %5109 = vmatprep.mubr.bf16.mxu0 %v1986_v9  ;;  %v2355_v50 = vsel %vm820_vm0, %v2312_v53, 0  ;;  %v2310_v10 = vpop.permute.xlu0 %2309 }
 0x4b3   : > { %v5533_v17 = vpop.eup %5532  ;;  %5110 = vmatmul.mubr.bf16.gmra.mxu0 %v1987_v36  ;;  %v2352_v1 = vsel %vm820_vm0, %v2310_v10, 0 }
 0x4b4   : > { %1958 = vadd.xlane.f32.xlu0 %v5533_v17  ;;  %v5535_v42 = vpop.eup %5534 }
 0x4b5   : > { %v2308_v32 = vpop.permute.xlu1 %2307 }
 0x4b6   : > { %v2349_v9 = vsel %vm820_vm0, %v2308_v32, 0 }
 0x4b7   : > { %v5537_v16 = vpop.eup %5536 }
 0x4b8   : > { %5128 = vmatpush3.bf16.xpose.msra.mxu0 %v2358_v2  ;;  %v5539_v55 = vpop.eup %5538  ;;  %1954 = vadd.xlane.f32.xlu0 %v5537_v16  ;;  %v1988_v43 = vpack.c.bf16 %v5537_v16, %v5535_v42 }
 0x4b9   : > { %5269 = vmatprep.subr.msk.bf16.mxu0 %vm820_vm0, %v2312_v53  ;;  %v1989_v60 = vpack.c.bf16 %v5533_v17, %v5539_v55  ;;  %v5541_v46 = vpop.eup %5540  ;;  %v2290_v56 = vpop.permute.xlu1 %2289 }
 0x4ba   : > { %5113 = vmatprep.mubr.bf16.mxu0 %v1988_v43 }
 0x4bb   : > { %5114 = vmatmul.mubr.bf16.gmra.mxu0 %v1989_v60  ;;  %v5543_v27 = vpop.eup %5542 }
 0x4bc   : > { %1966 = vadd.xlane.f32.xlu0 %v5541_v46  ;;  %v5545_v51 = vpop.eup %5544 }
 0x4bd   : > { %v1991_v28 = vpack.c.bf16 %v5541_v46, %v5545_v51  ;;  %v6792_v36 = vpop.permute.xlu1 %1419 }
 0x4be   : > { %8773 = vst [vmem:[#allocation48_spill] sm:$0xff] %v6792_v36  ;;  %v6934_v36 = vld [vmem:[%s6137_s26 + $0x28] sm:$0xff]  }
 0x4bf   : > { %v5547_v61 = vpop.eup %5546  ;;  %1938 = vadd.xlane.f32.xlu1 %v6744_v18  ;;  %v2306_v18 = vpop.permute.xlu0 %2305 }
 0x4c0   : > { %v1990_v39 = vpack.c.bf16 %v5543_v27, %v5547_v61  ;;  %5130 = vmatpush3.bf16.xpose.msra.mxu0 %v2355_v50  ;;  %1962 = vadd.xlane.f32.xlu0 %v5543_v27  ;;  %v2346_v2 = vsel %vm820_vm0, %v2306_v18, 0 }
 0x4c1   : > { %5270 = vmatprep.subr.msk.bf16.mxu0 %vm820_vm0, %v2310_v10 }
 0x4c2   : > { %5117 = vmatprep.mubr.bf16.mxu0 %v1990_v39 }
 0x4c3   : > { %1948 = vadd.xlane.f32.xlu1 %v5529_v48  ;;  %5118 = vmatmul.mubr.bf16.gmra.mxu0 %v1991_v28  ;;  %v2292_v17 = vpop.permute.xlu0 %2291  ;;  %v6795_v48 = vpop.permute.xlu1 %1429 }
 0x4c4   : > { %5137 = vmatprep.mubr.msk.bf16.mxu0 %vm820_vm0, %v2290_v56  ;;  %8774 = vst [vmem:[#allocation49_spill] sm:$0xff] %v6795_v48 }
 0x4c7   : > { %1944 = vadd.xlane.f32.xlu1 %v5531_v14  ;;  %v6798_v14 = vpop.permute.xlu0 %1424  ;;  %v6800_v16 = vpop.permute.xlu1 %1434 }
 0x4c8   : > { %5132 = vmatpush3.bf16.xpose.msra.mxu0 %v2352_v1  ;;  %8775 = vst [vmem:[#allocation46_spill] sm:$0xff] %v6798_v14  ;;  %8776 = vst [vmem:[#allocation47_spill] sm:$0xff] %v6800_v16 }
 0x4c9   : > { %5271 = vmatprep.subr.msk.bf16.mxu0 %vm820_vm0, %v2308_v32 }
 0x4cb   : > { %1956 = vadd.xlane.f32.xlu1 %v5539_v55  ;;  %v2294_v53 = vpop.permute.xlu0 %2293 }
 0x4cf   : > { %1952 = vadd.xlane.f32.xlu1 %v5535_v42  ;;  %v2296_v42 = vpop.permute.xlu1 %2295  ;;  %v6804_v55 = vpop.permute.xlu0 %1439 }
 0x4d0   : > { %5134 = vmatpush3.bf16.xpose.msra.mxu0 %v2349_v9  ;;  %8777 = vst [vmem:[#allocation95_spill] sm:$0xff] %v6804_v55 }
 0x4d1   : > { %5272 = vmatprep.subr.msk.bf16.mxu0 %vm820_vm0, %v2306_v18 }
 0x4d3   : > { %1964 = vadd.xlane.f32.xlu1 %v5545_v51  ;;  %v2298_v43 = vpop.permute.xlu1 %2297  ;;  %v2300_v60 = vpop.permute.xlu0 %2299 }
 0x4d7   : > { %1960 = vadd.xlane.f32.xlu1 %v5547_v61  ;;  %v2302_v46 = vpop.permute.xlu0 %2301  ;;  %v6809_v27 = vpop.permute.xlu1 %1444 }
 0x4d8   : > { %5136 = vmatpush3.bf16.xpose.msra.mxu0 %v2346_v2  ;;  %8778 = vst [vmem:[#allocation96_spill] sm:$0xff] %v6809_v27 }
 0x4db   : > { %v2304_v50 = vpop.permute.xlu1 %2303 }
 0x4df   : > { %5138 = vmatmul.mubr.msk.bf16.vlgmr.msra.gmra.mxu0 %vm820_vm0, %v2292_v17  ;;  %v6813_v51 = vpop.permute.xlu1 %1454 }
 0x4e0   : > { %5141 = vmatprep.mubr.msk.bf16.mxu0 %vm820_vm0, %v2294_v53  ;;  %8779 = vst [vmem:[#allocation97_spill] sm:$0xff] %v6813_v51  ;;  %v8628_v51 = vmov 2  }
 0x4e1   : > { %5339 = vset.pattern.permute.xlu1 %v8628_v51  ;;  %5340 = vset.pattern.permute.xlu0 %v8628_v51 }
 0x4e3   : > { %v6816_v61 = vpop.permute.xlu1 %1464 }
 0x4e4   : > { %8780 = vst [vmem:[#allocation98_spill] sm:$0xff] %v6816_v61 }
 0x4e7   : > { %5142 = vmatmul.mubr.msk.bf16.gmra.mxu0 %vm820_vm0, %v2296_v42  ;;  %v6820_v28 = vpop.permute.xlu1 %1474 }
 0x4e8   : > { %5145 = vmatprep.mubr.msk.bf16.mxu0 %vm820_vm0, %v2298_v43  ;;  %8781 = vst [vmem:[#allocation99_spill] sm:$0xff] %v6820_v28 }
 0x4eb   : > { %v6823_v1 = vpop.permute.xlu1 %1484 }
 0x4ec   : > { %8782 = vst [vmem:[#allocation100_spill] sm:$0xff] %v6823_v1 }
 0x4ef   : > { %5146 = vmatmul.mubr.msk.bf16.gmra.mxu0 %vm820_vm0, %v2300_v60  ;;  %v6825_v18 = vpop.permute.xlu1 %2115 }
 0x4f0   : > { %5149 = vmatprep.mubr.msk.bf16.mxu0 %vm820_vm0, %v2302_v46  ;;  %8783 = vst [vmem:[#allocation101_spill] sm:$0xff] %v6825_v18 }
 0x4f3   : > { %v6828_v53 = vpop.permute.xlu1 %2125 }
 0x4f4   : > { %8784 = vst [vmem:[#allocation102_spill] sm:$0xff] %v6828_v53 }
 0x4f7   : > { %5150 = vmatmul.mubr.msk.bf16.gmra.mxu0 %vm820_vm0, %v2304_v50  ;;  %v6834_v46 = vpop.permute.xlu1 %2130 }
 0x4f8   : > { %8785 = vst [vmem:[#allocation103_spill] sm:$0xff] %v6834_v46 }
 0x55f   : > { %v5107_v32 = vpop.f32.mrf.mxu0 }
 0x560   : > { %2229 = vrot.lane.b32.xlu0 %v5107_v32, %s5799_s29 }
 0x561   : > { %v2050_v10 = vpop.f32.mrf.mxu0 }
 0x563   : > { %v5108_v39 = vpop.f32.mrf.mxu0 }
 0x564   : > { %2225 = vrot.lane.b32.xlu0 %v2050_v10, %s5799_s29  ;;  %2231 = vrot.lane.b32.xlu1 %v5108_v39, %s5799_s29  ;;  %v6838_v39 = vpop.permute.xlu1 %2135 }
 0x565   : > { %v2053_v56 = vpop.f32.mrf.mxu0  ;;  %8786 = vst [vmem:[#allocation104_spill] sm:$0xff] %v6838_v39 }
 0x568   : > { %2227 = vrot.lane.b32.xlu1 %v2053_v56, %s5799_s29 }
 0x573   : > { %v5111_v9 = vpop.f32.mrf.mxu0 }
 0x574   : > { %2237 = vrot.lane.b32.xlu0 %v5111_v9, %s5799_s29 }
 0x575   : > { %v2066_v17 = vpop.f32.mrf.mxu0 }
 0x577   : > { %v5112_v2 = vpop.f32.mrf.mxu0 }
 0x578   : > { %2233 = vrot.lane.b32.xlu0 %v2066_v17, %s5799_s29  ;;  %2239 = vrot.lane.b32.xlu1 %v5112_v2, %s5799_s29  ;;  %v6844_v17 = vpop.permute.xlu1 %2145 }
 0x579   : > { %v2069_v42 = vpop.f32.mrf.mxu0  ;;  %8787 = vst [vmem:[#allocation105_spill] sm:$0xff] %v6844_v17  ;;  %v6873_v17 = vpop.permute.xlu0 %1449 }
 0x57a   : > { %8792 = vst [vmem:[#allocation110_spill] sm:$0xff] %v6873_v17 }
 0x57b   : > { %v5115_v43 = vpop.f32.mrf.mxu0 }
 0x57c   : > { %2245 = vrot.lane.b32.xlu0 %v5115_v43, %s5799_s29  ;;  %2235 = vrot.lane.b32.xlu1 %v2069_v42, %s5799_s29  ;;  %v6847_v42 = vpop.permute.xlu1 %2150  ;;  %v6850_v43 = vld [vmem:[%s6137_s26 + $0x38] sm:$0xff]  }
 0x57d   : > { %v2082_v60 = vpop.f32.mrf.mxu0  ;;  %8788 = vst [vmem:[#allocation106_spill] sm:$0xff] %v6847_v42  ;;  %v6884_v53 = vpop.permute.xlu0 %1459 }
 0x57e   : > { %8794 = vst [vmem:[#allocation112_spill] sm:$0xff] %v6884_v53 }
 0x57f   : > { %v5116_v50 = vpop.f32.mrf.mxu0 }
 0x580   : > { %2241 = vrot.lane.b32.xlu0 %v2082_v60, %s5799_s29  ;;  %2247 = vrot.lane.b32.xlu1 %v5116_v50, %s5799_s29  ;;  %v6855_v60 = vld [vmem:[%s6137_s26 + $0x30] sm:$0xff]   ;;  %v6859_v50 = vpop.permute.xlu1 %2140 }
 0x581   : > { %v2085_v32 = vpop.f32.mrf.mxu0  ;;  %8789 = vst [vmem:[#allocation107_spill] sm:$0xff] %v6859_v50  ;;  %v6896_v61 = vpop.permute.xlu0 %1469 }
 0x582   : > { %8796 = vst [vmem:[#allocation114_spill] sm:$0xff] %v6896_v61 }
 0x583   : > { %v5119_v10 = vpop.f32.mrf.mxu0 }
 0x584   : > { %2243 = vrot.lane.b32.xlu1 %v2085_v32, %s5799_s29  ;;  %2253 = vrot.lane.b32.xlu0 %v5119_v10, %s5799_s29  ;;  %v6861_v32 = vpop.permute.xlu1 %2155 }
 0x585   : > { %v2098_v56 = vpop.f32.mrf.mxu0  ;;  %8790 = vst [vmem:[#allocation108_spill] sm:$0xff] %v6861_v32  ;;  %v6907_v17 = vpop.permute.xlu0 %1479 }
 0x586   : > { %8798 = vst [vmem:[#allocation116_spill] sm:$0xff] %v6907_v17 }
 0x587   : > { %v5120_v9 = vpop.f32.mrf.mxu0 }
 0x588   : > { %2249 = vrot.lane.b32.xlu0 %v2098_v56, %s5799_s29  ;;  %2255 = vrot.lane.b32.xlu1 %v5120_v9, %s5799_s29  ;;  %v6867_v9 = vpop.permute.xlu1 %2170 }
 0x589   : > { %v2101_v2 = vpop.f32.mrf.mxu0  ;;  %8791 = vst [vmem:[#allocation109_spill] sm:$0xff] %v6867_v9  ;;  %v6918_v55 = vpop.permute.xlu0 %2120 }
 0x58a   : > { %8800 = vst [vmem:[#allocation118_spill] sm:$0xff] %v6918_v55 }
 0x58c   : > { %2251 = vrot.lane.b32.xlu1 %v2101_v2, %s5799_s29  ;;  %v6878_v46 = vpop.permute.xlu1 %2160 }
 0x58d   : > { %8793 = vst [vmem:[#allocation111_spill] sm:$0xff] %v6878_v46  ;;  %v6925_v16 = vpop.permute.xlu0 %2165 }
 0x58e   : > { %8802 = vst [vmem:[#allocation120_spill] sm:$0xff] %v6925_v16 }
 0x590   : > { %2776 = vrot.lane.b32.xlu1 %v6850_v43, %s5798_s28  ;;  %v6889_v18 = vpop.permute.xlu1 %2190 }
 0x591   : > { %8795 = vst [vmem:[#allocation113_spill] sm:$0xff] %v6889_v18  ;;  %v6938_v55 = vpop.permute.xlu0 %2185 }
 0x592   : > { %8805 = vst [vmem:[#allocation123_spill] sm:$0xff] %v6938_v55 }
 0x594   : > { %2774 = vrot.lane.b32.xlu1 %v6855_v60, %s5798_s28  ;;  %v6903_v53 = vpop.permute.xlu1 %2180 }
 0x595   : > { %8797 = vst [vmem:[#allocation115_spill] sm:$0xff] %v6903_v53  ;;  %v6942_v5 = vpop.permute.xlu0 %2175 }
 0x596   : > { %8807 = vst [vmem:[#allocation125_spill] sm:$0xff] %v6942_v5 }
 0x598   : > { %v6910_v27 = vpop.xlane.xlu1 %1938 }
 0x599   : > { %8799 = vst [vmem:[#allocation117_spill] sm:$0xff] %v6910_v27  ;;  %v6946_v30 = vpop.xlane.xlu0 %1940 }
 0x59a   : > { %8809 = vst [vmem:[#allocation127_spill] sm:$0xff] %v6946_v30  ;;  %v8840_v30 = vld [vmem:[#allocation18_spill] sm:$0xff] }
 0x59c   : > { %v6920_v53 = vpop.xlane.xlu1 %1948 }
 0x59d   : > { %8801 = vst [vmem:[#allocation119_spill] sm:$0xff] %v6920_v53  ;;  %v6950_v57 = vpop.xlane.xlu0 %1936  ;;  %v6955_v53 = vld [vmem:[%s6137_s26 + $0x10] sm:$0xff]  }
 0x59e   : > { %8811 = vst [vmem:[#allocation129_spill] sm:$0xff] %v6950_v57 }
 0x59f   : > { %v6863_v10 = vpop.f32.mrf.mxu0 }
 0x5a0   : > { %v6928_v48 = vpop.xlane.xlu1 %1944 }
 0x5a1   : > { %v6865_v56 = vpop.f32.mrf.mxu0  ;;  %8803 = vst [vmem:[#allocation121_spill] sm:$0xff] %v6928_v48  ;;  %v6959_v55 = vpop.xlane.xlu0 %1942 }
 0x5a2   : > { %8813 = vst [vmem:[#allocation131_spill] sm:$0xff] %v6959_v55 }
 0x5a3   : > { %v6869_v2 = vpop.f32.mrf.mxu0 }
 0x5a4   : > { %v6940_v45 = vpop.xlane.xlu1 %1956 }
 0x5a5   : > { %v6871_v42 = vpop.f32.mrf.mxu0  ;;  %8806 = vst [vmem:[#allocation124_spill] sm:$0xff] %v6940_v45  ;;  %v6963_v5 = vpop.xlane.xlu0 %1950 }
 0x5a6   : > { %8815 = vst [vmem:[#allocation133_spill] sm:$0xff] %v6963_v5 }
 0x5a7   : > { %v6875_v39 = vpop.f32.mrf.mxu0  ;;  %2470 = vmax.xlane.f32.xlu0 %v6863_v10 }
 0x5a8   : > { %v6944_v16 = vpop.xlane.xlu1 %1952 }
 0x5a9   : > { %v6880_v50 = vpop.f32.mrf.mxu0  ;;  %8808 = vst [vmem:[#allocation126_spill] sm:$0xff] %v6944_v16  ;;  %v6967_v31 = vpop.xlane.xlu0 %1946 }
 0x5aa   : > { %8817 = vst [vmem:[#allocation135_spill] sm:$0xff] %v6967_v31 }
 0x5ab   : > { %v6882_v32 = vpop.f32.mrf.mxu0  ;;  %2466 = vmax.xlane.f32.xlu0 %v6865_v56 }
 0x5ac   : > { %v6948_v38 = vpop.xlane.xlu1 %1964 }
 0x5ad   : > { %v6887_v9 = vpop.f32.mrf.mxu0  ;;  %8810 = vst [vmem:[#allocation128_spill] sm:$0xff] %v6948_v38  ;;  %v6972_v27 = vpop.xlane.xlu0 %1958 }
 0x5ae   : > { %8819 = vst [vmem:[#allocation137_spill] sm:$0xff] %v6972_v27 }
 0x5af   : > { %v6891_v1 = vpop.f32.mrf.mxu0  ;;  %2472 = vmax.xlane.f32.xlu0 %v6869_v2 }
 0x5b0   : > { %v6952_v48 = vpop.xlane.xlu1 %1960 }
 0x5b1   : > { %v6894_v28 = vpop.f32.mrf.mxu0  ;;  %8812 = vst [vmem:[#allocation130_spill] sm:$0xff] %v6952_v48  ;;  %v6979_v55 = vpop.xlane.xlu0 %1954 }
 0x5b2   : > { %8822 = vst [vmem:[#allocation140_spill] sm:$0xff] %v6979_v55 }
 0x5b3   : > { %v6898_v46 = vpop.f32.mrf.mxu0  ;;  %2480 = vmax.xlane.f32.xlu0 %v6882_v32 }
 0x5b5   : > { %v6905_v18 = vpop.f32.mrf.mxu0 }
 0x5b7   : > { %2476 = vmax.xlane.f32.xlu0 %v6887_v9  ;;  %v6913_v61 = vpop.f32.mrf.mxu0 }
 0x5b8   : > { %2468 = vmax.xlane.f32.xlu1 %v6871_v42 }
 0x5b9   : > { %v6916_v51 = vpop.f32.mrf.mxu0 }
 0x5bb   : > { %2488 = vmax.xlane.f32.xlu0 %v6898_v46  ;;  %v6923_v17 = vpop.f32.mrf.mxu0 }
 0x5bd   : > { %v6930_v14 = vpop.f32.mrf.mxu0 }
 0x5be   : > { %8804 = vst [vmem:[#allocation122_spill] sm:$0xff] %v6930_v14 }
 0x5bf   : > { %2484 = vmax.xlane.f32.xlu0 %v6905_v18 }
 0x5c3   : > { %2496 = vmax.xlane.f32.xlu0 %v6923_v17 }
 0x5c7   : > { %2492 = vmax.xlane.f32.xlu0 %v6930_v14  ;;  %v5742_v14 = vld [vmem:[#allocation2 + $0x60] sm:$0xff] }
 0x5c9   : > { %2772 = vrot.lane.b32.xlu1 %v6934_v36, %s5798_s28 }
 0x5d6   : > { %v6961_v45 = vpop.permute.xlu1 %2231 }
 0x5d7   : > { %8814 = vst [vmem:[#allocation132_spill] sm:$0xff] %v6961_v45 }
 0x5da   : > { %v6965_v16 = vpop.permute.xlu1 %2227 }
 0x5db   : > { %8816 = vst [vmem:[#allocation134_spill] sm:$0xff] %v6965_v16  ;;  %v6985_v16 = vpop.xlane.xlu0 %1966 }
 0x5dc   : > { %8824 = vst [vmem:[#allocation142_spill] sm:$0xff] %v6985_v16 }
 0x5dd   : > { %2766 = vrot.lane.b32.xlu0 %v6955_v53, %s5798_s28 }
 0x5ea   : > { %v6969_v38 = vpop.permute.xlu1 %2239 }
 0x5eb   : > { %8818 = vst [vmem:[#allocation136_spill] sm:$0xff] %v6969_v38 }
 0x5ed   : > { %2478 = vmax.xlane.f32.xlu1 %v6875_v39 }
 0x5ee   : > { %v6974_v33 = vpop.permute.xlu1 %2235 }
 0x5ef   : > { %8820 = vst [vmem:[#allocation138_spill] sm:$0xff] %v6974_v33  ;;  %v6992_v33 = vpop.xlane.xlu0 %1962 }
 0x5f0   : > { %8827 = vst [vmem:[#allocation145_spill] sm:$0xff] %v6992_v33 }
 0x5f1   : > { %2474 = vmax.xlane.f32.xlu1 %v6880_v50 }
 0x5f2   : > { %v6977_v63 = vpop.permute.xlu1 %2247 }
 0x5f3   : > { %8821 = vst [vmem:[#allocation139_spill] sm:$0xff] %v6977_v63  ;;  %v6995_v55 = vpop.permute.xlu0 %2229 }
 0x5f4   : > { %8828 = vst [vmem:[#allocation146_spill] sm:$0xff] %v6995_v55  ;;  %v7011_v55 = vld [vmem:[#allocation2 + $0x10] sm:$0xff] }
 0x5f5   : > { %2486 = vmax.xlane.f32.xlu1 %v6891_v1 }
 0x5f6   : > { %v6982_v45 = vpop.permute.xlu1 %2243 }
 0x5f7   : > { %8823 = vst [vmem:[#allocation141_spill] sm:$0xff] %v6982_v45  ;;  %v6997_v31 = vpop.permute.xlu0 %2225 }
 0x5f8   : > { %8829 = vst [vmem:[#allocation147_spill] sm:$0xff] %v6997_v31 }
 0x5f9   : > { %2482 = vmax.xlane.f32.xlu1 %v6894_v28 }
 0x5fa   : > { %v6987_v38 = vpop.permute.xlu1 %2255 }
 0x5fb   : > { %8825 = vst [vmem:[#allocation143_spill] sm:$0xff] %v6987_v38  ;;  %v6999_v16 = vpop.permute.xlu0 %2237 }
 0x5fc   : > { %8830 = vst [vmem:[#allocation148_spill] sm:$0xff] %v6999_v16  ;;  %v8836_v16 = vld [vmem:[#allocation15_spill] sm:$0xff] }
 0x5fd   : > { %2494 = vmax.xlane.f32.xlu1 %v6913_v61 }
 0x5fe   : > { %v6990_v27 = vpop.permute.xlu1 %2251 }
 0x5ff   : > { %8826 = vst [vmem:[#allocation144_spill] sm:$0xff] %v6990_v27  ;;  %v7001_v38 = vpop.permute.xlu0 %2233 }
 0x600   : > { %8831 = vst [vmem:[#allocation149_spill] sm:$0xff] %v7001_v38  ;;  %v3898_v38 = vsel %vm3895_vm2, %v8836_v16, %v6465_v41  ;;  %v7037_v16 = vld [vmem:[#allocation2 + $0x18] sm:$0xff] }
 0x601   : > { %2490 = vmax.xlane.f32.xlu1 %v6916_v51 }
 0x602   : > { %v2777_v63 = vpop.permute.xlu1 %2776 }
 0x603   : > { %5153 = vmatprep.subr.bf16.mxu1 %v2777_v63  ;;  %v7003_v5 = vpop.permute.xlu0 %2245 }
 0x604   : > { %5154 = vmatpush3.bf16.msra.mxu1 %v2777_v63  ;;  %8832 = vst [vmem:[#allocation150_spill] sm:$0xff] %v7003_v5 }
 0x606   : > { %v2775_v45 = vpop.permute.xlu1 %2774 }
 0x607   : > { %5155 = vmatprep.subr.bf16.mxu1 %v2775_v45  ;;  %v7005_v27 = vpop.permute.xlu0 %2241 }
 0x608   : > { %5156 = vmatpush3.bf16.msra.mxu1 %v2775_v45  ;;  %8833 = vst [vmem:[#allocation151_spill] sm:$0xff] %v7005_v27 }
 0x60b   : > { %v7007_v33 = vpop.permute.xlu0 %2253 }
 0x60c   : > { %8834 = vst [vmem:[#allocation152_spill] sm:$0xff] %v7007_v33 }
 0x60f   : > { %v7009_v57 = vpop.permute.xlu0 %2249 }
 0x610   : > { %8835 = vst [vmem:[#allocation153_spill] sm:$0xff] %v7009_v57  ;;  %v7024_v57 = vld [vmem:[#allocation2] sm:$0xff] }
 0x630   : > { %v2471_v63 = vpop.xlane.xlu0 %2470 }
 0x631   : > { %v7014_v45 = vmax.f32 %v7011_v55, %v2471_v63  ;;  %v8838_v63 = vld [vmem:[#allocation16_spill] sm:$0xff] }
 0x632   : > { %v3896_v31 = vsel %vm3895_vm2, %v8838_v63, %v6471_v20 }
 0x633   : > { %v7021_v5 = vsel %vm3912_vm3, %v3898_v38, %v7014_v45  ;;  %2574 = vperm.xlu1 %5339, %v7014_v45  }
 0x634   : > { %8837 = vst [vmem:[#allocation15_spill] sm:$0xff] %v7021_v5  ;;  %v2467_v33 = vpop.xlane.xlu0 %2466 }
 0x635   : > { %v7027_v27 = vmax.f32 %v7024_v57, %v2467_v33  ;;  %v3899_v33 = vsel %vm3895_vm2, %v8840_v30, %v6477_v47  ;;  %v7063_v30 = vld [vmem:[%s6137_s26 + $0x20] sm:$0xff]  }
 0x637   : > { %v7034_v41 = vsel %vm3912_vm3, %v3896_v31, %v7027_v27  ;;  %2564 = vperm.xlu1 %5339, %v7027_v27   ;;  %v7050_v31 = vld [vmem:[#allocation2 + $0x38] sm:$0xff] }
 0x638   : > { %8839 = vst [vmem:[#allocation16_spill] sm:$0xff] %v7034_v41  ;;  %v2473_v38 = vpop.xlane.xlu0 %2472  ;;  %v8847_v41 = vld [vmem:[#allocation23_spill] sm:$0xff] }
 0x639   : > { %v7040_v8 = vmax.f32 %v7037_v16, %v2473_v38  ;;  %v3903_v38 = vsel %vm3895_vm2, %v8727_v4, %v6511_v7  ;;  %v3901_v7 = vsel %vm3895_vm2, %v6247_v52, %v6517_v24  ;;  %v7075_v4 = vld [vmem:[#allocation2 + $0x8] sm:$0xff] }
 0x63a   : > { %v7103_v24 = vld [vmem:[%s6137_s26 + $0x8] sm:$0xff]  }
 0x63b   : > { %v7047_v58 = vsel %vm3912_vm3, %v3899_v33, %v7040_v8  ;;  %2579 = vperm.xlu1 %5339, %v7040_v8  }
 0x63c   : > { %8841 = vst [vmem:[#allocation18_spill] sm:$0xff] %v7047_v58  ;;  %v2481_v20 = vpop.xlane.xlu0 %2480 }
 0x63d   : > { %v7053_v63 = vmax.f32 %v7050_v31, %v2481_v20 }
 0x63f   : > { %v7060_v47 = vsel %vm3912_vm3, %v3903_v38, %v7053_v63  ;;  %2770 = vrot.lane.b32.xlu1 %v7063_v30, %s5798_s28 }
 0x640   : > { %8842 = vst [vmem:[#allocation154_spill] sm:$0xff] %v7060_v47  ;;  %v2477_v33 = vpop.xlane.xlu0 %2476  ;;  %v7115_v47 = vld [vmem:[#allocation2 + $0x30] sm:$0xff] }
 0x641   : > { %v7070_v20 = vmax.f32 %v7067_v22, %v2477_v33  ;;  %v2469_v21 = vpop.xlane.xlu1 %2468 }
 0x642   : > { %v7078_v38 = vmax.f32 %v7075_v4, %v2469_v21 }
 0x643   : > { %v7085_v33 = vsel %vm3912_vm3, %v3901_v7, %v7070_v20  ;;  %2768 = vrot.lane.b32.xlu1 %v7088_v40, %s5798_s28  ;;  %v5732_v7 = vld [vmem:[%s5945_s25 + $0x30] sm:$0xff]  }
 0x644   : > { %8844 = vst [vmem:[#allocation17_spill] sm:$0xff] %v7085_v33  ;;  %v7094_v21 = vsel %vm3912_vm3, %v3897_v6, %v7078_v38  ;;  %2569 = vperm.xlu0 %5340, %v7078_v38   ;;  %v5731_v6 = vld [vmem:[%s5945_s25 + $0x28] sm:$0xff]  }
 0x645   : > { %8845 = vst [vmem:[#allocation155_spill] sm:$0xff] %v7094_v21  ;;  %v2773_v52 = vpop.permute.xlu1 %2772  ;;  %v3902_v21 = vsel %vm3895_vm2, %v8726_v0, %v6520_v25  ;;  %v7138_v0 = vld [vmem:[#allocation2 + $0x50] sm:$0xff] }
 0x646   : > { %5157 = vmatprep.subr.bf16.mxu1 %v2773_v52 }
 0x647   : > { %5158 = vmatpush3.bf16.msra.mxu1 %v2773_v52  ;;  %2762 = vrot.lane.b32.xlu1 %v7098_v35, %s5798_s28  ;;  %v5733_v52 = vld [vmem:[%s5945_s25 + $0x20] sm:$0xff]  }
 0x648   : > { %2764 = vrot.lane.b32.xlu0 %v7103_v24, %s5798_s28 }
 0x64b   : > { %3089 = vrot.lane.b32.xlu1 %v5730_v62, %s5799_s29 }
 0x64c   : > { %3085 = vrot.lane.b32.xlu0 %v5731_v6, %s5799_s29 }
 0x64f   : > { %3087 = vrot.lane.b32.xlu1 %v5732_v7, %s5799_s29  ;;  %v7128_v7 = vld [vmem:[#allocation2 + $0x20] sm:$0xff] }
 0x650   : > { %3083 = vrot.lane.b32.xlu0 %v5733_v52, %s5799_s29 }
 0x676   : > { %v2479_v33 = vpop.xlane.xlu1 %2478 }
 0x677   : > { %v7118_v58 = vmax.f32 %v7115_v47, %v2479_v33  ;;  %v3900_v33 = vsel %vm3895_vm2, %v8847_v41, %v6527_v26  ;;  %v2489_v26 = vpop.xlane.xlu0 %2488 }
 0x679   : > { %v7125_v62 = vsel %vm3912_vm3, %v3902_v21, %v7118_v58  ;;  %2594 = vperm.xlu0 %5340, %v7118_v58  }
 0x67a   : > { %8846 = vst [vmem:[#allocation156_spill] sm:$0xff] %v7125_v62  ;;  %v2475_v6 = vpop.xlane.xlu1 %2474  ;;  %v3906_v62 = vsel %vm3895_vm2, %v8732_v3, %v6530_v34  ;;  %v7157_v3 = vld [vmem:[#allocation2 + $0x58] sm:$0xff] }
 0x67b   : > { %v2502_v52 = vmax.f32 %v7128_v7, %v2475_v6  ;;  %v2485_v49 = vpop.xlane.xlu0 %2484 }
 0x67d   : > { %v7135_v5 = vsel %vm3912_vm3, %v3900_v33, %v2502_v52  ;;  %2599 = vperm.xlu0 %5340, %v7053_v63   ;;  %2584 = vperm.xlu1 %5339, %v2502_v52   ;;  %v7148_v33 = vld [vmem:[#allocation2 + $0x40] sm:$0xff] }
 0x67e   : > { %8848 = vst [vmem:[#allocation23_spill] sm:$0xff] %v7135_v5  ;;  %v2487_v25 = vpop.xlane.xlu1 %2486 }
 0x67f   : > { %v2508_v21 = vmax.f32 %v7138_v0, %v2487_v25  ;;  %v3904_v25 = vsel %vm3895_vm2, %v8729_v44, %v6535_v54  ;;  %v5740_v44 = vld [vmem:[%s5945_s25 + $0x10] sm:$0xff]  }
 0x681   : > { %v7145_v6 = vsel %vm3912_vm3, %v3906_v62, %v2508_v21  ;;  %2589 = vperm.xlu0 %5340, %v7070_v20   ;;  %v7160_v62 = vmax.f32 %v7157_v3, %v2489_v26  ;;  %v2515_v26 = vsub.f32 %v7075_v4, %v7078_v38  ;;  %v2516_v38 = vsub.f32 %v7011_v55, %v7014_v45 }
 0x682   : > { %8849 = vst [vmem:[#allocation157_spill] sm:$0xff] %v7145_v6  ;;  %v2483_v41 = vpop.xlane.xlu1 %2482  ;;  %v5739_v6 = vld [vmem:[#allocation2 + $0x70] sm:$0xff] }
 0x683   : > { %v2506_v5 = vmax.f32 %v7148_v33, %v2483_v41  ;;  %v3910_v41 = vsel %vm3895_vm2, %v6278_v37, %v6553_v19  ;;  %v3908_v19 = vsel %vm3895_vm2, %v6286_v59, %v6565_v12  ;;  %v2518_v12 = vsub.f32 %v7128_v7, %v2502_v52  ;;  %v8854_v59 = vld [vmem:[#allocation9_spill] sm:$0xff] }
 0x685   : > { %v7155_v48 = vsel %vm3912_vm3, %v3904_v25, %v2506_v5  ;;  %2614 = vperm.xlu0 %5340, %v2508_v21   ;;  %2604 = vperm.xlu1 %5339, %v2506_v5   ;;  %v2538_v45 = vmul.f32 1.442695, %v2518_v12  ;;  %v7209_v12 = vld [vmem:[#allocation2 + $0x68] sm:$0xff] }
 0x686   : > { %8850 = vst [vmem:[#allocation158_spill] sm:$0xff] %v7155_v48  ;;  %v2495_v34 = vpop.xlane.xlu1 %2494  ;;  %v7173_v48 = vld [vmem:[#allocation2 + $0x48] sm:$0xff] }
 0x687   : > { %v2512_v11 = vmax.f32 %v5739_v6, %v2495_v34  ;;  %v7176_v34 = vmax.f32 %v7173_v48, %v2485_v49  ;;  %v2532_v49 = vmul.f32 1.442695, %v2515_v26  ;;  %v8855_v26 = vld [vmem:[#allocation10_spill] sm:$0xff] }
 0x689   : > { %v7166_v54 = vsel %vm3912_vm3, %v3910_v41, %v2512_v11  ;;  %3079 = vrot.lane.b32.xlu0 %v5740_v44, %s5799_s29  ;;  %2619 = vperm.xlu1 %5339, %v7160_v62   ;;  %v5743_v44 = vld [vmem:[%s5945_s25] sm:$0xff]   ;;  %5548 = vpow2.f32 %v2532_v49 }
 0x68a   : > { %8851 = vst [vmem:[#allocation159_spill] sm:$0xff] %v7166_v54  ;;  %v2491_v25 = vpop.xlane.xlu1 %2490  ;;  %v8853_v54 = vld [vmem:[#allocation8_spill] sm:$0xff] }
 0x68b   : > { %v2510_v37 = vmax.f32 %v5742_v14, %v2491_v25  ;;  %v2534_v25 = vmul.f32 1.442695, %v2516_v38  ;;  %v7200_v38 = vld [vmem:[#allocation2 + $0x78] sm:$0xff] }
 0x68d   : > { %v7182_v41 = vsel %vm3912_vm3, %v3908_v19, %v2510_v37  ;;  %3075 = vrot.lane.b32.xlu0 %v5743_v44, %s5799_s29  ;;  %2609 = vperm.xlu1 %5339, %v7176_v34   ;;  %v2497_v19 = vpop.xlane.xlu0 %2496  ;;  %5550 = vpow2.f32 %v2534_v25  ;;  %v2520_v44 = vsub.f32 %v7115_v47, %v7118_v58  ;;  %v5746_v58 = vld [vmem:[%s5945_s25 + $0x8] sm:$0xff]  }
 0x68e   : > { %8852 = vst [vmem:[#allocation160_spill] sm:$0xff] %v7182_v41  ;;  %v7203_v52 = vmax.f32 %v7200_v38, %v2497_v19  ;;  %5552 = vpow2.f32 %v2538_v45  ;;  %v2522_v19 = vsub.f32 %v7148_v33, %v2506_v5  ;;  %v2528_v45 = vsub.f32 %v5739_v6, %v2512_v11  ;;  %v8857_v6 = vld [vmem:[#allocation12_spill] sm:$0xff] }
 0x68f   : > { %v2542_v49 = vmul.f32 1.442695, %v2520_v44 }
 0x690   : > { %v2546_v44 = vmul.f32 1.442695, %v2522_v19 }
 0x691   : > { %3059 = vrot.lane.b32.xlu0 %v8853_v54, %s5799_s29  ;;  %2634 = vperm.xlu1 %5339, %v2512_v11   ;;  %v5744_v54 = vld [vmem:[%s5945_s25 + $0x18] sm:$0xff]   ;;  %v2493_v25 = vpop.xlane.xlu0 %2492  ;;  %5554 = vpow2.f32 %v2542_v49  ;;  %v2517_v49 = vsub.f32 %v7037_v16, %v7040_v8 }
 0x693   : > { %v2536_v11 = vmul.f32 1.442695, %v2517_v49 }
 0x695   : > { %3061 = vrot.lane.b32.xlu0 %v8854_v59, %s5799_s29  ;;  %2624 = vperm.xlu1 %5339, %v2510_v37   ;;  %v2524_v59 = vsub.f32 %v7138_v0, %v2508_v21  ;;  %v2514_v21 = vsub.f32 %v7024_v57, %v7027_v27 }
 0x696   : > { %v7215_v41 = vpop.eup %5548 }
 0x697   : > { %8856 = vst [vmem:[#allocation8_spill] sm:$0xff] %v7215_v41  ;;  %v2530_v5 = vmul.f32 1.442695, %v2514_v21 }
 0x699   : > { %3063 = vrot.lane.b32.xlu0 %v8855_v26, %s5799_s29  ;;  %3081 = vrot.lane.b32.xlu1 %v5744_v54, %s5799_s29  ;;  %v7212_v26 = vmax.f32 %v7209_v12, %v2493_v25  ;;  %v2550_v54 = vmul.f32 1.442695, %v2524_v59  ;;  %v2558_v59 = vmul.f32 1.442695, %v2528_v45  ;;  %v2526_v25 = vsub.f32 %v5742_v14, %v2510_v37 }
 0x69b   : > { %5556 = vpow2.f32 %v2550_v54 }
 0x69c   : > { %5558 = vpow2.f32 %v2546_v44 }
 0x69d   : > { %2639 = vperm.xlu0 %5340, %v7203_v52   ;;  %3077 = vrot.lane.b32.xlu1 %v5746_v58, %s5799_s29  ;;  %v7221_v58 = vpop.eup %5550  ;;  %5560 = vpow2.f32 %v2530_v5 }
 0x69e   : > { %5562 = vpow2.f32 %v2558_v59 }
 0x69f   : > { %5564 = vpow2.f32 %v2536_v11 }
 0x6a1   : > { %2629 = vperm.xlu0 %5340, %v7212_v26   ;;  %2890 = vperm.xlu1 %5339, %v7215_v41   ;;  %v7228_v41 = vpop.eup %5552 }
 0x6a2   : > { %v7233_v27 = vpop.eup %5554 }
 0x6a5   : > { %3065 = vrot.lane.b32.xlu0 %v6028_v23, %s5799_s29  ;;  %2895 = vperm.xlu1 %5339, %v7221_v58   ;;  %v2554_v23 = vmul.f32 1.442695, %v2526_v25 }
 0x6a7   : > { %5566 = vpow2.f32 %v2554_v23 }
 0x6a8   : > { %v7238_v14 = vpop.eup %5556 }
 0x6a9   : > { %3067 = vrot.lane.b32.xlu0 %v8737_v29, %s5799_s29  ;;  %2905 = vperm.xlu1 %5339, %v7228_v41   ;;  %8858 = vst [vmem:[#allocation9_spill] sm:$0xff] %v7238_v14  ;;  %v7243_v37 = vpop.eup %5558 }
 0x6aa   : > { %8859 = vst [vmem:[#allocation10_spill] sm:$0xff] %v7243_v37  ;;  %v7248_v19 = vpop.eup %5560 }
 0x6ab   : > { %v7250_v21 = vpop.eup %5562 }
 0x6ac   : > { %8860 = vst [vmem:[#allocation12_spill] sm:$0xff] %v7250_v21  ;;  %v7255_v5 = vpop.eup %5564 }
 0x6ad   : > { %3069 = vrot.lane.b32.xlu0 %v8857_v6, %s5799_s29  ;;  %2915 = vperm.xlu1 %5339, %v7233_v27  }
 0x6ae   : > { %v2575_v8 = vpop.permute.xlu1 %2574 }
 0x6af   : > { %v2644_v59 = vsub.f32 %v6863_v10, %v2575_v8 }
 0x6b1   : > { %3071 = vrot.lane.b32.xlu0 %v8738_v15, %s5799_s29  ;;  %2935 = vperm.xlu1 %5339, %v7238_v14   ;;  %v2767_v15 = vpop.permute.xlu0 %2766 }
 0x6b2   : > { %v2565_v29 = vpop.permute.xlu1 %2564 }
 0x6b3   : > { %v2642_v44 = vsub.f32 %v6865_v56, %v2565_v29  ;;  %v2662_v29 = vmul.f32 1.442695, %v2644_v59 }
 0x6b5   : > { %3073 = vrot.lane.b32.xlu0 %v8743_v13, %s5799_s29  ;;  %2925 = vperm.xlu1 %5339, %v7243_v37   ;;  %v7258_v13 = vpop.eup %5566  ;;  %v2658_v25 = vmul.f32 1.442695, %v2642_v44 }
 0x6b6   : > { %v2580_v54 = vpop.permute.xlu1 %2579 }
 0x6b7   : > { %v2645_v49 = vsub.f32 %v6869_v2, %v2580_v54  ;;  %5568 = vpow2.f32 %v2658_v25 }
 0x6b9   : > { %2885 = vperm.xlu0 %5340, %v7248_v19   ;;  %2955 = vperm.xlu1 %5339, %v7250_v21   ;;  %v2664_v23 = vmul.f32 1.442695, %v2645_v49 }
 0x6ba   : > { %v2771_v45 = vpop.permute.xlu1 %2770 }
 0x6bb   : > { %5159 = vmatprep.subr.bf16.mxu1 %v2771_v45  ;;  %5570 = vpow2.f32 %v2664_v23 }
 0x6bc   : > { %5160 = vmatpush3.bf16.msra.mxu1 %v2771_v45 }
 0x6bd   : > { %2900 = vperm.xlu0 %5340, %v7255_v5   ;;  %2945 = vperm.xlu1 %5339, %v7258_v13  }
 0x6be   : > { %v2769_v11 = vpop.permute.xlu1 %2768 }
 0x6bf   : > { %v2570_v6 = vpop.permute.xlu0 %2569  ;;  %5161 = vmatprep.subr.bf16.mxu1 %v2769_v11 }
 0x6c0   : > { %v2643_v56 = vsub.f32 %v6871_v42, %v2570_v6  ;;  %5162 = vmatpush3.bf16.msra.mxu1 %v2769_v11  ;;  %v2521_v42 = vsub.f32 %v7050_v31, %v7053_v63  ;;  %v2529_v11 = vsub.f32 %v7200_v38, %v7203_v52 }
 0x6c1   : > { %3546 = vrot.lane.b32.xlu0 %v6850_v43, %s5799_s29  ;;  %5163 = vmatprep.subr.bf16.mxu1 %v2767_v15 }
 0x6c2   : > { %v2660_v2 = vmul.f32 1.442695, %v2643_v56  ;;  %v2763_v8 = vpop.permute.xlu1 %2762  ;;  %v2544_v54 = vmul.f32 1.442695, %v2521_v42  ;;  %v2560_v56 = vmul.f32 1.442695, %v2529_v11 }
 0x6c3   : > { %v2765_v10 = vpop.permute.xlu0 %2764 }
 0x6c4   : > { %5572 = vpow2.f32 %v2660_v2  ;;  %5164 = vmatpush3.bf16.msra.mxu1 %v2767_v15  ;;  %v5569_v15 = vpop.eup %5568 }
 0x6c5   : > { %5574 = vpow2.f32 %v2662_v29  ;;  %3544 = vrot.lane.b32.xlu0 %v6855_v60, %s5799_s29  ;;  %5165 = vmatprep.subr.bf16.mxu1 %v2765_v10  ;;  %v2519_v60 = vsub.f32 %v7067_v22, %v7070_v20  ;;  %v2523_v22 = vsub.f32 %v7173_v48, %v7176_v34  ;;  %v2527_v29 = vsub.f32 %v7209_v12, %v7212_v26 }
 0x6c6   : > { %v3090_v43 = vpop.permute.xlu1 %3089  ;;  %5576 = vpow2.f32 %v2544_v54 }
 0x6c7   : > { %v2540_v63 = vmul.f32 1.442695, %v2519_v60  ;;  %v3137_v59 = vsel %vm820_vm0, %v3090_v43, 0  ;;  %v2548_v20 = vmul.f32 1.442695, %v2523_v22 }
 0x6c8   : > { %5166 = vmatpush3.bf16.msra.mxu1 %v2765_v10  ;;  %v5571_v44 = vpop.eup %5570 }
 0x6c9   : > { %3542 = vrot.lane.b32.xlu0 %v6934_v36, %s5799_s29  ;;  %5167 = vmatprep.subr.bf16.mxu1 %v2763_v8  ;;  %5578 = vpow2.f32 %v2540_v63 }
 0x6ca   : > { %v3088_v25 = vpop.permute.xlu1 %3087 }
 0x6cb   : > { %v3134_v23 = vsel %vm820_vm0, %v3088_v25, 0 }
 0x6cc   : > { %5168 = vmatpush3.bf16.msra.mxu1 %v2763_v8 }
 0x6cd   : > { %3540 = vrot.lane.b32.xlu0 %v7063_v30, %s5799_s29  ;;  %5273 = vmatprep.subr.msk.bf16.mxu1 %vm820_vm0, %v3090_v43  ;;  %v2525_v30 = vsub.f32 %v7157_v3, %v7160_v62 }
 0x6d1   : > { %v7277_v45 = vpop.eup %5572  ;;  %3538 = vrot.lane.b32.xlu0 %v7088_v40, %s5799_s29  ;;  %v2552_v40 = vmul.f32 1.442695, %v2525_v30 }
 0x6d2   : > { %v5575_v36 = vpop.eup %5574  ;;  %v2754_v31 = vpack.c.bf16 %v7277_v45, %v5569_v15 }
 0x6d3   : > { %v2755_v49 = vpack.c.bf16 %v5571_v44, %v5575_v36  ;;  %5580 = vpow2.f32 %v2552_v40  ;;  %v7297_v6 = vpop.eup %5576 }
 0x6d4   : > { %5169 = vmatprep.mubr.bf16.mxu1 %v2754_v31  ;;  %8861 = vst [vmem:[#allocation161_spill] sm:$0xff] %v7297_v6  ;;  %5582 = vpow2.f32 %v2548_v20 }
 0x6d5   : > { %3536 = vrot.lane.b32.xlu0 %v6955_v53, %s5799_s29  ;;  %5170 = vmatmul.mubr.bf16.vlgmr.msra.gmra.mxu1 %v2755_v49  ;;  %v3086_v53 = vpop.permute.xlu0 %3085  ;;  %5584 = vpow2.f32 %v2560_v56 }
 0x6d6   : > { %5186 = vmatpush3.bf16.xpose.msra.mxu1 %v3137_v59  ;;  %v3131_v2 = vsel %vm820_vm0, %v3086_v53, 0  ;;  %v7304_v10 = vpop.eup %5578 }
 0x6d7   : > { %5274 = vmatprep.subr.msk.bf16.mxu1 %vm820_vm0, %v3088_v25  ;;  %8862 = vst [vmem:[#allocation162_spill] sm:$0xff] %v7304_v10 }
 0x6d9   : > { %3534 = vrot.lane.b32.xlu0 %v7103_v24, %s5799_s29  ;;  %v2556_v24 = vmul.f32 1.442695, %v2527_v29 }
 0x6db   : > { %5586 = vpow2.f32 %v2556_v24 }
 0x6dd   : > { %3532 = vrot.lane.b32.xlu0 %v7098_v35, %s5799_s29  ;;  %v3084_v35 = vpop.permute.xlu0 %3083 }
 0x6de   : > { %5188 = vmatpush3.bf16.xpose.msra.mxu1 %v3134_v23  ;;  %v3128_v43 = vsel %vm820_vm0, %v3084_v35, 0 }
 0x6df   : > { %5275 = vmatprep.subr.msk.bf16.mxu1 %vm820_vm0, %v3086_v53 }
 0x6e0   : > { %v7308_v8 = vpop.eup %5580 }
 0x6e1   : > { %2920 = vperm.xlu0 %5340, %v7297_v6   ;;  %2710 = vadd.xlane.f32.xlu1 %v5575_v36  ;;  %8863 = vst [vmem:[#allocation163_spill] sm:$0xff] %v7308_v8  ;;  %v7311_v42 = vpop.eup %5582 }
 0x6e2   : > { %8864 = vst [vmem:[#allocation164_spill] sm:$0xff] %v7311_v42  ;;  %v7315_v54 = vpop.eup %5584 }
 0x6e3   : > { %8865 = vst [vmem:[#allocation165_spill] sm:$0xff] %v7315_v54 }
 0x6e5   : > { %2910 = vperm.xlu0 %5340, %v7304_v10   ;;  %2706 = vadd.xlane.f32.xlu1 %v5569_v15 }
 0x6e6   : > { %5190 = vmatpush3.bf16.xpose.msra.mxu1 %v3131_v2 }
 0x6e7   : > { %5276 = vmatprep.subr.msk.bf16.mxu1 %vm820_vm0, %v3084_v35 }
 0x6e8   : > { %v7318_v15 = vpop.eup %5586 }
 0x6e9   : > { %2940 = vperm.xlu0 %5340, %v7308_v8   ;;  %2712 = vadd.xlane.f32.xlu1 %v5571_v44  ;;  %8866 = vst [vmem:[#allocation166_spill] sm:$0xff] %v7318_v15 }
 0x6ed   : > { %2930 = vperm.xlu0 %5340, %v7311_v42  }
 0x6ee   : > { %5192 = vmatpush3.bf16.xpose.msra.mxu1 %v3128_v43 }
 0x6f1   : > { %2960 = vperm.xlu0 %5340, %v7315_v54  }
 0x6f4   : > { %v2595_v60 = vpop.permute.xlu0 %2594 }
 0x6f5   : > { %v2648_v36 = vsub.f32 %v6875_v39, %v2595_v60  ;;  %2950 = vperm.xlu0 %5340, %v7318_v15  }
 0x6f7   : > { %v2670_v31 = vmul.f32 1.442695, %v2648_v36 }
 0x6f8   : > { %v2600_v44 = vpop.permute.xlu0 %2599  ;;  %v2585_v63 = vpop.permute.xlu1 %2584 }
 0x6f9   : > { %5588 = vpow2.f32 %v2670_v31  ;;  %v2649_v30 = vsub.f32 %v6882_v32, %v2600_v44  ;;  %v2646_v49 = vsub.f32 %v6880_v50, %v2585_v63 }
 0x6fb   : > { %v2666_v59 = vmul.f32 1.442695, %v2646_v49  ;;  %v2672_v25 = vmul.f32 1.442695, %v2649_v30 }
 0x6fc   : > { %v2590_v40 = vpop.permute.xlu0 %2589 }
 0x6fd   : > { %v2647_v22 = vsub.f32 %v6887_v9, %v2590_v40  ;;  %5590 = vpow2.f32 %v2666_v59 }
 0x6fe   : > { %5592 = vpow2.f32 %v2672_v25 }
 0x6ff   : > { %v2668_v20 = vmul.f32 1.442695, %v2647_v22 }
 0x700   : > { %v2615_v11 = vpop.permute.xlu0 %2614  ;;  %v2605_v39 = vpop.permute.xlu1 %2604 }
 0x701   : > { %5594 = vpow2.f32 %v2668_v20  ;;  %v2652_v23 = vsub.f32 %v6891_v1, %v2615_v11  ;;  %v2650_v53 = vsub.f32 %v6894_v28, %v2605_v39 }
 0x703   : > { %v2678_v32 = vmul.f32 1.442695, %v2652_v23  ;;  %v2674_v2 = vmul.f32 1.442695, %v2650_v53 }
 0x704   : > { %v3080_v56 = vpop.permute.xlu0 %3079  ;;  %v2620_v29 = vpop.permute.xlu1 %2619 }
 0x705   : > { %v2653_v50 = vsub.f32 %v6898_v46, %v2620_v29  ;;  %5596 = vpow2.f32 %v2678_v32 }
 0x706   : > { %v5589_v24 = vpop.eup %5588  ;;  %5598 = vpow2.f32 %v2674_v2 }
 0x707   : > { %2718 = vadd.xlane.f32.xlu1 %v5589_v24  ;;  %v2680_v35 = vmul.f32 1.442695, %v2653_v50 }
 0x708   : > { %v7328_v9 = vpop.permute.xlu0 %3075  ;;  %v2610_v43 = vpop.permute.xlu1 %2609 }
 0x709   : > { %v2651_v60 = vsub.f32 %v6905_v18, %v2610_v43  ;;  %5600 = vpow2.f32 %v2680_v35  ;;  %v8867_v35 = vld [vmem:[#allocation122_spill] sm:$0xff] }
 0x70a   : > { %v5591_v36 = vpop.eup %5590 }
 0x70b   : > { %v2676_v1 = vmul.f32 1.442695, %v2651_v60  ;;  %2714 = vadd.xlane.f32.xlu1 %v5591_v36  ;;  %v5593_v44 = vpop.eup %5592 }
 0x70c   : > { %v7331_v28 = vpop.permute.xlu0 %3059  ;;  %v2635_v31 = vpop.permute.xlu1 %2634  ;;  %v2757_v18 = vpack.c.bf16 %v5593_v44, %v5589_v24 }
 0x70d   : > { %5602 = vpow2.f32 %v2676_v1  ;;  %v2656_v46 = vsub.f32 %v6913_v61, %v2635_v31 }
 0x70e   : > { %v5595_v63 = vpop.eup %5594 }
 0x70f   : > { %v2686_v30 = vmul.f32 1.442695, %v2656_v46  ;;  %v2756_v49 = vpack.c.bf16 %v5595_v63, %v5591_v36  ;;  %2720 = vadd.xlane.f32.xlu1 %v5593_v44  ;;  %v3122_v36 = vsel %vm820_vm0, %v3080_v56, 0 }
 0x710   : > { %v7334_v59 = vpop.permute.xlu0 %3061  ;;  %v2625_v25 = vpop.permute.xlu1 %2624 }
 0x711   : > { %5604 = vpow2.f32 %v2686_v30  ;;  %v2654_v40 = vsub.f32 %v6916_v51, %v2625_v25  ;;  %5173 = vmatprep.mubr.bf16.mxu1 %v2756_v49 }
 0x712   : > { %5174 = vmatmul.mubr.bf16.gmra.mxu1 %v2757_v18  ;;  %v5597_v39 = vpop.eup %5596  ;;  %v3116_v18 = vsel %vm820_vm0, %v7328_v9, 0 }
 0x713   : > { %v2682_v22 = vmul.f32 1.442695, %v2654_v40  ;;  %2716 = vadd.xlane.f32.xlu1 %v5595_v63  ;;  %v5599_v23 = vpop.eup %5598 }
 0x714   : > { %2708 = vadd.xlane.f32.xlu0 %v7277_v45  ;;  %v3064_v20 = vpop.permute.xlu0 %3063  ;;  %v3082_v11 = vpop.permute.xlu1 %3081 }
 0x715   : > { %5606 = vpow2.f32 %v2682_v22  ;;  %5277 = vmatprep.subr.msk.bf16.mxu1 %vm820_vm0, %v3082_v11  ;;  %v3125_v61 = vsel %vm820_vm0, %v3082_v11, 0 }
 0x716   : > { %5194 = vmatpush3.bf16.xpose.msra.mxu1 %v3125_v61  ;;  %v5601_v53 = vpop.eup %5600 }
 0x717   : > { %5278 = vmatprep.subr.msk.bf16.mxu1 %vm820_vm0, %v3080_v56  ;;  %2722 = vadd.xlane.f32.xlu1 %v5599_v23  ;;  %v2759_v2 = vpack.c.bf16 %v5601_v53, %v5597_v39 }
 0x718   : > { %2726 = vadd.xlane.f32.xlu0 %v5597_v39  ;;  %v2640_v51 = vpop.permute.xlu0 %2639  ;;  %v3078_v1 = vpop.permute.xlu1 %3077 }
 0x719   : > { %v2657_v29 = vsub.f32 %v6923_v17, %v2640_v51  ;;  %v3119_v63 = vsel %vm820_vm0, %v3078_v1, 0 }
 0x71a   : > { %v5603_v32 = vpop.eup %5602 }
 0x71b   : > { %v2688_v45 = vmul.f32 1.442695, %v2657_v29  ;;  %v2758_v50 = vpack.c.bf16 %v5603_v32, %v5599_v23  ;;  %2728 = vadd.xlane.f32.xlu1 %v5601_v53 }
 0x71c   : > { %v2630_v24 = vpop.permute.xlu0 %2629 }
 0x71d   : > { %5608 = vpow2.f32 %v2688_v45  ;;  %v2655_v43 = vsub.f32 %v8867_v35, %v2630_v24  ;;  %5177 = vmatprep.mubr.bf16.mxu1 %v2758_v50 }
 0x71e   : > { %v5605_v60 = vpop.eup %5604  ;;  %5178 = vmatmul.mubr.bf16.gmra.mxu1 %v2759_v2 }
 0x71f   : > { %v2684_v31 = vmul.f32 1.442695, %v2655_v43  ;;  %5196 = vmatpush3.bf16.xpose.msra.mxu1 %v3122_v36  ;;  %2734 = vadd.xlane.f32.xlu0 %v5605_v60 }
 0x720   : > { %2724 = vadd.xlane.f32.xlu1 %v5603_v32  ;;  %v3066_v17 = vpop.permute.xlu0 %3065  ;;  %5279 = vmatprep.subr.msk.bf16.mxu1 %vm820_vm0, %v3078_v1 }
 0x721   : > { %5610 = vpow2.f32 %v2684_v31 }
 0x722   : > { %v5607_v44 = vpop.eup %5606 }
 0x723   : > { %2730 = vadd.xlane.f32.xlu0 %v5607_v44 }
 0x724   : > { %v3068_v46 = vpop.permute.xlu0 %3067 }
 0x727   : > { %5198 = vmatpush3.bf16.xpose.msra.mxu1 %v3119_v63 }
 0x728   : > { %5280 = vmatprep.subr.msk.bf16.mxu1 %vm820_vm0, %v7328_v9  ;;  %v3070_v30 = vpop.permute.xlu0 %3069 }
 0x72a   : > { %v5609_v56 = vpop.eup %5608 }
 0x72b   : > { %2736 = vadd.xlane.f32.xlu1 %v5609_v56  ;;  %v2761_v11 = vpack.c.bf16 %v5609_v56, %v5605_v60  ;;  %v8879_v56 = vld [vmem:[#allocation74_spill] sm:$0xff] }
 0x72c   : > { %v3072_v49 = vpop.permute.xlu0 %3071 }
 0x72e   : > { %v5611_v25 = vpop.eup %5610 }
 0x72f   : > { %5200 = vmatpush3.bf16.xpose.msra.mxu1 %v3116_v18  ;;  %2732 = vadd.xlane.f32.xlu1 %v5611_v25  ;;  %v2760_v40 = vpack.c.bf16 %v5611_v25, %v5607_v44  ;;  %v720_v44 = vld [vmem:[#allocation3 + $0x60] sm:$0xff]  ;;  %v8880_v25 = vld [vmem:[#allocation130_spill] sm:$0xff] }
 0x730   : > { %v3074_v22 = vpop.permute.xlu0 %3073 }
 0x731   : > { %5181 = vmatprep.mubr.bf16.mxu1 %v2760_v40  ;;  %v2702_v40 = vmul.f32 %v7258_v13, %v720_v44 }
 0x732   : > { %5182 = vmatmul.mubr.bf16.gmra.mxu1 %v2761_v11 }
 0x733   : > { %5201 = vmatprep.mubr.msk.bf16.mxu1 %vm820_vm0, %v7331_v28 }
 0x734   : > { %v7352_v61 = vpop.permute.xlu0 %2885 }
 0x735   : > { %8868 = vst [vmem:[#allocation122_spill] sm:$0xff] %v7352_v61 }
 0x738   : > { %v7354_v39 = vpop.permute.xlu0 %2900 }
 0x739   : > { %8869 = vst [vmem:[#allocation167_spill] sm:$0xff] %v7354_v39 }
 0x73a   : > { %5202 = vmatmul.mubr.msk.bf16.vlgmr.msra.gmra.mxu1 %vm820_vm0, %v7334_v59 }
 0x73b   : > { %5205 = vmatprep.mubr.msk.bf16.mxu1 %vm820_vm0, %v3064_v20 }
 0x73c   : > { %v3547_v9 = vpop.permute.xlu0 %3546 }
 0x73d   : > { %5217 = vmatprep.subr.bf16.mxu0 %v3547_v9 }
 0x73e   : > { %5218 = vmatpush3.bf16.msra.mxu0 %v3547_v9 }
 0x740   : > { %v3545_v23 = vpop.permute.xlu0 %3544 }
 0x741   : > { %5219 = vmatprep.subr.bf16.mxu0 %v3545_v23 }
 0x742   : > { %5206 = vmatmul.mubr.msk.bf16.gmra.mxu1 %vm820_vm0, %v3066_v17  ;;  %5220 = vmatpush3.bf16.msra.mxu0 %v3545_v23 }
 0x743   : > { %5209 = vmatprep.mubr.msk.bf16.mxu1 %vm820_vm0, %v3068_v46  ;;  %v8877_v46 = vld [vmem:[#allocation84_spill] sm:$0xff] }
 0x744   : > { %v3543_v28 = vpop.permute.xlu0 %3542  ;;  %v1932_v63 = vmul.f32 %v8877_v46, %v720_v44 }
 0x745   : > { %5221 = vmatprep.subr.bf16.mxu0 %v3543_v28 }
 0x746   : > { %5222 = vmatpush3.bf16.msra.mxu0 %v3543_v28  ;;  %v1980_v18 = vadd.f32 %v8880_v25, %v1932_v63 }
 0x748   : > { %v3541_v51 = vpop.permute.xlu0 %3540 }
 0x749   : > { %5223 = vmatprep.subr.bf16.mxu0 %v3541_v51 }
 0x74a   : > { %5210 = vmatmul.mubr.msk.bf16.gmra.mxu1 %vm820_vm0, %v3070_v30  ;;  %5224 = vmatpush3.bf16.msra.mxu0 %v3541_v51 }
 0x74b   : > { %5213 = vmatprep.mubr.msk.bf16.mxu1 %vm820_vm0, %v3072_v49  ;;  %v1202_v49 = vmul.f32 %v8879_v56, %v720_v44 }
 0x74c   : > { %v3539_v59 = vpop.permute.xlu0 %3538 }
 0x74d   : > { %5225 = vmatprep.subr.bf16.mxu0 %v3539_v59 }
 0x74e   : > { %5226 = vmatpush3.bf16.msra.mxu0 %v3539_v59 }
 0x750   : > { %v3537_v20 = vpop.permute.xlu0 %3536 }
 0x751   : > { %5227 = vmatprep.subr.bf16.mxu0 %v3537_v20 }
 0x752   : > { %5214 = vmatmul.mubr.msk.bf16.gmra.mxu1 %vm820_vm0, %v3074_v22  ;;  %5228 = vmatpush3.bf16.msra.mxu0 %v3537_v20  ;;  %v8881_v22 = vld [vmem:[#allocation66_spill] sm:$0xff] }
 0x753   : > { %v1250_v11 = vadd.f32 %v8881_v22, %v1202_v49  ;;  %v7417_v22 = vpop.permute.xlu1 %2890 }
 0x754   : > { %v3535_v53 = vpop.permute.xlu0 %3534  ;;  %8883 = vst [vmem:[#allocation130_spill] sm:$0xff] %v7417_v22 }
 0x755   : > { %5229 = vmatprep.subr.bf16.mxu0 %v3535_v53  ;;  %v3975_v28 = vsel %vm3895_vm2, %v1250_v11, %v1980_v18 }
 0x756   : > { %5230 = vmatpush3.bf16.msra.mxu0 %v3535_v53 }
 0x758   : > { %v3533_v29 = vpop.permute.xlu0 %3532 }
 0x759   : > { %5231 = vmatprep.subr.bf16.mxu0 %v3533_v29 }
 0x75a   : > { %5232 = vmatpush3.bf16.msra.mxu0 %v3533_v29 }
 0x75c   : > { %v7364_v32 = vpop.permute.xlu0 %2920 }
 0x75d   : > { %8870 = vst [vmem:[#allocation168_spill] sm:$0xff] %v7364_v32 }
 0x760   : > { %v7366_v45 = vpop.permute.xlu0 %2910 }
 0x761   : > { %8871 = vst [vmem:[#allocation169_spill] sm:$0xff] %v7366_v45 }
 0x764   : > { %v7368_v50 = vpop.permute.xlu0 %2940 }
 0x765   : > { %8872 = vst [vmem:[#allocation170_spill] sm:$0xff] %v7368_v50 }
 0x768   : > { %v7370_v24 = vpop.permute.xlu0 %2930 }
 0x769   : > { %8873 = vst [vmem:[#allocation171_spill] sm:$0xff] %v7370_v24 }
 0x76c   : > { %v7372_v2 = vpop.permute.xlu0 %2960 }
 0x76d   : > { %8874 = vst [vmem:[#allocation172_spill] sm:$0xff] %v7372_v2 }
 0x770   : > { %v7375_v36 = vpop.permute.xlu0 %2950 }
 0x771   : > { %8875 = vst [vmem:[#allocation173_spill] sm:$0xff] %v7375_v36 }
 0x795   : > { %v5171_v35 = vpop.f32.mrf.mxu1 }
 0x796   : > { %2999 = vrot.lane.b32.xlu1 %v5171_v35, %s5798_s28 }
 0x797   : > { %v2820_v43 = vpop.f32.mrf.mxu1 }
 0x799   : > { %v5172_v60 = vpop.f32.mrf.mxu1 }
 0x79a   : > { %2995 = vrot.lane.b32.xlu1 %v2820_v43, %s5798_s28  ;;  %3001 = vrot.lane.b32.xlu0 %v5172_v60, %s5798_s28 }
 0x79b   : > { %v2823_v1 = vpop.f32.mrf.mxu1 }
 0x79d   : > { %v7379_v31 = vpop.xlane.xlu0 %2708 }
 0x79e   : > { %2997 = vrot.lane.b32.xlu0 %v2823_v1, %s5798_s28 }
 0x7a1   : > { %v7382_v17 = vpop.xlane.xlu0 %2726 }
 0x7a2   : > { %8876 = vst [vmem:[#allocation174_spill] sm:$0xff] %v7382_v17 }
 0x7a8   : > { %v7385_v30 = vpop.xlane.xlu0 %2734 }
 0x7a9   : > { %8878 = vst [vmem:[#allocation84_spill] sm:$0xff] %v7385_v30 }
 0x7ac   : > { %v2731_v9 = vpop.xlane.xlu0 %2730 }
 0x7ad   : > { %v2750_v23 = vadd.f32 %v2731_v9, %v2702_v40 }
 0x7af   : > { %v7393_v51 = vsel %vm3912_vm3, %v3975_v28, %v2750_v23  ;;  %v7423_v23 = vpop.permute.xlu1 %2895 }
 0x7b0   : > { %8882 = vst [vmem:[#allocation74_spill] sm:$0xff] %v7393_v51  ;;  %8884 = vst [vmem:[#allocation66_spill] sm:$0xff] %v7423_v23 }
 0x7d2   : > { %v5175_v59 = vpop.f32.mrf.mxu1 }
 0x7d3   : > { %3007 = vrot.lane.b32.xlu1 %v5175_v59, %s5798_s28  ;;  %v7427_v59 = vpop.permute.xlu1 %2905 }
 0x7d4   : > { %v2836_v20 = vpop.f32.mrf.mxu1  ;;  %8885 = vst [vmem:[#allocation175_spill] sm:$0xff] %v7427_v59 }
 0x7d6   : > { %v5176_v53 = vpop.f32.mrf.mxu1 }
 0x7d7   : > { %3003 = vrot.lane.b32.xlu1 %v2836_v20, %s5798_s28  ;;  %3009 = vrot.lane.b32.xlu0 %v5176_v53, %s5798_s28 }
 0x7d8   : > { %v2839_v29 = vpop.f32.mrf.mxu1 }
 0x7db   : > { %3005 = vrot.lane.b32.xlu0 %v2839_v29, %s5798_s28  ;;  %v7435_v29 = vpop.permute.xlu1 %2915 }
 0x7dc   : > { %8886 = vst [vmem:[#allocation176_spill] sm:$0xff] %v7435_v29 }
 0x7de   : > { %v5179_v13 = vpop.f32.mrf.mxu1 }
 0x7df   : > { %3015 = vrot.lane.b32.xlu1 %v5179_v13, %s5798_s28 }
 0x7e0   : > { %v2852_v35 = vpop.f32.mrf.mxu1 }
 0x7e2   : > { %v5180_v43 = vpop.f32.mrf.mxu1 }
 0x7e3   : > { %3011 = vrot.lane.b32.xlu1 %v2852_v35, %s5798_s28  ;;  %3017 = vrot.lane.b32.xlu0 %v5180_v43, %s5798_s28  ;;  %v7443_v35 = vpop.permute.xlu1 %2935 }
 0x7e4   : > { %v2855_v60 = vpop.f32.mrf.mxu1  ;;  %8887 = vst [vmem:[#allocation177_spill] sm:$0xff] %v7443_v35 }
 0x7e7   : > { %3013 = vrot.lane.b32.xlu0 %v2855_v60, %s5798_s28  ;;  %v8648_v60 = vmov 3  }
 0x7e8   : > { %5341 = vset.pattern.permute.xlu1 %v8648_v60  ;;  %5342 = vset.pattern.permute.xlu0 %v8648_v60 }
 0x7f2   : > { %v5183_v1 = vpop.f32.mrf.mxu1 }
 0x7f3   : > { %3023 = vrot.lane.b32.xlu1 %v5183_v1, %s5798_s28 }
 0x7f4   : > { %v2868_v44 = vpop.f32.mrf.mxu1 }
 0x7f6   : > { %v5184_v46 = vpop.f32.mrf.mxu1 }
 0x7f7   : > { %3019 = vrot.lane.b32.xlu1 %v2868_v44, %s5798_s28  ;;  %3025 = vrot.lane.b32.xlu0 %v5184_v46, %s5798_s28  ;;  %v7453_v44 = vpop.permute.xlu1 %2925 }
 0x7f8   : > { %v2871_v63 = vpop.f32.mrf.mxu1  ;;  %8888 = vst [vmem:[#allocation178_spill] sm:$0xff] %v7453_v44 }
 0x7fa   : > { %v7406_v56 = vpop.f32.mrf.mxu1 }
 0x7fb   : > { %3021 = vrot.lane.b32.xlu0 %v2871_v63, %s5798_s28  ;;  %v7461_v63 = vpop.permute.xlu1 %2955 }
 0x7fc   : > { %v7409_v49 = vpop.f32.mrf.mxu1  ;;  %8889 = vst [vmem:[#allocation179_spill] sm:$0xff] %v7461_v63 }
 0x7fe   : > { %v7411_v25 = vpop.f32.mrf.mxu1 }
 0x7ff   : > { %v7469_v2 = vpop.permute.xlu1 %2945 }
 0x800   : > { %v7413_v18 = vpop.f32.mrf.mxu1  ;;  %8890 = vst [vmem:[#allocation180_spill] sm:$0xff] %v7469_v2 }
 0x802   : > { %v7415_v40 = vpop.f32.mrf.mxu1 }
 0x803   : > { %v7473_v24 = vpop.xlane.xlu1 %2710 }
 0x804   : > { %v7419_v11 = vpop.f32.mrf.mxu1 }
 0x806   : > { %v7421_v9 = vpop.f32.mrf.mxu1 }
 0x807   : > { %v7475_v50 = vpop.xlane.xlu1 %2706 }
 0x808   : > { %v7425_v28 = vpop.f32.mrf.mxu1 }
 0x80a   : > { %v7429_v20 = vpop.f32.mrf.mxu1 }
 0x80b   : > { %v7477_v45 = vpop.xlane.xlu1 %2712 }
 0x80c   : > { %v7433_v53 = vpop.f32.mrf.mxu1  ;;  %v7497_v39 = vpop.permute.xlu0 %3001 }
 0x80d   : > { %8898 = vst [vmem:[#allocation188_spill] sm:$0xff] %v7497_v39 }
 0x80e   : > { %v7439_v13 = vpop.f32.mrf.mxu1 }
 0x80f   : > { %v7479_v32 = vpop.xlane.xlu1 %2718 }
 0x810   : > { %v7445_v43 = vpop.f32.mrf.mxu1  ;;  %v7501_v51 = vpop.permute.xlu0 %2997 }
 0x811   : > { %8900 = vst [vmem:[#allocation190_spill] sm:$0xff] %v7501_v51 }
 0x812   : > { %v7451_v1 = vpop.f32.mrf.mxu1 }
 0x813   : > { %v7481_v63 = vpop.xlane.xlu1 %2714 }
 0x814   : > { %v7457_v46 = vpop.f32.mrf.mxu1 }
 0x816   : > { %v7463_v36 = vpop.f32.mrf.mxu1 }
 0x817   : > { %v7483_v44 = vpop.xlane.xlu1 %2720 }
 0x818   : > { %v7467_v60 = vpop.f32.mrf.mxu1  ;;  %8891 = vst [vmem:[#allocation181_spill] sm:$0xff] %v7483_v44 }
 0x81a   : > { %3240 = vmax.xlane.f32.xlu0 %v7406_v56 }
 0x81b   : > { %3236 = vmax.xlane.f32.xlu1 %v7409_v49  ;;  %v7485_v35 = vpop.xlane.xlu1 %2716 }
 0x81c   : > { %8892 = vst [vmem:[#allocation182_spill] sm:$0xff] %v7485_v35  ;;  %v8924_v35 = vld [vmem:[#allocation157_spill] sm:$0xff] }
 0x81e   : > { %3238 = vmax.xlane.f32.xlu0 %v7413_v18 }
 0x81f   : > { %3242 = vmax.xlane.f32.xlu1 %v7411_v25  ;;  %v7487_v29 = vpop.xlane.xlu1 %2722 }
 0x820   : > { %8893 = vst [vmem:[#allocation183_spill] sm:$0xff] %v7487_v29 }
 0x822   : > { %3248 = vmax.xlane.f32.xlu0 %v7415_v40 }
 0x823   : > { %3250 = vmax.xlane.f32.xlu1 %v7421_v9  ;;  %v7489_v2 = vpop.xlane.xlu1 %2728 }
 0x824   : > { %8894 = vst [vmem:[#allocation184_spill] sm:$0xff] %v7489_v2  ;;  %v8916_v2 = vld [vmem:[#allocation155_spill] sm:$0xff] }
 0x826   : > { %3244 = vmax.xlane.f32.xlu0 %v7419_v11 }
 0x827   : > { %3246 = vmax.xlane.f32.xlu1 %v7425_v28  ;;  %v7491_v59 = vpop.xlane.xlu1 %2724 }
 0x828   : > { %8895 = vst [vmem:[#allocation185_spill] sm:$0xff] %v7491_v59 }
 0x82a   : > { %3256 = vmax.xlane.f32.xlu0 %v7429_v20 }
 0x82b   : > { %3258 = vmax.xlane.f32.xlu1 %v7439_v13  ;;  %v7493_v61 = vpop.xlane.xlu1 %2736 }
 0x82c   : > { %8896 = vst [vmem:[#allocation186_spill] sm:$0xff] %v7493_v61 }
 0x82e   : > { %3252 = vmax.xlane.f32.xlu0 %v7433_v53 }
 0x82f   : > { %3254 = vmax.xlane.f32.xlu1 %v7445_v43  ;;  %v7495_v22 = vpop.xlane.xlu1 %2732 }
 0x830   : > { %8897 = vst [vmem:[#allocation187_spill] sm:$0xff] %v7495_v22 }
 0x832   : > { %3264 = vmax.xlane.f32.xlu0 %v7451_v1 }
 0x833   : > { %3266 = vmax.xlane.f32.xlu1 %v7463_v36  ;;  %v7499_v23 = vpop.permute.xlu1 %2999 }
 0x834   : > { %8899 = vst [vmem:[#allocation189_spill] sm:$0xff] %v7499_v23 }
 0x836   : > { %3260 = vmax.xlane.f32.xlu0 %v7457_v46 }
 0x837   : > { %3262 = vmax.xlane.f32.xlu1 %v7467_v60  ;;  %v7503_v15 = vpop.permute.xlu1 %2995 }
 0x838   : > { %8901 = vst [vmem:[#allocation191_spill] sm:$0xff] %v7503_v15 }
 0x845   : > { %v7507_v30 = vpop.permute.xlu1 %3007 }
 0x846   : > { %8903 = vst [vmem:[#allocation193_spill] sm:$0xff] %v7507_v30 }
 0x849   : > { %v7505_v54 = vpop.permute.xlu0 %3009  ;;  %v7511_v21 = vpop.permute.xlu1 %3003 }
 0x84a   : > { %8902 = vst [vmem:[#allocation192_spill] sm:$0xff] %v7505_v54  ;;  %8905 = vst [vmem:[#allocation195_spill] sm:$0xff] %v7511_v21 }
 0x84d   : > { %v7509_v42 = vpop.permute.xlu0 %3005 }
 0x84e   : > { %8904 = vst [vmem:[#allocation194_spill] sm:$0xff] %v7509_v42 }
 0x851   : > { %v7515_v61 = vpop.permute.xlu1 %3015 }
 0x852   : > { %8907 = vst [vmem:[#allocation197_spill] sm:$0xff] %v7515_v61 }
 0x855   : > { %v7513_v59 = vpop.permute.xlu0 %3017  ;;  %v7519_v39 = vpop.permute.xlu1 %3011 }
 0x856   : > { %8906 = vst [vmem:[#allocation196_spill] sm:$0xff] %v7513_v59  ;;  %8909 = vst [vmem:[#allocation199_spill] sm:$0xff] %v7519_v39 }
 0x859   : > { %v7517_v22 = vpop.permute.xlu0 %3013 }
 0x85a   : > { %8908 = vst [vmem:[#allocation198_spill] sm:$0xff] %v7517_v22  ;;  %v8914_v22 = vld [vmem:[#allocation15_spill] sm:$0xff] }
 0x865   : > { %v7523_v51 = vpop.permute.xlu1 %3023 }
 0x866   : > { %8911 = vst [vmem:[#allocation201_spill] sm:$0xff] %v7523_v51 }
 0x869   : > { %v7521_v23 = vpop.permute.xlu0 %3025  ;;  %v7527_v54 = vpop.permute.xlu1 %3019 }
 0x86a   : > { %8910 = vst [vmem:[#allocation200_spill] sm:$0xff] %v7521_v23  ;;  %8913 = vst [vmem:[#allocation203_spill] sm:$0xff] %v7527_v54  ;;  %v8915_v23 = vld [vmem:[#allocation16_spill] sm:$0xff] }
 0x86d   : > { %v7525_v15 = vpop.permute.xlu0 %3021 }
 0x86e   : > { %8912 = vst [vmem:[#allocation202_spill] sm:$0xff] %v7525_v15 }
 0x8a3   : > { %v3241_v42 = vpop.xlane.xlu0 %3240 }
 0x8a4   : > { %v7530_v21 = vmax.f32 %v7011_v55, %v3241_v42  ;;  %v3237_v59 = vpop.xlane.xlu1 %3236 }
 0x8a5   : > { %v3268_v61 = vmax.f32 %v7024_v57, %v3237_v59 }
 0x8a6   : > { %v3932_v39 = vsel %vm3929_vm4, %v8914_v22, %v7530_v21  ;;  %3344 = vperm.xlu1 %5341, %v7530_v21  }
 0x8a7   : > { %3949 = vst.msk [vmem:[#allocation2 + $0x10] sm:$0xff] %vm579_vm1, %v3932_v39  ;;  %v3284_v15 = vsub.f32 %v7024_v57, %v3268_v61  ;;  %v3930_v54 = vsel %vm3929_vm4, %v8915_v23, %v3268_v61  ;;  %v3239_v51 = vpop.xlane.xlu0 %3238  ;;  %3334 = vperm.xlu0 %5342, %v3268_v61   ;;  %v8917_v57 = vld [vmem:[#allocation18_spill] sm:$0xff] }
 0x8a8   : > { %3947 = vst.msk [vmem:[#allocation2] sm:$0xff] %vm579_vm1, %v3930_v54  ;;  %v7543_v42 = vmax.f32 %v7075_v4, %v3239_v51  ;;  %v3243_v59 = vpop.xlane.xlu1 %3242  ;;  %v5748_v51 = vld [vmem:[#allocation2 + $0x38] sm:$0xff] }
 0x8a9   : > { %v3300_v30 = vmul.f32 1.442695, %v3284_v15  ;;  %v3271_v22 = vmax.f32 %v7037_v16, %v3243_v59 }
 0x8aa   : > { %v3931_v39 = vsel %vm3929_vm4, %v8916_v2, %v7543_v42  ;;  %v8918_v2 = vld [vmem:[#allocation156_spill] sm:$0xff] }
 0x8ab   : > { %3948 = vst.msk [vmem:[#allocation2 + $0x8] sm:$0xff] %vm579_vm1, %v3931_v39  ;;  %v3933_v23 = vsel %vm3929_vm4, %v8917_v57, %v3271_v22  ;;  %v3249_v8 = vpop.xlane.xlu0 %3248  ;;  %3349 = vperm.xlu1 %5341, %v3271_v22   ;;  %5612 = vpow2.f32 %v3300_v30  ;;  %v3287_v15 = vsub.f32 %v7037_v16, %v3271_v22  ;;  %v8919_v57 = vld [vmem:[#allocation154_spill] sm:$0xff]  ;;  %v5749_v22 = vld [vmem:[#allocation2 + $0x28] sm:$0xff] }
 0x8ac   : > { %3950 = vst.msk [vmem:[#allocation2 + $0x18] sm:$0xff] %vm579_vm1, %v3933_v23  ;;  %v7554_v54 = vmax.f32 %v7115_v47, %v3249_v8  ;;  %v3251_v61 = vpop.xlane.xlu1 %3250 }
 0x8ad   : > { %v3275_v59 = vmax.f32 %v5748_v51, %v3251_v61  ;;  %v3306_v30 = vmul.f32 1.442695, %v3287_v15  ;;  %v8920_v61 = vld [vmem:[#allocation23_spill] sm:$0xff] }
 0x8ae   : > { %v3936_v39 = vsel %vm3929_vm4, %v8918_v2, %v7554_v54  ;;  %v8922_v15 = vld [vmem:[#allocation67_spill] sm:$0xff] }
 0x8af   : > { %3953 = vst.msk [vmem:[#allocation2 + $0x30] sm:$0xff] %vm579_vm1, %v3936_v39  ;;  %v3937_v29 = vsel %vm3929_vm4, %v8919_v57, %v3275_v59  ;;  %v3245_v37 = vpop.xlane.xlu0 %3244  ;;  %3339 = vperm.xlu1 %5341, %v7543_v42   ;;  %v8921_v39 = vld [vmem:[#allocation17_spill] sm:$0xff]  ;;  %5614 = vpow2.f32 %v3306_v30 }
 0x8b0   : > { %3954 = vst.msk [vmem:[#allocation2 + $0x38] sm:$0xff] %vm579_vm1, %v3937_v29  ;;  %v7566_v8 = vmax.f32 %v7128_v7, %v3245_v37  ;;  %v3247_v16 = vpop.xlane.xlu1 %3246 }
 0x8b1   : > { %v3273_v23 = vmax.f32 %v5749_v22, %v3247_v16  ;;  %v8923_v16 = vld [vmem:[#allocation26_spill] sm:$0xff] }
 0x8b2   : > { %v3934_v2 = vsel %vm3929_vm4, %v8920_v61, %v7566_v8  ;;  %v3907_v14 = vsel %vm3895_vm2, %v8923_v16, %v8922_v15  ;;  %v3286_v61 = vsub.f32 %v7011_v55, %v7530_v21  ;;  %v8927_v16 = vld [vmem:[#allocation158_spill] sm:$0xff] }
 0x8b3   : > { %3951 = vst.msk [vmem:[#allocation2 + $0x20] sm:$0xff] %vm579_vm1, %v3934_v2  ;;  %v3935_v57 = vsel %vm3929_vm4, %v8921_v39, %v3273_v23  ;;  %v3257_v17 = vpop.xlane.xlu0 %3256  ;;  %3364 = vperm.xlu1 %5341, %v7554_v54   ;;  %v3924_v39 = vsel %vm3912_vm3, %v3907_v14, %v7160_v62  ;;  %v8925_v62 = vld [vmem:[#allocation68_spill] sm:$0xff]  ;;  %v8926_v14 = vld [vmem:[#allocation27_spill] sm:$0xff] }
 0x8b4   : > { %3952 = vst.msk [vmem:[#allocation2 + $0x28] sm:$0xff] %vm579_vm1, %v3935_v57  ;;  %v7577_v37 = vmax.f32 %v7138_v0, %v3257_v17  ;;  %v3259_v29 = vpop.xlane.xlu1 %3258  ;;  %v3291_v17 = vsub.f32 %v5748_v51, %v3275_v59  ;;  %v3905_v30 = vsel %vm3895_vm2, %v8926_v14, %v8925_v62  ;;  %v8928_v62 = vld [vmem:[#allocation69_spill] sm:$0xff] }
 0x8b5   : > { %v3279_v2 = vmax.f32 %v7157_v3, %v3259_v29  ;;  %v3922_v15 = vsel %vm3912_vm3, %v3905_v30, %v7176_v34  ;;  %v8929_v14 = vld [vmem:[#allocation25_spill] sm:$0xff] }
 0x8b6   : > { %v3940_v57 = vsel %vm3929_vm4, %v8924_v35, %v7577_v37  ;;  %v3304_v35 = vmul.f32 1.442695, %v3286_v61  ;;  %v7612_v61 = vld [vmem:[#allocation2 + $0x70] sm:$0xff] }
 0x8b7   : > { %3957 = vst.msk [vmem:[#allocation2 + $0x50] sm:$0xff] %vm579_vm1, %v3940_v57  ;;  %v3941_v10 = vsel %vm3929_vm4, %v3924_v39, %v3279_v2  ;;  %v3253_v44 = vpop.xlane.xlu0 %3252  ;;  %3354 = vperm.xlu1 %5341, %v7566_v8   ;;  %3389 = vperm.xlu0 %5342, %v3279_v2   ;;  %v3314_v39 = vmul.f32 1.442695, %v3291_v17  ;;  %v3285_v17 = vsub.f32 %v7075_v4, %v7543_v42  ;;  %v5751_v4 = vld [vmem:[#allocation2 + $0x60] sm:$0xff] }
 0x8b8   : > { %3958 = vst.msk [vmem:[#allocation2 + $0x58] sm:$0xff] %vm579_vm1, %v3941_v10  ;;  %v7595_v55 = vmax.f32 %v7148_v33, %v3253_v44  ;;  %v3255_v21 = vpop.xlane.xlu1 %3254  ;;  %v7601_v29 = vpop.eup %5612  ;;  %v3289_v44 = vsub.f32 %v5749_v22, %v3273_v23  ;;  %v3911_v22 = vsel %vm3895_vm2, %v8929_v14, %v8928_v62  ;;  %5616 = vpow2.f32 %v3304_v35  ;;  %v8932_v62 = vld [vmem:[#allocation24_spill] sm:$0xff] }
 0x8b9   : > { %v3277_v51 = vmax.f32 %v7173_v48, %v3255_v21  ;;  %v3928_v30 = vsel %vm3912_vm3, %v3911_v22, %v7203_v52  ;;  %5618 = vpow2.f32 %v3314_v39  ;;  %v3302_v39 = vmul.f32 1.442695, %v3285_v17  ;;  %v8933_v22 = vld [vmem:[#allocation160_spill] sm:$0xff] }
 0x8ba   : > { %v3938_v10 = vsel %vm3929_vm4, %v8927_v16, %v7595_v55 }
 0x8bb   : > { %3955 = vst.msk [vmem:[#allocation2 + $0x40] sm:$0xff] %vm579_vm1, %v3938_v10  ;;  %v3939_v57 = vsel %vm3929_vm4, %v3922_v15, %v3277_v51  ;;  %v3265_v6 = vpop.xlane.xlu0 %3264  ;;  %3369 = vperm.xlu1 %5341, %v3275_v59   ;;  %3655 = vperm.xlu0 %5342, %v7601_v29   ;;  %v8930_v15 = vld [vmem:[#allocation159_spill] sm:$0xff]  ;;  %v3295_v10 = vsub.f32 %v7157_v3, %v3279_v2 }
 0x8bc   : > { %3956 = vst.msk [vmem:[#allocation2 + $0x48] sm:$0xff] %vm579_vm1, %v3939_v57  ;;  %v7615_v34 = vmax.f32 %v7612_v61, %v3265_v6  ;;  %v3267_v21 = vpop.xlane.xlu1 %3266  ;;  %v3310_v6 = vmul.f32 1.442695, %v3289_v44  ;;  %v7636_v3 = vpop.eup %5614 }
 0x8bd   : > { %v3283_v59 = vmax.f32 %v7200_v38, %v3267_v21  ;;  %v8931_v21 = vld [vmem:[#allocation70_spill] sm:$0xff] }
 0x8be   : > { %v3944_v16 = vsel %vm3929_vm4, %v8930_v15, %v7615_v34  ;;  %v3909_v14 = vsel %vm3895_vm2, %v8932_v62, %v8931_v21  ;;  %5620 = vpow2.f32 %v3310_v6  ;;  %v3322_v15 = vmul.f32 1.442695, %v3295_v10 }
 0x8bf   : > { %3961 = vst.msk [vmem:[#allocation2 + $0x70] sm:$0xff] %vm579_vm1, %v3944_v16  ;;  %v3945_v35 = vsel %vm3929_vm4, %v3928_v30, %v3283_v59  ;;  %v3261_v57 = vpop.xlane.xlu0 %3260  ;;  %3359 = vperm.xlu1 %5341, %v3273_v23   ;;  %3379 = vperm.xlu0 %5342, %v3277_v51   ;;  %v3926_v2 = vsel %vm3912_vm3, %v3909_v14, %v7212_v26  ;;  %5622 = vpow2.f32 %v3302_v39 }
 0x8c0   : > { %3962 = vst.msk [vmem:[#allocation2 + $0x78] sm:$0xff] %vm579_vm1, %v3945_v35  ;;  %v3280_v42 = vmax.f32 %v5751_v4, %v3261_v57  ;;  %v3263_v52 = vpop.xlane.xlu1 %3262  ;;  %v3290_v23 = vsub.f32 %v7115_v47, %v7554_v54  ;;  %v3293_v16 = vsub.f32 %v7173_v48, %v3277_v51  ;;  %v3288_v47 = vsub.f32 %v7128_v7, %v7566_v8 }
 0x8c1   : > { %v3281_v44 = vmax.f32 %v7209_v12, %v3263_v52  ;;  %5624 = vpow2.f32 %v3322_v15  ;;  %v3299_v6 = vsub.f32 %v7200_v38, %v3283_v59  ;;  %v3294_v10 = vsub.f32 %v7138_v0, %v7577_v37 }
 0x8c2   : > { %v3942_v30 = vsel %vm3929_vm4, %v8933_v22, %v3280_v42  ;;  %v3312_v26 = vmul.f32 1.442695, %v3290_v23  ;;  %v3318_v54 = vmul.f32 1.442695, %v3293_v16  ;;  %v3308_v51 = vmul.f32 1.442695, %v3288_v47 }
 0x8c3   : > { %3959 = vst.msk [vmem:[#allocation2 + $0x60] sm:$0xff] %vm579_vm1, %v3942_v30  ;;  %v3943_v17 = vsel %vm3929_vm4, %v3926_v2, %v3281_v44  ;;  %3384 = vperm.xlu1 %5341, %v7577_v37   ;;  %3670 = vperm.xlu0 %5342, %v7636_v3   ;;  %v3330_v35 = vmul.f32 1.442695, %v3299_v6  ;;  %v3297_v57 = vsub.f32 %v7209_v12, %v3281_v44  ;;  %v3320_v38 = vmul.f32 1.442695, %v3294_v10 }
 0x8c4   : > { %3960 = vst.msk [vmem:[#allocation2 + $0x68] sm:$0xff] %vm579_vm1, %v3943_v17  ;;  %5626 = vpow2.f32 %v3312_v26  ;;  %v3292_v8 = vsub.f32 %v7148_v33, %v7595_v55  ;;  %v3298_v52 = vsub.f32 %v7612_v61, %v7615_v34  ;;  %v3296_v62 = vsub.f32 %v5751_v4, %v3280_v42 }
 0x8c5   : > { %v7654_v48 = vpop.eup %5616  ;;  %5628 = vpow2.f32 %v3318_v54  ;;  %v8934_v2 = vmov 1   ;;  %v8935_v30 = vmov 0  }
 0x8c6   : > { %v7660_v7 = vpop.eup %5618  ;;  %5630 = vpow2.f32 %v3308_v51  ;;  %v3316_v12 = vmul.f32 1.442695, %v3292_v8  ;;  %v3328_v21 = vmul.f32 1.442695, %v3298_v52  ;;  %v3324_v61 = vmul.f32 1.442695, %v3296_v62 }
 0x8c7   : > { %3374 = vperm.xlu1 %5341, %v7595_v55   ;;  %3409 = vperm.xlu0 %5342, %v3283_v59   ;;  %5632 = vpow2.f32 %v3330_v35  ;;  %v3326_v59 = vmul.f32 1.442695, %v3297_v57 }
 0x8c8   : > { %5634 = vpow2.f32 %v3320_v38 }
 0x8c9   : > { %5636 = vpow2.f32 %v3326_v59 }
 0x8ca   : > { %5638 = vpow2.f32 %v3316_v12 }
 0x8cb   : > { %3665 = vperm.xlu1 %5341, %v7654_v48   ;;  %3399 = vperm.xlu0 %5342, %v3281_v44   ;;  %v7666_v0 = vpop.eup %5620  ;;  %5640 = vpow2.f32 %v3328_v21 }
 0x8cc   : > { %v7668_v37 = vpop.eup %5622  ;;  %5642 = vpow2.f32 %v3324_v61 }
 0x8ce   : > { %v7674_v33 = vpop.eup %5624 }
 0x8cf   : > { %3404 = vperm.xlu1 %5341, %v7615_v34   ;;  %3690 = vperm.xlu0 %5342, %v7660_v7  }
 0x8d1   : > { %v7676_v55 = vpop.eup %5626 }
 0x8d2   : > { %v7679_v14 = vpop.eup %5628 }
 0x8d3   : > { %3660 = vperm.xlu1 %5341, %v7668_v37   ;;  %3680 = vperm.xlu0 %5342, %v7666_v0   ;;  %v7681_v39 = vpop.eup %5630 }
 0x8d4   : > { %v7685_v34 = vpop.eup %5632 }
 0x8d5   : > { %v7687_v44 = vpop.eup %5634 }
 0x8d6   : > { %v7691_v4 = vpop.eup %5636 }
 0x8d7   : > { %3394 = vperm.xlu1 %5341, %v3280_v42   ;;  %3710 = vperm.xlu0 %5342, %v7674_v33   ;;  %v7695_v42 = vpop.eup %5638 }
 0x8d8   : > { %v7699_v23 = vpop.eup %5640 }
 0x8d9   : > { %v7702_v22 = vpop.eup %5642 }
 0x8db   : > { %3685 = vperm.xlu1 %5341, %v7676_v55   ;;  %3700 = vperm.xlu0 %5342, %v7679_v14  }
 0x8df   : > { %3675 = vperm.xlu1 %5341, %v7681_v39   ;;  %3730 = vperm.xlu0 %5342, %v7685_v34  }
 0x8e3   : > { %3705 = vperm.xlu1 %5341, %v7687_v44   ;;  %3720 = vperm.xlu0 %5342, %v7691_v4  }
 0x8e7   : > { %3695 = vperm.xlu1 %5341, %v7695_v42   ;;  %5348 = vset.pattern.permute.xlu0 %v8934_v2 }
 0x8eb   : > { %3725 = vperm.xlu1 %5341, %v7699_v23  }
 0x8ef   : > { %3715 = vperm.xlu1 %5341, %v7702_v22  }
 0x8f3   : > { %5343 = vset.pattern.permute.xlu1 %v8935_v30 }
 0x921   : > { %v3345_v15 = vpop.permute.xlu1 %3344 }
 0x922   : > { %v3414_v16 = vsub.f32 %v7406_v56, %v3345_v15  ;;  %v3335_v17 = vpop.permute.xlu0 %3334 }
 0x923   : > { %v3412_v26 = vsub.f32 %v7409_v49, %v3335_v17 }
 0x924   : > { %v3432_v47 = vmul.f32 1.442695, %v3414_v16 }
 0x925   : > { %v3428_v54 = vmul.f32 1.442695, %v3412_v26 }
 0x926   : > { %5644 = vpow2.f32 %v3432_v47  ;;  %v3350_v6 = vpop.permute.xlu1 %3349 }
 0x927   : > { %v3415_v51 = vsub.f32 %v7411_v25, %v3350_v6  ;;  %5646 = vpow2.f32 %v3428_v54 }
 0x929   : > { %v3434_v10 = vmul.f32 1.442695, %v3415_v51 }
 0x92a   : > { %v3340_v35 = vpop.permute.xlu1 %3339 }
 0x92b   : > { %v3413_v57 = vsub.f32 %v7413_v18, %v3340_v35  ;;  %5648 = vpow2.f32 %v3434_v10 }
 0x92d   : > { %v3430_v38 = vmul.f32 1.442695, %v3413_v57 }
 0x92e   : > { %v3365_v8 = vpop.permute.xlu1 %3364 }
 0x92f   : > { %5650 = vpow2.f32 %v3430_v38  ;;  %v3418_v56 = vsub.f32 %v7415_v40, %v3365_v8 }
 0x931   : > { %v3440_v59 = vmul.f32 1.442695, %v3418_v56 }
 0x932   : > { %v3390_v12 = vpop.permute.xlu0 %3389  ;;  %v3355_v49 = vpop.permute.xlu1 %3354 }
 0x933   : > { %v5645_v52 = vpop.eup %5644  ;;  %5652 = vpow2.f32 %v3440_v59  ;;  %v3416_v21 = vsub.f32 %v7419_v11, %v3355_v49  ;;  %v3423_v8 = vsub.f32 %v7439_v13, %v3390_v12 }
 0x934   : > { %3480 = vadd.xlane.f32.xlu1 %v5645_v52  ;;  %v5647_v15 = vpop.eup %5646 }
 0x935   : > { %v3436_v25 = vmul.f32 1.442695, %v3416_v21  ;;  %v3450_v21 = vmul.f32 1.442695, %v3423_v8 }
 0x936   : > { %v7712_v62 = vpop.permute.xlu0 %3655  ;;  %v3370_v61 = vpop.permute.xlu1 %3369 }
 0x937   : > { %v3419_v18 = vsub.f32 %v7421_v9, %v3370_v61  ;;  %5654 = vpow2.f32 %v3436_v25 }
 0x938   : > { %3476 = vadd.xlane.f32.xlu1 %v5647_v15  ;;  %v5649_v26 = vpop.eup %5648 }
 0x939   : > { %v3442_v16 = vmul.f32 1.442695, %v3419_v18  ;;  %v3525_v10 = vpack.c.bf16 %v5649_v26, %v5645_v52 }
 0x93a   : > { %v3380_v17 = vpop.permute.xlu0 %3379  ;;  %v3360_v40 = vpop.permute.xlu1 %3359 }
 0x93b   : > { %5656 = vpow2.f32 %v3442_v16  ;;  %v3417_v47 = vsub.f32 %v7425_v28, %v3360_v40  ;;  %v3421_v35 = vsub.f32 %v7445_v43, %v3380_v17 }
 0x93c   : > { %v5651_v54 = vpop.eup %5650  ;;  %3482 = vadd.xlane.f32.xlu1 %v5649_v26 }
 0x93d   : > { %v3438_v11 = vmul.f32 1.442695, %v3417_v47  ;;  %3478 = vadd.xlane.f32.xlu0 %v5651_v54  ;;  %v3524_v6 = vpack.c.bf16 %v5651_v54, %v5647_v15  ;;  %v3446_v59 = vmul.f32 1.442695, %v3421_v35 }
 0x93e   : > { %v3385_v51 = vpop.permute.xlu1 %3384  ;;  %v7717_v57 = vpop.permute.xlu0 %3670 }
 0x93f   : > { %v3422_v9 = vsub.f32 %v7429_v20, %v3385_v51  ;;  %5233 = vmatprep.mubr.bf16.mxu0 %v3524_v6  ;;  %5658 = vpow2.f32 %v3438_v11 }
 0x940   : > { %v5653_v38 = vpop.eup %5652  ;;  %5234 = vmatmul.mubr.bf16.vlgmr.msra.gmra.mxu0 %v3525_v10 }
 0x941   : > { %v3448_v28 = vmul.f32 1.442695, %v3422_v9  ;;  %3488 = vadd.xlane.f32.xlu1 %v5653_v38 }
 0x942   : > { %v3375_v56 = vpop.permute.xlu1 %3374  ;;  %v3410_v43 = vpop.permute.xlu0 %3409 }
 0x943   : > { %5660 = vpow2.f32 %v3448_v28  ;;  %v3420_v49 = vsub.f32 %v7433_v53, %v3375_v56  ;;  %v3427_v18 = vsub.f32 %v7463_v36, %v3410_v43 }
 0x944   : > { %v5655_v52 = vpop.eup %5654  ;;  %5662 = vpow2.f32 %v3446_v59 }
 0x945   : > { %v3444_v25 = vmul.f32 1.442695, %v3420_v49  ;;  %3484 = vadd.xlane.f32.xlu1 %v5655_v52  ;;  %v3458_v11 = vmul.f32 1.442695, %v3427_v18 }
 0x946   : > { %v7722_v61 = vpop.permute.xlu1 %3665  ;;  %v3400_v12 = vpop.permute.xlu0 %3399 }
 0x947   : > { %5664 = vpow2.f32 %v3444_v25  ;;  %v3425_v17 = vsub.f32 %v7467_v60, %v3400_v12 }
 0x948   : > { %v5657_v20 = vpop.eup %5656  ;;  %5666 = vpow2.f32 %v3450_v21 }
 0x949   : > { %3490 = vadd.xlane.f32.xlu1 %v5657_v20  ;;  %v3527_v47 = vpack.c.bf16 %v5657_v20, %v5653_v38  ;;  %v3454_v6 = vmul.f32 1.442695, %v3425_v17 }
 0x94a   : > { %v3405_v13 = vpop.permute.xlu1 %3404  ;;  %v7734_v43 = vpop.permute.xlu0 %3690 }
 0x94b   : > { %v3426_v15 = vsub.f32 %v7451_v1, %v3405_v13 }
 0x94c   : > { %v5659_v16 = vpop.eup %5658 }
 0x94d   : > { %v3456_v53 = vmul.f32 1.442695, %v3426_v15  ;;  %3486 = vadd.xlane.f32.xlu1 %v5659_v16  ;;  %v3526_v26 = vpack.c.bf16 %v5659_v16, %v5655_v52  ;;  %v710_v16 = vld [vmem:[#allocation3 + $0x10] sm:$0xff] }
 0x94e   : > { %v7727_v40 = vpop.permute.xlu1 %3660  ;;  %v7738_v20 = vpop.permute.xlu0 %3680 }
 0x94f   : > { %5668 = vpow2.f32 %v3456_v53  ;;  %5237 = vmatprep.mubr.bf16.mxu0 %v3526_v26  ;;  %v8942_v53 = vld [vmem:[#allocation83_spill] sm:$0xff]  ;;  %v2692_v26 = vmul.f32 %v7221_v58, %v710_v16 }
 0x950   : > { %v5661_v54 = vpop.eup %5660  ;;  %5238 = vmatmul.mubr.bf16.gmra.mxu0 %v3527_v47  ;;  %5670 = vpow2.f32 %v3458_v11  ;;  %v1922_v17 = vmul.f32 %v8942_v53, %v710_v16  ;;  %v8950_v53 = vld [vmem:[#allocation129_spill] sm:$0xff] }
 0x951   : > { %3496 = vadd.xlane.f32.xlu0 %v5661_v54  ;;  %v5663_v36 = vpop.eup %5662  ;;  %5672 = vpow2.f32 %v3454_v6  ;;  %v8945_v6 = vld [vmem:[#allocation127_spill] sm:$0xff] }
 0x952   : > { %v3395_v51 = vpop.permute.xlu1 %3394  ;;  %v7742_v12 = vpop.permute.xlu0 %3710 }
 0x953   : > { %v3424_v1 = vsub.f32 %v7457_v46, %v3395_v51  ;;  %v1970_v51 = vadd.f32 %v8945_v6, %v1922_v17 }
 0x954   : > { %v5665_v10 = vpop.eup %5664 }
 0x955   : > { %v3452_v35 = vmul.f32 1.442695, %v3424_v1  ;;  %v5667_v60 = vpop.eup %5666  ;;  %3492 = vadd.xlane.f32.xlu1 %v5665_v10  ;;  %v3528_v9 = vpack.c.bf16 %v5663_v36, %v5665_v10  ;;  %v708_v1 = vld [vmem:[#allocation3] sm:$0xff]  ;;  %v8946_v10 = vld [vmem:[#allocation58_spill] sm:$0xff] }
 0x956   : > { %v3529_v8 = vpack.c.bf16 %v5667_v60, %v5661_v54  ;;  %v7730_v52 = vpop.permute.xlu1 %3685  ;;  %v7746_v18 = vpop.permute.xlu0 %3700  ;;  %v8944_v54 = vld [vmem:[#allocation22_spill] sm:$0xff] }
 0x957   : > { %5674 = vpow2.f32 %v3452_v35  ;;  %5241 = vmatprep.mubr.bf16.mxu0 %v3528_v9  ;;  %8936 = vst [vmem:[#allocation15_spill] sm:$0xff] %v7730_v52  ;;  %8941 = vst [vmem:[#allocation154_spill] sm:$0xff] %v7746_v18  ;;  %v1192_v11 = vmul.f32 %v8944_v54, %v710_v16  ;;  %v9136_v18 = vld [vmem:[#allocation152_spill] sm:$0xff] }
 0x958   : > { %5242 = vmatmul.mubr.bf16.gmra.mxu0 %v3529_v8 }
 0x959   : > { %3498 = vadd.xlane.f32.xlu1 %v5667_v60  ;;  %v1240_v35 = vadd.f32 %v8946_v10, %v1192_v11  ;;  %v8947_v60 = vld [vmem:[#allocation81_spill] sm:$0xff]  ;;  %v8951_v11 = vld [vmem:[#allocation50_spill] sm:$0xff] }
 0x95a   : > { %v7732_v21 = vpop.permute.xlu1 %3675  ;;  %v1920_v9 = vmul.f32 %v8947_v60, %v708_v1  ;;  %v7757_v8 = vpop.permute.xlu0 %3730  ;;  %v709_v10 = vld [vmem:[#allocation3 + $0x8] sm:$0xff] }
 0x95b   : > { %8937 = vst [vmem:[#allocation16_spill] sm:$0xff] %v7732_v21  ;;  %8948 = vst [vmem:[#allocation17_spill] sm:$0xff] %v7757_v8  ;;  %v8952_v60 = vld [vmem:[#allocation85_spill] sm:$0xff]  ;;  %v9131_v21 = vld [vmem:[#allocation136_spill] sm:$0xff] }
 0x95c   : > { %v5669_v38 = vpop.eup %5668  ;;  %v1968_v17 = vadd.f32 %v8950_v53, %v1920_v9  ;;  %v8955_v9 = vld [vmem:[#allocation131_spill] sm:$0xff]  ;;  %v9132_v8 = vld [vmem:[#allocation150_spill] sm:$0xff] }
 0x95d   : > { %3504 = vadd.xlane.f32.xlu0 %v5669_v38  ;;  %3494 = vadd.xlane.f32.xlu1 %v5663_v36  ;;  %v5671_v28 = vpop.eup %5670  ;;  %v2740_v36 = vadd.f32 %v7473_v24, %v2692_v26  ;;  %v8958_v53 = vld [vmem:[#allocation71_spill] sm:$0xff] }
 0x95e   : > { %v5673_v56 = vpop.eup %5672  ;;  %v3531_v49 = vpack.c.bf16 %v5671_v28, %v5669_v38  ;;  %v7736_v25 = vpop.permute.xlu1 %3705  ;;  %v3462_v38 = vmul.f32 %v7654_v48, %v710_v16  ;;  %v3460_v16 = vmul.f32 %v7601_v29, %v708_v1  ;;  %v1191_v29 = vmul.f32 %v8958_v53, %v709_v10 }
 0x95f   : > { %8938 = vst [vmem:[#allocation155_spill] sm:$0xff] %v7736_v25  ;;  %v9127_v25 = vld [vmem:[#allocation132_spill] sm:$0xff] }
 0x961   : > { %3506 = vadd.xlane.f32.xlu1 %v5671_v28  ;;  %v2690_v28 = vmul.f32 %v7248_v19, %v708_v1 }
 0x962   : > { %v7740_v13 = vpop.permute.xlu1 %3695 }
 0x963   : > { %8939 = vst [vmem:[#allocation18_spill] sm:$0xff] %v7740_v13  ;;  %v2738_v26 = vadd.f32 %v7475_v50, %v2690_v28  ;;  %v8956_v28 = vld [vmem:[#allocation8_spill] sm:$0xff]  ;;  %v9126_v13 = vld [vmem:[#allocation115_spill] sm:$0xff] }
 0x964   : > { %v5675_v46 = vpop.eup %5674 }
 0x965   : > { %3500 = vadd.xlane.f32.xlu0 %v5675_v46  ;;  %v3530_v59 = vpack.c.bf16 %v5673_v56, %v5675_v46  ;;  %3502 = vadd.xlane.f32.xlu1 %v5673_v56  ;;  %v8949_v56 = vld [vmem:[#allocation28_spill] sm:$0xff] }
 0x966   : > { %v7744_v15 = vpop.permute.xlu1 %3725  ;;  %v1190_v46 = vmul.f32 %v8949_v56, %v708_v1  ;;  %v8953_v56 = vld [vmem:[#allocation19_spill] sm:$0xff]  ;;  %v714_v1 = vld [vmem:[#allocation3 + $0x30] sm:$0xff] }
 0x967   : > { %5245 = vmatprep.mubr.bf16.mxu0 %v3530_v59  ;;  %8940 = vst [vmem:[#allocation156_spill] sm:$0xff] %v7744_v15  ;;  %v711_v59 = vld [vmem:[#allocation3 + $0x18] sm:$0xff]  ;;  %v8954_v15 = vld [vmem:[#allocation78_spill] sm:$0xff] }
 0x968   : > { %5246 = vmatmul.mubr.bf16.gmra.mxu0 %v3531_v49  ;;  %v3965_v49 = vsel %vm3895_vm2, %v1240_v35, %v1970_v51  ;;  %v1238_v6 = vadd.f32 %v8951_v11, %v1190_v46  ;;  %v1923_v48 = vmul.f32 %v8952_v60, %v711_v59  ;;  %v1921_v51 = vmul.f32 %v8954_v15, %v709_v10  ;;  %v7777_v46 = vpop.permute.xlu0 %3720  ;;  %v8960_v11 = vld [vmem:[#allocation51_spill] sm:$0xff] }
 0x969   : > { %v3981_v24 = vsel %vm3912_vm3, %v3965_v49, %v2740_v36  ;;  %v2693_v35 = vmul.f32 %v7255_v5, %v711_v59  ;;  %8957 = vst [vmem:[#allocation67_spill] sm:$0xff] %v7777_v46  ;;  %v9130_v46 = vld [vmem:[#allocation149_spill] sm:$0xff] }
 0x96a   : > { %v7750_v47 = vpop.permute.xlu1 %3715  ;;  %v3963_v50 = vsel %vm3895_vm2, %v1238_v6, %v1968_v17 }
 0x96b   : > { %8943 = vst [vmem:[#allocation23_spill] sm:$0xff] %v7750_v47  ;;  %v1193_v47 = vmul.f32 %v8953_v56, %v711_v59  ;;  %v3979_v15 = vsel %vm3912_vm3, %v3963_v50, %v2738_v26  ;;  %v2741_v5 = vadd.f32 %v7477_v45, %v2693_v35  ;;  %v8963_v26 = vld [vmem:[#allocation72_spill] sm:$0xff] }
 0x96c   : > { %v1196_v50 = vmul.f32 %v8963_v26, %v714_v1  ;;  %v8969_v26 = vld [vmem:[#allocation62_spill] sm:$0xff] }
 0x96d   : > { %v1241_v60 = vadd.f32 %v8960_v11, %v1193_v47  ;;  %v2696_v47 = vmul.f32 %v7233_v27, %v714_v1  ;;  %v8966_v11 = vld [vmem:[#allocation86_spill] sm:$0xff] }
 0x96f   : > { %v2744_v53 = vadd.f32 %v7479_v32, %v2696_v47 }
 0x9bd   : > { %v3481_v58 = vpop.xlane.xlu1 %3480 }
 0x9be   : > { %v3510_v54 = vadd.f32 %v3481_v58, %v3462_v38  ;;  %v1971_v38 = vadd.f32 %v8955_v9, %v1923_v48  ;;  %v2691_v58 = vmul.f32 %v8956_v28, %v709_v10  ;;  %v3463_v48 = vmul.f32 %v7636_v3, %v711_v59  ;;  %v8964_v3 = vld [vmem:[#allocation119_spill] sm:$0xff] }
 0x9c0   : > { %v3997_v19 = vsel %vm3929_vm4, %v3981_v24, %v3510_v54  ;;  %v8959_v54 = vld [vmem:[#allocation117_spill] sm:$0xff]  ;;  %v2739_v17 = vadd.f32 %v7379_v31, %v2691_v58  ;;  %v3966_v45 = vsel %vm3895_vm2, %v1241_v60, %v1971_v38 }
 0x9c1   : > { %4013 = vst.msk [vmem:[#allocation3 + $0x10] sm:$0xff] %vm579_vm1, %v3997_v19  ;;  %v3477_v36 = vpop.xlane.xlu1 %3476  ;;  %v1969_v24 = vadd.f32 %v8959_v54, %v1921_v51  ;;  %v8961_v19 = vld [vmem:[#allocation60_spill] sm:$0xff]  ;;  %v3461_v51 = vmul.f32 %v7668_v37, %v709_v10  ;;  %v3982_v58 = vsel %vm3912_vm3, %v3966_v45, %v2741_v5  ;;  %v8965_v54 = vld [vmem:[#allocation61_spill] sm:$0xff] }
 0x9c2   : > { %v3508_v49 = vadd.f32 %v3477_v36, %v3460_v16  ;;  %v1239_v56 = vadd.f32 %v8961_v19, %v1191_v29  ;;  %v8962_v16 = vld [vmem:[#allocation87_spill] sm:$0xff]  ;;  %v1244_v38 = vadd.f32 %v8965_v54, %v1196_v50  ;;  %v8970_v45 = vld [vmem:[#allocation88_spill] sm:$0xff] }
 0x9c3   : > { %v1926_v36 = vmul.f32 %v8962_v16, %v714_v1 }
 0x9c4   : > { %v3995_v6 = vsel %vm3929_vm4, %v3979_v15, %v3508_v49  ;;  %v3964_v28 = vsel %vm3895_vm2, %v1239_v56, %v1969_v24  ;;  %v712_v15 = vld [vmem:[#allocation3 + $0x20] sm:$0xff]  ;;  %v3466_v24 = vmul.f32 %v7676_v55, %v714_v1  ;;  %v8968_v56 = vld [vmem:[#allocation121_spill] sm:$0xff] }
 0x9c5   : > { %4011 = vst.msk [vmem:[#allocation3] sm:$0xff] %vm579_vm1, %v3995_v6  ;;  %v3483_v9 = vpop.xlane.xlu1 %3482  ;;  %v1974_v59 = vadd.f32 %v8964_v3, %v1926_v36  ;;  %v3980_v29 = vsel %vm3912_vm3, %v3964_v28, %v2739_v17  ;;  %v1924_v5 = vmul.f32 %v8966_v11, %v712_v15  ;;  %v2694_v17 = vmul.f32 %v7228_v41, %v712_v15  ;;  %v8972_v3 = vld [vmem:[#allocation11_spill] sm:$0xff] }
 0x9c6   : > { %v3511_v31 = vadd.f32 %v3483_v9, %v3463_v48  ;;  %v3479_v35 = vpop.xlane.xlu0 %3478  ;;  %v8967_v48 = vld [vmem:[#allocation21_spill] sm:$0xff]  ;;  %v3464_v41 = vmul.f32 %v7681_v39, %v712_v15 }
 0x9c7   : > { %v3509_v49 = vadd.f32 %v3479_v35, %v3461_v51  ;;  %v3969_v60 = vsel %vm3895_vm2, %v1244_v38, %v1974_v59  ;;  %v1194_v19 = vmul.f32 %v8967_v48, %v712_v15  ;;  %v1972_v16 = vadd.f32 %v8968_v56, %v1924_v5  ;;  %v715_v51 = vld [vmem:[#allocation3 + $0x38] sm:$0xff]  ;;  %v8975_v38 = vld [vmem:[#allocation52_spill] sm:$0xff]  ;;  %v8977_v5 = vld [vmem:[#allocation162_spill] sm:$0xff] }
 0x9c8   : > { %v4048_v37 = vld [vmem:[#allocation3 + $0x10] sm:$0xff]  ;;  %v3998_v10 = vsel %vm3929_vm4, %v3982_v58, %v3511_v31  ;;  %v3985_v36 = vsel %vm3912_vm3, %v3969_v60, %v2744_v53  ;;  %v2742_v55 = vadd.f32 %v7481_v63, %v2694_v17  ;;  %v1927_v47 = vmul.f32 %v8970_v45, %v715_v51  ;;  %v8971_v31 = vld [vmem:[#allocation161_spill] sm:$0xff]  ;;  %v8979_v56 = vld [vmem:[#allocation135_spill] sm:$0xff] }
 0x9c9   : > { %5676 = vrcp.f32 %v4048_v37  ;;  %4014 = vst.msk [vmem:[#allocation3 + $0x18] sm:$0xff] %vm579_vm1, %v3998_v10  ;;  %v3996_v27 = vsel %vm3929_vm4, %v3980_v29, %v3509_v49  ;;  %v1242_v50 = vadd.f32 %v8969_v26, %v1194_v19  ;;  %v2697_v35 = vmul.f32 %v8971_v31, %v715_v51  ;;  %v8973_v58 = vld [vmem:[#allocation133_spill] sm:$0xff]  ;;  %v718_v17 = vld [vmem:[#allocation3 + $0x50] sm:$0xff] }
 0x9ca   : > { %4012 = vst.msk [vmem:[#allocation3 + $0x8] sm:$0xff] %vm579_vm1, %v3996_v27  ;;  %v3489_v32 = vpop.xlane.xlu1 %3488  ;;  %v1197_v59 = vmul.f32 %v8972_v3, %v715_v51  ;;  %v1975_v49 = vadd.f32 %v8973_v58, %v1927_v47  ;;  %v713_v29 = vld [vmem:[#allocation3 + $0x28] sm:$0xff]  ;;  %v3467_v15 = vmul.f32 %v7660_v7, %v715_v51  ;;  %v8985_v58 = vld [vmem:[#allocation124_spill] sm:$0xff] }
 0x9cb   : > { %v3514_v6 = vadd.f32 %v3489_v32, %v3466_v24  ;;  %v3967_v63 = vsel %vm3895_vm2, %v1242_v50, %v1972_v16  ;;  %v8974_v10 = vld [vmem:[#allocation181_spill] sm:$0xff]  ;;  %v2695_v32 = vmul.f32 %v8977_v5, %v713_v29  ;;  %v8981_v50 = vld [vmem:[#allocation182_spill] sm:$0xff] }
 0x9cc   : > { %v4046_v9 = vld [vmem:[#allocation3] sm:$0xff]  ;;  %v3983_v37 = vsel %vm3912_vm3, %v3967_v63, %v2742_v55  ;;  %v2745_v54 = vadd.f32 %v8974_v10, %v2697_v35  ;;  %v1245_v27 = vadd.f32 %v8975_v38, %v1197_v59  ;;  %v8976_v24 = vld [vmem:[#allocation89_spill] sm:$0xff]  ;;  %v8987_v38 = vld [vmem:[#allocation63_spill] sm:$0xff] }
 0x9cd   : > { %5678 = vrcp.f32 %v4046_v9  ;;  %v4001_v1 = vsel %vm3929_vm4, %v3985_v36, %v3514_v6  ;;  %v1925_v11 = vmul.f32 %v8976_v24, %v713_v29  ;;  %v8978_v6 = vld [vmem:[#allocation20_spill] sm:$0xff]  ;;  %v2743_v7 = vadd.f32 %v8981_v50, %v2695_v32  ;;  %v8982_v45 = vld [vmem:[#allocation53_spill] sm:$0xff]  ;;  %v8993_v50 = vld [vmem:[#allocation183_spill] sm:$0xff] }
 0x9ce   : > { %4017 = vst.msk [vmem:[#allocation3 + $0x30] sm:$0xff] %vm579_vm1, %v4001_v1  ;;  %v3485_v28 = vpop.xlane.xlu1 %3484  ;;  %v1195_v48 = vmul.f32 %v8978_v6, %v713_v29  ;;  %v3970_v19 = vsel %vm3895_vm2, %v1245_v27, %v1975_v49  ;;  %v8980_v55 = vld [vmem:[#allocation80_spill] sm:$0xff]  ;;  %v8984_v3 = vld [vmem:[#allocation73_spill] sm:$0xff] }
 0x9cf   : > { %v3512_v53 = vadd.f32 %v3485_v28, %v3464_v41  ;;  %v1973_v16 = vadd.f32 %v8979_v56, %v1925_v11  ;;  %v1930_v1 = vmul.f32 %v8980_v55, %v718_v17  ;;  %v3986_v26 = vsel %vm3912_vm3, %v3970_v19, %v2745_v54  ;;  %v8983_v41 = vld [vmem:[#allocation9_spill] sm:$0xff]  ;;  %v716_v24 = vld [vmem:[#allocation3 + $0x40] sm:$0xff] }
 0x9d0   : > { %v4049_v36 = vld [vmem:[#allocation3 + $0x18] sm:$0xff]  ;;  %v1243_v47 = vadd.f32 %v8982_v45, %v1195_v48  ;;  %v2700_v31 = vmul.f32 %v8983_v41, %v718_v17  ;;  %v3465_v28 = vmul.f32 %v7666_v0, %v713_v29  ;;  %v1200_v59 = vmul.f32 %v8984_v3, %v718_v17  ;;  %v8989_v48 = vld [vmem:[#allocation10_spill] sm:$0xff] }
 0x9d1   : > { %v3999_v39 = vsel %vm3929_vm4, %v3983_v37, %v3512_v53  ;;  %v1978_v49 = vadd.f32 %v8985_v58, %v1930_v1  ;;  %5680 = vrcp.f32 %v4049_v36  ;;  %v8986_v37 = vld [vmem:[#allocation174_spill] sm:$0xff]  ;;  %v3470_v29 = vmul.f32 %v7687_v44, %v718_v17  ;;  %v8990_v44 = vld [vmem:[#allocation13_spill] sm:$0xff]  ;;  %v8992_v1 = vld [vmem:[#allocation75_spill] sm:$0xff] }
 0x9d2   : > { %4015 = vst.msk [vmem:[#allocation3 + $0x20] sm:$0xff] %vm579_vm1, %v3999_v39  ;;  %v3491_v60 = vpop.xlane.xlu1 %3490  ;;  %v3968_v53 = vsel %vm3895_vm2, %v1243_v47, %v1973_v16  ;;  %v2748_v10 = vadd.f32 %v8986_v37, %v2700_v31  ;;  %v1248_v27 = vadd.f32 %v8987_v38, %v1200_v59  ;;  %v719_v39 = vld [vmem:[#allocation3 + $0x58] sm:$0xff]  ;;  %v2698_v19 = vmul.f32 %v8989_v48, %v716_v24  ;;  %v722_v16 = vld [vmem:[#allocation3 + $0x70] sm:$0xff]  ;;  %v8994_v47 = vld [vmem:[#allocation64_spill] sm:$0xff] }
 0x9d3   : > { %v3515_v9 = vadd.f32 %v3491_v60, %v3467_v15  ;;  %v3984_v0 = vsel %vm3912_vm3, %v3968_v53, %v2743_v7  ;;  %v8988_v15 = vld [vmem:[#allocation90_spill] sm:$0xff]  ;;  %v1198_v17 = vmul.f32 %v8990_v44, %v716_v24  ;;  %v8995_v31 = vld [vmem:[#allocation91_spill] sm:$0xff]  ;;  %v3468_v3 = vmul.f32 %v7695_v42, %v716_v24  ;;  %v717_v38 = vld [vmem:[#allocation3 + $0x48] sm:$0xff] }
 0x9d4   : > { %v1928_v5 = vmul.f32 %v8988_v15, %v716_v24  ;;  %v3973_v6 = vsel %vm3895_vm2, %v1248_v27, %v1978_v49  ;;  %v8991_v36 = vld [vmem:[#allocation126_spill] sm:$0xff]  ;;  %v2746_v7 = vadd.f32 %v8993_v50, %v2698_v19  ;;  %v8997_v49 = vld [vmem:[#allocation76_spill] sm:$0xff]  ;;  %v8998_v53 = vld [vmem:[#allocation163_spill] sm:$0xff] }
 0x9d5   : > { %v4002_v35 = vsel %vm3929_vm4, %v3986_v26, %v3515_v9  ;;  %v3989_v55 = vsel %vm3912_vm3, %v3973_v6, %v2748_v10  ;;  %v1201_v26 = vmul.f32 %v8992_v1, %v719_v39  ;;  %v1246_v41 = vadd.f32 %v8994_v47, %v1198_v17  ;;  %v8996_v59 = vld [vmem:[#allocation54_spill] sm:$0xff]  ;;  %v9000_v27 = vld [vmem:[#allocation137_spill] sm:$0xff]  ;;  %v9004_v48 = vld [vmem:[#allocation92_spill] sm:$0xff] }
 0x9d6   : > { %v7835_v51 = vpop.eup %5676  ;;  %4018 = vst.msk [vmem:[#allocation3 + $0x38] sm:$0xff] %vm579_vm1, %v4002_v35  ;;  %v3487_v63 = vpop.xlane.xlu1 %3486  ;;  %v1976_v9 = vadd.f32 %v8991_v36, %v1928_v5  ;;  %v1931_v35 = vmul.f32 %v8995_v31, %v719_v39  ;;  %v2701_v37 = vmul.f32 %v8998_v53, %v719_v39  ;;  %v9001_v5 = vmov 2   ;;  %v9002_v42 = vld [vmem:[#allocation82_spill] sm:$0xff]  ;;  %v9007_v1 = vld [vmem:[#allocation65_spill] sm:$0xff]  ;;  %v9008_v50 = vld [vmem:[#allocation128_spill] sm:$0xff] }
 0x9d7   : > { %4090 = vperm.xlu1 %5343, %v7835_v51   ;;  %v3513_v54 = vadd.f32 %v3487_v63, %v3465_v28  ;;  %v4047_v28 = vld [vmem:[#allocation3 + $0x8] sm:$0xff]  ;;  %v1249_v58 = vadd.f32 %v8996_v59, %v1201_v26  ;;  %v1204_v63 = vmul.f32 %v8997_v49, %v722_v16  ;;  %v1934_v24 = vmul.f32 %v9002_v42, %v722_v16  ;;  %v9011_v49 = vld [vmem:[#allocation84_spill] sm:$0xff] }
 0x9d8   : > { %5682 = vrcp.f32 %v4047_v28  ;;  %v1929_v19 = vmul.f32 %v9004_v48, %v717_v38  ;;  %v3471_v36 = vmul.f32 %v7674_v33, %v719_v39  ;;  %v9012_v53 = vld [vmem:[#allocation185_spill] sm:$0xff] }
 0x9d9   : > { %v4000_v32 = vsel %vm3929_vm4, %v3984_v0, %v3513_v54  ;;  %v8999_v54 = vmov 3   ;;  %v1979_v0 = vadd.f32 %v9000_v27, %v1931_v35  ;;  %v1252_v26 = vadd.f32 %v9007_v1, %v1204_v63  ;;  %v723_v35 = vld [vmem:[#allocation3 + $0x78] sm:$0xff]  ;;  %v9016_v48 = vld [vmem:[#allocation165_spill] sm:$0xff] }
 0x9da   : > { %v7850_v11 = vpop.eup %5678  ;;  %v3497_v60 = vpop.xlane.xlu0 %3496  ;;  %4016 = vst.msk [vmem:[#allocation3 + $0x28] sm:$0xff] %vm579_vm1, %v4000_v32  ;;  %v9013_v27 = vld [vmem:[#allocation55_spill] sm:$0xff] }
 0x9db   : > { %v3518_v56 = vadd.f32 %v3497_v60, %v3470_v29  ;;  %5344 = vset.pattern.permute.xlu1 %v8934_v2  ;;  %4175 = vperm.xlu0 %5348, %v7850_v11   ;;  %v3971_v29 = vsel %vm3895_vm2, %v1246_v41, %v1976_v9  ;;  %v9003_v60 = vld [vmem:[#allocation184_spill] sm:$0xff]  ;;  %v9006_v9 = vld [vmem:[#allocation14_spill] sm:$0xff]  ;;  %v3974_v28 = vsel %vm3895_vm2, %v1249_v58, %v1979_v0  ;;  %v9014_v58 = vld [vmem:[#allocation93_spill] sm:$0xff] }
 0x9dc   : > { %4183 = vperm.xlu1 %5344, %v7835_v51   ;;  %v3987_v32 = vsel %vm3912_vm3, %v3971_v29, %v2746_v7  ;;  %v2749_v6 = vadd.f32 %v9003_v60, %v2701_v37  ;;  %v9009_v7 = vld [vmem:[#allocation164_spill] sm:$0xff]  ;;  %v1935_v0 = vmul.f32 %v9014_v58, %v723_v35 }
 0x9dd   : > { %v4005_v45 = vsel %vm3929_vm4, %v3989_v55, %v3518_v56  ;;  %v9005_v56 = vld [vmem:[#allocation12_spill] sm:$0xff]  ;;  %v1199_v55 = vmul.f32 %v9006_v9, %v717_v38  ;;  %v2699_v47 = vmul.f32 %v9009_v7, %v717_v38  ;;  %v4052_v9 = vld [vmem:[#allocation3 + $0x30] sm:$0xff] }
 0x9de   : > { %4021 = vst.msk [vmem:[#allocation3 + $0x50] sm:$0xff] %vm579_vm1, %v4005_v45  ;;  %v3493_v10 = vpop.xlane.xlu1 %3492  ;;  %v2704_v44 = vmul.f32 %v9005_v56, %v722_v16  ;;  %v1982_v45 = vadd.f32 %v9008_v50, %v1934_v24  ;;  %v7891_v31 = vpop.eup %5680  ;;  %v3990_v63 = vsel %vm3912_vm3, %v3974_v28, %v2749_v6  ;;  %v3469_v24 = vmul.f32 %v7679_v14, %v717_v38  ;;  %v721_v38 = vld [vmem:[#allocation3 + $0x68] sm:$0xff]  ;;  %v9020_v7 = vld [vmem:[#allocation94_spill] sm:$0xff] }
 0x9df   : > { %5350 = vset.pattern.permute.xlu0 %v8999_v54  ;;  %v3516_v15 = vadd.f32 %v3493_v10, %v3468_v3  ;;  %v9010_v3 = vld [vmem:[#allocation140_spill] sm:$0xff]  ;;  %v2747_v37 = vadd.f32 %v9012_v53, %v2699_v47  ;;  %v3474_v10 = vmul.f32 %v7699_v23, %v722_v16  ;;  %v1247_v29 = vadd.f32 %v9013_v27, %v1199_v55  ;;  %v9018_v55 = vld [vmem:[#allocation57_spill] sm:$0xff] }
 0x9e0   : > { %5345 = vset.pattern.permute.xlu1 %v9001_v5  ;;  %4335 = vperm.xlu0 %5350, %v7850_v11   ;;  %v1977_v59 = vadd.f32 %v9010_v3, %v1929_v19  ;;  %v2752_v33 = vadd.f32 %v9011_v49, %v2704_v44  ;;  %v3977_v6 = vsel %vm3895_vm2, %v1252_v26, %v1982_v45  ;;  %v9017_v44 = vld [vmem:[#allocation142_spill] sm:$0xff]  ;;  %5684 = vrcp.f32 %v4052_v9  ;;  %v9023_v53 = vld [vmem:[#allocation145_spill] sm:$0xff] }
 0x9e1   : > { %4263 = vperm.xlu1 %5345, %v7835_v51   ;;  %v4003_v17 = vsel %vm3929_vm4, %v3987_v32, %v3516_v15  ;;  %v9015_v32 = vld [vmem:[#allocation79_spill] sm:$0xff]  ;;  %v2705_v19 = vmul.f32 %v9016_v48, %v723_v35  ;;  %v9019_v26 = vld [vmem:[#allocation186_spill] sm:$0xff]  ;;  %v1933_v47 = vmul.f32 %v9020_v7, %v721_v38  ;;  %v3475_v28 = vmul.f32 %v7685_v34, %v723_v35  ;;  %v5752_v34 = vld [vmem:[#allocation3 + $0x60] sm:$0xff] }
 0x9e2   : > { %4019 = vst.msk [vmem:[#allocation3 + $0x40] sm:$0xff] %vm579_vm1, %v4003_v17  ;;  %v3499_v41 = vpop.xlane.xlu1 %3498  ;;  %v1205_v60 = vmul.f32 %v9015_v32, %v723_v35  ;;  %v3972_v56 = vsel %vm3895_vm2, %v1247_v29, %v1977_v59  ;;  %v1983_v17 = vadd.f32 %v9017_v44, %v1935_v0  ;;  %v9021_v3 = vld [vmem:[#allocation166_spill] sm:$0xff]  ;;  %v9024_v29 = vld [vmem:[#allocation187_spill] sm:$0xff]  ;;  %v3472_v35 = vmul.f32 %v5752_v34, %v7702_v22  ;;  %v4050_v44 = vld [vmem:[#allocation3 + $0x20] sm:$0xff] }
 0x9e3   : > { %v3519_v39 = vadd.f32 %v3499_v41, %v3471_v36  ;;  %v3993_v36 = vsel %vm3912_vm3, %v3977_v6, %v2752_v33  ;;  %v3988_v1 = vsel %vm3912_vm3, %v3972_v56, %v2747_v37  ;;  %v2753_v50 = vadd.f32 %v9019_v26, %v2705_v19  ;;  %v9022_v33 = vld [vmem:[#allocation77_spill] sm:$0xff] }
 0x9e4   : > { %5352 = vset.pattern.permute.xlu0 %v8934_v2  ;;  %v1253_v14 = vadd.f32 %v9018_v55, %v1205_v60  ;;  %v2703_v59 = vmul.f32 %v9021_v3, %v721_v38  ;;  %v1981_v37 = vadd.f32 %v9023_v53, %v1933_v47  ;;  %v3473_v60 = vmul.f32 %v7691_v4, %v721_v38  ;;  %v4051_v9 = vld [vmem:[#allocation3 + $0x28] sm:$0xff] }
 0x9e5   : > { %5346 = vset.pattern.permute.xlu1 %v8999_v54  ;;  %4187 = vperm.xlu0 %5352, %v7891_v31   ;;  %v4006_v15 = vsel %vm3929_vm4, %v3990_v63, %v3519_v39  ;;  %v1203_v39 = vmul.f32 %v9022_v33, %v721_v38  ;;  %v5683_v0 = vpop.eup %5682  ;;  %5686 = vrcp.f32 %v4050_v44 }
 0x9e6   : > { %v3505_v42 = vpop.xlane.xlu0 %3504  ;;  %4343 = vperm.xlu1 %5346, %v7835_v51   ;;  %4022 = vst.msk [vmem:[#allocation3 + $0x58] sm:$0xff] %vm579_vm1, %v4006_v15  ;;  %v3495_v16 = vpop.xlane.xlu1 %3494  ;;  %v3978_v63 = vsel %vm3895_vm2, %v1253_v14, %v1983_v17  ;;  %v2751_v58 = vadd.f32 %v9024_v29, %v2703_v59  ;;  %v9025_v15 = vld [vmem:[#allocation59_spill] sm:$0xff] }
 0x9e7   : > { %v3522_v23 = vadd.f32 %v3505_v42, %v3474_v10  ;;  %v3517_v51 = vadd.f32 %v3495_v16, %v3469_v24  ;;  %v3994_v27 = vsel %vm3912_vm3, %v3978_v63, %v2753_v50  ;;  %v1251_v42 = vadd.f32 %v9025_v15, %v1203_v39  ;;  %v9026_v16 = vld [vmem:[#allocation74_spill] sm:$0xff]  ;;  %v4053_v17 = vld [vmem:[#allocation3 + $0x38] sm:$0xff] }
 0x9e8   : > { %5688 = vrcp.f32 %v4053_v17 }
 0x9e9   : > { %v4009_v45 = vsel %vm3929_vm4, %v3993_v36, %v3522_v23  ;;  %5354 = vset.pattern.permute.xlu0 %v8999_v54  ;;  %v4004_v41 = vsel %vm3929_vm4, %v3988_v1, %v3517_v51  ;;  %v3976_v19 = vsel %vm3895_vm2, %v1251_v42, %v1981_v37  ;;  %5690 = vrcp.f32 %v4051_v9  ;;  %v4056_v51 = vld [vmem:[#allocation3 + $0x50] sm:$0xff]  ;;  %v4054_v14 = vld [vmem:[#allocation3 + $0x40] sm:$0xff] }
 0x9ea   : > { %4025 = vst.msk [vmem:[#allocation3 + $0x70] sm:$0xff] %vm579_vm1, %v4009_v45  ;;  %5347 = vset.pattern.permute.xlu1 %v8935_v30  ;;  %4347 = vperm.xlu0 %5354, %v7891_v31   ;;  %4020 = vst.msk [vmem:[#allocation3 + $0x48] sm:$0xff] %vm579_vm1, %v4004_v41  ;;  %v3507_v49 = vpop.xlane.xlu1 %3506  ;;  %v3992_v23 = vsel %vm3912_vm3, %v3976_v19, %v2751_v58  ;;  %5692 = vrcp.f32 %v4056_v51 }
 0x9eb   : > { %4080 = vperm.xlu1 %5347, %v7850_v11   ;;  %v3523_v10 = vadd.f32 %v3507_v49, %v3475_v28  ;;  %5694 = vrcp.f32 %v4054_v14 }
 0x9ed   : > { %v4010_v24 = vsel %vm3929_vm4, %v3994_v27, %v3523_v10  ;;  %v4057_v1 = vld [vmem:[#allocation3 + $0x58] sm:$0xff] }
 0x9ee   : > { %v3501_v32 = vpop.xlane.xlu0 %3500  ;;  %5355 = vset.pattern.permute.xlu0 %v8935_v30  ;;  %4026 = vst.msk [vmem:[#allocation3 + $0x78] sm:$0xff] %vm579_vm1, %v4010_v24  ;;  %v3503_v48 = vpop.xlane.xlu1 %3502  ;;  %5696 = vrcp.f32 %v4057_v1 }
 0x9ef   : > { %v3520_v6 = vadd.f32 %v3501_v32, %v3472_v35  ;;  %5349 = vset.pattern.permute.xlu1 %v9001_v5  ;;  %4085 = vperm.xlu0 %5355, %v5683_v0   ;;  %v3521_v22 = vadd.f32 %v3503_v48, %v3473_v60 }
 0x9f0   : > { %4255 = vperm.xlu1 %5349, %v7850_v11   ;;  %v5685_v11 = vpop.eup %5684 }
 0x9f1   : > { %v4007_v56 = vsel %vm3929_vm4, %v9026_v16, %v3520_v6  ;;  %v4008_v4 = vsel %vm3929_vm4, %v3992_v23, %v3521_v22  ;;  %v4055_v50 = vld [vmem:[#allocation3 + $0x48] sm:$0xff]  ;;  %v4060_v7 = vld [vmem:[#allocation3 + $0x70] sm:$0xff] }
 0x9f2   : > { %4023 = vst.msk [vmem:[#allocation3 + $0x60] sm:$0xff] %vm579_vm1, %v4007_v56  ;;  %4024 = vst.msk [vmem:[#allocation3 + $0x68] sm:$0xff] %vm579_vm1, %v4008_v4  ;;  %v5687_v36 = vpop.eup %5686  ;;  %5698 = vrcp.f32 %v4055_v50 }
 0x9f3   : > { %5357 = vset.pattern.permute.xlu0 %v9001_v5  ;;  %5700 = vrcp.f32 %v4060_v7 }
 0x9f4   : > { %5351 = vset.pattern.permute.xlu1 %v8935_v30  ;;  %4259 = vperm.xlu0 %5357, %v5683_v0  }
 0x9f5   : > { %4095 = vperm.xlu1 %5351, %v7891_v31   ;;  %v4061_v3 = vld [vmem:[#allocation3 + $0x78] sm:$0xff] }
 0x9f8   : > { %5359 = vset.pattern.permute.xlu0 %v8935_v30 }
 0x9f9   : > { %5353 = vset.pattern.permute.xlu1 %v9001_v5  ;;  %4110 = vperm.xlu0 %5359, %v5685_v11   ;;  %v4058_v41 = vld [vmem:[#allocation3 + $0x60] sm:$0xff]  ;;  %v4059_v49 = vld [vmem:[#allocation3 + $0x68] sm:$0xff] }
 0x9fa   : > { %4267 = vperm.xlu1 %5353, %v7891_v31   ;;  %v5689_v31 = vpop.eup %5688  ;;  %5702 = vrcp.f32 %v4058_v41 }
 0x9fb   : > { %v5691_v55 = vpop.eup %5690  ;;  %5704 = vrcp.f32 %v4061_v3 }
 0x9fc   : > { %v5693_v38 = vpop.eup %5692  ;;  %5706 = vrcp.f32 %v4059_v49 }
 0x9fd   : > { %5361 = vset.pattern.permute.xlu0 %v9001_v5  ;;  %v5695_v26 = vpop.eup %5694 }
 0x9fe   : > { %5356 = vset.pattern.permute.xlu1 %v8934_v2  ;;  %4279 = vperm.xlu0 %5361, %v5685_v11   ;;  %v5697_v45 = vpop.eup %5696 }
 0x9ff   : > { %4179 = vperm.xlu1 %5356, %v5683_v0   ;;  %v5699_v47 = vpop.eup %5698 }
 0xa00   : > { %v7984_v28 = vpop.eup %5700  ;;  %v7989_v59 = vpop.f32.mrf.mxu0 }
 0xa02   : > { %5363 = vset.pattern.permute.xlu0 %v8935_v30  ;;  %v7994_v33 = vpop.f32.mrf.mxu0 }
 0xa03   : > { %5358 = vset.pattern.permute.xlu1 %v8999_v54  ;;  %4100 = vperm.xlu0 %5363, %v5687_v36  }
 0xa04   : > { %4339 = vperm.xlu1 %5358, %v5683_v0   ;;  %v5236_v53 = vpop.f32.mrf.mxu0 }
 0xa06   : > { %v3593_v27 = vpop.f32.mrf.mxu0 }
 0xa07   : > { %5365 = vset.pattern.permute.xlu0 %v9001_v5  ;;  %v5703_v39 = vpop.eup %5702 }
 0xa08   : > { %5360 = vset.pattern.permute.xlu1 %v8934_v2  ;;  %4271 = vperm.xlu0 %5365, %v5687_v36   ;;  %v5705_v34 = vpop.eup %5704 }
 0xa09   : > { %4199 = vperm.xlu1 %5360, %v5685_v11   ;;  %v5707_v15 = vpop.eup %5706 }
 0xa0c   : > { %5368 = vset.pattern.permute.xlu0 %v8934_v2 }
 0xa0d   : > { %5362 = vset.pattern.permute.xlu1 %v8999_v54  ;;  %4203 = vperm.xlu0 %5368, %v5689_v31  }
 0xa0e   : > { %4359 = vperm.xlu1 %5362, %v5685_v11  }
 0xa10   : > { %v5239_v29 = vpop.f32.mrf.mxu0 }
 0xa11   : > { %5370 = vset.pattern.permute.xlu0 %v8999_v54 }
 0xa12   : > { %5364 = vset.pattern.permute.xlu1 %v8934_v2  ;;  %4363 = vperm.xlu0 %5370, %v5689_v31   ;;  %v3606_v0 = vpop.f32.mrf.mxu0 }
 0xa13   : > { %4191 = vperm.xlu1 %5364, %v5687_v36  }
 0xa14   : > { %v5240_v32 = vpop.f32.mrf.mxu0 }
 0xa16   : > { %5372 = vset.pattern.permute.xlu0 %v8934_v2  ;;  %v3609_v6 = vpop.f32.mrf.mxu0 }
 0xa17   : > { %5366 = vset.pattern.permute.xlu1 %v8999_v54  ;;  %4195 = vperm.xlu0 %5372, %v5691_v55  }
 0xa18   : > { %4351 = vperm.xlu1 %5366, %v5687_v36   ;;  %v5243_v19 = vpop.f32.mrf.mxu0 }
 0xa1a   : > { %v3622_v23 = vpop.f32.mrf.mxu0 }
 0xa1b   : > { %5374 = vset.pattern.permute.xlu0 %v8999_v54 }
 0xa1c   : > { %5367 = vset.pattern.permute.xlu1 %v8935_v30  ;;  %4355 = vperm.xlu0 %5374, %v5691_v55   ;;  %v5244_v44 = vpop.f32.mrf.mxu0 }
 0xa1d   : > { %4115 = vperm.xlu1 %5367, %v5689_v31  }
 0xa1e   : > { %v3625_v17 = vpop.f32.mrf.mxu0 }
 0xa20   : > { %5375 = vset.pattern.permute.xlu0 %v8935_v30 }
 0xa21   : > { %5369 = vset.pattern.permute.xlu1 %v9001_v5  ;;  %4130 = vperm.xlu0 %5375, %v5693_v38  }
 0xa22   : > { %4283 = vperm.xlu1 %5369, %v5689_v31  }
 0xa25   : > { %5377 = vset.pattern.permute.xlu0 %v9001_v5 }
 0xa26   : > { %5371 = vset.pattern.permute.xlu1 %v8935_v30  ;;  %4295 = vperm.xlu0 %5377, %v5693_v38  }
 0xa27   : > { %4105 = vperm.xlu1 %5371, %v5691_v55  }
 0xa28   : > { %v5247_v36 = vpop.f32.mrf.mxu0 }
 0xa2a   : > { %5379 = vset.pattern.permute.xlu0 %v8935_v30  ;;  %v3638_v31 = vpop.f32.mrf.mxu0 }
 0xa2b   : > { %5373 = vset.pattern.permute.xlu1 %v9001_v5  ;;  %4120 = vperm.xlu0 %5379, %v5695_v26  }
 0xa2c   : > { %4275 = vperm.xlu1 %5373, %v5691_v55   ;;  %v5248_v55 = vpop.f32.mrf.mxu0 }
 0xa2f   : > { %5381 = vset.pattern.permute.xlu0 %v9001_v5 }
 0xa30   : > { %5376 = vset.pattern.permute.xlu1 %v8934_v2  ;;  %4287 = vperm.xlu0 %5381, %v5695_v26  }
 0xa31   : > { %4215 = vperm.xlu1 %5376, %v5693_v38  }
 0xa34   : > { %5384 = vset.pattern.permute.xlu0 %v8934_v2 }
 0xa35   : > { %5378 = vset.pattern.permute.xlu1 %v8999_v54  ;;  %4219 = vperm.xlu0 %5384, %v5697_v45  }
 0xa36   : > { %4375 = vperm.xlu1 %5378, %v5693_v38  }
 0xa39   : > { %5386 = vset.pattern.permute.xlu0 %v8999_v54 }
 0xa3a   : > { %5380 = vset.pattern.permute.xlu1 %v8934_v2  ;;  %4379 = vperm.xlu0 %5386, %v5697_v45  }
 0xa3b   : > { %4207 = vperm.xlu1 %5380, %v5695_v26  }
 0xa3e   : > { %5388 = vset.pattern.permute.xlu0 %v8934_v2 }
 0xa3f   : > { %5382 = vset.pattern.permute.xlu1 %v8999_v54  ;;  %4211 = vperm.xlu0 %5388, %v5699_v47  }
 0xa40   : > { %4367 = vperm.xlu1 %5382, %v5695_v26  }
 0xa43   : > { %5390 = vset.pattern.permute.xlu0 %v8999_v54 }
 0xa44   : > { %5383 = vset.pattern.permute.xlu1 %v8935_v30  ;;  %4371 = vperm.xlu0 %5390, %v5699_v47  }
 0xa45   : > { %4135 = vperm.xlu1 %5383, %v5697_v45  }
 0xa48   : > { %5391 = vset.pattern.permute.xlu0 %v8935_v30 }
 0xa49   : > { %5385 = vset.pattern.permute.xlu1 %v9001_v5  ;;  %4150 = vperm.xlu0 %5391, %v7984_v28  }
 0xa4a   : > { %4299 = vperm.xlu1 %5385, %v5697_v45  }
 0xa4d   : > { %5393 = vset.pattern.permute.xlu0 %v9001_v5 }
 0xa4e   : > { %5387 = vset.pattern.permute.xlu1 %v8935_v30  ;;  %4311 = vperm.xlu0 %5393, %v7984_v28  }
 0xa4f   : > { %4125 = vperm.xlu1 %5387, %v5699_v47  }
 0xa52   : > { %5394 = vset.pattern.permute.xlu0 %v8935_v30  ;;  %v7997_v63 = vpop.permute.xlu1 %4090 }
 0xa53   : > { %9027 = vst [vmem:[#allocation26_spill] sm:$0xff] %v7997_v63  ;;  %4140 = vperm.xlu0 %5394, %v5703_v39   ;;  %5389 = vset.pattern.permute.xlu1 %v9001_v5  ;;  %v9104_v63 = vld [vmem:[#allocation41_spill] sm:$0xff] }
 0xa54   : > { %4291 = vperm.xlu1 %5389, %v5699_v47  }
 0xa56   : > { %v8000_v37 = vpop.permute.xlu0 %4175 }
 0xa57   : > { %9028 = vst [vmem:[#allocation157_spill] sm:$0xff] %v8000_v37  ;;  %5395 = vset.pattern.permute.xlu0 %v9001_v5  ;;  %v8003_v10 = vpop.permute.xlu1 %4183  ;;  %v9091_v37 = vld [vmem:[#allocation31_spill] sm:$0xff] }
 0xa58   : > { %9029 = vst [vmem:[#allocation68_spill] sm:$0xff] %v8003_v10  ;;  %4303 = vperm.xlu0 %5395, %v5703_v39   ;;  %5392 = vset.pattern.permute.xlu1 %v8934_v2  ;;  %v9103_v10 = vld [vmem:[#allocation39_spill] sm:$0xff] }
 0xa59   : > { %4231 = vperm.xlu1 %5392, %v7984_v28  }
 0xa5b   : > { %v8007_v58 = vpop.permute.xlu0 %4335 }
 0xa5c   : > { %9030 = vst [vmem:[#allocation27_spill] sm:$0xff] %v8007_v58  ;;  %5398 = vset.pattern.permute.xlu0 %v8934_v2  ;;  %v8010_v35 = vpop.permute.xlu1 %4263  ;;  %v9087_v58 = vld [vmem:[#allocation116_spill] sm:$0xff] }
 0xa5d   : > { %9031 = vst [vmem:[#allocation158_spill] sm:$0xff] %v8010_v35  ;;  %4223 = vperm.xlu1 %5392, %v5703_v39   ;;  %4235 = vperm.xlu0 %5398, %v5705_v34  }
 0xa60   : > { %v8012_v42 = vpop.permute.xlu0 %4187 }
 0xa61   : > { %5396 = vset.pattern.permute.xlu1 %v8999_v54  ;;  %4227 = vperm.xlu0 %5398, %v5707_v15   ;;  %v8015_v24 = vpop.permute.xlu1 %4343 }
 0xa62   : > { %9032 = vst [vmem:[#allocation69_spill] sm:$0xff] %v8015_v24  ;;  %4383 = vperm.xlu1 %5396, %v5703_v39   ;;  %v9097_v24 = vld [vmem:[#allocation35_spill] sm:$0xff] }
 0xa65   : > { %v8017_v60 = vpop.permute.xlu0 %4347  ;;  %5402 = vset.pattern.permute.xlu0 %v8999_v54 }
 0xa66   : > { %9033 = vst [vmem:[#allocation25_spill] sm:$0xff] %v8017_v60  ;;  %5397 = vset.pattern.permute.xlu1 %v8935_v30  ;;  %4387 = vperm.xlu0 %5402, %v5707_v15   ;;  %v8021_v2 = vpop.permute.xlu1 %4080  ;;  %v9125_v60 = vld [vmem:[#allocation113_spill] sm:$0xff] }
 0xa67   : > { %9034 = vst [vmem:[#allocation159_spill] sm:$0xff] %v8021_v2  ;;  %4155 = vperm.xlu1 %5397, %v5705_v34   ;;  %v9092_v2 = vld [vmem:[#allocation100_spill] sm:$0xff] }
 0xa6a   : > { %v8023_v48 = vpop.permute.xlu0 %4085  ;;  %3771 = vrot.lane.b32.xlu0 %v5236_v53, %s5796_s27 }
 0xa6b   : > { %5399 = vset.pattern.permute.xlu1 %v9001_v5  ;;  %v8027_v22 = vpop.permute.xlu1 %4255 }
 0xa6c   : > { %9035 = vst [vmem:[#allocation70_spill] sm:$0xff] %v8027_v22  ;;  %4315 = vperm.xlu1 %5399, %v5705_v34   ;;  %v9089_v22 = vld [vmem:[#allocation32_spill] sm:$0xff] }
 0xa6e   : > { %3767 = vrot.lane.b32.xlu0 %v3593_v27, %s5796_s27 }
 0xa6f   : > { %v8030_v16 = vpop.permute.xlu0 %4259 }
 0xa70   : > { %9036 = vst [vmem:[#allocation24_spill] sm:$0xff] %v8030_v16  ;;  %5400 = vset.pattern.permute.xlu1 %v8935_v30  ;;  %v8033_v56 = vpop.permute.xlu1 %4095  ;;  %v9124_v16 = vld [vmem:[#allocation147_spill] sm:$0xff] }
 0xa71   : > { %4145 = vperm.xlu1 %5400, %v5707_v15  }
 0xa72   : > { %3779 = vrot.lane.b32.xlu0 %v5240_v32, %s5796_s27 }
 0xa74   : > { %v8036_v4 = vpop.permute.xlu0 %4110 }
 0xa75   : > { %9037 = vst [vmem:[#allocation160_spill] sm:$0xff] %v8036_v4  ;;  %5401 = vset.pattern.permute.xlu1 %v9001_v5  ;;  %v8039_v11 = vpop.permute.xlu1 %4267  ;;  %v9083_v4 = vld [vmem:[#allocation97_spill] sm:$0xff] }
 0xa76   : > { %3775 = vrot.lane.b32.xlu0 %v3609_v6, %s5796_s27  ;;  %4307 = vperm.xlu1 %5401, %v5707_v15  }
 0xa79   : > { %v8042_v9 = vpop.permute.xlu0 %4279 }
 0xa7a   : > { %9038 = vst [vmem:[#allocation83_spill] sm:$0xff] %v8042_v9  ;;  %3787 = vrot.lane.b32.xlu0 %v5244_v44, %s5796_s27  ;;  %3769 = vrot.lane.b32.xlu1 %v7989_v59, %s5796_s27  ;;  %v8047_v30 = vpop.permute.xlu1 %4179  ;;  %v9081_v9 = vld [vmem:[#allocation110_spill] sm:$0xff] }
 0xa7b   : > { %5403 = vset.pattern.permute.xlu1 %v8999_v54  ;;  %v3641_v54 = vpop.f32.mrf.mxu0 }
 0xa7e   : > { %v8050_v5 = vpop.permute.xlu0 %4100  ;;  %3783 = vrot.lane.b32.xlu0 %v3625_v17, %s5796_s27  ;;  %3765 = vrot.lane.b32.xlu1 %v7994_v33, %s5796_s27 }
 0xa7f   : > { %9039 = vst [vmem:[#allocation22_spill] sm:$0xff] %v8050_v5  ;;  %v8055_v51 = vpop.permute.xlu1 %4339  ;;  %v9079_v5 = vld [vmem:[#allocation95_spill] sm:$0xff] }
 0xa80   : > { %9040 = vst [vmem:[#allocation127_spill] sm:$0xff] %v8055_v51  ;;  %v9095_v51 = vld [vmem:[#allocation36_spill] sm:$0xff] }
 0xa82   : > { %3795 = vrot.lane.b32.xlu0 %v5248_v55, %s5796_s27  ;;  %3777 = vrot.lane.b32.xlu1 %v5239_v29, %s5796_s27 }
 0xa83   : > { %v8059_v14 = vpop.permute.xlu0 %4271 }
 0xa84   : > { %9041 = vst [vmem:[#allocation58_spill] sm:$0xff] %v8059_v14  ;;  %v8061_v38 = vpop.permute.xlu1 %4199  ;;  %v9077_v14 = vld [vmem:[#allocation49_spill] sm:$0xff] }
 0xa85   : > { %9042 = vst [vmem:[#allocation81_spill] sm:$0xff] %v8061_v38  ;;  %v9082_v38 = vld [vmem:[#allocation112_spill] sm:$0xff] }
 0xa86   : > { %3791 = vrot.lane.b32.xlu0 %v3641_v54, %s5796_s27  ;;  %3773 = vrot.lane.b32.xlu1 %v3606_v0, %s5796_s27 }
 0xa88   : > { %v8065_v1 = vpop.permute.xlu0 %4203 }
 0xa89   : > { %9043 = vst [vmem:[#allocation28_spill] sm:$0xff] %v8065_v1  ;;  %v8067_v26 = vpop.permute.xlu1 %4359  ;;  %v9128_v1 = vld [vmem:[#allocation134_spill] sm:$0xff] }
 0xa8a   : > { %9044 = vst [vmem:[#allocation129_spill] sm:$0xff] %v8067_v26  ;;  %4395 = vperm.xlu0 %5402, %v5705_v34   ;;  %3785 = vrot.lane.b32.xlu1 %v5243_v19, %s5796_s27  ;;  %v9080_v26 = vld [vmem:[#allocation96_spill] sm:$0xff] }
 0xa8d   : > { %v8070_v50 = vpop.permute.xlu0 %4363 }
 0xa8e   : > { %9045 = vst [vmem:[#allocation50_spill] sm:$0xff] %v8070_v50  ;;  %3781 = vrot.lane.b32.xlu1 %v3622_v23, %s5796_s27  ;;  %v8073_v45 = vpop.permute.xlu1 %4191 }
 0xa8f   : > { %9046 = vst [vmem:[#allocation85_spill] sm:$0xff] %v8073_v45 }
 0xa92   : > { %v8075_v7 = vpop.permute.xlu0 %4195  ;;  %3793 = vrot.lane.b32.xlu1 %v5247_v36, %s5796_s27 }
 0xa93   : > { %9047 = vst [vmem:[#allocation19_spill] sm:$0xff] %v8075_v7  ;;  %v8078_v47 = vpop.permute.xlu1 %4351  ;;  %v9088_v7 = vld [vmem:[#allocation99_spill] sm:$0xff] }
 0xa94   : > { %9048 = vst [vmem:[#allocation78_spill] sm:$0xff] %v8078_v47 }
 0xa96   : > { %3789 = vrot.lane.b32.xlu1 %v3638_v31, %s5796_s27 }
 0xa97   : > { %v8081_v41 = vpop.permute.xlu0 %4355 }
 0xa98   : > { %9049 = vst [vmem:[#allocation131_spill] sm:$0xff] %v8081_v41  ;;  %v8083_v3 = vpop.permute.xlu1 %4115  ;;  %v1494_v41 = vmul.f32 0.0, %v9080_v26 }
 0xa99   : > { %9050 = vst [vmem:[#allocation8_spill] sm:$0xff] %v8083_v3  ;;  %v9129_v3 = vld [vmem:[#allocation148_spill] sm:$0xff] }
 0xa9a   : > { %4391 = vperm.xlu1 %5403, %v7984_v28  }
 0xa9c   : > { %v8086_v59 = vpop.permute.xlu0 %4130 }
 0xa9d   : > { %9051 = vst [vmem:[#allocation71_spill] sm:$0xff] %v8086_v59  ;;  %v8088_v49 = vpop.permute.xlu1 %4283 }
 0xa9e   : > { %9052 = vst [vmem:[#allocation117_spill] sm:$0xff] %v8088_v49  ;;  %v9123_v49 = vld [vmem:[#allocation146_spill] sm:$0xff] }
 0xaa1   : > { %v8090_v33 = vpop.permute.xlu0 %4295 }
 0xaa2   : > { %9053 = vst [vmem:[#allocation51_spill] sm:$0xff] %v8090_v33  ;;  %v8092_v39 = vpop.permute.xlu1 %4105  ;;  %v9074_v33 = vld [vmem:[#allocation48_spill] sm:$0xff] }
 0xaa3   : > { %9054 = vst [vmem:[#allocation60_spill] sm:$0xff] %v8092_v39  ;;  %v9090_v39 = vld [vmem:[#allocation29_spill] sm:$0xff] }
 0xaa6   : > { %v8094_v53 = vpop.permute.xlu0 %4120 }
 0xaa7   : > { %9055 = vst [vmem:[#allocation87_spill] sm:$0xff] %v8094_v53  ;;  %v8096_v27 = vpop.permute.xlu1 %4275 }
 0xaa8   : > { %9056 = vst [vmem:[#allocation72_spill] sm:$0xff] %v8096_v27  ;;  %v9084_v27 = vld [vmem:[#allocation114_spill] sm:$0xff] }
 0xaab   : > { %v8098_v29 = vpop.permute.xlu0 %4287 }
 0xaac   : > { %9057 = vst [vmem:[#allocation119_spill] sm:$0xff] %v8098_v29  ;;  %v8100_v34 = vpop.permute.xlu1 %4215 }
 0xaad   : > { %9058 = vst [vmem:[#allocation61_spill] sm:$0xff] %v8100_v34  ;;  %v9075_v34 = vld [vmem:[#allocation46_spill] sm:$0xff] }
 0xaae   : > { %v1490_v59 = vmul.f32 0.0, %v9075_v34 }
 0xab0   : > { %v8102_v0 = vpop.permute.xlu0 %4219 }
 0xab1   : > { %9059 = vst [vmem:[#allocation86_spill] sm:$0xff] %v8102_v0  ;;  %v8104_v15 = vpop.permute.xlu1 %4375  ;;  %v9121_v0 = vld [vmem:[#allocation109_spill] sm:$0xff] }
 0xab2   : > { %9060 = vst [vmem:[#allocation21_spill] sm:$0xff] %v8104_v15  ;;  %v9072_v15 = vld [vmem:[#allocation56_spill] sm:$0xff] }
 0xab3   : > { %v1487_v29 = vmul.f32 0.0, %v9072_v15  ;;  %v1497_v15 = vmul.f32 0.0, %v9082_v38  ;;  %v1502_v38 = vmul.f32 0.0, %v9092_v2 }
 0xab5   : > { %v8106_v28 = vpop.permute.xlu0 %4379 }
 0xab6   : > { %9061 = vst [vmem:[#allocation121_spill] sm:$0xff] %v8106_v28  ;;  %v8108_v32 = vpop.permute.xlu1 %4207  ;;  %v9109_v28 = vld [vmem:[#allocation101_spill] sm:$0xff] }
 0xab7   : > { %9062 = vst [vmem:[#allocation62_spill] sm:$0xff] %v8108_v32  ;;  %v9073_v32 = vld [vmem:[#allocation45_spill] sm:$0xff] }
 0xab8   : > { %v1488_v53 = vmul.f32 0.0, %v9073_v32  ;;  %v1496_v32 = vmul.f32 0.0, %v9083_v4  ;;  %v9094_v4 = vld [vmem:[#allocation34_spill] sm:$0xff] }
 0xaba   : > { %v8110_v6 = vpop.permute.xlu0 %4211 }
 0xabb   : > { %9063 = vst [vmem:[#allocation88_spill] sm:$0xff] %v8110_v6  ;;  %v8112_v19 = vpop.permute.xlu1 %4367  ;;  %v9085_v6 = vld [vmem:[#allocation30_spill] sm:$0xff] }
 0xabc   : > { %9064 = vst [vmem:[#allocation161_spill] sm:$0xff] %v8112_v19  ;;  %v1489_v19 = vmul.f32 0.0, %v9074_v33  ;;  %v1499_v33 = vmul.f32 0.0, %v9084_v27  ;;  %v1503_v34 = vadd.f32 %v1487_v29, %v9085_v6  ;;  %v9096_v6 = vld [vmem:[#allocation33_spill] sm:$0xff] }
 0xabe   : > { %v1505_v26 = vadd.f32 %v9090_v39, %v1489_v19  ;;  %v9101_v19 = vld [vmem:[#allocation40_spill] sm:$0xff] }
 0xabf   : > { %v8114_v23 = vpop.permute.xlu0 %4371 }
 0xac0   : > { %9065 = vst [vmem:[#allocation11_spill] sm:$0xff] %v8114_v23  ;;  %v8116_v44 = vpop.permute.xlu1 %4135  ;;  %v9078_v23 = vld [vmem:[#allocation47_spill] sm:$0xff] }
 0xac1   : > { %9066 = vst [vmem:[#allocation133_spill] sm:$0xff] %v8116_v44  ;;  %v1492_v45 = vmul.f32 0.0, %v9078_v23  ;;  %v1500_v23 = vmul.f32 0.0, %v9088_v7  ;;  %v9099_v7 = vld [vmem:[#allocation38_spill] sm:$0xff]  ;;  %v9122_v44 = vld [vmem:[#allocation111_spill] sm:$0xff] }
 0xac3   : > { %v1508_v29 = vadd.f32 %v1492_v45, %v9095_v51  ;;  %v9106_v45 = vld [vmem:[#allocation118_spill] sm:$0xff] }
 0xac4   : > { %v8118_v17 = vpop.permute.xlu0 %4150 }
 0xac5   : > { %9067 = vst [vmem:[#allocation181_spill] sm:$0xff] %v8118_v17  ;;  %v8120_v36 = vpop.permute.xlu1 %4299  ;;  %v1491_v17 = vmul.f32 0.0, %v9077_v14  ;;  %v1501_v14 = vmul.f32 0.0, %v9087_v58  ;;  %v1510_v58 = vadd.f32 %v9097_v24, %v1494_v41  ;;  %v9108_v41 = vld [vmem:[#allocation120_spill] sm:$0xff] }
 0xac6   : > { %9068 = vst [vmem:[#allocation52_spill] sm:$0xff] %v8120_v36  ;;  %v9120_v36 = vld [vmem:[#allocation108_spill] sm:$0xff] }
 0xac7   : > { %v1507_v27 = vadd.f32 %v1491_v17, %v9094_v4  ;;  %v1517_v17 = vadd.f32 %v9104_v63, %v1501_v14  ;;  %v9105_v4 = vld [vmem:[#allocation44_spill] sm:$0xff] }
 0xac8   : > { %v1516_v51 = vadd.f32 %v1500_v23, %v9105_v4  ;;  %v9117_v4 = vld [vmem:[#allocation105_spill] sm:$0xff] }
 0xac9   : > { %v8122_v31 = vpop.permute.xlu0 %4311 }
 0xaca   : > { %9069 = vst [vmem:[#allocation89_spill] sm:$0xff] %v8122_v31  ;;  %v8124_v55 = vpop.permute.xlu1 %4125  ;;  %v1493_v31 = vmul.f32 0.0, %v9079_v5  ;;  %v1504_v5 = vadd.f32 %v1488_v53, %v9089_v22  ;;  %v9100_v53 = vld [vmem:[#allocation37_spill] sm:$0xff] }
 0xacb   : > { %9070 = vst [vmem:[#allocation162_spill] sm:$0xff] %v8124_v55  ;;  %v9086_v55 = vld [vmem:[#allocation98_spill] sm:$0xff]  ;;  %v1513_v39 = vadd.f32 %v9100_v53, %v1497_v15 }
 0xacc   : > { %v9111_v53 = vld [vmem:[#allocation102_spill] sm:$0xff] }
 0xace   : > { %v8126_v54 = vpop.permute.xlu0 %4140 }
 0xacf   : > { %9071 = vst [vmem:[#allocation20_spill] sm:$0xff] %v8126_v54  ;;  %v8132_v47 = vpop.permute.xlu1 %4291  ;;  %v1495_v54 = vmul.f32 0.0, %v9081_v9  ;;  %v1506_v9 = vadd.f32 %v9091_v37, %v1490_v59  ;;  %v1512_v37 = vadd.f32 %v1496_v32, %v9101_v19  ;;  %v9102_v59 = vld [vmem:[#allocation42_spill] sm:$0xff]  ;;  %v2195_v32 = vmul.f32 0.0, %v9111_v53  ;;  %v9112_v19 = vld [vmem:[#allocation125_spill] sm:$0xff] }
 0xad0   : > { %9076 = vst [vmem:[#allocation135_spill] sm:$0xff] %v8132_v47  ;;  %v1498_v47 = vmul.f32 0.0, %v9086_v55  ;;  %v1509_v55 = vadd.f32 %v9096_v6, %v1493_v31  ;;  %v1515_v2 = vadd.f32 %v1499_v33, %v9102_v59  ;;  %v2194_v31 = vmul.f32 0.0, %v9106_v45  ;;  %v9107_v6 = vld [vmem:[#allocation43_spill] sm:$0xff]  ;;  %v9118_v45 = vld [vmem:[#allocation106_spill] sm:$0xff] }
 0xad1   : > { %v1511_v22 = vadd.f32 %v1495_v54, %v9099_v7  ;;  %v1518_v24 = vadd.f32 %v9107_v6, %v1502_v38  ;;  %v2193_v54 = vmul.f32 0.0, %v9109_v28  ;;  %v9110_v7 = vld [vmem:[#allocation123_spill] sm:$0xff]  ;;  %v2205_v33 = vmul.f32 0.0, %v9112_v19 }
 0xad2   : > { %v2207_v15 = vmul.f32 0.0, %v9110_v7  ;;  %v9113_v59 = vld [vmem:[#allocation103_spill] sm:$0xff]  ;;  %v2199_v38 = vmul.f32 0.0, %v9117_v4  ;;  %v2200_v6 = vmul.f32 0.0, %v9118_v45  ;;  %v2201_v7 = vmul.f32 0.0, %v9120_v36 }
 0xad3   : > { %v8150_v50 = vpop.permute.xlu0 %4303  ;;  %v2204_v53 = vmul.f32 0.0, %v9121_v0  ;;  %v2202_v19 = vmul.f32 0.0, %v9122_v44  ;;  %v2274_v45 = vadd.f32 %v9128_v1, %v2194_v31  ;;  %v9139_v31 = vld [vmem:[#allocation153_spill] sm:$0xff] }
 0xad4   : > { %9093 = vst [vmem:[#allocation80_spill] sm:$0xff] %v8150_v50  ;;  %v8156_v35 = vpop.permute.xlu1 %4231  ;;  %v1514_v50 = vadd.f32 %v9103_v10, %v1498_v47  ;;  %v2196_v10 = vmul.f32 0.0, %v9113_v59  ;;  %v9114_v47 = vld [vmem:[#allocation104_spill] sm:$0xff]  ;;  %v2275_v59 = vadd.f32 %v9123_v49, %v2195_v32  ;;  %v2280_v0 = vadd.f32 %v9131_v21, %v2200_v6  ;;  %v9133_v49 = vld [vmem:[#allocation138_spill] sm:$0xff]  ;;  %v9135_v32 = vld [vmem:[#allocation139_spill] sm:$0xff] }
 0xad5   : > { %9098 = vst [vmem:[#allocation182_spill] sm:$0xff] %v8156_v35  ;;  %v2203_v35 = vmul.f32 0.0, %v9108_v41  ;;  %v2197_v63 = vmul.f32 0.0, %v9114_v47  ;;  %v9119_v41 = vld [vmem:[#allocation107_spill] sm:$0xff]  ;;  %v2273_v47 = vadd.f32 %v9124_v16, %v2193_v54 }
 0xad6   : > { %v2198_v28 = vmul.f32 0.0, %v9119_v41  ;;  %v2276_v4 = vadd.f32 %v9127_v25, %v2196_v10  ;;  %v2279_v41 = vadd.f32 %v9129_v3, %v2199_v38  ;;  %v9134_v54 = vld [vmem:[#allocation151_spill] sm:$0xff]  ;;  %v2287_v25 = vadd.f32 %v9136_v18, %v2207_v15  ;;  %v9138_v3 = vld [vmem:[#allocation141_spill] sm:$0xff] }
 0xad7   : > { %v2277_v36 = vadd.f32 %v9130_v46, %v2197_v63  ;;  %v2283_v44 = vadd.f32 %v9132_v8, %v2203_v35  ;;  %v3831_v1 = vsel %vm820_vm0, %v1505_v26, %v2275_v59  ;;  %v3829_v46 = vsel %vm820_vm0, %v1503_v34, %v2273_v47  ;;  %v9140_v38 = vld [vmem:[#allocation143_spill] sm:$0xff]  ;;  %v9145_v47 = vld [vmem:[#allocation122_spill] sm:$0xff] }
 0xad8   : > { %v8174_v14 = vpop.permute.xlu0 %4235  ;;  %v8176_v23 = vpop.permute.xlu1 %4223  ;;  %v2278_v16 = vadd.f32 %v9133_v49, %v2198_v28  ;;  %v2282_v21 = vadd.f32 %v9138_v3, %v2202_v19  ;;  %v2285_v8 = vadd.f32 %v9139_v31, %v2205_v33  ;;  %v3832_v35 = vsel %vm820_vm0, %v1506_v9, %v2276_v4  ;;  %v9141_v28 = vld [vmem:[#allocation144_spill] sm:$0xff]  ;;  %v9144_v19 = vld [vmem:[#allocation130_spill] sm:$0xff]  ;;  %v9146_v4 = vld [vmem:[#allocation175_spill] sm:$0xff] }
 0xad9   : > { %9115 = vst [vmem:[#allocation53_spill] sm:$0xff] %v8174_v14  ;;  %9116 = vst [vmem:[#allocation9_spill] sm:$0xff] %v8176_v23  ;;  %v2208_v14 = vmul.f32 0.0, %v9125_v60  ;;  %v2206_v23 = vmul.f32 0.0, %v9126_v13  ;;  %v2281_v60 = vadd.f32 %v9134_v54, %v2201_v7  ;;  %v2284_v13 = vadd.f32 %v9135_v32, %v2204_v53  ;;  %v9152_v32 = vld [vmem:[#allocation190_spill] sm:$0xff] }
 0xada   : > { %v3830_v63 = vsel %vm820_vm0, %v1504_v5, %v2274_v45  ;;  %v8211_v18 = vsel %vm820_vm0, %v1509_v55, %v2279_v41  ;;  %v8214_v15 = vsel %vm820_vm0, %v1507_v27, %v2277_v36  ;;  %v8217_v34 = vsel %vm820_vm0, %v1510_v58, %v2280_v0  ;;  %v9148_v36 = vld [vmem:[#allocation189_spill] sm:$0xff] }
 0xadb   : > { %v2288_v6 = vadd.f32 %v9140_v38, %v2208_v14  ;;  %v2286_v7 = vadd.f32 %v9141_v28, %v2206_v23  ;;  %v8220_v26 = vsel %vm820_vm0, %v1513_v39, %v2283_v44  ;;  %v8223_v9 = vsel %vm820_vm0, %v1508_v29, %v2278_v16  ;;  %v9142_v14 = vld [vmem:[#allocation66_spill] sm:$0xff]  ;;  %v9143_v23 = vld [vmem:[#allocation167_spill] sm:$0xff]  ;;  %v9149_v44 = vld [vmem:[#allocation188_spill] sm:$0xff] }
 0xadc   : > { %v8194_v52 = vpop.permute.xlu0 %4227  ;;  %v8226_v5 = vsel %vm820_vm0, %v1511_v22, %v2281_v60  ;;  %v8229_v33 = vsel %vm820_vm0, %v1514_v50, %v2284_v13  ;;  %v8232_v55 = vsel %vm820_vm0, %v1517_v17, %v2287_v25  ;;  %v8237_v58 = vsel %vm820_vm0, %v1512_v37, %v2282_v21  ;;  %v9150_v16 = vld [vmem:[#allocation177_spill] sm:$0xff]  ;;  %v9153_v25 = vld [vmem:[#allocation178_spill] sm:$0xff]  ;;  %v9154_v21 = vld [vmem:[#allocation179_spill] sm:$0xff] }
 0xadd   : > { %v8200_v10 = vpop.permute.xlu1 %4383  ;;  %v8240_v39 = vsel %vm820_vm0, %v1515_v2, %v2285_v8  ;;  %v2965_v29 = vmul.f32 0.0, %v9142_v14  ;;  %v2966_v53 = vmul.f32 0.0, %v9143_v23  ;;  %v8247_v50 = vsel %vm820_vm0, %v1518_v24, %v2288_v6  ;;  %v9147_v2 = vld [vmem:[#allocation176_spill] sm:$0xff]  ;;  %v9151_v24 = vld [vmem:[#allocation191_spill] sm:$0xff] }
 0xade   : > { %9137 = vst [vmem:[#allocation73_spill] sm:$0xff] %v8200_v10  ;;  %v8250_v17 = vsel %vm820_vm0, %v1516_v51, %v2286_v7  ;;  %v2964_v59 = vmul.f32 0.0, %v9144_v19  ;;  %v2963_v37 = vmul.f32 0.0, %v9145_v47  ;;  %v2967_v45 = vmul.f32 0.0, %v9146_v4  ;;  %v9155_v8 = vld [vmem:[#allocation180_spill] sm:$0xff]  ;;  %v9157_v7 = vld [vmem:[#allocation169_spill] sm:$0xff] }
 0xadf   : > { %v2969_v41 = vmul.f32 0.0, %v9147_v2  ;;  %v3045_v0 = vadd.f32 %v9148_v36, %v2965_v29  ;;  %v3046_v49 = vadd.f32 %v9149_v44, %v2966_v53  ;;  %v2973_v54 = vmul.f32 0.0, %v9150_v16  ;;  %v9156_v6 = vld [vmem:[#allocation168_spill] sm:$0xff]  ;;  %v9158_v29 = vld [vmem:[#allocation170_spill] sm:$0xff]  ;;  %v9159_v53 = vld [vmem:[#allocation171_spill] sm:$0xff] }
 0xae0   : > { %v3043_v60 = vadd.f32 %v9151_v24, %v2963_v37  ;;  %v3044_v51 = vadd.f32 %v9152_v32, %v2964_v59  ;;  %v2971_v3 = vmul.f32 0.0, %v9153_v25  ;;  %v2977_v31 = vmul.f32 0.0, %v9154_v21  ;;  %v9160_v59 = vld [vmem:[#allocation172_spill] sm:$0xff]  ;;  %v9161_v2 = vld [vmem:[#allocation173_spill] sm:$0xff] }
 0xae1   : > { %v8234_v27 = vpop.permute.xlu0 %4387  ;;  %v2975_v38 = vmul.f32 0.0, %v9155_v8  ;;  %v2970_v28 = vmul.f32 0.0, %v9156_v6  ;;  %v2968_v14 = vmul.f32 0.0, %v9157_v7  ;;  %v2974_v23 = vmul.f32 0.0, %v9158_v29  ;;  %v9162_v25 = vld [vmem:[#allocation193_spill] sm:$0xff]  ;;  %v9163_v6 = vld [vmem:[#allocation192_spill] sm:$0xff] }
 0xae2   : > { %v8244_v22 = vpop.permute.xlu1 %4155  ;;  %v2972_v19 = vmul.f32 0.0, %v9159_v53  ;;  %v3736_v47 = vmul.f32 0.0, %v7717_v57  ;;  %v2978_v4 = vmul.f32 0.0, %v9160_v59  ;;  %v2976_v36 = vmul.f32 0.0, %v9161_v2  ;;  %v9164_v29 = vld [vmem:[#allocation195_spill] sm:$0xff]  ;;  %v9166_v2 = vld [vmem:[#allocation197_spill] sm:$0xff] }
 0xae3   : > { %v8274_v44 = vsel %vm3845_vm5, %v3831_v1, %v3045_v0  ;;  %v3849_v16 = vsel %vm3845_vm5, %v3832_v35, %v3046_v49  ;;  %v8278_v24 = vsel %vm3845_vm5, %v3829_v46, %v3043_v60  ;;  %v3847_v32 = vsel %vm3845_vm5, %v3830_v63, %v3044_v51  ;;  %v9165_v1 = vld [vmem:[#allocation194_spill] sm:$0xff]  ;;  %v9167_v49 = vld [vmem:[#allocation196_spill] sm:$0xff]  ;;  %v9168_v60 = vld [vmem:[#allocation199_spill] sm:$0xff] }
 0xae4   : > { %v3049_v21 = vadd.f32 %v9162_v25, %v2969_v41  ;;  %v3050_v7 = vadd.f32 %v9163_v6, %v2970_v28  ;;  %v3047_v53 = vadd.f32 %v9164_v29, %v2967_v45  ;;  %v3734_v59 = vmul.f32 0.0, %v7727_v40  ;;  %v9169_v63 = vld [vmem:[#allocation198_spill] sm:$0xff]  ;;  %v9170_v41 = vld [vmem:[#allocation201_spill] sm:$0xff]  ;;  %v9171_v45 = vld [vmem:[#allocation200_spill] sm:$0xff] }
 0xae5   : > { %v3772_v13 = vpop.permute.xlu0 %3771  ;;  %v3048_v0 = vadd.f32 %v9165_v1, %v2968_v14  ;;  %v3053_v35 = vadd.f32 %v9166_v2, %v2973_v54  ;;  %v3054_v46 = vadd.f32 %v9167_v49, %v2974_v23  ;;  %v3051_v10 = vadd.f32 %v9168_v60, %v2971_v3  ;;  %v9172_v6 = vld [vmem:[#allocation203_spill] sm:$0xff]  ;;  %v9173_v14 = vld [vmem:[#allocation202_spill] sm:$0xff] }
 0xae6   : > { %v3816_v8 = vadd.f32 %v3772_v13, %v3736_v47  ;;  %v3052_v51 = vadd.f32 %v9169_v63, %v2972_v19  ;;  %v3057_v13 = vadd.f32 %v9170_v41, %v2977_v31  ;;  %v3740_v47 = vmul.f32 0.0, %v7734_v43  ;;  %v9181_v63 = vld [vmem:[#allocation155_spill] sm:$0xff]  ;;  %v9182_v41 = vld [vmem:[#allocation18_spill] sm:$0xff] }
 0xae7   : > { %v8269_v37 = vpop.permute.xlu1 %4315  ;;  %v3058_v40 = vadd.f32 %v9171_v45, %v2978_v4  ;;  %v3055_v29 = vadd.f32 %v9172_v6, %v2975_v38  ;;  %v3056_v1 = vadd.f32 %v9173_v14, %v2976_v36  ;;  %v8300_v3 = vsel %vm3845_vm5, %v8211_v18, %v3049_v21  ;;  %v9183_v45 = vld [vmem:[#allocation25_spill] sm:$0xff] }
 0xae8   : > { %v3866_v54 = vsel %vm3862_vm6, %v3849_v16, %v3816_v8  ;;  %v3853_v31 = vsel %vm3845_vm5, %v8217_v34, %v3050_v7  ;;  %v8306_v43 = vsel %vm3845_vm5, %v8214_v15, %v3047_v53  ;;  %v8310_v38 = vsel %vm3845_vm5, %v8223_v9, %v3048_v0 }
 0xae9   : > { %v3768_v57 = vpop.permute.xlu0 %3767  ;;  %v8314_v4 = vsel %vm3845_vm5, %v8220_v26, %v3053_v35  ;;  %v3857_v18 = vsel %vm3845_vm5, %v8229_v33, %v3054_v46  ;;  %v8320_v36 = vsel %vm3845_vm5, %v8226_v5, %v3051_v10  ;;  %v8324_v15 = vsel %vm3845_vm5, %v8237_v58, %v3052_v51  ;;  %v9180_v35 = vld [vmem:[#allocation28_spill] sm:$0xff] }
 0xaea   : > { %v3814_v28 = vadd.f32 %v3768_v57, %v3734_v59  ;;  %v4161_v34 = vmul.f32 %v8033_v56, %v3866_v54  ;;  %v4241_v9 = vmul.f32 %v8012_v42, %v3866_v54  ;;  %v8333_v26 = vsel %vm3845_vm5, %v8232_v55, %v3057_v13  ;;  %v9174_v57 = vld [vmem:[#allocation154_spill] sm:$0xff] }
 0xaeb   : > { %v8337_v10 = vsel %vm3845_vm5, %v8247_v50, %v3058_v40  ;;  %v8341_v5 = vsel %vm3845_vm5, %v8240_v39, %v3055_v29  ;;  %v8345_v56 = vsel %vm3845_vm5, %v8250_v17, %v3056_v1  ;;  %v3733_v58 = vmul.f32 0.0, %v7712_v62  ;;  %v9175_v62 = vld [vmem:[#allocation15_spill] sm:$0xff]  ;;  %v9184_v29 = vld [vmem:[#allocation24_spill] sm:$0xff] }
 0xaec   : > { %v8292_v25 = vpop.permute.xlu1 %4145  ;;  %v8329_v16 = vsel %vm3862_vm6, %v3847_v32, %v3814_v28  ;;  %v3735_v55 = vmul.f32 0.0, %v7722_v61  ;;  %v3738_v32 = vmul.f32 0.0, %v7738_v20  ;;  %v3744_v21 = vmul.f32 0.0, %v7742_v12  ;;  %v9176_v61 = vld [vmem:[#allocation17_spill] sm:$0xff] }
 0xaed   : > { %v3780_v23 = vpop.permute.xlu0 %3779  ;;  %v4321_v39 = vmul.f32 %v8039_v11, %v3866_v54  ;;  %v4159_v8 = vmul.f32 %v8023_v48, %v8329_v16  ;;  %v4239_v17 = vmul.f32 %v8047_v30, %v8329_v16  ;;  %v3742_v7 = vmul.f32 0.0, %v9174_v57  ;;  %v9177_v11 = vld [vmem:[#allocation16_spill] sm:$0xff]  ;;  %v9178_v48 = vld [vmem:[#allocation67_spill] sm:$0xff] }
 0xaee   : > { %v3820_v19 = vadd.f32 %v3780_v23, %v3740_v47  ;;  %v8362_v53 = vmul.f32 0.0, %v9175_v62  ;;  %v8365_v20 = vmul.f32 0.0, %v9176_v61  ;;  %v4417_v12 = vsel %vm820_vm0, %v4161_v34, %v4241_v9  ;;  %v9179_v30 = vld [vmem:[#allocation8_spill] sm:$0xff]  ;;  %v9185_v23 = vld [vmem:[#allocation117_spill] sm:$0xff] }
 0xaef   : > { %v8369_v59 = vmul.f32 0.0, %v9177_v11  ;;  %v8372_v0 = vmul.f32 0.0, %v9178_v48  ;;  %v8377_v51 = vmul.f32 0.0, %v9181_v63  ;;  %v8380_v13 = vmul.f32 0.0, %v9182_v41  ;;  %v9188_v62 = vld [vmem:[#allocation52_spill] sm:$0xff]  ;;  %v9190_v48 = vld [vmem:[#allocation26_spill] sm:$0xff] }
 0xaf0   : > { %v3870_v50 = vsel %vm3862_vm6, %v3853_v31, %v3820_v19  ;;  %v4401_v40 = vmul.f32 %v9183_v45, %v3866_v54  ;;  %v4433_v6 = vsel %vm3845_vm5, %v4417_v12, %v4321_v39  ;;  %v4319_v14 = vmul.f32 %v9184_v29, %v8329_v16  ;;  %v9187_v39 = vld [vmem:[#allocation86_spill] sm:$0xff]  ;;  %v9189_v12 = vld [vmem:[#allocation121_spill] sm:$0xff] }
 0xaf1   : > { %v3776_v42 = vpop.permute.xlu0 %3775  ;;  %v8347_v33 = vpop.permute.xlu1 %4307  ;;  %v4165_v2 = vmul.f32 %v9179_v30, %v3870_v50  ;;  %v4245_v49 = vmul.f32 %v9180_v35, %v3870_v50  ;;  %v4415_v1 = vsel %vm820_vm0, %v4159_v8, %v4239_v17  ;;  %v4325_v31 = vmul.f32 %v9185_v23, %v3870_v50  ;;  %v9193_v41 = vld [vmem:[#allocation69_spill] sm:$0xff] }
 0xaf2   : > { %v3818_v19 = vadd.f32 %v3776_v42, %v3738_v32  ;;  %v9191_v42 = vld [vmem:[#allocation68_spill] sm:$0xff]  ;;  %v4449_v23 = vsel %vm3862_vm6, %v4433_v6, %v4401_v40  ;;  %v9197_v40 = vld [vmem:[#allocation157_spill] sm:$0xff] }
 0xaf3   : > { %v4421_v54 = vsel %vm820_vm0, %v4165_v2, %v4245_v49 }
 0xaf4   : > { %v3868_v45 = vsel %vm3862_vm6, %v8310_v38, %v3818_v19 }
 0xaf5   : > { %v3788_v46 = vpop.permute.xlu0 %3787  ;;  %v3770_v60 = vpop.permute.xlu1 %3769 }
 0xaf6   : > { %v3824_v47 = vadd.f32 %v3788_v46, %v3744_v21  ;;  %v3815_v28 = vadd.f32 %v3770_v60, %v3735_v55  ;;  %v9186_v55 = vld [vmem:[#allocation133_spill] sm:$0xff]  ;;  %v4437_v60 = vsel %vm3845_vm5, %v4421_v54, %v4325_v31  ;;  %v9194_v31 = vld [vmem:[#allocation127_spill] sm:$0xff] }
 0xaf8   : > { %v3874_v34 = vsel %vm3862_vm6, %v3857_v18, %v3824_v47  ;;  %v3865_v9 = vsel %vm3862_vm6, %v8274_v44, %v3815_v28  ;;  %v9192_v18 = vld [vmem:[#allocation158_spill] sm:$0xff]  ;;  %v4431_v44 = vsel %vm3845_vm5, %v4415_v1, %v4319_v14 }
 0xaf9   : > { %v4169_v21 = vmul.f32 %v9186_v55, %v3874_v34  ;;  %v4249_v57 = vmul.f32 %v9187_v39, %v3874_v34  ;;  %v4329_v8 = vmul.f32 %v9188_v62, %v3874_v34  ;;  %v3784_v17 = vpop.permute.xlu0 %3783  ;;  %v3766_v61 = vpop.permute.xlu1 %3765  ;;  %v4409_v11 = vmul.f32 %v9189_v12, %v3874_v34  ;;  %v9196_v55 = vld [vmem:[#allocation159_spill] sm:$0xff]  ;;  %v9198_v39 = vld [vmem:[#allocation60_spill] sm:$0xff]  ;;  %v9199_v62 = vld [vmem:[#allocation70_spill] sm:$0xff] }
 0xafa   : > { %v4160_v30 = vmul.f32 %v9190_v48, %v3865_v9  ;;  %v4240_v32 = vmul.f32 %v9191_v42, %v3865_v9  ;;  %v4320_v35 = vmul.f32 %v9192_v18, %v3865_v9  ;;  %v3822_v49 = vadd.f32 %v3784_v17, %v3742_v7  ;;  %v9200_v17 = vld [vmem:[#allocation19_spill] sm:$0xff] }
 0xafb   : > { %v4425_v2 = vsel %vm820_vm0, %v4169_v21, %v4249_v57  ;;  %v3813_v46 = vadd.f32 %v3766_v61, %v3733_v58  ;;  %v4400_v47 = vmul.f32 %v9193_v41, %v3865_v9  ;;  %v4399_v34 = vmul.f32 %v9194_v31, %v8329_v16  ;;  %v9195_v9 = vld [vmem:[#allocation50_spill] sm:$0xff]  ;;  %v9201_v12 = vld [vmem:[#allocation27_spill] sm:$0xff] }
 0xafc   : > { %v4441_v63 = vsel %vm3845_vm5, %v4425_v2, %v4329_v8  ;;  %v4416_v28 = vsel %vm820_vm0, %v4160_v30, %v4240_v32  ;;  %v4405_v54 = vmul.f32 %v9195_v9, %v3870_v50  ;;  %v4163_v57 = vmul.f32 %v9198_v39, %v3868_v45  ;;  %v9202_v32 = vld [vmem:[#allocation162_spill] sm:$0xff] }
 0xafd   : > { %v8414_v29 = vsel %vm3862_vm6, %v4441_v63, %v4409_v11  ;;  %v4432_v14 = vsel %vm3845_vm5, %v4416_v28, %v4320_v35  ;;  %v3863_v7 = vsel %vm3862_vm6, %v8278_v24, %v3813_v46  ;;  %v3796_v58 = vpop.permute.xlu0 %3795  ;;  %v3778_v1 = vpop.permute.xlu1 %3777  ;;  %v3872_v24 = vsel %vm3862_vm6, %v8324_v15, %v3822_v49  ;;  %v9203_v35 = vld [vmem:[#allocation88_spill] sm:$0xff]  ;;  %v9211_v39 = vld [vmem:[#allocation22_spill] sm:$0xff] }
 0xafe   : > { %v4448_v38 = vsel %vm3862_vm6, %v4432_v14, %v4400_v47  ;;  %v4158_v21 = vmul.f32 %v9196_v55, %v3863_v7  ;;  %v4238_v6 = vmul.f32 %v9197_v40, %v3863_v7  ;;  %v4447_v16 = vsel %vm3862_vm6, %v4431_v44, %v4399_v34  ;;  %v9204_v46 = vld [vmem:[#allocation72_spill] sm:$0xff]  ;;  %v9208_v34 = vld [vmem:[#allocation131_spill] sm:$0xff] }
 0xaff   : > { %v4826_v19 = vpack.c.bf16 %v4449_v23, %v4448_v38  ;;  %v4453_v50 = vsel %vm3862_vm6, %v4437_v60, %v4405_v54  ;;  %v4318_v8 = vmul.f32 %v9199_v62, %v3863_v7  ;;  %v4243_v61 = vmul.f32 %v9200_v17, %v3868_v45  ;;  %v9205_v28 = vld [vmem:[#allocation160_spill] sm:$0xff]  ;;  %v9207_v23 = vld [vmem:[#allocation83_spill] sm:$0xff]  ;;  %v9212_v62 = vld [vmem:[#allocation85_spill] sm:$0xff] }
 0xb00   : > { %v4398_v11 = vmul.f32 %v9201_v12, %v3863_v7  ;;  %v4414_v48 = vsel %vm820_vm0, %v4158_v21, %v4238_v6  ;;  %v3819_v15 = vadd.f32 %v3778_v1, %v8362_v53  ;;  %v4167_v18 = vmul.f32 %v9202_v32, %v3872_v24  ;;  %v9206_v7 = vld [vmem:[#allocation81_spill] sm:$0xff]  ;;  %v9209_v54 = vld [vmem:[#allocation135_spill] sm:$0xff] }
 0xb01   : > { %4858 = vst [vmem:[%s8426_s5 + $0x8] sm:$0xff] %v4826_v19   ;;  %v3792_v30 = vpop.permute.xlu0 %3791  ;;  %v3774_v42 = vpop.permute.xlu1 %3773  ;;  %v4247_v44 = vmul.f32 %v9203_v35, %v3872_v24  ;;  %v4430_v2 = vsel %vm3845_vm5, %v4414_v48, %v4318_v8  ;;  %v4323_v60 = vmul.f32 %v9204_v46, %v3868_v45  ;;  %v4403_v9 = vmul.f32 %v9208_v34, %v3868_v45  ;;  %v9210_v21 = vld [vmem:[#allocation129_spill] sm:$0xff]  ;;  %v9213_v17 = vld [vmem:[#allocation11_spill] sm:$0xff]  ;;  %v9216_v46 = vld [vmem:[#allocation156_spill] sm:$0xff] }
 0xb02   : > { %v3817_v49 = vadd.f32 %v3774_v42, %v8369_v59  ;;  %v4446_v63 = vsel %vm3862_vm6, %v4430_v2, %v4398_v11  ;;  %v3869_v41 = vsel %vm3862_vm6, %v8300_v3, %v3819_v15  ;;  %v3826_v53 = vadd.f32 %v3792_v30, %v8372_v0  ;;  %v9215_v15 = vld [vmem:[#allocation78_spill] sm:$0xff] }
 0xb03   : > { %v4821_v47 = vpack.c.bf16 %v4447_v16, %v4446_v63  ;;  %v4164_v14 = vmul.f32 %v9205_v28, %v3869_v41  ;;  %v4244_v1 = vmul.f32 %v9206_v7, %v3869_v41  ;;  %v4324_v31 = vmul.f32 %v9207_v23, %v3869_v41 }
 0xb04   : > { %v4419_v59 = vsel %vm820_vm0, %v4163_v57, %v4243_v61  ;;  %v4327_v38 = vmul.f32 %v9209_v54, %v3872_v24  ;;  %v3867_v19 = vsel %vm3862_vm6, %v8306_v43, %v3817_v49  ;;  %v4423_v3 = vsel %vm820_vm0, %v4167_v18, %v4247_v44  ;;  %v9222_v54 = vld [vmem:[#allocation87_spill] sm:$0xff] }
 0xb05   : > { %v3786_v55 = vpop.permute.xlu1 %3785  ;;  %4822 = vst [vmem:[%s8426_s5] sm:$0xff] %v4821_v47   ;;  %v3828_v0 = vadd.f32 %v3796_v58, %v8365_v20  ;;  %v4404_v40 = vmul.f32 %v9210_v21, %v3869_v41  ;;  %v4420_v6 = vsel %vm820_vm0, %v4164_v14, %v4244_v1  ;;  %v8467_v45 = vsel %vm3862_vm6, %v8345_v56, %v3826_v53  ;;  %v9214_v58 = vld [vmem:[#allocation58_spill] sm:$0xff]  ;;  %v9218_v53 = vld [vmem:[#allocation53_spill] sm:$0xff]  ;;  %v4396_v7 = vpop.permute.xlu0 %4395  ;;  %v9219_v1 = vld [vmem:[#allocation71_spill] sm:$0xff] }
 0xb06   : > { %v4436_v16 = vsel %vm3845_vm5, %v4420_v6, %v4324_v31  ;;  %v4162_v57 = vmul.f32 %v9211_v39, %v3867_v19  ;;  %v4242_v43 = vmul.f32 %v9212_v62, %v3867_v19  ;;  %v4435_v8 = vsel %vm3845_vm5, %v4419_v59, %v4323_v60  ;;  %v9217_v60 = vld [vmem:[#allocation23_spill] sm:$0xff]  ;;  %v9220_v31 = vld [vmem:[#allocation61_spill] sm:$0xff] }
 0xb07   : > { %v4407_v61 = vmul.f32 %v9213_v17, %v3872_v24  ;;  %v4452_v20 = vsel %vm3862_vm6, %v4436_v16, %v4404_v40  ;;  %v4322_v12 = vmul.f32 %v9214_v58, %v3867_v19  ;;  %v4439_v11 = vsel %vm3845_vm5, %v4423_v3, %v4327_v38 }
 0xb08   : > { %v4836_v48 = vpack.c.bf16 %v4453_v50, %v4452_v20  ;;  %v4402_v30 = vmul.f32 %v9215_v15, %v3867_v19  ;;  %v4418_v56 = vsel %vm820_vm0, %v4162_v57, %v4242_v43  ;;  %v4171_v32 = vmul.f32 %v8292_v25, %v8467_v45  ;;  %v9223_v19 = vld [vmem:[#allocation62_spill] sm:$0xff]  ;;  %v9226_v57 = vld [vmem:[#allocation161_spill] sm:$0xff] }
 0xb09   : > { %v3782_v42 = vpop.permute.xlu1 %3781  ;;  %v4251_v18 = vmul.f32 %v8194_v52, %v8467_v45  ;;  %v4434_v24 = vsel %vm3845_vm5, %v4418_v56, %v4322_v12  ;;  %v3878_v35 = vsel %vm3862_vm6, %v8337_v10, %v3828_v0  ;;  %v4451_v44 = vsel %vm3862_vm6, %v4435_v8, %v4403_v9  ;;  %v9221_v9 = vld [vmem:[#allocation51_spill] sm:$0xff]  ;;  %v9225_v0 = vld [vmem:[#allocation21_spill] sm:$0xff] }
 0xb0a   : > { %4860 = vst [vmem:[%s8426_s5 + $0x18] sm:$0xff] %v4836_v48   ;;  %v4450_v50 = vsel %vm3862_vm6, %v4434_v24, %v4402_v30  ;;  %v3823_v2 = vadd.f32 %v3786_v55, %v8377_v51  ;;  %v3821_v49 = vadd.f32 %v3782_v42, %v8380_v13  ;;  %v3747_v25 = vmul.f32 0.0, %v9216_v46  ;;  %v9224_v55 = vld [vmem:[#allocation119_spill] sm:$0xff]  ;;  %v9227_v12 = vld [vmem:[#allocation181_spill] sm:$0xff]  ;;  %v9228_v48 = vld [vmem:[#allocation182_spill] sm:$0xff] }
 0xb0b   : > { %v3745_v63 = vmul.f32 0.0, %v9217_v60  ;;  %v4455_v52 = vsel %vm3862_vm6, %v4439_v11, %v4407_v61  ;;  %v4831_v41 = vpack.c.bf16 %v4451_v44, %v4450_v50  ;;  %v4331_v10 = vmul.f32 %v8347_v33, %v8467_v45  ;;  %v9230_v24 = vld [vmem:[#allocation20_spill] sm:$0xff] }
 0xb0c   : > { %v4253_v47 = vmul.f32 %v9218_v53, %v3878_v35  ;;  %v3873_v28 = vsel %vm3862_vm6, %v8314_v4, %v3823_v2  ;;  %v3871_v51 = vsel %vm3862_vm6, %v8320_v36, %v3821_v49  ;;  %v4427_v13 = vsel %vm820_vm0, %v4171_v32, %v4251_v18  ;;  %v9229_v32 = vld [vmem:[#allocation89_spill] sm:$0xff] }
 0xb0d   : > { %v3794_v14 = vpop.permute.xlu1 %3793  ;;  %4859 = vst [vmem:[%s8426_s5 + $0x10] sm:$0xff] %v4831_v41   ;;  %v4168_v23 = vmul.f32 %v9219_v1, %v3873_v28  ;;  %v4248_v34 = vmul.f32 %v9220_v31, %v3873_v28  ;;  %v4328_v59 = vmul.f32 %v9221_v9, %v3873_v28  ;;  %v4173_v33 = vmul.f32 %v8244_v22, %v3878_v35 }
 0xb0e   : > { %v4166_v38 = vmul.f32 %v9222_v54, %v3871_v51  ;;  %v4246_v4 = vmul.f32 %v9223_v19, %v3871_v51  ;;  %v4326_v3 = vmul.f32 %v9224_v55, %v3871_v51  ;;  %v4333_v36 = vmul.f32 %v8269_v37, %v3878_v35 }
 0xb0f   : > { %v4408_v21 = vmul.f32 %v9225_v0, %v3873_v28  ;;  %v4424_v40 = vsel %vm820_vm0, %v4168_v23, %v4248_v34  ;;  %v3827_v6 = vadd.f32 %v3794_v14, %v3747_v25  ;;  %v4413_v16 = vmul.f32 %v4396_v7, %v3878_v35  ;;  %v9231_v35 = vld [vmem:[#allocation9_spill] sm:$0xff] }
 0xb10   : > { %v4440_v39 = vsel %vm3845_vm5, %v4424_v40, %v4328_v59  ;;  %v4406_v62 = vmul.f32 %v9226_v57, %v3871_v51  ;;  %v4422_v22 = vsel %vm820_vm0, %v4166_v38, %v4246_v4  ;;  %v4429_v30 = vsel %vm820_vm0, %v4173_v33, %v4253_v47 }
 0xb11   : > { %v3790_v43 = vpop.permute.xlu1 %3789  ;;  %v4456_v8 = vsel %vm3862_vm6, %v4440_v39, %v4408_v21  ;;  %v4438_v17 = vsel %vm3845_vm5, %v4422_v22, %v4326_v3  ;;  %v3877_v37 = vsel %vm3862_vm6, %v8333_v26, %v3827_v6  ;;  %v4411_v49 = vmul.f32 %v8234_v27, %v8467_v45 }
 0xb12   : > { %v3825_v61 = vadd.f32 %v3790_v43, %v3745_v63  ;;  %v4846_v20 = vpack.c.bf16 %v8414_v29, %v4456_v8  ;;  %v4454_v58 = vsel %vm3862_vm6, %v4438_v17, %v4406_v62  ;;  %v4172_v11 = vmul.f32 %v9227_v12, %v3877_v37  ;;  %v9232_v29 = vld [vmem:[#allocation80_spill] sm:$0xff]  ;;  %v9233_v63 = vld [vmem:[#allocation73_spill] sm:$0xff] }
 0xb13   : > { %v4252_v15 = vmul.f32 %v9228_v48, %v3877_v37  ;;  %v4841_v56 = vpack.c.bf16 %v4455_v52, %v4454_v58  ;;  %v4332_v18 = vmul.f32 %v9229_v32, %v3877_v37  ;;  %v4443_v46 = vsel %vm3845_vm5, %v4427_v13, %v4331_v10 }
 0xb14   : > { %v3875_v42 = vsel %vm3862_vm6, %v8341_v5, %v3825_v61  ;;  %4862 = vst [vmem:[%s8426_s5 + $0x28] sm:$0xff] %v4846_v20   ;;  %v4445_v60 = vsel %vm3845_vm5, %v4429_v30, %v4333_v36  ;;  %v4459_v10 = vsel %vm3862_vm6, %v4443_v46, %v4411_v49 }
 0xb15   : > { %v4170_v26 = vmul.f32 %v9230_v24, %v3875_v42  ;;  %v4250_v44 = vmul.f32 %v9231_v35, %v3875_v42  ;;  %v4330_v50 = vmul.f32 %v9232_v29, %v3875_v42  ;;  %v4392_v2 = vpop.permute.xlu1 %4391  ;;  %4861 = vst [vmem:[%s8426_s5 + $0x20] sm:$0xff] %v4841_v56   ;;  %v4428_v5 = vsel %vm820_vm0, %v4172_v11, %v4252_v15 }
 0xb16   : > { %v4412_v25 = vmul.f32 %v4392_v2, %v3877_v37  ;;  %v4410_v52 = vmul.f32 %v9233_v63, %v3875_v42  ;;  %v4444_v53 = vsel %vm3845_vm5, %v4428_v5, %v4332_v18  ;;  %v4461_v47 = vsel %vm3862_vm6, %v4445_v60, %v4413_v16 }
 0xb17   : > { %v4426_v41 = vsel %vm820_vm0, %v4170_v26, %v4250_v44 }
 0xb18   : > { %v4442_v27 = vsel %vm3845_vm5, %v4426_v41, %v4330_v50  ;;  %v4460_v45 = vsel %vm3862_vm6, %v4444_v53, %v4412_v25 }
 0xb19   : > { %v4458_v28 = vsel %vm3862_vm6, %v4442_v27, %v4410_v52  ;;  %v4856_v51 = vpack.c.bf16 %v4461_v47, %v4460_v45 }
 0xb1a   : > { %v4851_v14 = vpack.c.bf16 %v4459_v10, %v4458_v28 }
 0xb1b   : > { %4864 = vst [vmem:[%s8426_s5 + $0x38] sm:$0xff] %v4856_v51  }
 0xb1c   : > { %4863 = vst [vmem:[%s8426_s5 + $0x30] sm:$0xff] %v4851_v14  }
 0xb1d PF: > { %s13_s16 = sadd.s32 1, %s5791_s16   ;;  %s9234_s12 = smov %s5779_s13 }
 0xb1e   : > { %p10_p10 = scmp.ge.s32.totalorder %s13_s16, 4   ;;  %s9235_s13 = smov %s5861_s21 }
 0xb1f   : > { %s9236_s14 = smov %s5787_s15  ;;  %s9237_s15 = smov %s9239_s17 }
 0xb20   :  { %12 = sbr.rel (!%p10_p10) target bundleno = 3 (0x3), region = 214 }

// kernel: _lambda_.15
= control target key start
LH: loop header
LB: loop body
LE: loop exit
PB: predicated region body
PF: predicated region fallthrough
CT: control target
= control target key end

     0   :  { %s1664_s15 = smov 0   ;;  %s1666_s16 = smov 0   ;;  %s1882_s0 = inlined_call_operand.vmem [shape: bf16[256,512], index: 0, kind: input, shape index: {}]   ;;  %s1883_s1 = inlined_call_operand.vmem [shape: bf16[512,128], index: 1, kind: input, shape index: {}]   ;;  %s1884_s2 = inlined_call_operand.vmem [shape: f32[1,128], index: 2, kind: input, shape index: {}]   ;;  %s1885_s3 = inlined_call_operand.vmem [shape: bf16[256,128], index: 3, kind: input, shape index: {}]   ;;  %s1886_s4 = inlined_call_operand.vmem [shape: bf16[256,128], index: 4, kind: output, shape index: {}]  }
   0x1   :  { %s1668_s17 = smov 0  }
   0x2 LB: > { %s26_s18 = sadd.s32 1, %s1633_s16  ;;  %p1189_p0 = scmp.ge.s32.totalorder %s1637_s17, 1  ;;  %s1637_s17 = sphi %s1668_s17, %s14_s17   ;;  %s1633_s16 = sphi %s1666_s16, %s1888_s16   ;;  %s1629_s15 = sphi %s1664_s15, %s1887_s15  }
   0x3   : > { %p28_p1 = scmp.ge.s32.totalorder %s26_s18, 2  ;;  %p211_p2 = scmp.lt.s32.totalorder %s1637_s17, 3 }
   0x5   : > { %s1890_s18 = smov (%p28_p1, %s26_s18), 0  ;;  %p212_p3 = pnand %p1189_p0, %p211_p2 }
   0x6   : > { %s1190_s29 = sshll.u32 (!%p212_p3), %s1629_s15, 4 }
   0x7   : > { %215 = sbr.rel (%p212_p3) target bundleno = 312 (0x138), region = 36  ;;  %p257_p4 = scmp.lt.s32.totalorder (!%p212_p3), %s1190_s29, 31 }
   0xc   : > { %v1535_v0 = vld [vmem:[%s1883_s1 + $0x78] sm:$0xff]   ;;  %v1539_v4 = vld [vmem:[%s1883_s1 + $0x70] sm:$0xff]   ;;  %v1543_v8 = vld [vmem:[%s1883_s1 + $0x68] sm:$0xff]   ;;  %s1892_s29 = smov (!%p257_p4, %s1190_s29), 31 }
   0xd   : > { %v1536_v1 = vld [vmem:[%s1883_s1 + $0xf8] sm:$0xff]   ;;  %1383 = vmatprep.subr.bf16.mxu0 %v1535_v0  ;;  %v1540_v5 = vld [vmem:[%s1883_s1 + $0xf0] sm:$0xff]   ;;  %v1544_v9 = vld [vmem:[%s1883_s1 + $0xe8] sm:$0xff]   ;;  %s1280_s30 = sshll.u32 %s1892_s29, 4  ;;  %s1194_s21 = sshll.u32 %s1892_s29, 2 }
   0xe   : > { %v1537_v2 = vld [vmem:[%s1883_s1 + $0x38] sm:$0xff]   ;;  %1447 = vmatprep.subr.bf16.mxu1 %v1536_v1  ;;  %v1541_v6 = vld [vmem:[%s1883_s1 + $0x30] sm:$0xff]   ;;  %v1545_v10 = vld [vmem:[%s1883_s1 + $0x28] sm:$0xff]   ;;  %s1781_s12 = scalar_lea.vmem %s1882_s0, %s1280_s30  ;;  %s1832_s26 = scalar_lea.vmem %s1885_s3, %s1194_s21 }
   0xf   : > { %v1538_v3 = vld [vmem:[%s1883_s1 + $0xb8] sm:$0xff]   ;;  %1384 = vmatpush3.bf16.msra.mxu0 %v1537_v2  ;;  %v1542_v7 = vld [vmem:[%s1883_s1 + $0xb0] sm:$0xff]   ;;  %v1546_v11 = vld [vmem:[%s1883_s1 + $0xa8] sm:$0xff]   ;;  %s1844_s30 = scalar_lea.vmem %s1886_s4, %s1194_s21 }
  0x10   : > { %1448 = vmatpush3.bf16.msra.mxu1 %v1538_v3  ;;  %1385 = vmatprep.subr.bf16.mxu0 %v1539_v4  ;;  %v1547_v12 = vld [vmem:[%s1883_s1 + $0x60] sm:$0xff]   ;;  %v1551_v16 = vld [vmem:[%s1883_s1 + $0x58] sm:$0xff]   ;;  %v1555_v20 = vld [vmem:[%s1883_s1 + $0x50] sm:$0xff]  }
  0x11   : > { %1449 = vmatprep.subr.bf16.mxu1 %v1540_v5  ;;  %v1548_v13 = vld [vmem:[%s1883_s1 + $0xe0] sm:$0xff]   ;;  %v1552_v17 = vld [vmem:[%s1883_s1 + $0xd8] sm:$0xff]   ;;  %v1556_v21 = vld [vmem:[%s1883_s1 + $0xd0] sm:$0xff]  }
  0x12   : > { %v1549_v14 = vld [vmem:[%s1883_s1 + $0x20] sm:$0xff]   ;;  %v1553_v18 = vld [vmem:[%s1883_s1 + $0x18] sm:$0xff]   ;;  %v1557_v22 = vld [vmem:[%s1883_s1 + $0x10] sm:$0xff]  }
  0x13   : > { %1386 = vmatpush3.bf16.msra.mxu0 %v1541_v6  ;;  %v1550_v15 = vld [vmem:[%s1883_s1 + $0xa0] sm:$0xff]   ;;  %v1554_v19 = vld [vmem:[%s1883_s1 + $0x98] sm:$0xff]   ;;  %v1558_v23 = vld [vmem:[%s1883_s1 + $0x90] sm:$0xff]  }
  0x14   : > { %1450 = vmatpush3.bf16.msra.mxu1 %v1542_v7  ;;  %1387 = vmatprep.subr.bf16.mxu0 %v1543_v8  ;;  %v1559_v24 = vld [vmem:[%s1883_s1 + $0x48] sm:$0xff]   ;;  %v1563_v28 = vld [vmem:[%s1883_s1 + $0x40] sm:$0xff]  }
  0x15   : > { %1451 = vmatprep.subr.bf16.mxu1 %v1544_v9  ;;  %v1560_v25 = vld [vmem:[%s1883_s1 + $0xc8] sm:$0xff]   ;;  %v1564_v29 = vld [vmem:[%s1883_s1 + $0xc0] sm:$0xff]  }
  0x16   : > { %v1561_v26 = vld [vmem:[%s1883_s1 + $0x8] sm:$0xff]   ;;  %v1565_v30 = vld [vmem:[%s1883_s1] sm:$0xff]  }
  0x17   : > { %1388 = vmatpush3.bf16.msra.mxu0 %v1545_v10  ;;  %v1562_v27 = vld [vmem:[%s1883_s1 + $0x88] sm:$0xff]   ;;  %v1566_v31 = vld [vmem:[%s1883_s1 + $0x80] sm:$0xff]  }
  0x18   : > { %1452 = vmatpush3.bf16.msra.mxu1 %v1546_v11  ;;  %1389 = vmatprep.subr.bf16.mxu0 %v1547_v12  ;;  %v1567_v32 = vld [vmem:[%s1781_s12] ss:$16 sps:$4 sm:$0xff]   ;;  %v1569_v33 = vld [vmem:[%s1781_s12 + $0x4] ss:$16 sps:$4 sm:$0xff]   ;;  %v1570_v34 = vld [vmem:[%s1781_s12 + $0x8] ss:$16 sps:$4 sm:$0xff]  }
  0x19   : > { %1453 = vmatprep.subr.bf16.mxu1 %v1548_v13  ;;  %v1572_v35 = vld [vmem:[%s1781_s12 + $0xc] ss:$16 sps:$4 sm:$0xff]   ;;  %776 = vmatprep.mubr.bf16.mxu0 %v1569_v33  ;;  %v1573_v36 = vld [vmem:[%s1781_s12 + $0x24] ss:$16 sps:$4 sm:$0xff]   ;;  %v1577_v38 = vld [vmem:[%s1781_s12 + $0x20] ss:$16 sps:$4 sm:$0xff]  }
  0x1a   : > { %873 = vmatprep.mubr.bf16.mxu1 %v1572_v35  ;;  %v1575_v37 = vld [vmem:[%s1781_s12 + $0x2c] ss:$16 sps:$4 sm:$0xff]   ;;  %v1578_v39 = vld [vmem:[%s1781_s12 + $0x28] ss:$16 sps:$4 sm:$0xff]   ;;  %v1579_v40 = vld [vmem:[%s1781_s12 + $0x44] ss:$16 sps:$4 sm:$0xff]  }
  0x1b   : > { %1390 = vmatpush3.bf16.msra.mxu0 %v1549_v14  ;;  %v1581_v41 = vld [vmem:[%s1781_s12 + $0x4c] ss:$16 sps:$4 sm:$0xff]   ;;  %v1583_v42 = vld [vmem:[%s1781_s12 + $0x40] ss:$16 sps:$4 sm:$0xff]   ;;  %v1584_v43 = vld [vmem:[%s1781_s12 + $0x48] ss:$16 sps:$4 sm:$0xff]  }
  0x1c   : > { %1454 = vmatpush3.bf16.msra.mxu1 %v1550_v15  ;;  %1391 = vmatprep.subr.bf16.mxu0 %v1551_v16  ;;  %v1585_v44 = vld [vmem:[%s1781_s12 + $0x64] ss:$16 sps:$4 sm:$0xff]   ;;  %v1587_v45 = vld [vmem:[%s1781_s12 + $0x6c] ss:$16 sps:$4 sm:$0xff]   ;;  %v1589_v46 = vld [vmem:[%s1781_s12 + $0x60] ss:$16 sps:$4 sm:$0xff]  }
  0x1d   : > { %1455 = vmatprep.subr.bf16.mxu1 %v1552_v17  ;;  %v1590_v47 = vld [vmem:[%s1781_s12 + $0x68] ss:$16 sps:$4 sm:$0xff]   ;;  %v1591_v48 = vld [vmem:[%s1781_s12 + $0x84] ss:$16 sps:$4 sm:$0xff]   ;;  %v1593_v49 = vld [vmem:[%s1781_s12 + $0x8c] ss:$16 sps:$4 sm:$0xff]  }
  0x1e   : > { %v1595_v50 = vld [vmem:[%s1781_s12 + $0x80] ss:$16 sps:$4 sm:$0xff]   ;;  %v1596_v51 = vld [vmem:[%s1781_s12 + $0x88] ss:$16 sps:$4 sm:$0xff]   ;;  %v1597_v52 = vld [vmem:[%s1781_s12 + $0xa4] ss:$16 sps:$4 sm:$0xff]  }
  0x1f   : > { %1392 = vmatpush3.bf16.msra.mxu0 %v1553_v18  ;;  %v1599_v53 = vld [vmem:[%s1781_s12 + $0xac] ss:$16 sps:$4 sm:$0xff]   ;;  %v1601_v54 = vld [vmem:[%s1781_s12 + $0xa0] ss:$16 sps:$4 sm:$0xff]   ;;  %v1602_v55 = vld [vmem:[%s1781_s12 + $0xa8] ss:$16 sps:$4 sm:$0xff]  }
  0x20   : > { %1456 = vmatpush3.bf16.msra.mxu1 %v1554_v19  ;;  %1393 = vmatprep.subr.bf16.mxu0 %v1555_v20  ;;  %v1603_v56 = vld [vmem:[%s1781_s12 + $0xc4] ss:$16 sps:$4 sm:$0xff]   ;;  %v1605_v57 = vld [vmem:[%s1781_s12 + $0xcc] ss:$16 sps:$4 sm:$0xff]   ;;  %v1607_v58 = vld [vmem:[%s1781_s12 + $0xc0] ss:$16 sps:$4 sm:$0xff]  }
  0x21   : > { %1457 = vmatprep.subr.bf16.mxu1 %v1556_v21  ;;  %v1608_v59 = vld [vmem:[%s1781_s12 + $0xc8] ss:$16 sps:$4 sm:$0xff]   ;;  %v1609_v60 = vld [vmem:[%s1781_s12 + $0xe4] ss:$16 sps:$4 sm:$0xff]   ;;  %v1611_v61 = vld [vmem:[%s1781_s12 + $0xec] ss:$16 sps:$4 sm:$0xff]  }
  0x22   : > { %v1613_v62 = vld [vmem:[%s1781_s12 + $0xe0] ss:$16 sps:$4 sm:$0xff]   ;;  %v1614_v63 = vld [vmem:[%s1781_s12 + $0xe8] ss:$16 sps:$4 sm:$0xff]  }
  0x23   : > { %1394 = vmatpush3.bf16.msra.mxu0 %v1557_v22  ;;  %v1825_v2 = vld [vmem:[%s1884_s2] ss:$0 sm:$0xff] }
  0x24   : > { %1458 = vmatpush3.bf16.msra.mxu1 %v1558_v23  ;;  %1395 = vmatprep.subr.bf16.mxu0 %v1559_v24  ;;  %v1298_v8 = vld [vmem:[%s1832_s26] sm:$0xff]  }
  0x25   : > { %1459 = vmatprep.subr.bf16.mxu1 %v1560_v25  ;;  %v1299_v14 = vunpack.c.l.bf16 %v1298_v8  ;;  %v1300_v19 = vunpack.c.h.bf16 %v1298_v8 }
  0x27   : > { %1396 = vmatpush3.bf16.msra.mxu0 %v1561_v26 }
  0x28   : > { %1460 = vmatpush3.bf16.msra.mxu1 %v1562_v27  ;;  %1397 = vmatprep.subr.bf16.mxu0 %v1563_v28 }
  0x29   : > { %1461 = vmatprep.subr.bf16.mxu1 %v1564_v29  ;;  %v1369_v29 = vld [vmem:[%s1832_s26 + $0x8] sm:$0xff]  }
  0x2b   : > { %1398 = vmatpush3.bf16.msra.mxu0 %v1565_v30 }
  0x2c   : > { %1462 = vmatpush3.bf16.msra.mxu1 %v1566_v31 }
  0x2e   : > { %777 = vmatmul.mubr.bf16.vlgmr.msra.gmra.mxu0 %v1567_v32 }
  0x2f   : > { %874 = vmatmul.mubr.bf16.vlgmr.msra.gmra.mxu1 %v1570_v34  ;;  %784 = vmatprep.mubr.bf16.mxu0 %v1573_v36  ;;  %v1303_v36 = vunpack.c.l.bf16 %v1369_v29 }
  0x30   : > { %881 = vmatprep.mubr.bf16.mxu1 %v1575_v37 }
  0x36   : > { %785 = vmatmul.mubr.bf16.gmra.mxu0 %v1577_v38 }
  0x37   : > { %882 = vmatmul.mubr.bf16.gmra.mxu1 %v1578_v39  ;;  %792 = vmatprep.mubr.bf16.mxu0 %v1579_v40 }
  0x38   : > { %889 = vmatprep.mubr.bf16.mxu1 %v1581_v41  ;;  %v1304_v41 = vunpack.c.h.bf16 %v1369_v29 }
  0x3e   : > { %793 = vmatmul.mubr.bf16.gmra.mxu0 %v1583_v42 }
  0x3f   : > { %890 = vmatmul.mubr.bf16.gmra.mxu1 %v1584_v43  ;;  %800 = vmatprep.mubr.bf16.mxu0 %v1585_v44 }
  0x40   : > { %897 = vmatprep.mubr.bf16.mxu1 %v1587_v45 }
  0x46   : > { %801 = vmatmul.mubr.bf16.gmra.mxu0 %v1589_v46 }
  0x47   : > { %898 = vmatmul.mubr.bf16.gmra.mxu1 %v1590_v47  ;;  %808 = vmatprep.mubr.bf16.mxu0 %v1591_v48 }
  0x48   : > { %905 = vmatprep.mubr.bf16.mxu1 %v1593_v49 }
  0x4e   : > { %809 = vmatmul.mubr.bf16.gmra.mxu0 %v1595_v50 }
  0x4f   : > { %906 = vmatmul.mubr.bf16.gmra.mxu1 %v1596_v51  ;;  %816 = vmatprep.mubr.bf16.mxu0 %v1597_v52  ;;  %v1370_v51 = vld [vmem:[%s1832_s26 + $0x10] sm:$0xff]  }
  0x50   : > { %913 = vmatprep.mubr.bf16.mxu1 %v1599_v53 }
  0x56   : > { %817 = vmatmul.mubr.bf16.gmra.mxu0 %v1601_v54 }
  0x57   : > { %914 = vmatmul.mubr.bf16.gmra.mxu1 %v1602_v55  ;;  %824 = vmatprep.mubr.bf16.mxu0 %v1603_v56 }
  0x58   : > { %921 = vmatprep.mubr.bf16.mxu1 %v1605_v57 }
  0x5e   : > { %825 = vmatmul.mubr.bf16.gmra.mxu0 %v1607_v58  ;;  %v1307_v58 = vunpack.c.l.bf16 %v1370_v51 }
  0x5f   : > { %922 = vmatmul.mubr.bf16.gmra.mxu1 %v1608_v59  ;;  %832 = vmatprep.mubr.bf16.mxu0 %v1609_v60 }
  0x60   : > { %929 = vmatprep.mubr.bf16.mxu1 %v1611_v61 }
  0x66   : > { %833 = vmatmul.mubr.bf16.gmra.mxu0 %v1613_v62 }
  0x67   : > { %930 = vmatmul.mubr.bf16.gmra.mxu1 %v1614_v63  ;;  %v1308_v63 = vunpack.c.h.bf16 %v1370_v51 }
  0xee   : > { %v1399_v0 = vpop.f32.mrf.mxu0 }
  0xef   : > { %v1463_v1 = vpop.f32.mrf.mxu1 }
  0xf0   : > { %v1400_v3 = vpop.f32.mrf.mxu0 }
  0xf1   : > { %v1401_v4 = vadd.f32 %v1400_v3, %v1399_v0  ;;  %v1464_v5 = vpop.f32.mrf.mxu1 }
  0xf2   : > { %v1402_v6 = vpop.f32.mrf.mxu0  ;;  %v1465_v11 = vadd.f32 %v1464_v5, %v1463_v1 }
  0xf3   : > { %v779_v7 = vadd.f32 %v1401_v4, %v1825_v2  ;;  %v1466_v9 = vpop.f32.mrf.mxu1 }
  0xf4   : > { %v1403_v10 = vpop.f32.mrf.mxu0 }
  0xf5   : > { %v1404_v12 = vadd.f32 %v1403_v10, %v1402_v6  ;;  %v1467_v13 = vpop.f32.mrf.mxu1  ;;  %v876_v16 = vadd.f32 %v1465_v11, %v779_v7  ;;  %v1371_v10 = vld [vmem:[%s1832_s26 + $0x18] sm:$0xff]  }
  0xf6   : > { %v1405_v15 = vpop.f32.mrf.mxu0  ;;  %v1468_v18 = vadd.f32 %v1467_v13, %v1466_v9 }
  0xf7   : > { %v782_v17 = vadd.f32 %v1404_v12, %v1825_v2  ;;  %v1469_v20 = vpop.f32.mrf.mxu1  ;;  %v970_v26 = vadd.f32 %v1299_v14, %v876_v16 }
  0xf8   : > { %v1406_v21 = vpop.f32.mrf.mxu0 }
  0xf9   : > { %v879_v22 = vadd.f32 %v1468_v18, %v782_v17  ;;  %v1407_v23 = vadd.f32 %v1406_v21, %v1405_v15  ;;  %v1470_v24 = vpop.f32.mrf.mxu1  ;;  %v1311_v17 = vunpack.c.l.bf16 %v1371_v10 }
  0xfa   : > { %v1408_v25 = vpop.f32.mrf.mxu0  ;;  %v1471_v33 = vadd.f32 %v1470_v24, %v1469_v20 }
  0xfb   : > { %v971_v27 = vadd.f32 %v1300_v19, %v879_v22  ;;  %v787_v28 = vadd.f32 %v1407_v23, %v1825_v2  ;;  %v1472_v30 = vpop.f32.mrf.mxu1  ;;  %v1312_v22 = vunpack.c.h.bf16 %v1371_v10 }
  0xfc   : > { %v1409_v31 = vpop.f32.mrf.mxu0 }
  0xfd   : > { %v1332_v32 = vpack.c.bf16 %v971_v27, %v970_v26  ;;  %v1410_v34 = vadd.f32 %v1409_v31, %v1408_v25  ;;  %v1473_v35 = vpop.f32.mrf.mxu1  ;;  %v884_v38 = vadd.f32 %v1471_v33, %v787_v28 }
  0xfe   : > { %v1411_v37 = vpop.f32.mrf.mxu0  ;;  %v1474_v40 = vadd.f32 %v1473_v35, %v1472_v30 }
  0xff   : > { %1333 = vst [vmem:[%s1844_s30] sm:$0xff] %v1332_v32   ;;  %v790_v39 = vadd.f32 %v1410_v34, %v1825_v2  ;;  %v1475_v42 = vpop.f32.mrf.mxu1  ;;  %v972_v48 = vadd.f32 %v1303_v36, %v884_v38  ;;  %v1372_v32 = vld [vmem:[%s1832_s26 + $0x20] sm:$0xff]  }
 0x100   : > { %v1412_v43 = vpop.f32.mrf.mxu0 }
 0x101   : > { %v887_v44 = vadd.f32 %v1474_v40, %v790_v39  ;;  %v1413_v45 = vadd.f32 %v1412_v43, %v1411_v37  ;;  %v1476_v46 = vpop.f32.mrf.mxu1  ;;  %v1315_v39 = vunpack.c.l.bf16 %v1372_v32 }
 0x102   : > { %v1414_v47 = vpop.f32.mrf.mxu0  ;;  %v1477_v55 = vadd.f32 %v1476_v46, %v1475_v42 }
 0x103   : > { %v973_v49 = vadd.f32 %v1304_v41, %v887_v44  ;;  %v795_v50 = vadd.f32 %v1413_v45, %v1825_v2  ;;  %v1478_v52 = vpop.f32.mrf.mxu1  ;;  %v1316_v44 = vunpack.c.h.bf16 %v1372_v32 }
 0x104   : > { %v1415_v53 = vpop.f32.mrf.mxu0 }
 0x105   : > { %v1337_v54 = vpack.c.bf16 %v973_v49, %v972_v48  ;;  %v1416_v56 = vadd.f32 %v1415_v53, %v1414_v47  ;;  %v1479_v57 = vpop.f32.mrf.mxu1  ;;  %v892_v60 = vadd.f32 %v1477_v55, %v795_v50 }
 0x106   : > { %v1417_v59 = vpop.f32.mrf.mxu0  ;;  %v1480_v62 = vadd.f32 %v1479_v57, %v1478_v52 }
 0x107   : > { %1376 = vst [vmem:[%s1844_s30 + $0x8] sm:$0xff] %v1337_v54   ;;  %v798_v61 = vadd.f32 %v1416_v56, %v1825_v2  ;;  %v1481_v0 = vpop.f32.mrf.mxu1  ;;  %v974_v7 = vadd.f32 %v1307_v58, %v892_v60  ;;  %v1373_v54 = vld [vmem:[%s1832_s26 + $0x28] sm:$0xff]  }
 0x108   : > { %v1418_v1 = vpop.f32.mrf.mxu0 }
 0x109   : > { %v895_v3 = vadd.f32 %v1480_v62, %v798_v61  ;;  %v1419_v4 = vadd.f32 %v1418_v1, %v1417_v59  ;;  %v1482_v5 = vpop.f32.mrf.mxu1  ;;  %v1319_v61 = vunpack.c.l.bf16 %v1373_v54 }
 0x10a   : > { %v1420_v6 = vpop.f32.mrf.mxu0  ;;  %v1483_v14 = vadd.f32 %v1482_v5, %v1481_v0 }
 0x10b   : > { %v975_v8 = vadd.f32 %v1308_v63, %v895_v3  ;;  %v803_v9 = vadd.f32 %v1419_v4, %v1825_v2  ;;  %v1484_v11 = vpop.f32.mrf.mxu1  ;;  %v1320_v3 = vunpack.c.h.bf16 %v1373_v54 }
 0x10c   : > { %v1421_v12 = vpop.f32.mrf.mxu0 }
 0x10d   : > { %v1342_v13 = vpack.c.bf16 %v975_v8, %v974_v7  ;;  %v1422_v15 = vadd.f32 %v1421_v12, %v1420_v6  ;;  %v1485_v16 = vpop.f32.mrf.mxu1  ;;  %v900_v19 = vadd.f32 %v1483_v14, %v803_v9 }
 0x10e   : > { %v1423_v18 = vpop.f32.mrf.mxu0  ;;  %v1486_v21 = vadd.f32 %v1485_v16, %v1484_v11 }
 0x10f   : > { %1377 = vst [vmem:[%s1844_s30 + $0x10] sm:$0xff] %v1342_v13   ;;  %v806_v20 = vadd.f32 %v1422_v15, %v1825_v2  ;;  %v1487_v23 = vpop.f32.mrf.mxu1  ;;  %v976_v29 = vadd.f32 %v1311_v17, %v900_v19  ;;  %v1374_v13 = vld [vmem:[%s1832_s26 + $0x30] sm:$0xff]  }
 0x110   : > { %v1424_v24 = vpop.f32.mrf.mxu0 }
 0x111   : > { %v903_v25 = vadd.f32 %v1486_v21, %v806_v20  ;;  %v1425_v26 = vadd.f32 %v1424_v24, %v1423_v18  ;;  %v1488_v27 = vpop.f32.mrf.mxu1  ;;  %v1323_v20 = vunpack.c.l.bf16 %v1374_v13 }
 0x112   : > { %v1426_v28 = vpop.f32.mrf.mxu0  ;;  %v1489_v36 = vadd.f32 %v1488_v27, %v1487_v23 }
 0x113   : > { %v977_v30 = vadd.f32 %v1312_v22, %v903_v25  ;;  %v811_v31 = vadd.f32 %v1425_v26, %v1825_v2  ;;  %v1490_v33 = vpop.f32.mrf.mxu1  ;;  %v1324_v25 = vunpack.c.h.bf16 %v1374_v13 }
 0x114   : > { %v1427_v34 = vpop.f32.mrf.mxu0 }
 0x115   : > { %v1347_v35 = vpack.c.bf16 %v977_v30, %v976_v29  ;;  %v1428_v37 = vadd.f32 %v1427_v34, %v1426_v28  ;;  %v1491_v38 = vpop.f32.mrf.mxu1  ;;  %v908_v41 = vadd.f32 %v1489_v36, %v811_v31 }
 0x116   : > { %v1429_v40 = vpop.f32.mrf.mxu0  ;;  %v1492_v43 = vadd.f32 %v1491_v38, %v1490_v33 }
 0x117   : > { %1378 = vst [vmem:[%s1844_s30 + $0x18] sm:$0xff] %v1347_v35   ;;  %v814_v42 = vadd.f32 %v1428_v37, %v1825_v2  ;;  %v1493_v45 = vpop.f32.mrf.mxu1  ;;  %v978_v51 = vadd.f32 %v1315_v39, %v908_v41  ;;  %v1375_v35 = vld [vmem:[%s1832_s26 + $0x38] sm:$0xff]  }
 0x118   : > { %v1430_v46 = vpop.f32.mrf.mxu0 }
 0x119   : > { %v911_v47 = vadd.f32 %v1492_v43, %v814_v42  ;;  %v1431_v48 = vadd.f32 %v1430_v46, %v1429_v40  ;;  %v1494_v49 = vpop.f32.mrf.mxu1  ;;  %v1327_v42 = vunpack.c.l.bf16 %v1375_v35  ;;  %v1328_v46 = vunpack.c.h.bf16 %v1375_v35 }
 0x11a   : > { %v1432_v50 = vpop.f32.mrf.mxu0  ;;  %v1495_v58 = vadd.f32 %v1494_v49, %v1493_v45 }
 0x11b   : > { %v979_v52 = vadd.f32 %v1316_v44, %v911_v47  ;;  %v819_v53 = vadd.f32 %v1431_v48, %v1825_v2  ;;  %v1496_v55 = vpop.f32.mrf.mxu1 }
 0x11c   : > { %v1433_v56 = vpop.f32.mrf.mxu0 }
 0x11d   : > { %v1352_v57 = vpack.c.bf16 %v979_v52, %v978_v51  ;;  %v1434_v59 = vadd.f32 %v1433_v56, %v1432_v50  ;;  %v1497_v60 = vpop.f32.mrf.mxu1  ;;  %v916_v63 = vadd.f32 %v1495_v58, %v819_v53 }
 0x11e   : > { %v1435_v62 = vpop.f32.mrf.mxu0  ;;  %v1498_v1 = vadd.f32 %v1497_v60, %v1496_v55 }
 0x11f   : > { %1379 = vst [vmem:[%s1844_s30 + $0x20] sm:$0xff] %v1352_v57   ;;  %v822_v0 = vadd.f32 %v1434_v59, %v1825_v2  ;;  %v1499_v4 = vpop.f32.mrf.mxu1  ;;  %v980_v10 = vadd.f32 %v1319_v61, %v916_v63 }
 0x120   : > { %v1436_v5 = vpop.f32.mrf.mxu0 }
 0x121   : > { %v919_v6 = vadd.f32 %v1498_v1, %v822_v0  ;;  %v1437_v7 = vadd.f32 %v1436_v5, %v1435_v62  ;;  %v1500_v8 = vpop.f32.mrf.mxu1 }
 0x122   : > { %v1438_v9 = vpop.f32.mrf.mxu0  ;;  %v1501_v17 = vadd.f32 %v1500_v8, %v1499_v4 }
 0x123   : > { %v981_v11 = vadd.f32 %v1320_v3, %v919_v6  ;;  %v827_v12 = vadd.f32 %v1437_v7, %v1825_v2  ;;  %v1502_v14 = vpop.f32.mrf.mxu1 }
 0x124   : > { %v1439_v15 = vpop.f32.mrf.mxu0 }
 0x125   : > { %v1357_v16 = vpack.c.bf16 %v981_v11, %v980_v10  ;;  %v1440_v18 = vadd.f32 %v1439_v15, %v1438_v9  ;;  %v1503_v19 = vpop.f32.mrf.mxu1  ;;  %v924_v22 = vadd.f32 %v1501_v17, %v827_v12 }
 0x126   : > { %v1441_v21 = vpop.f32.mrf.mxu0  ;;  %v1504_v24 = vadd.f32 %v1503_v19, %v1502_v14 }
 0x127   : > { %1380 = vst [vmem:[%s1844_s30 + $0x28] sm:$0xff] %v1357_v16   ;;  %v830_v23 = vadd.f32 %v1440_v18, %v1825_v2  ;;  %v1505_v26 = vpop.f32.mrf.mxu1  ;;  %v982_v32 = vadd.f32 %v1323_v20, %v924_v22 }
 0x128   : > { %v1442_v27 = vpop.f32.mrf.mxu0 }
 0x129   : > { %v927_v28 = vadd.f32 %v1504_v24, %v830_v23  ;;  %v1443_v29 = vadd.f32 %v1442_v27, %v1441_v21  ;;  %v1506_v30 = vpop.f32.mrf.mxu1 }
 0x12a   : > { %v1444_v31 = vpop.f32.mrf.mxu0  ;;  %v1507_v39 = vadd.f32 %v1506_v30, %v1505_v26 }
 0x12b   : > { %v983_v33 = vadd.f32 %v1324_v25, %v927_v28  ;;  %v835_v34 = vadd.f32 %v1443_v29, %v1825_v2  ;;  %v1508_v36 = vpop.f32.mrf.mxu1 }
 0x12c   : > { %v1445_v37 = vpop.f32.mrf.mxu0 }
 0x12d   : > { %v1362_v38 = vpack.c.bf16 %v983_v33, %v982_v32  ;;  %v1446_v40 = vadd.f32 %v1445_v37, %v1444_v31  ;;  %v1509_v41 = vpop.f32.mrf.mxu1  ;;  %v932_v43 = vadd.f32 %v1507_v39, %v835_v34 }
 0x12e   : > { %v1510_v45 = vadd.f32 %v1509_v41, %v1508_v36 }
 0x12f   : > { %1381 = vst [vmem:[%s1844_s30 + $0x30] sm:$0xff] %v1362_v38   ;;  %v838_v44 = vadd.f32 %v1446_v40, %v1825_v2  ;;  %v984_v48 = vadd.f32 %v1327_v42, %v932_v43 }
 0x131   : > { %v935_v47 = vadd.f32 %v1510_v45, %v838_v44 }
 0x133   : > { %v985_v49 = vadd.f32 %v1328_v46, %v935_v47 }
 0x135   : > { %v1367_v50 = vpack.c.bf16 %v985_v49, %v984_v48 }
 0x137   : > { %1382 = vst [vmem:[%s1844_s30 + $0x38] sm:$0xff] %v1367_v50  }
 0x138 PF: > { %s14_s17 = sadd.s32 1, %s1637_s17   ;;  %s1887_s15 = smov %s1633_s16 }
 0x139   : > { %p11_p5 = scmp.ge.s32.totalorder %s14_s17, 4   ;;  %s1888_s16 = smov %s1890_s18 }
 0x13b   :  { %13 = sbr.rel (!%p11_p5) target bundleno = 2 (0x2), region = 75 }

</bundles_post_ra>
